<compile_context>
chip_gen: v5e
topology: v5e:2x2
jax: 0.10.0
libtpu: 0.0.40
codegen_flags: <defaults>
</compile_context>

<pallas_src>
import functools

import jax
import jax.numpy as jnp
from jax.experimental import pallas as pl
from jax.experimental.pallas import tpu as pltpu


# ----------------------------- Pallas kernel -------------------------------

def _matmul_bias_act_kernel(x_ref, w_ref, b_ref, o_ref, *, activation):
    # MXU matmul: bf16 operands, f32 accumulate.
    acc = jnp.dot(x_ref[...], w_ref[...], preferred_element_type=jnp.float32)
    acc = acc + b_ref[...]                      # (TM, Np) + (1, Np) broadcast, f32
    if activation == "relu":
        acc = jnp.maximum(acc, 0.0)
    elif activation == "sigmoid":
        # Numerically stable sigmoid, stays in [0, 1]; exp goes to the EUP slot.
        z = jnp.exp(-jnp.abs(acc))
        acc = jnp.where(acc >= 0.0, 1.0 / (1.0 + z), z / (1.0 + z))
    o_ref[...] = acc.astype(o_ref.dtype)


def _round_up(x, m):
    return (x + m - 1) // m * m


def matmul_bias_act(x, w, b, activation="none"):
    """y = act(x @ w + b). x:(M,K) f32, w:(K,N) f32, b:(N,) f32 -> (M,N) f32.

    K and N are zero-padded to multiples of 128 (lane-dense MXU operands and
    unmasked output stores); M is tiled with TM<=512 and the M axis is marked
    'parallel' for megacore sharding.
    """
    M, K = x.shape
    K2, N = w.shape
    assert K == K2
    Kp = _round_up(K, 128)
    Np = _round_up(N, 128)
    TM = 512 if M > 512 else _round_up(M, 8)
    Mp = _round_up(M, TM)
    grid_m = Mp // TM

    xp = jnp.pad(x.astype(jnp.bfloat16), ((0, Mp - M), (0, Kp - K)))
    wp = jnp.pad(w.astype(jnp.bfloat16), ((0, Kp - K), (0, Np - N)))
    bp = jnp.pad(b.astype(jnp.float32), (0, Np - N)).reshape(1, Np)

    out = pl.pallas_call(
        functools.partial(_matmul_bias_act_kernel, activation=activation),
        out_shape=jax.ShapeDtypeStruct((Mp, Np), jnp.float32),
        grid=(grid_m,),
        in_specs=[
            pl.BlockSpec((TM, Kp), lambda i: (i, 0)),
            pl.BlockSpec((Kp, Np), lambda i: (0, 0)),
            pl.BlockSpec((1, Np), lambda i: (0, 0)),
        ],
        out_specs=pl.BlockSpec((TM, Np), lambda i: (i, 0)),
        compiler_params=pltpu.CompilerParams(
            dimension_semantics=("parallel",),
            vmem_limit_bytes=32 * 1024 * 1024,
        ),
    )(xp, wp, bp)
    return out[:M, :N]


# ------------------------------- JAX glue -----------------------------------
# Channels-last (NHWC) everywhere between layers; pooling / upsampling are
# plain reshape ops that XLA fuses (no lane-sparse Pallas calls).

def im2col_nhwc(x, K):
    """Valid-conv patches for NHWC input; feature order (ki, kj, c)."""
    B, H, W, C = x.shape
    OH, OW = H - K + 1, W - K + 1
    cols = [x[:, ki:ki + OH, kj:kj + OW, :] for ki in range(K) for kj in range(K)]
    p = jnp.concatenate(cols, axis=-1)           # (B, OH, OW, K*K*C)
    return p.reshape(B * OH * OW, K * K * C), (B, OH, OW)


def conv2d_nhwc(x, w, b, activation):
    """x NHWC, w torch Conv2d layout (Cout, Cin, K, K), stride 1, no padding."""
    Cout, Cin, K, _ = w.shape
    patches, (B, OH, OW) = im2col_nhwc(x, K)
    wm = jnp.transpose(w, (2, 3, 1, 0)).reshape(K * K * Cin, Cout)   # rows (ki,kj,cin)
    out = matmul_bias_act(patches, wm, b, activation)
    return out.reshape(B, OH, OW, Cout)


def conv_transpose2d_nhwc(x, w, b, activation):
    """x NHWC, w torch ConvTranspose2d layout (Cin, Cout, K, K), stride 1, pad 0.
    Equivalent to a full-padded conv with spatially-flipped, channel-swapped weights."""
    Cin, Cout, K, _ = w.shape
    wm = jnp.flip(w, axis=(2, 3)).transpose(2, 3, 0, 1).reshape(K * K * Cin, Cout)
    x_pad = jnp.pad(x, ((0, 0), (K - 1, K - 1), (K - 1, K - 1), (0, 0)))
    patches, (B, OH, OW) = im2col_nhwc(x_pad, K)
    out = matmul_bias_act(patches, wm, b, activation)
    return out.reshape(B, OH, OW, Cout)


def maxpool2x2_nhwc(x):
    B, H, W, C = x.shape
    return x.reshape(B, H // 2, 2, W // 2, 2, C).max(axis=(2, 4))


def upsample2x_nhwc(x):
    return jnp.repeat(jnp.repeat(x, 2, axis=1), 2, axis=2)


# ------------------------------ Parameters ----------------------------------

def init_params(key, vec_size):
    def uni(k, shape, fan_in):
        bound = 1.0 / float(fan_in) ** 0.5
        return jax.random.uniform(k, shape, jnp.float32, -bound, bound)

    ks = jax.random.split(key, 10)
    fc_in = 16 * 5 * 5 + vec_size
    return {
        "conv1_w": uni(ks[0], (6, 3, 5, 5), 3 * 25),
        "conv1_b": uni(ks[1], (6,), 3 * 25),
        "conv2_w": uni(ks[2], (16, 6, 5, 5), 6 * 25),
        "conv2_b": uni(ks[3], (16,), 6 * 25),
        "fc1_w": uni(ks[4], (fc_in, 400), fc_in),            # stored as (in, out)
        "fc1_b": uni(ks[5], (400,), fc_in),
        "deconv1_w": uni(ks[6], (16, 6, 5, 5), 6 * 25),      # torch (Cin, Cout, K, K)
        "deconv1_b": uni(ks[7], (6,), 6 * 25),
        "deconv2_w": uni(ks[8], (6, 3, 5, 5), 3 * 25),
        "deconv2_b": uni(ks[9], (3,), 3 * 25),
    }


# ------------------------------- Forward ------------------------------------

def marker_forward(params, img, vecs):
    x = jnp.transpose(img, (0, 2, 3, 1))                                 # NCHW -> NHWC (B,32,32,3)
    x = conv2d_nhwc(x, params["conv1_w"], params["conv1_b"], "relu")     # (B,28,28,6)
    x = maxpool2x2_nhwc(x)                                               # (B,14,14,6)
    x = conv2d_nhwc(x, params["conv2_w"], params["conv2_b"], "relu")     # (B,10,10,16)
    x = maxpool2x2_nhwc(x)                                               # (B,5,5,16)
    B = x.shape[0]
    # Flatten in NCHW (c,h,w) order to match torch .view(-1, 16*5*5).
    flat = jnp.transpose(x, (0, 3, 1, 2)).reshape(B, 16 * 5 * 5)         # (B,400)
    h = jnp.concatenate([vecs, flat], axis=1)                            # (B, vec+400)
    # TODO(synk): fc1 could be fused with the flatten/concat into one pallas_call
    # to amortize dispatch overhead at tiny batch sizes.
    h = matmul_bias_act(h, params["fc1_w"], params["fc1_b"], "relu")     # (B,400)
    x = h.reshape(B, 16, 5, 5).transpose(0, 2, 3, 1)                     # NHWC (B,5,5,16)
    x = upsample2x_nhwc(x)                                               # (B,10,10,16)
    x = conv_transpose2d_nhwc(x, params["deconv1_w"], params["deconv1_b"], "relu")    # (B,14,14,6)
    x = upsample2x_nhwc(x)                                               # (B,28,28,6)
    x = conv_transpose2d_nhwc(x, params["deconv2_w"], params["deconv2_b"], "sigmoid")  # (B,32,32,3)
    return jnp.transpose(x, (0, 3, 1, 2))                                # NCHW (B,3,32,32)


if __name__ == "__main__":
    vec_size = 8
    B = 2
    key = jax.random.PRNGKey(0)
    k_img, k_vec = jax.random.split(key)
    img = jax.random.uniform(k_img, (B, 3, 32, 32), jnp.float32)
    vecs = jax.random.normal(k_vec, (B, vec_size), jnp.float32)
    params = init_params(jax.random.PRNGKey(42), vec_size)

    out = jax.jit(marker_forward)(params, img, vecs)
    out = jax.block_until_ready(out)
    assert out.shape == (B, 3, 32, 32), out.shape
    assert bool(jnp.all((out >= 0.0) & (out <= 1.0)))   # sigmoid output range
    print("KERNEL_OK")
</pallas_src>

<mosaic_0001>
module attributes {stable_mosaic.version = 11 : i64} {
  func.func @_matmul_bias_act_kernel(%arg0: i32, %arg1: memref<512x128xbf16, #tpu.memory_space<vmem>>, %arg2: memref<128x128xbf16, #tpu.memory_space<vmem>>, %arg3: memref<1x128xf32, #tpu.memory_space<vmem>>, %arg4: memref<512x128xf32, #tpu.memory_space<vmem>>) attributes {dimension_semantics = [#tpu.dimension_semantics<parallel>], iteration_bounds = array<i64: 4>, scalar_prefetch = 0 : i64, scratch_operands = 0 : i64, tpu.core_type = #tpu.core_type<tc>, window_params = [{transform_indices = @transform_0, window_bounds = array<i64: 512, 128>}, {pipeline_mode = #tpu.pipeline_mode<synchronous>, transform_indices = @transform_1, window_bounds = array<i64: 128, 128>}, {pipeline_mode = #tpu.pipeline_mode<synchronous>, transform_indices = @transform_2, window_bounds = array<i64: 1, 128>}, {transform_indices = @transform_3, window_bounds = array<i64: 512, 128>}]} {
    %c0 = arith.constant 0 : index
    %c0_0 = arith.constant 0 : index
    %0 = vector.load %arg1[%c0, %c0_0] : memref<512x128xbf16, #tpu.memory_space<vmem>>, vector<512x128xbf16>
    %c0_1 = arith.constant 0 : index
    %c0_2 = arith.constant 0 : index
    %1 = vector.load %arg2[%c0_1, %c0_2] : memref<128x128xbf16, #tpu.memory_space<vmem>>, vector<128x128xbf16>
    %cst = arith.constant dense<0.000000e+00> : vector<512x128xf32>
    %2 = tpu.matmul %0, %1, %cst {dimension_numbers = #tpu.dot_dimension_numbers<[1], [0], [0], [1], [0, 0, 1, 1], [], []>} : vector<512x128xbf16>, vector<128x128xbf16>, vector<512x128xf32> -> vector<512x128xf32>
    %c0_3 = arith.constant 0 : index
    %c0_4 = arith.constant 0 : index
    %3 = vector.load %arg3[%c0_3, %c0_4] : memref<1x128xf32, #tpu.memory_space<vmem>>, vector<1x128xf32>
    %4 = vector.broadcast %3 : vector<1x128xf32> to vector<512x128xf32>
    %5 = arith.addf %2, %4 : vector<512x128xf32>
    %cst_5 = arith.constant 0.000000e+00 : f32
    %6 = vector.broadcast %cst_5 : f32 to vector<512x128xf32>
    %7 = arith.maximumf %5, %6 : vector<512x128xf32>
    %c0_6 = arith.constant 0 : index
    %c0_7 = arith.constant 0 : index
    %8 = vector.load %arg4[%c0_6, %c0_7] : memref<512x128xf32, #tpu.memory_space<vmem>>, vector<512x128xf32>
    tpu.vector_store %arg4[%c0_6, %c0_7], %7 {strides = array<i32>} : memref<512x128xf32, #tpu.memory_space<vmem>>, vector<512x128xf32>,
    return
  }
  func.func @transform_0(%arg0: i32) -> (i32, i32) {
    %c0_i32 = arith.constant 0 : i32
    %c0_i32_0 = arith.constant 0 : i32
    return %arg0, %c0_i32 : i32, i32
  }
  func.func @transform_1(%arg0: i32) -> (i32, i32) {
    %c0_i32 = arith.constant 0 : i32
    %c0_i32_0 = arith.constant 0 : i32
    %c0_i32_1 = arith.constant 0 : i32
    return %c0_i32, %c0_i32_0 : i32, i32
  }
  func.func @transform_2(%arg0: i32) -> (i32, i32) {
    %c0_i32 = arith.constant 0 : i32
    %c0_i32_0 = arith.constant 0 : i32
    %c0_i32_1 = arith.constant 0 : i32
    return %c0_i32, %c0_i32_0 : i32, i32
  }
  func.func @transform_3(%arg0: i32) -> (i32, i32) {
    %c0_i32 = arith.constant 0 : i32
    %c0_i32_0 = arith.constant 0 : i32
    return %arg0, %c0_i32 : i32, i32
  }
}

module attributes {stable_mosaic.version = 11 : i64} {
  func.func @_matmul_bias_act_kernel(%arg0: i32, %arg1: memref<200x256xbf16, #tpu.memory_space<vmem>>, %arg2: memref<256x128xbf16, #tpu.memory_space<vmem>>, %arg3: memref<1x128xf32, #tpu.memory_space<vmem>>, %arg4: memref<200x128xf32, #tpu.memory_space<vmem>>) attributes {dimension_semantics = [#tpu.dimension_semantics<parallel>], iteration_bounds = array<i64: 1>, scalar_prefetch = 0 : i64, scratch_operands = 0 : i64, tpu.core_type = #tpu.core_type<tc>, window_params = [{transform_indices = @transform_0, window_bounds = array<i64: 200, 256>}, {pipeline_mode = #tpu.pipeline_mode<synchronous>, transform_indices = @transform_1, window_bounds = array<i64: 256, 128>}, {pipeline_mode = #tpu.pipeline_mode<synchronous>, transform_indices = @transform_2, window_bounds = array<i64: 1, 128>}, {transform_indices = @transform_3, window_bounds = array<i64: 200, 128>}]} {
    %c0 = arith.constant 0 : index
    %c0_0 = arith.constant 0 : index
    %0 = vector.load %arg1[%c0, %c0_0] : memref<200x256xbf16, #tpu.memory_space<vmem>>, vector<200x256xbf16>
    %c0_1 = arith.constant 0 : index
    %c0_2 = arith.constant 0 : index
    %1 = vector.load %arg2[%c0_1, %c0_2] : memref<256x128xbf16, #tpu.memory_space<vmem>>, vector<256x128xbf16>
    %cst = arith.constant dense<0.000000e+00> : vector<200x128xf32>
    %2 = tpu.matmul %0, %1, %cst {dimension_numbers = #tpu.dot_dimension_numbers<[1], [0], [0], [1], [0, 0, 1, 1], [], []>} : vector<200x256xbf16>, vector<256x128xbf16>, vector<200x128xf32> -> vector<200x128xf32>
    %c0_3 = arith.constant 0 : index
    %c0_4 = arith.constant 0 : index
    %3 = vector.load %arg3[%c0_3, %c0_4] : memref<1x128xf32, #tpu.memory_space<vmem>>, vector<1x128xf32>
    %4 = vector.broadcast %3 : vector<1x128xf32> to vector<200x128xf32>
    %5 = arith.addf %2, %4 : vector<200x128xf32>
    %cst_5 = arith.constant 0.000000e+00 : f32
    %6 = vector.broadcast %cst_5 : f32 to vector<200x128xf32>
    %7 = arith.maximumf %5, %6 : vector<200x128xf32>
    %c0_6 = arith.constant 0 : index
    %c0_7 = arith.constant 0 : index
    %8 = vector.load %arg4[%c0_6, %c0_7] : memref<200x128xf32, #tpu.memory_space<vmem>>, vector<200x128xf32>
    tpu.vector_store %arg4[%c0_6, %c0_7], %7 {strides = array<i32>} : memref<200x128xf32, #tpu.memory_space<vmem>>, vector<200x128xf32>,
    return
  }
  func.func @transform_0(%arg0: i32) -> (i32, i32) {
    %c0_i32 = arith.constant 0 : i32
    %c0_i32_0 = arith.constant 0 : i32
    return %arg0, %c0_i32 : i32, i32
  }
  func.func @transform_1(%arg0: i32) -> (i32, i32) {
    %c0_i32 = arith.constant 0 : i32
    %c0_i32_0 = arith.constant 0 : i32
    %c0_i32_1 = arith.constant 0 : i32
    return %c0_i32, %c0_i32_0 : i32, i32
  }
  func.func @transform_2(%arg0: i32) -> (i32, i32) {
    %c0_i32 = arith.constant 0 : i32
    %c0_i32_0 = arith.constant 0 : i32
    %c0_i32_1 = arith.constant 0 : i32
    return %c0_i32, %c0_i32_0 : i32, i32
  }
  func.func @transform_3(%arg0: i32) -> (i32, i32) {
    %c0_i32 = arith.constant 0 : i32
    %c0_i32_0 = arith.constant 0 : i32
    return %arg0, %c0_i32 : i32, i32
  }
}

module attributes {stable_mosaic.version = 11 : i64} {
  func.func @_matmul_bias_act_kernel(%arg0: i32, %arg1: memref<8x512xbf16, #tpu.memory_space<vmem>>, %arg2: memref<512x512xbf16, #tpu.memory_space<vmem>>, %arg3: memref<1x512xf32, #tpu.memory_space<vmem>>, %arg4: memref<8x512xf32, #tpu.memory_space<vmem>>) attributes {dimension_semantics = [#tpu.dimension_semantics<parallel>], iteration_bounds = array<i64: 1>, scalar_prefetch = 0 : i64, scratch_operands = 0 : i64, tpu.core_type = #tpu.core_type<tc>, window_params = [{transform_indices = @transform_0, window_bounds = array<i64: 8, 512>}, {pipeline_mode = #tpu.pipeline_mode<synchronous>, transform_indices = @transform_1, window_bounds = array<i64: 512, 512>}, {pipeline_mode = #tpu.pipeline_mode<synchronous>, transform_indices = @transform_2, window_bounds = array<i64: 1, 512>}, {transform_indices = @transform_3, window_bounds = array<i64: 8, 512>}]} {
    %c0 = arith.constant 0 : index
    %c0_0 = arith.constant 0 : index
    %0 = vector.load %arg1[%c0, %c0_0] : memref<8x512xbf16, #tpu.memory_space<vmem>>, vector<8x512xbf16>
    %c0_1 = arith.constant 0 : index
    %c0_2 = arith.constant 0 : index
    %1 = vector.load %arg2[%c0_1, %c0_2] : memref<512x512xbf16, #tpu.memory_space<vmem>>, vector<512x512xbf16>
    %cst = arith.constant dense<0.000000e+00> : vector<8x512xf32>
    %2 = tpu.matmul %0, %1, %cst {dimension_numbers = #tpu.dot_dimension_numbers<[1], [0], [0], [1], [0, 0, 1, 1], [], []>} : vector<8x512xbf16>, vector<512x512xbf16>, vector<8x512xf32> -> vector<8x512xf32>
    %c0_3 = arith.constant 0 : index
    %c0_4 = arith.constant 0 : index
    %3 = vector.load %arg3[%c0_3, %c0_4] : memref<1x512xf32, #tpu.memory_space<vmem>>, vector<1x512xf32>
    %4 = vector.broadcast %3 : vector<1x512xf32> to vector<8x512xf32>
    %5 = arith.addf %2, %4 : vector<8x512xf32>
    %cst_5 = arith.constant 0.000000e+00 : f32
    %6 = vector.broadcast %cst_5 : f32 to vector<8x512xf32>
    %7 = arith.maximumf %5, %6 : vector<8x512xf32>
    %c0_6 = arith.constant 0 : index
    %c0_7 = arith.constant 0 : index
    %8 = vector.load %arg4[%c0_6, %c0_7] : memref<8x512xf32, #tpu.memory_space<vmem>>, vector<8x512xf32>
    tpu.vector_store %arg4[%c0_6, %c0_7], %7 {strides = array<i32>} : memref<8x512xf32, #tpu.memory_space<vmem>>, vector<8x512xf32>,
    return
  }
  func.func @transform_0(%arg0: i32) -> (i32, i32) {
    %c0_i32 = arith.constant 0 : i32
    %c0_i32_0 = arith.constant 0 : i32
    return %arg0, %c0_i32 : i32, i32
  }
  func.func @transform_1(%arg0: i32) -> (i32, i32) {
    %c0_i32 = arith.constant 0 : i32
    %c0_i32_0 = arith.constant 0 : i32
    %c0_i32_1 = arith.constant 0 : i32
    return %c0_i32, %c0_i32_0 : i32, i32
  }
  func.func @transform_2(%arg0: i32) -> (i32, i32) {
    %c0_i32 = arith.constant 0 : i32
    %c0_i32_0 = arith.constant 0 : i32
    %c0_i32_1 = arith.constant 0 : i32
    return %c0_i32, %c0_i32_0 : i32, i32
  }
  func.func @transform_3(%arg0: i32) -> (i32, i32) {
    %c0_i32 = arith.constant 0 : i32
    %c0_i32_0 = arith.constant 0 : i32
    return %arg0, %c0_i32 : i32, i32
  }
}

module attributes {stable_mosaic.version = 11 : i64} {
  func.func @_matmul_bias_act_kernel(%arg0: i32, %arg1: memref<392x512xbf16, #tpu.memory_space<vmem>>, %arg2: memref<512x128xbf16, #tpu.memory_space<vmem>>, %arg3: memref<1x128xf32, #tpu.memory_space<vmem>>, %arg4: memref<392x128xf32, #tpu.memory_space<vmem>>) attributes {dimension_semantics = [#tpu.dimension_semantics<parallel>], iteration_bounds = array<i64: 1>, scalar_prefetch = 0 : i64, scratch_operands = 0 : i64, tpu.core_type = #tpu.core_type<tc>, window_params = [{transform_indices = @transform_0, window_bounds = array<i64: 392, 512>}, {pipeline_mode = #tpu.pipeline_mode<synchronous>, transform_indices = @transform_1, window_bounds = array<i64: 512, 128>}, {pipeline_mode = #tpu.pipeline_mode<synchronous>, transform_indices = @transform_2, window_bounds = array<i64: 1, 128>}, {transform_indices = @transform_3, window_bounds = array<i64: 392, 128>}]} {
    %c0 = arith.constant 0 : index
    %c0_0 = arith.constant 0 : index
    %0 = vector.load %arg1[%c0, %c0_0] : memref<392x512xbf16, #tpu.memory_space<vmem>>, vector<392x512xbf16>
    %c0_1 = arith.constant 0 : index
    %c0_2 = arith.constant 0 : index
    %1 = vector.load %arg2[%c0_1, %c0_2] : memref<512x128xbf16, #tpu.memory_space<vmem>>, vector<512x128xbf16>
    %cst = arith.constant dense<0.000000e+00> : vector<392x128xf32>
    %2 = tpu.matmul %0, %1, %cst {dimension_numbers = #tpu.dot_dimension_numbers<[1], [0], [0], [1], [0, 0, 1, 1], [], []>} : vector<392x512xbf16>, vector<512x128xbf16>, vector<392x128xf32> -> vector<392x128xf32>
    %c0_3 = arith.constant 0 : index
    %c0_4 = arith.constant 0 : index
    %3 = vector.load %arg3[%c0_3, %c0_4] : memref<1x128xf32, #tpu.memory_space<vmem>>, vector<1x128xf32>
    %4 = vector.broadcast %3 : vector<1x128xf32> to vector<392x128xf32>
    %5 = arith.addf %2, %4 : vector<392x128xf32>
    %cst_5 = arith.constant 0.000000e+00 : f32
    %6 = vector.broadcast %cst_5 : f32 to vector<392x128xf32>
    %7 = arith.maximumf %5, %6 : vector<392x128xf32>
    %c0_6 = arith.constant 0 : index
    %c0_7 = arith.constant 0 : index
    %8 = vector.load %arg4[%c0_6, %c0_7] : memref<392x128xf32, #tpu.memory_space<vmem>>, vector<392x128xf32>
    tpu.vector_store %arg4[%c0_6, %c0_7], %7 {strides = array<i32>} : memref<392x128xf32, #tpu.memory_space<vmem>>, vector<392x128xf32>,
    return
  }
  func.func @transform_0(%arg0: i32) -> (i32, i32) {
    %c0_i32 = arith.constant 0 : i32
    %c0_i32_0 = arith.constant 0 : i32
    return %arg0, %c0_i32 : i32, i32
  }
  func.func @transform_1(%arg0: i32) -> (i32, i32) {
    %c0_i32 = arith.constant 0 : i32
    %c0_i32_0 = arith.constant 0 : i32
    %c0_i32_1 = arith.constant 0 : i32
    return %c0_i32, %c0_i32_0 : i32, i32
  }
  func.func @transform_2(%arg0: i32) -> (i32, i32) {
    %c0_i32 = arith.constant 0 : i32
    %c0_i32_0 = arith.constant 0 : i32
    %c0_i32_1 = arith.constant 0 : i32
    return %c0_i32, %c0_i32_0 : i32, i32
  }
  func.func @transform_3(%arg0: i32) -> (i32, i32) {
    %c0_i32 = arith.constant 0 : i32
    %c0_i32_0 = arith.constant 0 : i32
    return %arg0, %c0_i32 : i32, i32
  }
}

module attributes {stable_mosaic.version = 11 : i64} {
  func.func @_matmul_bias_act_kernel(%arg0: i32, %arg1: memref<512x256xbf16, #tpu.memory_space<vmem>>, %arg2: memref<256x128xbf16, #tpu.memory_space<vmem>>, %arg3: memref<1x128xf32, #tpu.memory_space<vmem>>, %arg4: memref<512x128xf32, #tpu.memory_space<vmem>>) attributes {dimension_semantics = [#tpu.dimension_semantics<parallel>], iteration_bounds = array<i64: 4>, scalar_prefetch = 0 : i64, scratch_operands = 0 : i64, tpu.core_type = #tpu.core_type<tc>, window_params = [{transform_indices = @transform_0, window_bounds = array<i64: 512, 256>}, {pipeline_mode = #tpu.pipeline_mode<synchronous>, transform_indices = @transform_1, window_bounds = array<i64: 256, 128>}, {pipeline_mode = #tpu.pipeline_mode<synchronous>, transform_indices = @transform_2, window_bounds = array<i64: 1, 128>}, {transform_indices = @transform_3, window_bounds = array<i64: 512, 128>}]} {
    %c0 = arith.constant 0 : index
    %c0_0 = arith.constant 0 : index
    %0 = vector.load %arg1[%c0, %c0_0] : memref<512x256xbf16, #tpu.memory_space<vmem>>, vector<512x256xbf16>
    %c0_1 = arith.constant 0 : index
    %c0_2 = arith.constant 0 : index
    %1 = vector.load %arg2[%c0_1, %c0_2] : memref<256x128xbf16, #tpu.memory_space<vmem>>, vector<256x128xbf16>
    %cst = arith.constant dense<0.000000e+00> : vector<512x128xf32>
    %2 = tpu.matmul %0, %1, %cst {dimension_numbers = #tpu.dot_dimension_numbers<[1], [0], [0], [1], [0, 0, 1, 1], [], []>} : vector<512x256xbf16>, vector<256x128xbf16>, vector<512x128xf32> -> vector<512x128xf32>
    %c0_3 = arith.constant 0 : index
    %c0_4 = arith.constant 0 : index
    %3 = vector.load %arg3[%c0_3, %c0_4] : memref<1x128xf32, #tpu.memory_space<vmem>>, vector<1x128xf32>
    %4 = vector.broadcast %3 : vector<1x128xf32> to vector<512x128xf32>
    %5 = arith.addf %2, %4 : vector<512x128xf32>
    %6 = math.absf %5 : vector<512x128xf32>
    %cst_5 = arith.constant 0.000000e+00 : f32
    %7 = vector.broadcast %cst_5 : f32 to vector<512x128xf32>
    %8 = arith.subf %7, %6 : vector<512x128xf32>
    %9 = math.exp %8 : vector<512x128xf32>
    %cst_6 = arith.constant 0.000000e+00 : f32
    %10 = vector.broadcast %cst_6 : f32 to vector<512x128xf32>
    %11 = arith.cmpf oge, %5, %10 : vector<512x128xf32>
    %cst_7 = arith.constant 1.000000e+00 : f32
    %12 = vector.broadcast %cst_7 : f32 to vector<512x128xf32>
    %13 = arith.addf %12, %9 : vector<512x128xf32>
    %cst_8 = arith.constant 1.000000e+00 : f32
    %14 = vector.broadcast %cst_8 : f32 to vector<512x128xf32>
    %15 = arith.divf %14, %13 : vector<512x128xf32>
    %cst_9 = arith.constant 1.000000e+00 : f32
    %16 = vector.broadcast %cst_9 : f32 to vector<512x128xf32>
    %17 = arith.addf %16, %9 : vector<512x128xf32>
    %18 = arith.divf %9, %17 : vector<512x128xf32>
    %19 = arith.select %11, %15, %18 : vector<512x128xi1>, vector<512x128xf32>
    %c0_10 = arith.constant 0 : index
    %c0_11 = arith.constant 0 : index
    %20 = vector.load %arg4[%c0_10, %c0_11] : memref<512x128xf32, #tpu.memory_space<vmem>>, vector<512x128xf32>
    tpu.vector_store %arg4[%c0_10, %c0_11], %19 {strides = array<i32>} : memref<512x128xf32, #tpu.memory_space<vmem>>, vector<512x128xf32>,
    return
  }
  func.func @transform_0(%arg0: i32) -> (i32, i32) {
    %c0_i32 = arith.constant 0 : i32
    %c0_i32_0 = arith.constant 0 : i32
    return %arg0, %c0_i32 : i32, i32
  }
  func.func @transform_1(%arg0: i32) -> (i32, i32) {
    %c0_i32 = arith.constant 0 : i32
    %c0_i32_0 = arith.constant 0 : i32
    %c0_i32_1 = arith.constant 0 : i32
    return %c0_i32, %c0_i32_0 : i32, i32
  }
  func.func @transform_2(%arg0: i32) -> (i32, i32) {
    %c0_i32 = arith.constant 0 : i32
    %c0_i32_0 = arith.constant 0 : i32
    %c0_i32_1 = arith.constant 0 : i32
    return %c0_i32, %c0_i32_0 : i32, i32
  }
  func.func @transform_3(%arg0: i32) -> (i32, i32) {
    %c0_i32 = arith.constant 0 : i32
    %c0_i32_0 = arith.constant 0 : i32
    return %arg0, %c0_i32 : i32, i32
  }
}

</mosaic_0001>

<bundles_post_ra>
// kernel: marker_forward.5
= control target key start
LH: loop header
LB: loop body
LE: loop exit
PB: predicated region body
PF: predicated region fallthrough
CT: control target
= control target key end

     0   :  { %s1123_s12 = smov 0   ;;  %s1337_s0 = inlined_call_operand.vmem [shape: bf16[2048,128], index: 0, kind: input, shape index: {}]   ;;  %s1338_s1 = inlined_call_operand.vmem [shape: bf16[128,128], index: 1, kind: input, shape index: {}]   ;;  %s1339_s2 = inlined_call_operand.vmem [shape: f32[1,128], index: 2, kind: input, shape index: {}]   ;;  %s1340_s3 = inlined_call_operand.vmem [shape: f32[2048,128], index: 3, kind: output, shape index: {}]  }
   0x1 LB: > { %s851_s13 = sadd.s32 4294967295, %s1101_s12   ;;  %p855_p0 = scmp.ge.s32.totalorder %s1101_s12, 1  ;;  %s1101_s12 = sphi %s1123_s12, %s13_s12  }
   0x2   : > { %p138_p1 = scmp.lt.s32.totalorder %s1101_s12, 5 }
   0x4   : > { %p139_p2 = pnand %p855_p0, %p138_p1 }
   0x5   : > { %s856_s22 = sshll.u32 (!%p139_p2), %s851_s13, 6 }
   0x6   : > { %142 = sbr.rel (%p139_p2) target bundleno = 302 (0x12e), region = 32  ;;  %p163_p3 = scmp.lt.s32.totalorder (!%p139_p2), %s856_s22, 255 }
   0xb   : > { %v1061_v0 = vld [vmem:[%s1338_s1 + $0x38] sm:$0xff]  ;;  %v1060_v1 = vld [vmem:[%s1338_s1 + $0x30] sm:$0xff]  ;;  %v1059_v2 = vld [vmem:[%s1338_s1 + $0x28] sm:$0xff]  ;;  %s1342_s22 = smov (!%p163_p3, %s856_s22), 255 }
   0xc   : > { %498 = vmatpush.bf16.msra.mxu0 %v1061_v0  ;;  %1062 = vmatpush.bf16.msra.mxu1 %v1061_v0  ;;  %v1058_v3 = vld [vmem:[%s1338_s1 + $0x20] sm:$0xff]  ;;  %v1057_v4 = vld [vmem:[%s1338_s1 + $0x18] sm:$0xff]  ;;  %v1056_v5 = vld [vmem:[%s1338_s1 + $0x10] sm:$0xff]  ;;  %s857_s29 = sshll.u32 %s1342_s22, 2  ;;  %s859_s10 = sshll.u32 %s1342_s22, 3 }
   0xd   : > { %1063 = vmatpush.bf16.msra.mxu2 %v1061_v0  ;;  %1064 = vmatpush.bf16.msra.mxu3 %v1061_v0  ;;  %v1055_v6 = vld [vmem:[%s1338_s1 + $0x8] sm:$0xff]  ;;  %v1054_v7 = vld [vmem:[%s1338_s1] sm:$0xff]  ;;  %s1161_s7 = scalar_lea.vmem %s1337_s0, %s857_s29  ;;  %s1206_s14 = scalar_lea.vmem %s1340_s3, %s859_s10 }
   0xe   : > { %v1022_v8 = vld [vmem:[%s1161_s7] sm:$0xff]  ;;  %v1023_v12 = vld [vmem:[%s1161_s7 + $0x8] sm:$0xff]  ;;  %v1024_v16 = vld [vmem:[%s1161_s7 + $0x10] sm:$0xff] }
   0xf   : > { %v1030_v9 = vld [vmem:[%s1161_s7 + $0x40] sm:$0xff]  ;;  %v1031_v13 = vld [vmem:[%s1161_s7 + $0x48] sm:$0xff]  ;;  %v1032_v17 = vld [vmem:[%s1161_s7 + $0x50] sm:$0xff] }
  0x10   : > { %499 = vmatpush.bf16.msra.mxu0 %v1060_v1  ;;  %1065 = vmatpush.bf16.msra.mxu1 %v1060_v1  ;;  %v1038_v10 = vld [vmem:[%s1161_s7 + $0x80] sm:$0xff]  ;;  %v1039_v14 = vld [vmem:[%s1161_s7 + $0x88] sm:$0xff]  ;;  %v1040_v18 = vld [vmem:[%s1161_s7 + $0x90] sm:$0xff] }
  0x11   : > { %1066 = vmatpush.bf16.msra.mxu2 %v1060_v1  ;;  %1067 = vmatpush.bf16.msra.mxu3 %v1060_v1  ;;  %v1046_v11 = vld [vmem:[%s1161_s7 + $0xc0] sm:$0xff]  ;;  %v1047_v15 = vld [vmem:[%s1161_s7 + $0xc8] sm:$0xff]  ;;  %v1048_v19 = vld [vmem:[%s1161_s7 + $0xd0] sm:$0xff] }
  0x12   : > { %v1025_v20 = vld [vmem:[%s1161_s7 + $0x18] sm:$0xff]  ;;  %v1026_v24 = vld [vmem:[%s1161_s7 + $0x20] sm:$0xff]  ;;  %v1027_v28 = vld [vmem:[%s1161_s7 + $0x28] sm:$0xff] }
  0x13   : > { %v1033_v21 = vld [vmem:[%s1161_s7 + $0x58] sm:$0xff]  ;;  %v1034_v25 = vld [vmem:[%s1161_s7 + $0x60] sm:$0xff]  ;;  %v1035_v29 = vld [vmem:[%s1161_s7 + $0x68] sm:$0xff] }
  0x14   : > { %500 = vmatpush.bf16.msra.mxu0 %v1059_v2  ;;  %1068 = vmatpush.bf16.msra.mxu1 %v1059_v2  ;;  %v1041_v22 = vld [vmem:[%s1161_s7 + $0x98] sm:$0xff]  ;;  %v1042_v26 = vld [vmem:[%s1161_s7 + $0xa0] sm:$0xff]  ;;  %v1043_v30 = vld [vmem:[%s1161_s7 + $0xa8] sm:$0xff] }
  0x15   : > { %1069 = vmatpush.bf16.msra.mxu2 %v1059_v2  ;;  %1070 = vmatpush.bf16.msra.mxu3 %v1059_v2  ;;  %v1049_v23 = vld [vmem:[%s1161_s7 + $0xd8] sm:$0xff]  ;;  %v1050_v27 = vld [vmem:[%s1161_s7 + $0xe0] sm:$0xff]  ;;  %v1051_v31 = vld [vmem:[%s1161_s7 + $0xe8] sm:$0xff] }
  0x16   : > { %v1028_v32 = vld [vmem:[%s1161_s7 + $0x30] sm:$0xff]  ;;  %v1029_v36 = vld [vmem:[%s1161_s7 + $0x38] sm:$0xff]  ;;  %v1198_v40 = vld [vmem:[%s1339_s2] ss:$0 sm:$0xff] }
  0x17   : > { %v1036_v33 = vld [vmem:[%s1161_s7 + $0x70] sm:$0xff]  ;;  %v1037_v37 = vld [vmem:[%s1161_s7 + $0x78] sm:$0xff] }
  0x18   : > { %501 = vmatpush.bf16.msra.mxu0 %v1058_v3  ;;  %1071 = vmatpush.bf16.msra.mxu1 %v1058_v3  ;;  %v1044_v34 = vld [vmem:[%s1161_s7 + $0xb0] sm:$0xff]  ;;  %v1045_v38 = vld [vmem:[%s1161_s7 + $0xb8] sm:$0xff] }
  0x19   : > { %1072 = vmatpush.bf16.msra.mxu2 %v1058_v3  ;;  %1073 = vmatpush.bf16.msra.mxu3 %v1058_v3  ;;  %v1052_v35 = vld [vmem:[%s1161_s7 + $0xf0] sm:$0xff]  ;;  %v1053_v39 = vld [vmem:[%s1161_s7 + $0xf8] sm:$0xff] }
  0x1c   : > { %502 = vmatpush.bf16.msra.mxu0 %v1057_v4  ;;  %1074 = vmatpush.bf16.msra.mxu1 %v1057_v4 }
  0x1d   : > { %1075 = vmatpush.bf16.msra.mxu2 %v1057_v4  ;;  %1076 = vmatpush.bf16.msra.mxu3 %v1057_v4 }
  0x20   : > { %503 = vmatpush.bf16.msra.mxu0 %v1056_v5  ;;  %1077 = vmatpush.bf16.msra.mxu1 %v1056_v5 }
  0x21   : > { %1078 = vmatpush.bf16.msra.mxu2 %v1056_v5  ;;  %1079 = vmatpush.bf16.msra.mxu3 %v1056_v5 }
  0x24   : > { %504 = vmatpush.bf16.msra.mxu0 %v1055_v6  ;;  %1080 = vmatpush.bf16.msra.mxu1 %v1055_v6 }
  0x25   : > { %1081 = vmatpush.bf16.msra.mxu2 %v1055_v6  ;;  %1082 = vmatpush.bf16.msra.mxu3 %v1055_v6 }
  0x28   : > { %505 = vmatpush.bf16.msra.mxu0 %v1054_v7  ;;  %1083 = vmatpush.bf16.msra.mxu1 %v1054_v7 }
  0x29   : > { %1084 = vmatpush.bf16.msra.mxu2 %v1054_v7  ;;  %1085 = vmatpush.bf16.msra.mxu3 %v1054_v7 }
  0x2b   : > { %506 = vmatmul.bf16.vlgmr.msra.gmra.mxu0 %v1022_v8  ;;  %546 = vmatmul.bf16.vlgmr.msra.gmra.mxu1 %v1030_v9 }
  0x2c   : > { %586 = vmatmul.bf16.vlgmr.msra.gmra.mxu2 %v1038_v10  ;;  %626 = vmatmul.bf16.vlgmr.msra.gmra.mxu3 %v1046_v11 }
  0x3b   : > { %511 = vmatmul.bf16.gmra.mxu0 %v1023_v12  ;;  %551 = vmatmul.bf16.gmra.mxu1 %v1031_v13 }
  0x3c   : > { %591 = vmatmul.bf16.gmra.mxu2 %v1039_v14  ;;  %631 = vmatmul.bf16.gmra.mxu3 %v1047_v15 }
  0x4b   : > { %516 = vmatmul.bf16.gmra.mxu0 %v1024_v16  ;;  %556 = vmatmul.bf16.gmra.mxu1 %v1032_v17 }
  0x4c   : > { %596 = vmatmul.bf16.gmra.mxu2 %v1040_v18  ;;  %636 = vmatmul.bf16.gmra.mxu3 %v1048_v19 }
  0x5b   : > { %521 = vmatmul.bf16.gmra.mxu0 %v1025_v20  ;;  %561 = vmatmul.bf16.gmra.mxu1 %v1033_v21 }
  0x5c   : > { %601 = vmatmul.bf16.gmra.mxu2 %v1041_v22  ;;  %641 = vmatmul.bf16.gmra.mxu3 %v1049_v23 }
  0x6b   : > { %526 = vmatmul.bf16.gmra.mxu0 %v1026_v24  ;;  %566 = vmatmul.bf16.gmra.mxu1 %v1034_v25 }
  0x6c   : > { %606 = vmatmul.bf16.gmra.mxu2 %v1042_v26  ;;  %646 = vmatmul.bf16.gmra.mxu3 %v1050_v27 }
  0x7b   : > { %531 = vmatmul.bf16.gmra.mxu0 %v1027_v28  ;;  %571 = vmatmul.bf16.gmra.mxu1 %v1035_v29 }
  0x7c   : > { %611 = vmatmul.bf16.gmra.mxu2 %v1043_v30  ;;  %651 = vmatmul.bf16.gmra.mxu3 %v1051_v31 }
  0x8b   : > { %536 = vmatmul.bf16.gmra.mxu0 %v1028_v32  ;;  %576 = vmatmul.bf16.gmra.mxu1 %v1036_v33 }
  0x8c   : > { %616 = vmatmul.bf16.gmra.mxu2 %v1044_v34  ;;  %656 = vmatmul.bf16.gmra.mxu3 %v1052_v35 }
  0x9b   : > { %541 = vmatmul.bf16.gmra.mxu0 %v1029_v36  ;;  %581 = vmatmul.bf16.gmra.mxu1 %v1037_v37 }
  0x9c   : > { %621 = vmatmul.bf16.gmra.mxu2 %v1045_v38  ;;  %661 = vmatmul.bf16.gmra.mxu3 %v1053_v39 }
  0xa8   : > { %v507_v41 = vpop.f32.mrf.mxu0  ;;  %v547_v42 = vpop.f32.mrf.mxu1 }
  0xa9   : > { %v508_v43 = vadd.f32 %v1198_v40, %v507_v41  ;;  %v548_v44 = vadd.f32 %v1198_v40, %v547_v42 }
  0xab   : > { %v667_v45 = vmax.f32 %v508_v43, 0.0  ;;  %v683_v46 = vmax.f32 %v548_v44, 0.0 }
  0xad   : > { %731 = vst [vmem:[%s1206_s14] sm:$0xff] %v667_v45 }
  0xae   : > { %747 = vst [vmem:[%s1206_s14 + $0x80] sm:$0xff] %v683_v46 }
  0xaf   : > { %v587_v47 = vpop.f32.mrf.mxu2  ;;  %v627_v48 = vpop.f32.mrf.mxu3 }
  0xb0   : > { %v588_v49 = vadd.f32 %v1198_v40, %v587_v47  ;;  %v628_v50 = vadd.f32 %v1198_v40, %v627_v48  ;;  %v509_v51 = vpop.f32.mrf.mxu0  ;;  %v549_v52 = vpop.f32.mrf.mxu1 }
  0xb1   : > { %v510_v53 = vadd.f32 %v1198_v40, %v509_v51  ;;  %v550_v54 = vadd.f32 %v1198_v40, %v549_v52 }
  0xb2   : > { %v699_v55 = vmax.f32 %v588_v49, 0.0  ;;  %v715_v56 = vmax.f32 %v628_v50, 0.0 }
  0xb3   : > { %v668_v57 = vmax.f32 %v510_v53, 0.0  ;;  %v684_v58 = vmax.f32 %v550_v54, 0.0 }
  0xb4   : > { %763 = vst [vmem:[%s1206_s14 + $0x100] sm:$0xff] %v699_v55 }
  0xb5   : > { %779 = vst [vmem:[%s1206_s14 + $0x180] sm:$0xff] %v715_v56 }
  0xb6   : > { %732 = vst [vmem:[%s1206_s14 + $0x8] sm:$0xff] %v668_v57 }
  0xb7   : > { %748 = vst [vmem:[%s1206_s14 + $0x88] sm:$0xff] %v684_v58  ;;  %v589_v59 = vpop.f32.mrf.mxu2  ;;  %v629_v60 = vpop.f32.mrf.mxu3 }
  0xb8   : > { %v590_v61 = vadd.f32 %v1198_v40, %v589_v59  ;;  %v630_v62 = vadd.f32 %v1198_v40, %v629_v60  ;;  %v512_v63 = vpop.f32.mrf.mxu0  ;;  %v552_v0 = vpop.f32.mrf.mxu1 }
  0xb9   : > { %v513_v1 = vadd.f32 %v1198_v40, %v512_v63  ;;  %v553_v2 = vadd.f32 %v1198_v40, %v552_v0 }
  0xba   : > { %v700_v3 = vmax.f32 %v590_v61, 0.0  ;;  %v716_v4 = vmax.f32 %v630_v62, 0.0 }
  0xbb   : > { %v669_v5 = vmax.f32 %v513_v1, 0.0  ;;  %v685_v6 = vmax.f32 %v553_v2, 0.0 }
  0xbc   : > { %764 = vst [vmem:[%s1206_s14 + $0x108] sm:$0xff] %v700_v3 }
  0xbd   : > { %780 = vst [vmem:[%s1206_s14 + $0x188] sm:$0xff] %v716_v4 }
  0xbe   : > { %733 = vst [vmem:[%s1206_s14 + $0x10] sm:$0xff] %v669_v5 }
  0xbf   : > { %749 = vst [vmem:[%s1206_s14 + $0x90] sm:$0xff] %v685_v6  ;;  %v592_v7 = vpop.f32.mrf.mxu2  ;;  %v632_v8 = vpop.f32.mrf.mxu3 }
  0xc0   : > { %v593_v9 = vadd.f32 %v1198_v40, %v592_v7  ;;  %v633_v10 = vadd.f32 %v1198_v40, %v632_v8  ;;  %v514_v11 = vpop.f32.mrf.mxu0  ;;  %v554_v12 = vpop.f32.mrf.mxu1 }
  0xc1   : > { %v515_v13 = vadd.f32 %v1198_v40, %v514_v11  ;;  %v555_v14 = vadd.f32 %v1198_v40, %v554_v12 }
  0xc2   : > { %v701_v15 = vmax.f32 %v593_v9, 0.0  ;;  %v717_v16 = vmax.f32 %v633_v10, 0.0 }
  0xc3   : > { %v670_v17 = vmax.f32 %v515_v13, 0.0  ;;  %v686_v18 = vmax.f32 %v555_v14, 0.0 }
  0xc4   : > { %765 = vst [vmem:[%s1206_s14 + $0x110] sm:$0xff] %v701_v15 }
  0xc5   : > { %781 = vst [vmem:[%s1206_s14 + $0x190] sm:$0xff] %v717_v16 }
  0xc6   : > { %734 = vst [vmem:[%s1206_s14 + $0x18] sm:$0xff] %v670_v17 }
  0xc7   : > { %750 = vst [vmem:[%s1206_s14 + $0x98] sm:$0xff] %v686_v18  ;;  %v594_v19 = vpop.f32.mrf.mxu2  ;;  %v634_v20 = vpop.f32.mrf.mxu3 }
  0xc8   : > { %v595_v21 = vadd.f32 %v1198_v40, %v594_v19  ;;  %v635_v22 = vadd.f32 %v1198_v40, %v634_v20  ;;  %v517_v23 = vpop.f32.mrf.mxu0  ;;  %v557_v24 = vpop.f32.mrf.mxu1 }
  0xc9   : > { %v518_v25 = vadd.f32 %v1198_v40, %v517_v23  ;;  %v558_v26 = vadd.f32 %v1198_v40, %v557_v24 }
  0xca   : > { %v702_v27 = vmax.f32 %v595_v21, 0.0  ;;  %v718_v28 = vmax.f32 %v635_v22, 0.0 }
  0xcb   : > { %v671_v29 = vmax.f32 %v518_v25, 0.0  ;;  %v687_v30 = vmax.f32 %v558_v26, 0.0 }
  0xcc   : > { %766 = vst [vmem:[%s1206_s14 + $0x118] sm:$0xff] %v702_v27 }
  0xcd   : > { %782 = vst [vmem:[%s1206_s14 + $0x198] sm:$0xff] %v718_v28 }
  0xce   : > { %735 = vst [vmem:[%s1206_s14 + $0x20] sm:$0xff] %v671_v29 }
  0xcf   : > { %751 = vst [vmem:[%s1206_s14 + $0xa0] sm:$0xff] %v687_v30  ;;  %v597_v31 = vpop.f32.mrf.mxu2  ;;  %v637_v32 = vpop.f32.mrf.mxu3 }
  0xd0   : > { %v598_v33 = vadd.f32 %v1198_v40, %v597_v31  ;;  %v638_v34 = vadd.f32 %v1198_v40, %v637_v32  ;;  %v519_v35 = vpop.f32.mrf.mxu0  ;;  %v559_v36 = vpop.f32.mrf.mxu1 }
  0xd1   : > { %v520_v37 = vadd.f32 %v1198_v40, %v519_v35  ;;  %v560_v38 = vadd.f32 %v1198_v40, %v559_v36 }
  0xd2   : > { %v703_v39 = vmax.f32 %v598_v33, 0.0  ;;  %v719_v41 = vmax.f32 %v638_v34, 0.0 }
  0xd3   : > { %v672_v42 = vmax.f32 %v520_v37, 0.0  ;;  %v688_v43 = vmax.f32 %v560_v38, 0.0 }
  0xd4   : > { %767 = vst [vmem:[%s1206_s14 + $0x120] sm:$0xff] %v703_v39 }
  0xd5   : > { %783 = vst [vmem:[%s1206_s14 + $0x1a0] sm:$0xff] %v719_v41 }
  0xd6   : > { %736 = vst [vmem:[%s1206_s14 + $0x28] sm:$0xff] %v672_v42 }
  0xd7   : > { %752 = vst [vmem:[%s1206_s14 + $0xa8] sm:$0xff] %v688_v43  ;;  %v599_v44 = vpop.f32.mrf.mxu2  ;;  %v639_v45 = vpop.f32.mrf.mxu3 }
  0xd8   : > { %v600_v46 = vadd.f32 %v1198_v40, %v599_v44  ;;  %v640_v47 = vadd.f32 %v1198_v40, %v639_v45  ;;  %v522_v48 = vpop.f32.mrf.mxu0  ;;  %v562_v49 = vpop.f32.mrf.mxu1 }
  0xd9   : > { %v523_v50 = vadd.f32 %v1198_v40, %v522_v48  ;;  %v563_v51 = vadd.f32 %v1198_v40, %v562_v49 }
  0xda   : > { %v704_v52 = vmax.f32 %v600_v46, 0.0  ;;  %v720_v53 = vmax.f32 %v640_v47, 0.0 }
  0xdb   : > { %v673_v54 = vmax.f32 %v523_v50, 0.0  ;;  %v689_v55 = vmax.f32 %v563_v51, 0.0 }
  0xdc   : > { %768 = vst [vmem:[%s1206_s14 + $0x128] sm:$0xff] %v704_v52 }
  0xdd   : > { %784 = vst [vmem:[%s1206_s14 + $0x1a8] sm:$0xff] %v720_v53 }
  0xde   : > { %737 = vst [vmem:[%s1206_s14 + $0x30] sm:$0xff] %v673_v54 }
  0xdf   : > { %753 = vst [vmem:[%s1206_s14 + $0xb0] sm:$0xff] %v689_v55  ;;  %v602_v56 = vpop.f32.mrf.mxu2  ;;  %v642_v57 = vpop.f32.mrf.mxu3 }
  0xe0   : > { %v603_v58 = vadd.f32 %v1198_v40, %v602_v56  ;;  %v643_v59 = vadd.f32 %v1198_v40, %v642_v57  ;;  %v524_v60 = vpop.f32.mrf.mxu0  ;;  %v564_v61 = vpop.f32.mrf.mxu1 }
  0xe1   : > { %v525_v62 = vadd.f32 %v1198_v40, %v524_v60  ;;  %v565_v63 = vadd.f32 %v1198_v40, %v564_v61 }
  0xe2   : > { %v705_v0 = vmax.f32 %v603_v58, 0.0  ;;  %v721_v1 = vmax.f32 %v643_v59, 0.0 }
  0xe3   : > { %v674_v2 = vmax.f32 %v525_v62, 0.0  ;;  %v690_v3 = vmax.f32 %v565_v63, 0.0 }
  0xe4   : > { %769 = vst [vmem:[%s1206_s14 + $0x130] sm:$0xff] %v705_v0 }
  0xe5   : > { %785 = vst [vmem:[%s1206_s14 + $0x1b0] sm:$0xff] %v721_v1 }
  0xe6   : > { %738 = vst [vmem:[%s1206_s14 + $0x38] sm:$0xff] %v674_v2 }
  0xe7   : > { %754 = vst [vmem:[%s1206_s14 + $0xb8] sm:$0xff] %v690_v3  ;;  %v604_v4 = vpop.f32.mrf.mxu2  ;;  %v644_v5 = vpop.f32.mrf.mxu3 }
  0xe8   : > { %v605_v6 = vadd.f32 %v1198_v40, %v604_v4  ;;  %v645_v7 = vadd.f32 %v1198_v40, %v644_v5  ;;  %v527_v8 = vpop.f32.mrf.mxu0  ;;  %v567_v9 = vpop.f32.mrf.mxu1 }
  0xe9   : > { %v528_v10 = vadd.f32 %v1198_v40, %v527_v8  ;;  %v568_v11 = vadd.f32 %v1198_v40, %v567_v9 }
  0xea   : > { %v706_v12 = vmax.f32 %v605_v6, 0.0  ;;  %v722_v13 = vmax.f32 %v645_v7, 0.0 }
  0xeb   : > { %v675_v14 = vmax.f32 %v528_v10, 0.0  ;;  %v691_v15 = vmax.f32 %v568_v11, 0.0 }
  0xec   : > { %770 = vst [vmem:[%s1206_s14 + $0x138] sm:$0xff] %v706_v12 }
  0xed   : > { %786 = vst [vmem:[%s1206_s14 + $0x1b8] sm:$0xff] %v722_v13 }
  0xee   : > { %739 = vst [vmem:[%s1206_s14 + $0x40] sm:$0xff] %v675_v14 }
  0xef   : > { %755 = vst [vmem:[%s1206_s14 + $0xc0] sm:$0xff] %v691_v15  ;;  %v607_v16 = vpop.f32.mrf.mxu2  ;;  %v647_v17 = vpop.f32.mrf.mxu3 }
  0xf0   : > { %v608_v18 = vadd.f32 %v1198_v40, %v607_v16  ;;  %v648_v19 = vadd.f32 %v1198_v40, %v647_v17  ;;  %v529_v20 = vpop.f32.mrf.mxu0  ;;  %v569_v21 = vpop.f32.mrf.mxu1 }
  0xf1   : > { %v530_v22 = vadd.f32 %v1198_v40, %v529_v20  ;;  %v570_v23 = vadd.f32 %v1198_v40, %v569_v21 }
  0xf2   : > { %v707_v24 = vmax.f32 %v608_v18, 0.0  ;;  %v723_v25 = vmax.f32 %v648_v19, 0.0 }
  0xf3   : > { %v676_v26 = vmax.f32 %v530_v22, 0.0  ;;  %v692_v27 = vmax.f32 %v570_v23, 0.0 }
  0xf4   : > { %771 = vst [vmem:[%s1206_s14 + $0x140] sm:$0xff] %v707_v24 }
  0xf5   : > { %787 = vst [vmem:[%s1206_s14 + $0x1c0] sm:$0xff] %v723_v25 }
  0xf6   : > { %740 = vst [vmem:[%s1206_s14 + $0x48] sm:$0xff] %v676_v26 }
  0xf7   : > { %756 = vst [vmem:[%s1206_s14 + $0xc8] sm:$0xff] %v692_v27  ;;  %v609_v28 = vpop.f32.mrf.mxu2  ;;  %v649_v29 = vpop.f32.mrf.mxu3 }
  0xf8   : > { %v610_v30 = vadd.f32 %v1198_v40, %v609_v28  ;;  %v650_v31 = vadd.f32 %v1198_v40, %v649_v29  ;;  %v532_v32 = vpop.f32.mrf.mxu0  ;;  %v572_v33 = vpop.f32.mrf.mxu1 }
  0xf9   : > { %v533_v34 = vadd.f32 %v1198_v40, %v532_v32  ;;  %v573_v35 = vadd.f32 %v1198_v40, %v572_v33 }
  0xfa   : > { %v708_v36 = vmax.f32 %v610_v30, 0.0  ;;  %v724_v37 = vmax.f32 %v650_v31, 0.0 }
  0xfb   : > { %v677_v38 = vmax.f32 %v533_v34, 0.0  ;;  %v693_v39 = vmax.f32 %v573_v35, 0.0 }
  0xfc   : > { %772 = vst [vmem:[%s1206_s14 + $0x148] sm:$0xff] %v708_v36 }
  0xfd   : > { %788 = vst [vmem:[%s1206_s14 + $0x1c8] sm:$0xff] %v724_v37 }
  0xfe   : > { %741 = vst [vmem:[%s1206_s14 + $0x50] sm:$0xff] %v677_v38 }
  0xff   : > { %757 = vst [vmem:[%s1206_s14 + $0xd0] sm:$0xff] %v693_v39  ;;  %v612_v41 = vpop.f32.mrf.mxu2  ;;  %v652_v42 = vpop.f32.mrf.mxu3 }
 0x100   : > { %v613_v43 = vadd.f32 %v1198_v40, %v612_v41  ;;  %v653_v44 = vadd.f32 %v1198_v40, %v652_v42  ;;  %v534_v45 = vpop.f32.mrf.mxu0  ;;  %v574_v46 = vpop.f32.mrf.mxu1 }
 0x101   : > { %v535_v47 = vadd.f32 %v1198_v40, %v534_v45  ;;  %v575_v48 = vadd.f32 %v1198_v40, %v574_v46 }
 0x102   : > { %v709_v49 = vmax.f32 %v613_v43, 0.0  ;;  %v725_v50 = vmax.f32 %v653_v44, 0.0 }
 0x103   : > { %v678_v51 = vmax.f32 %v535_v47, 0.0  ;;  %v694_v52 = vmax.f32 %v575_v48, 0.0 }
 0x104   : > { %773 = vst [vmem:[%s1206_s14 + $0x150] sm:$0xff] %v709_v49 }
 0x105   : > { %789 = vst [vmem:[%s1206_s14 + $0x1d0] sm:$0xff] %v725_v50 }
 0x106   : > { %742 = vst [vmem:[%s1206_s14 + $0x58] sm:$0xff] %v678_v51 }
 0x107   : > { %758 = vst [vmem:[%s1206_s14 + $0xd8] sm:$0xff] %v694_v52  ;;  %v614_v53 = vpop.f32.mrf.mxu2  ;;  %v654_v54 = vpop.f32.mrf.mxu3 }
 0x108   : > { %v615_v55 = vadd.f32 %v1198_v40, %v614_v53  ;;  %v655_v56 = vadd.f32 %v1198_v40, %v654_v54  ;;  %v537_v57 = vpop.f32.mrf.mxu0  ;;  %v577_v58 = vpop.f32.mrf.mxu1 }
 0x109   : > { %v538_v59 = vadd.f32 %v1198_v40, %v537_v57  ;;  %v578_v60 = vadd.f32 %v1198_v40, %v577_v58 }
 0x10a   : > { %v710_v61 = vmax.f32 %v615_v55, 0.0  ;;  %v726_v62 = vmax.f32 %v655_v56, 0.0 }
 0x10b   : > { %v679_v63 = vmax.f32 %v538_v59, 0.0  ;;  %v695_v0 = vmax.f32 %v578_v60, 0.0 }
 0x10c   : > { %774 = vst [vmem:[%s1206_s14 + $0x158] sm:$0xff] %v710_v61 }
 0x10d   : > { %790 = vst [vmem:[%s1206_s14 + $0x1d8] sm:$0xff] %v726_v62 }
 0x10e   : > { %743 = vst [vmem:[%s1206_s14 + $0x60] sm:$0xff] %v679_v63 }
 0x10f   : > { %759 = vst [vmem:[%s1206_s14 + $0xe0] sm:$0xff] %v695_v0  ;;  %v617_v1 = vpop.f32.mrf.mxu2  ;;  %v657_v2 = vpop.f32.mrf.mxu3 }
 0x110   : > { %v618_v3 = vadd.f32 %v1198_v40, %v617_v1  ;;  %v658_v4 = vadd.f32 %v1198_v40, %v657_v2  ;;  %v539_v5 = vpop.f32.mrf.mxu0  ;;  %v579_v6 = vpop.f32.mrf.mxu1 }
 0x111   : > { %v540_v7 = vadd.f32 %v1198_v40, %v539_v5  ;;  %v580_v8 = vadd.f32 %v1198_v40, %v579_v6 }
 0x112   : > { %v711_v9 = vmax.f32 %v618_v3, 0.0  ;;  %v727_v10 = vmax.f32 %v658_v4, 0.0 }
 0x113   : > { %v680_v11 = vmax.f32 %v540_v7, 0.0  ;;  %v696_v12 = vmax.f32 %v580_v8, 0.0 }
 0x114   : > { %775 = vst [vmem:[%s1206_s14 + $0x160] sm:$0xff] %v711_v9 }
 0x115   : > { %791 = vst [vmem:[%s1206_s14 + $0x1e0] sm:$0xff] %v727_v10 }
 0x116   : > { %744 = vst [vmem:[%s1206_s14 + $0x68] sm:$0xff] %v680_v11 }
 0x117   : > { %760 = vst [vmem:[%s1206_s14 + $0xe8] sm:$0xff] %v696_v12  ;;  %v619_v13 = vpop.f32.mrf.mxu2  ;;  %v659_v14 = vpop.f32.mrf.mxu3 }
 0x118   : > { %v620_v15 = vadd.f32 %v1198_v40, %v619_v13  ;;  %v660_v16 = vadd.f32 %v1198_v40, %v659_v14  ;;  %v542_v17 = vpop.f32.mrf.mxu0  ;;  %v582_v18 = vpop.f32.mrf.mxu1 }
 0x119   : > { %v543_v19 = vadd.f32 %v1198_v40, %v542_v17  ;;  %v583_v20 = vadd.f32 %v1198_v40, %v582_v18 }
 0x11a   : > { %v712_v21 = vmax.f32 %v620_v15, 0.0  ;;  %v728_v22 = vmax.f32 %v660_v16, 0.0 }
 0x11b   : > { %v681_v23 = vmax.f32 %v543_v19, 0.0  ;;  %v697_v24 = vmax.f32 %v583_v20, 0.0 }
 0x11c   : > { %776 = vst [vmem:[%s1206_s14 + $0x168] sm:$0xff] %v712_v21 }
 0x11d   : > { %792 = vst [vmem:[%s1206_s14 + $0x1e8] sm:$0xff] %v728_v22 }
 0x11e   : > { %745 = vst [vmem:[%s1206_s14 + $0x70] sm:$0xff] %v681_v23 }
 0x11f   : > { %761 = vst [vmem:[%s1206_s14 + $0xf0] sm:$0xff] %v697_v24  ;;  %v622_v25 = vpop.f32.mrf.mxu2  ;;  %v662_v26 = vpop.f32.mrf.mxu3 }
 0x120   : > { %v623_v27 = vadd.f32 %v1198_v40, %v622_v25  ;;  %v663_v28 = vadd.f32 %v1198_v40, %v662_v26  ;;  %v544_v29 = vpop.f32.mrf.mxu0  ;;  %v584_v30 = vpop.f32.mrf.mxu1 }
 0x121   : > { %v545_v31 = vadd.f32 %v1198_v40, %v544_v29  ;;  %v585_v32 = vadd.f32 %v1198_v40, %v584_v30 }
 0x122   : > { %v713_v33 = vmax.f32 %v623_v27, 0.0  ;;  %v729_v34 = vmax.f32 %v663_v28, 0.0 }
 0x123   : > { %v682_v35 = vmax.f32 %v545_v31, 0.0  ;;  %v698_v36 = vmax.f32 %v585_v32, 0.0 }
 0x124   : > { %777 = vst [vmem:[%s1206_s14 + $0x170] sm:$0xff] %v713_v33 }
 0x125   : > { %793 = vst [vmem:[%s1206_s14 + $0x1f0] sm:$0xff] %v729_v34 }
 0x126   : > { %746 = vst [vmem:[%s1206_s14 + $0x78] sm:$0xff] %v682_v35 }
 0x127   : > { %762 = vst [vmem:[%s1206_s14 + $0xf8] sm:$0xff] %v698_v36  ;;  %v624_v37 = vpop.f32.mrf.mxu2  ;;  %v664_v38 = vpop.f32.mrf.mxu3 }
 0x128   : > { %v625_v39 = vadd.f32 %v1198_v40, %v624_v37  ;;  %v665_v41 = vadd.f32 %v1198_v40, %v664_v38 }
 0x12a   : > { %v714_v42 = vmax.f32 %v625_v39, 0.0  ;;  %v730_v43 = vmax.f32 %v665_v41, 0.0 }
 0x12c   : > { %778 = vst [vmem:[%s1206_s14 + $0x178] sm:$0xff] %v714_v42 }
 0x12d   : > { %794 = vst [vmem:[%s1206_s14 + $0x1f8] sm:$0xff] %v730_v43 }
 0x12e PF: > { %s13_s12 = sadd.s32 1, %s1101_s12  }
 0x12f   : > { %p10_p4 = scmp.ge.s32.totalorder %s13_s12, 6  }
 0x131   :  { %12 = sbr.rel (!%p10_p4) target bundleno = 1 (0x1), region = 62 }

// kernel: marker_forward.6
= control target key start
LH: loop header
LB: loop body
LE: loop exit
PB: predicated region body
PF: predicated region fallthrough
CT: control target
= control target key end

     0   :  { %s1041_s1 = inlined_call_operand.vmem [shape: bf16[256,128], index: 1, kind: input, shape index: {}]   ;;  %s1042_s2 = inlined_call_operand.vmem [shape: f32[1,128], index: 2, kind: input, shape index: {}]   ;;  %s1043_s0 = inlined_call_operand.vmem [shape: bf16[200,256], index: 0, kind: input, shape index: {}]   ;;  %s1044_s3 = inlined_call_operand.vmem [shape: f32[200,128], index: 3, kind: output, shape index: {}]  }
   0x1   :  { %v689_v0 = vld [vmem:[%s1041_s1 + $0x38] sm:$0xff]  ;;  %v688_v2 = vld [vmem:[%s1041_s1 + $0x30] sm:$0xff]  ;;  %v687_v4 = vld [vmem:[%s1041_s1 + $0x28] sm:$0xff] }
   0x2   :  { %v697_v1 = vld [vmem:[%s1041_s1 + $0x78] sm:$0xff]  ;;  %298 = vmatpush.bf16.msra.mxu0 %v689_v0  ;;  %698 = vmatpush.bf16.msra.mxu2 %v689_v0  ;;  %v696_v3 = vld [vmem:[%s1041_s1 + $0x70] sm:$0xff]  ;;  %v695_v5 = vld [vmem:[%s1041_s1 + $0x68] sm:$0xff] }
   0x3   :  { %371 = vmatpush.bf16.msra.mxu1 %v697_v1  ;;  %706 = vmatpush.bf16.msra.mxu3 %v697_v1  ;;  %v686_v6 = vld [vmem:[%s1041_s1 + $0x20] sm:$0xff]  ;;  %v685_v8 = vld [vmem:[%s1041_s1 + $0x18] sm:$0xff]  ;;  %v684_v10 = vld [vmem:[%s1041_s1 + $0x10] sm:$0xff] }
   0x4   :  { %v694_v7 = vld [vmem:[%s1041_s1 + $0x60] sm:$0xff]  ;;  %v693_v9 = vld [vmem:[%s1041_s1 + $0x58] sm:$0xff]  ;;  %v692_v11 = vld [vmem:[%s1041_s1 + $0x50] sm:$0xff] }
   0x5   :  { %v683_v12 = vld [vmem:[%s1041_s1 + $0x8] sm:$0xff]  ;;  %v682_v14 = vld [vmem:[%s1041_s1] sm:$0xff]  ;;  %v672_v22 = vld [vmem:[%s1043_s0 + $0x74] sm:$0xf] }
   0x6   :  { %299 = vmatpush.bf16.msra.mxu0 %v688_v2  ;;  %699 = vmatpush.bf16.msra.mxu2 %v688_v2  ;;  %v691_v13 = vld [vmem:[%s1041_s1 + $0x48] sm:$0xff]  ;;  %v690_v15 = vld [vmem:[%s1041_s1 + $0x40] sm:$0xff]  ;;  %v558_v23 = vld [vmem:[%s1043_s0 + $0x78] sm:$0xf0] }
   0x7   :  { %372 = vmatpush.bf16.msra.mxu1 %v696_v3  ;;  %707 = vmatpush.bf16.msra.mxu3 %v696_v3  ;;  %v500_v16 = vld [vmem:[%s1043_s0] sm:$0xf]  ;;  %v659_v17 = vld [vmem:[%s1043_s0 + $0x4] sm:$0xf0]  ;;  %v658_v20 = vld [vmem:[%s1043_s0 + $0x4] sm:$0xf]  ;;  %v561_v27 = vor.u32 %v672_v22, %v558_v23 }
   0x8   :  { %v548_v18 = vld [vmem:[%s1043_s0 + $0x60] sm:$0xf]  ;;  %v671_v19 = vld [vmem:[%s1043_s0 + $0x64] sm:$0xf0]  ;;  %v502_v21 = vld [vmem:[%s1043_s0 + $0x8] sm:$0xf0]  ;;  %v501_v24 = vor.u32 %v659_v17, %v500_v16 }
   0x9   :  { %v549_v25 = vor.u32 %v671_v19, %v548_v18  ;;  %v505_v26 = vor.u32 %v658_v20, %v502_v21  ;;  %v508_v28 = vld [vmem:[%s1043_s0 + $0x10] sm:$0xf]  ;;  %v661_v29 = vld [vmem:[%s1043_s0 + $0x14] sm:$0xf0]  ;;  %v660_v32 = vld [vmem:[%s1043_s0 + $0x14] sm:$0xf] }
   0xa   :  { %300 = vmatpush.bf16.msra.mxu0 %v687_v4  ;;  %700 = vmatpush.bf16.msra.mxu2 %v687_v4  ;;  %v556_v30 = vld [vmem:[%s1043_s0 + $0x70] sm:$0xf]  ;;  %v673_v31 = vld [vmem:[%s1043_s0 + $0x74] sm:$0xf0]  ;;  %v510_v33 = vld [vmem:[%s1043_s0 + $0x18] sm:$0xf0]  ;;  %v509_v36 = vor.u32 %v661_v29, %v508_v28 }
   0xb   :  { %373 = vmatpush.bf16.msra.mxu1 %v695_v5  ;;  %708 = vmatpush.bf16.msra.mxu3 %v695_v5  ;;  %v674_v34 = vld [vmem:[%s1043_s0 + $0x84] sm:$0xf]  ;;  %v566_v35 = vld [vmem:[%s1043_s0 + $0x88] sm:$0xf0]  ;;  %v557_v37 = vor.u32 %v673_v31, %v556_v30  ;;  %v513_v38 = vor.u32 %v660_v32, %v510_v33  ;;  %v516_v40 = vld [vmem:[%s1043_s0 + $0x20] sm:$0xf] }
   0xc   :  { %v569_v39 = vor.u32 %v674_v34, %v566_v35  ;;  %v663_v41 = vld [vmem:[%s1043_s0 + $0x24] sm:$0xf0]  ;;  %v564_v42 = vld [vmem:[%s1043_s0 + $0x80] sm:$0xf]  ;;  %v662_v44 = vld [vmem:[%s1043_s0 + $0x24] sm:$0xf] }
   0xd   :  { %v675_v43 = vld [vmem:[%s1043_s0 + $0x84] sm:$0xf0]  ;;  %v518_v45 = vld [vmem:[%s1043_s0 + $0x28] sm:$0xf0]  ;;  %v676_v46 = vld [vmem:[%s1043_s0 + $0x94] sm:$0xf]  ;;  %v517_v48 = vor.u32 %v663_v41, %v516_v40 }
   0xe   :  { %301 = vmatpush.bf16.msra.mxu0 %v686_v6  ;;  %701 = vmatpush.bf16.msra.mxu2 %v686_v6  ;;  %v574_v47 = vld [vmem:[%s1043_s0 + $0x98] sm:$0xf0]  ;;  %v565_v49 = vor.u32 %v675_v43, %v564_v42  ;;  %v521_v50 = vor.u32 %v662_v44, %v518_v45  ;;  %v524_v52 = vld [vmem:[%s1043_s0 + $0x30] sm:$0xf]  ;;  %v665_v53 = vld [vmem:[%s1043_s0 + $0x34] sm:$0xf0] }
   0xf   :  { %374 = vmatpush.bf16.msra.mxu1 %v694_v7  ;;  %709 = vmatpush.bf16.msra.mxu3 %v694_v7  ;;  %v577_v51 = vor.u32 %v676_v46, %v574_v47  ;;  %v572_v54 = vld [vmem:[%s1043_s0 + $0x90] sm:$0xf]  ;;  %v677_v55 = vld [vmem:[%s1043_s0 + $0x94] sm:$0xf0]  ;;  %v664_v56 = vld [vmem:[%s1043_s0 + $0x34] sm:$0xf]  ;;  %v525_v60 = vor.u32 %v665_v53, %v524_v52 }
  0x10   :  { %v526_v57 = vld [vmem:[%s1043_s0 + $0x38] sm:$0xf0]  ;;  %v678_v58 = vld [vmem:[%s1043_s0 + $0xa4] sm:$0xf]  ;;  %v582_v59 = vld [vmem:[%s1043_s0 + $0xa8] sm:$0xf0]  ;;  %v573_v61 = vor.u32 %v677_v55, %v572_v54 }
  0x11   :  { %v529_v62 = vor.u32 %v664_v56, %v526_v57  ;;  %v585_v63 = vor.u32 %v678_v58, %v582_v59  ;;  %v532_v0 = vld [vmem:[%s1043_s0 + $0x40] sm:$0xf]  ;;  %v667_v1 = vld [vmem:[%s1043_s0 + $0x44] sm:$0xf0]  ;;  %v666_v4 = vld [vmem:[%s1043_s0 + $0x44] sm:$0xf] }
  0x12   :  { %302 = vmatpush.bf16.msra.mxu0 %v685_v8  ;;  %702 = vmatpush.bf16.msra.mxu2 %v685_v8  ;;  %v580_v2 = vld [vmem:[%s1043_s0 + $0xa0] sm:$0xf]  ;;  %v679_v3 = vld [vmem:[%s1043_s0 + $0xa4] sm:$0xf0]  ;;  %v534_v5 = vld [vmem:[%s1043_s0 + $0x48] sm:$0xf0]  ;;  %v533_v8 = vor.u32 %v667_v1, %v532_v0 }
  0x13   :  { %375 = vmatpush.bf16.msra.mxu1 %v693_v9  ;;  %710 = vmatpush.bf16.msra.mxu3 %v693_v9  ;;  %v680_v6 = vld [vmem:[%s1043_s0 + $0xb4] sm:$0xf]  ;;  %v590_v7 = vld [vmem:[%s1043_s0 + $0xb8] sm:$0xf0]  ;;  %v581_v9 = vor.u32 %v679_v3, %v580_v2  ;;  %v681_v16 = vld [vmem:[%s1043_s0 + $0xb4] sm:$0xf0] }
  0x14   :  { %v668_v18 = vld [vmem:[%s1043_s0 + $0x54] sm:$0xf]  ;;  %v542_v19 = vld [vmem:[%s1043_s0 + $0x58] sm:$0xf0]  ;;  %v933_v29 = vld [vmem:[%s1042_s2] ss:$0 sm:$0xff] }
  0x15   :  { %v545_v22 = vor.u32 %v668_v18, %v542_v19 }
  0x16   :  { %303 = vmatpush.bf16.msra.mxu0 %v684_v10  ;;  %703 = vmatpush.bf16.msra.mxu2 %v684_v10  ;;  %v537_v10 = vor.u32 %v666_v4, %v534_v5 }
  0x17   :  { %376 = vmatpush.bf16.msra.mxu1 %v692_v11  ;;  %711 = vmatpush.bf16.msra.mxu3 %v692_v11  ;;  %v593_v11 = vor.u32 %v680_v6, %v590_v7 }
  0x1a   :  { %304 = vmatpush.bf16.msra.mxu0 %v683_v12  ;;  %704 = vmatpush.bf16.msra.mxu2 %v683_v12  ;;  %v38_v12 = vld [vmem:[%s1043_s0 + $0xc0] sm:$0xff] }
  0x1b   :  { %377 = vmatpush.bf16.msra.mxu1 %v691_v13  ;;  %712 = vmatpush.bf16.msra.mxu3 %v691_v13  ;;  %v540_v13 = vld [vmem:[%s1043_s0 + $0x50] sm:$0xf]  ;;  %v149_v17 = vunpack.c.h.b16 %v38_v12 }
  0x1d   :  { %v175_v23 = vpack.c.b16 %v149_v17, %v149_v17 }
  0x1e   :  { %305 = vmatpush.bf16.msra.mxu0 %v682_v14  ;;  %705 = vmatpush.bf16.msra.mxu2 %v682_v14  ;;  %v669_v14 = vld [vmem:[%s1043_s0 + $0x54] sm:$0xf0] }
  0x1f   :  { %378 = vmatpush.bf16.msra.mxu1 %v690_v15  ;;  %713 = vmatpush.bf16.msra.mxu3 %v690_v15  ;;  %v588_v15 = vld [vmem:[%s1043_s0 + $0xb0] sm:$0xf]  ;;  %v541_v20 = vor.u32 %v669_v14, %v540_v13 }
  0x20   :  { %v589_v21 = vor.u32 %v681_v16, %v588_v15 }
  0x21   :  { %306 = vmatmul.bf16.vlgmr.msra.gmra.mxu0 %v501_v24  ;;  %336 = vmatmul.bf16.vlgmr.msra.gmra.mxu2 %v549_v25  ;;  %v148_v24 = vunpack.c.l.b16 %v38_v12  ;;  %v670_v25 = vld [vmem:[%s1043_s0 + $0x64] sm:$0xf] }
  0x22   :  { %379 = vmatmul.bf16.vlgmr.msra.gmra.mxu1 %v505_v26  ;;  %414 = vmatmul.bf16.vlgmr.msra.gmra.mxu3 %v561_v27  ;;  %v550_v26 = vld [vmem:[%s1043_s0 + $0x68] sm:$0xf0] }
  0x23   :  { %v174_v27 = vpack.c.b16 %v148_v24, %v148_v24  ;;  %v553_v28 = vor.u32 %v670_v25, %v550_v26 }
  0x31   :  { %311 = vmatmul.bf16.gmra.mxu0 %v509_v36  ;;  %341 = vmatmul.bf16.gmra.mxu2 %v557_v37 }
  0x32   :  { %384 = vmatmul.bf16.gmra.mxu1 %v513_v38  ;;  %419 = vmatmul.bf16.gmra.mxu3 %v569_v39 }
  0x41   :  { %316 = vmatmul.bf16.gmra.mxu0 %v517_v48  ;;  %346 = vmatmul.bf16.gmra.mxu2 %v565_v49 }
  0x42   :  { %389 = vmatmul.bf16.gmra.mxu1 %v521_v50  ;;  %424 = vmatmul.bf16.gmra.mxu3 %v577_v51 }
  0x51   :  { %321 = vmatmul.bf16.gmra.mxu0 %v525_v60  ;;  %351 = vmatmul.bf16.gmra.mxu2 %v573_v61 }
  0x52   :  { %394 = vmatmul.bf16.gmra.mxu1 %v529_v62  ;;  %429 = vmatmul.bf16.gmra.mxu3 %v585_v63 }
  0x61   :  { %326 = vmatmul.bf16.gmra.mxu0 %v533_v8  ;;  %356 = vmatmul.bf16.gmra.mxu2 %v581_v9 }
  0x62   :  { %399 = vmatmul.bf16.gmra.mxu1 %v537_v10  ;;  %434 = vmatmul.bf16.gmra.mxu3 %v593_v11 }
  0x71   :  { %331 = vmatmul.bf16.gmra.mxu0 %v541_v20  ;;  %361 = vmatmul.bf16.gmra.mxu2 %v589_v21 }
  0x72   :  { %404 = vmatmul.bf16.gmra.mxu1 %v545_v22  ;;  %439 = vmatmul.bf16.gmra.mxu3 %v175_v23 }
  0x81   :  { %366 = vmatmul.bf16.gmra.mxu2 %v174_v27 }
  0x82   :  { %409 = vmatmul.bf16.gmra.mxu1 %v553_v28 }
  0x9e   :  { %v307_v30 = vpop.f32.mrf.mxu0 }
  0x9f   :  { %v308_v31 = vadd.f32 %v933_v29, %v307_v30  ;;  %v380_v32 = vpop.f32.mrf.mxu1 }
  0xa1   :  { %v381_v33 = vadd.f32 %v380_v32, %v308_v31 }
  0xa3   :  { %v444_v34 = vmax.f32 %v381_v33, 0.0 }
  0xa4   :  { %v936_v35 = vpop.f32.mrf.mxu2 }
  0xa5   :  { %469 = vst [vmem:[%s1044_s3] sm:$0xff] %v444_v34  ;;  %v415_v36 = vpop.f32.mrf.mxu3 }
  0xa6   :  { %v309_v37 = vpop.f32.mrf.mxu0 }
  0xa7   :  { %v310_v38 = vadd.f32 %v933_v29, %v309_v37  ;;  %v382_v39 = vpop.f32.mrf.mxu1 }
  0xa9   :  { %v383_v40 = vadd.f32 %v382_v39, %v310_v38 }
  0xab   :  { %v445_v41 = vmax.f32 %v383_v40, 0.0 }
  0xac   :  { %v942_v42 = vpop.f32.mrf.mxu2 }
  0xad   :  { %470 = vst [vmem:[%s1044_s3 + $0x8] sm:$0xff] %v445_v41  ;;  %v417_v43 = vpop.f32.mrf.mxu3 }
  0xae   :  { %v312_v44 = vpop.f32.mrf.mxu0 }
  0xaf   :  { %v313_v45 = vadd.f32 %v933_v29, %v312_v44  ;;  %v385_v46 = vpop.f32.mrf.mxu1 }
  0xb1   :  { %v386_v47 = vadd.f32 %v385_v46, %v313_v45 }
  0xb3   :  { %v446_v48 = vmax.f32 %v386_v47, 0.0 }
  0xb4   :  { %v342_v49 = vpop.f32.mrf.mxu2 }
  0xb5   :  { %471 = vst [vmem:[%s1044_s3 + $0x10] sm:$0xff] %v446_v48  ;;  %v343_v50 = vadd.f32 %v933_v29, %v342_v49  ;;  %v420_v51 = vpop.f32.mrf.mxu3 }
  0xb6   :  { %v314_v52 = vpop.f32.mrf.mxu0 }
  0xb7   :  { %v416_v53 = vadd.f32 %v415_v36, %v343_v50  ;;  %v315_v54 = vadd.f32 %v933_v29, %v314_v52  ;;  %v387_v55 = vpop.f32.mrf.mxu1 }
  0xb9   :  { %v458_v56 = vmax.f32 %v416_v53, 0.0  ;;  %v388_v57 = vadd.f32 %v387_v55, %v315_v54 }
  0xbb   :  { %483 = vst [vmem:[%s1044_s3 + $0x70] sm:$0xff] %v458_v56  ;;  %v447_v58 = vmax.f32 %v388_v57, 0.0 }
  0xbc   :  { %v344_v59 = vpop.f32.mrf.mxu2 }
  0xbd   :  { %472 = vst [vmem:[%s1044_s3 + $0x18] sm:$0xff] %v447_v58  ;;  %v345_v60 = vadd.f32 %v933_v29, %v344_v59  ;;  %v422_v61 = vpop.f32.mrf.mxu3 }
  0xbe   :  { %v317_v62 = vpop.f32.mrf.mxu0 }
  0xbf   :  { %v418_v63 = vadd.f32 %v417_v43, %v345_v60  ;;  %v318_v0 = vadd.f32 %v933_v29, %v317_v62  ;;  %v390_v1 = vpop.f32.mrf.mxu1 }
  0xc1   :  { %v459_v2 = vmax.f32 %v418_v63, 0.0  ;;  %v391_v3 = vadd.f32 %v390_v1, %v318_v0 }
  0xc3   :  { %484 = vst [vmem:[%s1044_s3 + $0x78] sm:$0xff] %v459_v2  ;;  %v448_v4 = vmax.f32 %v391_v3, 0.0 }
  0xc4   :  { %v347_v5 = vpop.f32.mrf.mxu2 }
  0xc5   :  { %473 = vst [vmem:[%s1044_s3 + $0x20] sm:$0xff] %v448_v4  ;;  %v348_v6 = vadd.f32 %v933_v29, %v347_v5  ;;  %v425_v7 = vpop.f32.mrf.mxu3 }
  0xc6   :  { %v319_v8 = vpop.f32.mrf.mxu0 }
  0xc7   :  { %v421_v9 = vadd.f32 %v420_v51, %v348_v6  ;;  %v320_v10 = vadd.f32 %v933_v29, %v319_v8  ;;  %v392_v11 = vpop.f32.mrf.mxu1 }
  0xc9   :  { %v460_v12 = vmax.f32 %v421_v9, 0.0  ;;  %v393_v13 = vadd.f32 %v392_v11, %v320_v10 }
  0xcb   :  { %485 = vst [vmem:[%s1044_s3 + $0x80] sm:$0xff] %v460_v12  ;;  %v449_v14 = vmax.f32 %v393_v13, 0.0 }
  0xcc   :  { %v349_v15 = vpop.f32.mrf.mxu2 }
  0xcd   :  { %474 = vst [vmem:[%s1044_s3 + $0x28] sm:$0xff] %v449_v14  ;;  %v350_v16 = vadd.f32 %v933_v29, %v349_v15  ;;  %v427_v17 = vpop.f32.mrf.mxu3 }
  0xce   :  { %v322_v18 = vpop.f32.mrf.mxu0 }
  0xcf   :  { %v423_v19 = vadd.f32 %v422_v61, %v350_v16  ;;  %v323_v20 = vadd.f32 %v933_v29, %v322_v18  ;;  %v395_v21 = vpop.f32.mrf.mxu1 }
  0xd1   :  { %v461_v22 = vmax.f32 %v423_v19, 0.0  ;;  %v396_v23 = vadd.f32 %v395_v21, %v323_v20 }
  0xd3   :  { %486 = vst [vmem:[%s1044_s3 + $0x88] sm:$0xff] %v461_v22  ;;  %v450_v24 = vmax.f32 %v396_v23, 0.0 }
  0xd4   :  { %v352_v25 = vpop.f32.mrf.mxu2 }
  0xd5   :  { %475 = vst [vmem:[%s1044_s3 + $0x30] sm:$0xff] %v450_v24  ;;  %v353_v26 = vadd.f32 %v933_v29, %v352_v25  ;;  %v430_v27 = vpop.f32.mrf.mxu3  ;;  %v340_v25 = vadd.f32 %v933_v29, %v942_v42 }
  0xd6   :  { %v324_v28 = vpop.f32.mrf.mxu0 }
  0xd7   :  { %v426_v30 = vadd.f32 %v425_v7, %v353_v26  ;;  %v325_v31 = vadd.f32 %v933_v29, %v324_v28  ;;  %v397_v32 = vpop.f32.mrf.mxu1 }
  0xd9   :  { %v462_v33 = vmax.f32 %v426_v30, 0.0  ;;  %v398_v34 = vadd.f32 %v397_v32, %v325_v31 }
  0xdb   :  { %487 = vst [vmem:[%s1044_s3 + $0x90] sm:$0xff] %v462_v33  ;;  %v451_v36 = vmax.f32 %v398_v34, 0.0 }
  0xdc   :  { %v354_v37 = vpop.f32.mrf.mxu2 }
  0xdd   :  { %476 = vst [vmem:[%s1044_s3 + $0x38] sm:$0xff] %v451_v36  ;;  %v355_v38 = vadd.f32 %v933_v29, %v354_v37  ;;  %v432_v39 = vpop.f32.mrf.mxu3 }
  0xde   :  { %v327_v40 = vpop.f32.mrf.mxu0 }
  0xdf   :  { %v428_v41 = vadd.f32 %v427_v17, %v355_v38  ;;  %v328_v43 = vadd.f32 %v933_v29, %v327_v40  ;;  %v400_v44 = vpop.f32.mrf.mxu1  ;;  %v338_v17 = vadd.f32 %v933_v29, %v936_v35 }
  0xe1   :  { %v463_v45 = vmax.f32 %v428_v41, 0.0  ;;  %v401_v46 = vadd.f32 %v400_v44, %v328_v43 }
  0xe3   :  { %488 = vst [vmem:[%s1044_s3 + $0x98] sm:$0xff] %v463_v45  ;;  %v452_v47 = vmax.f32 %v401_v46, 0.0 }
  0xe4   :  { %v357_v48 = vpop.f32.mrf.mxu2 }
  0xe5   :  { %477 = vst [vmem:[%s1044_s3 + $0x40] sm:$0xff] %v452_v47  ;;  %v358_v49 = vadd.f32 %v933_v29, %v357_v48  ;;  %v435_v50 = vpop.f32.mrf.mxu3 }
  0xe6   :  { %v329_v51 = vpop.f32.mrf.mxu0 }
  0xe7   :  { %v431_v52 = vadd.f32 %v430_v27, %v358_v49  ;;  %v330_v53 = vadd.f32 %v933_v29, %v329_v51  ;;  %v402_v54 = vpop.f32.mrf.mxu1 }
  0xe9   :  { %v464_v55 = vmax.f32 %v431_v52, 0.0  ;;  %v403_v56 = vadd.f32 %v402_v54, %v330_v53 }
  0xeb   :  { %489 = vst [vmem:[%s1044_s3 + $0xa0] sm:$0xff] %v464_v55  ;;  %v453_v57 = vmax.f32 %v403_v56, 0.0 }
  0xec   :  { %v359_v58 = vpop.f32.mrf.mxu2 }
  0xed   :  { %478 = vst [vmem:[%s1044_s3 + $0x48] sm:$0xff] %v453_v57  ;;  %v360_v59 = vadd.f32 %v933_v29, %v359_v58  ;;  %v437_v60 = vpop.f32.mrf.mxu3 }
  0xee   :  { %v332_v61 = vpop.f32.mrf.mxu0 }
  0xef   :  { %v433_v62 = vadd.f32 %v432_v39, %v360_v59  ;;  %v333_v63 = vadd.f32 %v933_v29, %v332_v61  ;;  %v405_v0 = vpop.f32.mrf.mxu1 }
  0xf1   :  { %v465_v1 = vmax.f32 %v433_v62, 0.0  ;;  %v406_v2 = vadd.f32 %v405_v0, %v333_v63 }
  0xf3   :  { %490 = vst [vmem:[%s1044_s3 + $0xa8] sm:$0xff] %v465_v1  ;;  %v454_v3 = vmax.f32 %v406_v2, 0.0 }
  0xf4   :  { %v362_v4 = vpop.f32.mrf.mxu2 }
  0xf5   :  { %479 = vst [vmem:[%s1044_s3 + $0x50] sm:$0xff] %v454_v3  ;;  %v363_v5 = vadd.f32 %v933_v29, %v362_v4  ;;  %v440_v6 = vpop.f32.mrf.mxu3 }
  0xf6   :  { %v334_v7 = vpop.f32.mrf.mxu0 }
  0xf7   :  { %v436_v8 = vadd.f32 %v435_v50, %v363_v5  ;;  %v335_v9 = vadd.f32 %v933_v29, %v334_v7  ;;  %v407_v10 = vpop.f32.mrf.mxu1 }
  0xf9   :  { %v466_v11 = vmax.f32 %v436_v8, 0.0  ;;  %v408_v12 = vadd.f32 %v407_v10, %v335_v9 }
  0xfb   :  { %491 = vst [vmem:[%s1044_s3 + $0xb0] sm:$0xff] %v466_v11  ;;  %v455_v13 = vmax.f32 %v408_v12, 0.0 }
  0xfc   :  { %v364_v14 = vpop.f32.mrf.mxu2 }
  0xfd   :  { %480 = vst [vmem:[%s1044_s3 + $0x58] sm:$0xff] %v455_v13  ;;  %v365_v15 = vadd.f32 %v933_v29, %v364_v14  ;;  %v442_v16 = vpop.f32.mrf.mxu3 }
  0xff   :  { %v438_v18 = vadd.f32 %v437_v60, %v365_v15  ;;  %v410_v19 = vpop.f32.mrf.mxu1 }
 0x100   :  { %v411_v20 = vadd.f32 %v410_v19, %v338_v17 }
 0x101   :  { %v467_v21 = vmax.f32 %v438_v18, 0.0 }
 0x102   :  { %v456_v22 = vmax.f32 %v411_v20, 0.0 }
 0x103   :  { %492 = vst [vmem:[%s1044_s3 + $0xb8] sm:$0xff] %v467_v21 }
 0x104   :  { %481 = vst [vmem:[%s1044_s3 + $0x60] sm:$0xff] %v456_v22  ;;  %v367_v23 = vpop.f32.mrf.mxu2 }
 0x105   :  { %v368_v24 = vadd.f32 %v933_v29, %v367_v23 }
 0x107   :  { %v441_v35 = vadd.f32 %v440_v6, %v368_v24  ;;  %v412_v26 = vpop.f32.mrf.mxu1 }
 0x108   :  { %v413_v27 = vadd.f32 %v412_v26, %v340_v25 }
 0x109   :  { %v468_v28 = vmax.f32 %v441_v35, 0.0 }
 0x10a   :  { %v457_v30 = vmax.f32 %v413_v27, 0.0 }
 0x10b   :  { %493 = vst [vmem:[%s1044_s3 + $0xc0] sm:$0xff] %v468_v28 }
 0x10c   :  { %482 = vst [vmem:[%s1044_s3 + $0x68] sm:$0xff] %v457_v30  ;;  %v369_v31 = vpop.f32.mrf.mxu2 }

// kernel: marker_forward.7
= control target key start
LH: loop header
LB: loop body
LE: loop exit
PB: predicated region body
PF: predicated region fallthrough
CT: control target
= control target key end

     0   :  { %s2501_s1 = inlined_call_operand.vmem [shape: bf16[512,512], index: 1, kind: input, shape index: {}]   ;;  %s2502_s0 = inlined_call_operand.vmem [shape: bf16[8,512], index: 0, kind: input, shape index: {}]   ;;  %s2503_s2 = inlined_call_operand.vmem [shape: f32[1,512], index: 2, kind: input, shape index: {}]   ;;  %s2504_s3 = inlined_call_operand.vmem [shape: f32[8,512], index: 3, kind: output, shape index: {}]  }
   0x1   :  { %v1142_v0 = vld [vmem:[%s2501_s1 + $0xe0] sm:$0xf]  ;;  %v1570_v1 = vld [vmem:[%s2501_s1 + $0xec] sm:$0xf0] }
   0x2   :  { %v1270_v2 = vld [vmem:[%s2501_s1 + $0x1e0] sm:$0xf]  ;;  %v1143_v3 = vor.u32 %v1570_v1, %v1142_v0  ;;  %v1602_v4 = vld [vmem:[%s2501_s1 + $0x1ec] sm:$0xf0] }
   0x3   :  { %v1398_v5 = vld [vmem:[%s2501_s1 + $0x2e0] sm:$0xf]  ;;  %v1634_v6 = vld [vmem:[%s2501_s1 + $0x2ec] sm:$0xf0]  ;;  %v1271_v7 = vor.u32 %v1602_v4, %v1270_v2 }
   0x4   :  { %v1399_v8 = vor.u32 %v1634_v6, %v1398_v5  ;;  %v1526_v9 = vld [vmem:[%s2501_s1 + $0x3e0] sm:$0xf]  ;;  %v1666_v10 = vld [vmem:[%s2501_s1 + $0x3ec] sm:$0xf0]  ;;  %808 = vmatpush.bf16.msra.mxu0 %v1143_v3 }
   0x5   :  { %v1126_v11 = vld [vmem:[%s2501_s1 + $0xc0] sm:$0xf]  ;;  %v1527_v12 = vor.u32 %v1666_v10, %v1526_v9  ;;  %v1566_v13 = vld [vmem:[%s2501_s1 + $0xcc] sm:$0xf0]  ;;  %821 = vmatpush.bf16.msra.mxu1 %v1271_v7 }
   0x6   :  { %v1254_v14 = vld [vmem:[%s2501_s1 + $0x1c0] sm:$0xf]  ;;  %v1598_v15 = vld [vmem:[%s2501_s1 + $0x1cc] sm:$0xf0]  ;;  %834 = vmatpush.bf16.msra.mxu2 %v1399_v8  ;;  %v1127_v16 = vor.u32 %v1566_v13, %v1126_v11 }
   0x7   :  { %v1255_v17 = vor.u32 %v1598_v15, %v1254_v14  ;;  %v1382_v18 = vld [vmem:[%s2501_s1 + $0x2c0] sm:$0xf]  ;;  %v1630_v19 = vld [vmem:[%s2501_s1 + $0x2cc] sm:$0xf0]  ;;  %847 = vmatpush.bf16.msra.mxu3 %v1527_v12 }
   0x8   :  { %v1510_v20 = vld [vmem:[%s2501_s1 + $0x3c0] sm:$0xf]  ;;  %v1383_v21 = vor.u32 %v1630_v19, %v1382_v18  ;;  %v1662_v22 = vld [vmem:[%s2501_s1 + $0x3cc] sm:$0xf0]  ;;  %809 = vmatpush.bf16.msra.mxu0 %v1127_v16 }
   0x9   :  { %v1110_v23 = vld [vmem:[%s2501_s1 + $0xa0] sm:$0xf]  ;;  %v1562_v24 = vld [vmem:[%s2501_s1 + $0xac] sm:$0xf0]  ;;  %v1511_v25 = vor.u32 %v1662_v22, %v1510_v20  ;;  %822 = vmatpush.bf16.msra.mxu1 %v1255_v17 }
   0xa   :  { %v1238_v26 = vld [vmem:[%s2501_s1 + $0x1a0] sm:$0xf]  ;;  %v1594_v27 = vld [vmem:[%s2501_s1 + $0x1ac] sm:$0xf0]  ;;  %v1111_v29 = vor.u32 %v1562_v24, %v1110_v23  ;;  %835 = vmatpush.bf16.msra.mxu2 %v1383_v21 }
   0xb   :  { %v1366_v28 = vld [vmem:[%s2501_s1 + $0x2a0] sm:$0xf]  ;;  %v1626_v30 = vld [vmem:[%s2501_s1 + $0x2ac] sm:$0xf0]  ;;  %v1239_v33 = vor.u32 %v1594_v27, %v1238_v26  ;;  %848 = vmatpush.bf16.msra.mxu3 %v1511_v25 }
   0xc   :  { %v1494_v31 = vld [vmem:[%s2501_s1 + $0x3a0] sm:$0xf]  ;;  %v1658_v32 = vld [vmem:[%s2501_s1 + $0x3ac] sm:$0xf0]  ;;  %v1367_v34 = vor.u32 %v1626_v30, %v1366_v28  ;;  %810 = vmatpush.bf16.msra.mxu0 %v1111_v29  ;;  %v1568_v28 = vld [vmem:[%s2501_s1 + $0xe4] sm:$0xf] }
   0xd   :  { %v1094_v35 = vld [vmem:[%s2501_s1 + $0x80] sm:$0xf]  ;;  %v1558_v36 = vld [vmem:[%s2501_s1 + $0x8c] sm:$0xf0]  ;;  %v1495_v38 = vor.u32 %v1658_v32, %v1494_v31  ;;  %823 = vmatpush.bf16.msra.mxu1 %v1239_v33  ;;  %v1144_v29 = vld [vmem:[%s2501_s1 + $0xf0] sm:$0xf0] }
   0xe   :  { %v1222_v37 = vld [vmem:[%s2501_s1 + $0x180] sm:$0xf]  ;;  %v1590_v39 = vld [vmem:[%s2501_s1 + $0x18c] sm:$0xf0]  ;;  %v1095_v44 = vor.u32 %v1558_v36, %v1094_v35  ;;  %836 = vmatpush.bf16.msra.mxu2 %v1367_v34  ;;  %v1600_v30 = vld [vmem:[%s2501_s1 + $0x1e4] sm:$0xf] }
   0xf   :  { %v1350_v40 = vld [vmem:[%s2501_s1 + $0x280] sm:$0xf]  ;;  %v1622_v41 = vld [vmem:[%s2501_s1 + $0x28c] sm:$0xf0]  ;;  %v1223_v45 = vor.u32 %v1590_v39, %v1222_v37  ;;  %849 = vmatpush.bf16.msra.mxu3 %v1495_v38  ;;  %v1272_v32 = vld [vmem:[%s2501_s1 + $0x1f0] sm:$0xf0] }
  0x10   :  { %v1478_v42 = vld [vmem:[%s2501_s1 + $0x380] sm:$0xf]  ;;  %v1654_v43 = vld [vmem:[%s2501_s1 + $0x38c] sm:$0xf0]  ;;  %v1351_v46 = vor.u32 %v1622_v41, %v1350_v40  ;;  %811 = vmatpush.bf16.msra.mxu0 %v1095_v44  ;;  %v1632_v33 = vld [vmem:[%s2501_s1 + $0x2e4] sm:$0xf]  ;;  %v1147_v40 = vor.u32 %v1568_v28, %v1144_v29  ;;  %v1275_v41 = vor.u32 %v1600_v30, %v1272_v32 }
  0x11   :  { %v1078_v47 = vld [vmem:[%s2501_s1 + $0x60] sm:$0xf]  ;;  %v1554_v48 = vld [vmem:[%s2501_s1 + $0x6c] sm:$0xf0]  ;;  %v1479_v50 = vor.u32 %v1654_v43, %v1478_v42  ;;  %824 = vmatpush.bf16.msra.mxu1 %v1223_v45  ;;  %v1400_v34 = vld [vmem:[%s2501_s1 + $0x2f0] sm:$0xf0] }
  0x12   :  { %v1206_v49 = vld [vmem:[%s2501_s1 + $0x160] sm:$0xf]  ;;  %v1586_v51 = vld [vmem:[%s2501_s1 + $0x16c] sm:$0xf0]  ;;  %v1079_v56 = vor.u32 %v1554_v48, %v1078_v47  ;;  %837 = vmatpush.bf16.msra.mxu2 %v1351_v46  ;;  %v1664_v37 = vld [vmem:[%s2501_s1 + $0x3e4] sm:$0xf]  ;;  %v1403_v42 = vor.u32 %v1632_v33, %v1400_v34 }
  0x13   :  { %v1334_v52 = vld [vmem:[%s2501_s1 + $0x260] sm:$0xf]  ;;  %v1618_v53 = vld [vmem:[%s2501_s1 + $0x26c] sm:$0xf0]  ;;  %v1207_v57 = vor.u32 %v1586_v51, %v1206_v49  ;;  %850 = vmatpush.bf16.msra.mxu3 %v1479_v50  ;;  %v1528_v38 = vld [vmem:[%s2501_s1 + $0x3f0] sm:$0xf0] }
  0x14   :  { %v1462_v54 = vld [vmem:[%s2501_s1 + $0x360] sm:$0xf]  ;;  %v1650_v55 = vld [vmem:[%s2501_s1 + $0x36c] sm:$0xf0]  ;;  %v1335_v58 = vor.u32 %v1618_v53, %v1334_v52  ;;  %812 = vmatpush.bf16.msra.mxu0 %v1079_v56  ;;  %v1564_v43 = vld [vmem:[%s2501_s1 + $0xc4] sm:$0xf]  ;;  %v1531_v46 = vor.u32 %v1664_v37, %v1528_v38 }
  0x15   :  { %v1062_v59 = vld [vmem:[%s2501_s1 + $0x40] sm:$0xf]  ;;  %v1550_v60 = vld [vmem:[%s2501_s1 + $0x4c] sm:$0xf0]  ;;  %v1463_v62 = vor.u32 %v1650_v55, %v1462_v54  ;;  %825 = vmatpush.bf16.msra.mxu1 %v1207_v57  ;;  %v1128_v44 = vld [vmem:[%s2501_s1 + $0xd0] sm:$0xf0] }
  0x16   :  { %v1190_v61 = vld [vmem:[%s2501_s1 + $0x140] sm:$0xf]  ;;  %v1582_v63 = vld [vmem:[%s2501_s1 + $0x14c] sm:$0xf0]  ;;  %v1063_v4 = vor.u32 %v1550_v60, %v1062_v59  ;;  %838 = vmatpush.bf16.msra.mxu2 %v1335_v58  ;;  %v1596_v45 = vld [vmem:[%s2501_s1 + $0x1c4] sm:$0xf]  ;;  %v1131_v52 = vor.u32 %v1564_v43, %v1128_v44 }
  0x17   :  { %v1318_v0 = vld [vmem:[%s2501_s1 + $0x240] sm:$0xf]  ;;  %v1614_v1 = vld [vmem:[%s2501_s1 + $0x24c] sm:$0xf0]  ;;  %v1191_v5 = vor.u32 %v1582_v63, %v1190_v61  ;;  %851 = vmatpush.bf16.msra.mxu3 %v1463_v62  ;;  %v1256_v47 = vld [vmem:[%s2501_s1 + $0x1d0] sm:$0xf0] }
  0x18   :  { %v1446_v2 = vld [vmem:[%s2501_s1 + $0x340] sm:$0xf]  ;;  %v1646_v3 = vld [vmem:[%s2501_s1 + $0x34c] sm:$0xf0]  ;;  %v1319_v6 = vor.u32 %v1614_v1, %v1318_v0  ;;  %813 = vmatpush.bf16.msra.mxu0 %v1063_v4  ;;  %v1628_v48 = vld [vmem:[%s2501_s1 + $0x2c4] sm:$0xf]  ;;  %v1259_v54 = vor.u32 %v1596_v45, %v1256_v47 }
  0x19   :  { %v1046_v7 = vld [vmem:[%s2501_s1 + $0x20] sm:$0xf]  ;;  %v1546_v8 = vld [vmem:[%s2501_s1 + $0x2c] sm:$0xf0]  ;;  %v1447_v10 = vor.u32 %v1646_v3, %v1446_v2  ;;  %826 = vmatpush.bf16.msra.mxu1 %v1191_v5  ;;  %v1384_v49 = vld [vmem:[%s2501_s1 + $0x2d0] sm:$0xf0] }
  0x1a   :  { %v1174_v9 = vld [vmem:[%s2501_s1 + $0x120] sm:$0xf]  ;;  %v1578_v11 = vld [vmem:[%s2501_s1 + $0x12c] sm:$0xf0]  ;;  %v1047_v16 = vor.u32 %v1546_v8, %v1046_v7  ;;  %839 = vmatpush.bf16.msra.mxu2 %v1319_v6  ;;  %v1660_v50 = vld [vmem:[%s2501_s1 + $0x3c4] sm:$0xf]  ;;  %v1387_v55 = vor.u32 %v1628_v48, %v1384_v49 }
  0x1b   :  { %v1302_v12 = vld [vmem:[%s2501_s1 + $0x220] sm:$0xf]  ;;  %v1610_v13 = vld [vmem:[%s2501_s1 + $0x22c] sm:$0xf0]  ;;  %v1175_v19 = vor.u32 %v1578_v11, %v1174_v9  ;;  %852 = vmatpush.bf16.msra.mxu3 %v1447_v10  ;;  %v1512_v51 = vld [vmem:[%s2501_s1 + $0x3d0] sm:$0xf0] }
  0x1c   :  { %v1430_v14 = vld [vmem:[%s2501_s1 + $0x320] sm:$0xf]  ;;  %v1642_v15 = vld [vmem:[%s2501_s1 + $0x32c] sm:$0xf0]  ;;  %v1303_v20 = vor.u32 %v1610_v13, %v1302_v12  ;;  %814 = vmatpush.bf16.msra.mxu0 %v1047_v16  ;;  %v1560_v53 = vld [vmem:[%s2501_s1 + $0xa4] sm:$0xf]  ;;  %v1515_v59 = vor.u32 %v1660_v50, %v1512_v51 }
  0x1d   :  { %v1030_v17 = vld [vmem:[%s2501_s1] sm:$0xf]  ;;  %v1542_v18 = vld [vmem:[%s2501_s1 + $0xc] sm:$0xf0]  ;;  %v1431_v24 = vor.u32 %v1642_v15, %v1430_v14  ;;  %827 = vmatpush.bf16.msra.mxu1 %v1175_v19  ;;  %v1112_v56 = vld [vmem:[%s2501_s1 + $0xb0] sm:$0xf0] }
  0x1e   :  { %v1158_v21 = vld [vmem:[%s2501_s1 + $0x100] sm:$0xf]  ;;  %v1574_v22 = vld [vmem:[%s2501_s1 + $0x10c] sm:$0xf0]  ;;  %v1031_v31 = vor.u32 %v1542_v18, %v1030_v17  ;;  %840 = vmatpush.bf16.msra.mxu2 %v1303_v20  ;;  %v1592_v57 = vld [vmem:[%s2501_s1 + $0x1a4] sm:$0xf]  ;;  %v1115_v0 = vor.u32 %v1560_v53, %v1112_v56 }
  0x1f   :  { %v1286_v23 = vld [vmem:[%s2501_s1 + $0x200] sm:$0xf]  ;;  %v1606_v25 = vld [vmem:[%s2501_s1 + $0x20c] sm:$0xf0]  ;;  %v1159_v35 = vor.u32 %v1574_v22, %v1158_v21  ;;  %853 = vmatpush.bf16.msra.mxu3 %v1431_v24  ;;  %v1240_v58 = vld [vmem:[%s2501_s1 + $0x1b0] sm:$0xf0] }
  0x20   :  { %v1414_v26 = vld [vmem:[%s2501_s1 + $0x300] sm:$0xf]  ;;  %v1638_v27 = vld [vmem:[%s2501_s1 + $0x30c] sm:$0xf0]  ;;  %v1287_v36 = vor.u32 %v1606_v25, %v1286_v23  ;;  %815 = vmatpush.bf16.msra.mxu0 %v1031_v31  ;;  %v1624_v60 = vld [vmem:[%s2501_s1 + $0x2a4] sm:$0xf]  ;;  %v1243_v1 = vor.u32 %v1592_v57, %v1240_v58 }
  0x21   :  { %v1415_v39 = vor.u32 %v1638_v27, %v1414_v26  ;;  %828 = vmatpush.bf16.msra.mxu1 %v1159_v35  ;;  %v1368_v61 = vld [vmem:[%s2501_s1 + $0x2b0] sm:$0xf0]  ;;  %v1656_v62 = vld [vmem:[%s2501_s1 + $0x3a4] sm:$0xf]  ;;  %v15_v2 = vld [vmem:[%s2502_s0 + $0x8] sm:$0xff] }
  0x22   :  { %841 = vmatpush.bf16.msra.mxu2 %v1287_v36  ;;  %v1496_v63 = vld [vmem:[%s2501_s1 + $0x3b0] sm:$0xf0]  ;;  %v14_v3 = vld [vmem:[%s2502_s0] sm:$0xff]  ;;  %v1371_v4 = vor.u32 %v1624_v60, %v1368_v61  ;;  %v158_v8 = vunpack.c.l.b16 %v15_v2  ;;  %v159_v9 = vunpack.c.h.b16 %v15_v2 }
  0x23   :  { %854 = vmatpush.bf16.msra.mxu3 %v1415_v39  ;;  %v1556_v5 = vld [vmem:[%s2501_s1 + $0x84] sm:$0xf]  ;;  %v1096_v6 = vld [vmem:[%s2501_s1 + $0x90] sm:$0xf0]  ;;  %v156_v10 = vunpack.c.l.b16 %v14_v3  ;;  %v1499_v11 = vor.u32 %v1656_v62, %v1496_v63  ;;  %v157_v15 = vunpack.c.h.b16 %v14_v3 }
  0x24   :  { %860 = vmatpush.bf16.msrb.mxu0 %v1147_v40  ;;  %v1588_v7 = vld [vmem:[%s2501_s1 + $0x184] sm:$0xf]  ;;  %v1224_v12 = vld [vmem:[%s2501_s1 + $0x190] sm:$0xf0]  ;;  %v1982_v18 = vpack.c.b16 %v158_v8, %v158_v8  ;;  %v1984_v19 = vpack.c.b16 %v159_v9, %v159_v9  ;;  %v1099_v21 = vor.u32 %v1556_v5, %v1096_v6  ;;  %v1150_v6 = vld [vmem:[%s2501_s1 + $0xe8] sm:$0xf] }
  0x25   :  { %873 = vmatpush.bf16.msrb.mxu1 %v1275_v41  ;;  %v1620_v13 = vld [vmem:[%s2501_s1 + $0x284] sm:$0xf]  ;;  %v1352_v14 = vld [vmem:[%s2501_s1 + $0x290] sm:$0xf0]  ;;  %v1986_v20 = vpack.c.b16 %v156_v10, %v156_v10  ;;  %v1988_v22 = vpack.c.b16 %v157_v15, %v157_v15  ;;  %v1227_v23 = vor.u32 %v1588_v7, %v1224_v12  ;;  %v1571_v7 = vld [vmem:[%s2501_s1 + $0xf4] sm:$0xf0] }
  0x26   :  { %886 = vmatpush.bf16.msrb.mxu2 %v1403_v42  ;;  %v1652_v16 = vld [vmem:[%s2501_s1 + $0x384] sm:$0xf]  ;;  %v1480_v17 = vld [vmem:[%s2501_s1 + $0x390] sm:$0xf0]  ;;  %v1355_v24 = vor.u32 %v1620_v13, %v1352_v14  ;;  %855 = vmatmul.bf16.vlgmr.msra.gmra.mxu3 %v1984_v19  ;;  %v1278_v8 = vld [vmem:[%s2501_s1 + $0x1e8] sm:$0xf] }
  0x27   :  { %899 = vmatpush.bf16.msrb.mxu3 %v1531_v46  ;;  %v1552_v25 = vld [vmem:[%s2501_s1 + $0x64] sm:$0xf]  ;;  %v1080_v26 = vld [vmem:[%s2501_s1 + $0x70] sm:$0xf0]  ;;  %v1483_v28 = vor.u32 %v1652_v16, %v1480_v17  ;;  %842 = vmatmul.bf16.vlgmr.msra.gmra.mxu2 %v1982_v18  ;;  %v1603_v10 = vld [vmem:[%s2501_s1 + $0x1f4] sm:$0xf0] }
  0x28   :  { %861 = vmatpush.bf16.msrb.mxu0 %v1131_v52  ;;  %v1584_v27 = vld [vmem:[%s2501_s1 + $0x164] sm:$0xf]  ;;  %v1208_v29 = vld [vmem:[%s2501_s1 + $0x170] sm:$0xf0]  ;;  %v1083_v34 = vor.u32 %v1552_v25, %v1080_v26  ;;  %829 = vmatmul.bf16.vlgmr.msra.gmra.mxu1 %v1988_v22  ;;  %v1635_v12 = vld [vmem:[%s2501_s1 + $0x2f4] sm:$0xf0] }
  0x29   :  { %874 = vmatpush.bf16.msrb.mxu1 %v1259_v54  ;;  %v1616_v30 = vld [vmem:[%s2501_s1 + $0x264] sm:$0xf]  ;;  %v1336_v31 = vld [vmem:[%s2501_s1 + $0x270] sm:$0xf0]  ;;  %816 = vmatmul.bf16.vlgmr.msra.gmra.mxu0 %v1986_v20  ;;  %v1211_v35 = vor.u32 %v1584_v27, %v1208_v29  ;;  %v1534_v15 = vld [vmem:[%s2501_s1 + $0x3e8] sm:$0xf] }
  0x2a   :  { %887 = vmatpush.bf16.msrb.mxu2 %v1387_v55  ;;  %v1648_v32 = vld [vmem:[%s2501_s1 + $0x364] sm:$0xf]  ;;  %v1464_v33 = vld [vmem:[%s2501_s1 + $0x370] sm:$0xf0]  ;;  %v1339_v36 = vor.u32 %v1616_v30, %v1336_v31  ;;  %v1667_v16 = vld [vmem:[%s2501_s1 + $0x3f4] sm:$0xf0] }
  0x2b   :  { %900 = vmatpush.bf16.msrb.mxu3 %v1515_v59  ;;  %v1548_v37 = vld [vmem:[%s2501_s1 + $0x44] sm:$0xf]  ;;  %v1064_v38 = vld [vmem:[%s2501_s1 + $0x50] sm:$0xf0]  ;;  %v1467_v40 = vor.u32 %v1648_v32, %v1464_v33  ;;  %v1134_v25 = vld [vmem:[%s2501_s1 + $0xc8] sm:$0xf] }
  0x2c   :  { %862 = vmatpush.bf16.msrb.mxu0 %v1115_v0  ;;  %v1580_v39 = vld [vmem:[%s2501_s1 + $0x144] sm:$0xf]  ;;  %v1192_v41 = vld [vmem:[%s2501_s1 + $0x150] sm:$0xf0]  ;;  %v1067_v46 = vor.u32 %v1548_v37, %v1064_v38  ;;  %v1567_v26 = vld [vmem:[%s2501_s1 + $0xd4] sm:$0xf0] }
  0x2d   :  { %875 = vmatpush.bf16.msrb.mxu1 %v1243_v1  ;;  %v1612_v42 = vld [vmem:[%s2501_s1 + $0x244] sm:$0xf]  ;;  %v1320_v43 = vld [vmem:[%s2501_s1 + $0x250] sm:$0xf0]  ;;  %v1195_v47 = vor.u32 %v1580_v39, %v1192_v41  ;;  %v1262_v27 = vld [vmem:[%s2501_s1 + $0x1c8] sm:$0xf] }
  0x2e   :  { %888 = vmatpush.bf16.msrb.mxu2 %v1371_v4  ;;  %v1644_v44 = vld [vmem:[%s2501_s1 + $0x344] sm:$0xf]  ;;  %v1448_v45 = vld [vmem:[%s2501_s1 + $0x350] sm:$0xf0]  ;;  %v1323_v48 = vor.u32 %v1612_v42, %v1320_v43  ;;  %v1599_v29 = vld [vmem:[%s2501_s1 + $0x1d4] sm:$0xf0] }
  0x2f   :  { %901 = vmatpush.bf16.msrb.mxu3 %v1499_v11  ;;  %v1544_v49 = vld [vmem:[%s2501_s1 + $0x24] sm:$0xf]  ;;  %v1048_v50 = vld [vmem:[%s2501_s1 + $0x30] sm:$0xf0]  ;;  %v1451_v52 = vor.u32 %v1644_v44, %v1448_v45  ;;  %v1406_v11 = vld [vmem:[%s2501_s1 + $0x2e8] sm:$0xf] }
  0x30   :  { %863 = vmatpush.bf16.msrb.mxu0 %v1099_v21  ;;  %v1576_v51 = vld [vmem:[%s2501_s1 + $0x124] sm:$0xf]  ;;  %v1176_v53 = vld [vmem:[%s2501_s1 + $0x130] sm:$0xf0]  ;;  %v1051_v58 = vor.u32 %v1544_v49, %v1048_v50  ;;  %v1151_v21 = vor.u32 %v1571_v7, %v1150_v6  ;;  %v1390_v30 = vld [vmem:[%s2501_s1 + $0x2c8] sm:$0xf] }
  0x31   :  { %876 = vmatpush.bf16.msrb.mxu1 %v1227_v23  ;;  %v1608_v54 = vld [vmem:[%s2501_s1 + $0x224] sm:$0xf]  ;;  %v1304_v55 = vld [vmem:[%s2501_s1 + $0x230] sm:$0xf0]  ;;  %v1179_v61 = vor.u32 %v1576_v51, %v1176_v53  ;;  %v1279_v23 = vor.u32 %v1603_v10, %v1278_v8  ;;  %v1631_v31 = vld [vmem:[%s2501_s1 + $0x2d4] sm:$0xf0] }
  0x32   :  { %889 = vmatpush.bf16.msrb.mxu2 %v1355_v24  ;;  %v1640_v56 = vld [vmem:[%s2501_s1 + $0x324] sm:$0xf]  ;;  %v1432_v57 = vld [vmem:[%s2501_s1 + $0x330] sm:$0xf0]  ;;  %v1307_v62 = vor.u32 %v1608_v54, %v1304_v55  ;;  %v1407_v24 = vor.u32 %v1635_v12, %v1406_v11  ;;  %v1518_v32 = vld [vmem:[%s2501_s1 + $0x3c8] sm:$0xf] }
  0x33   :  { %902 = vmatpush.bf16.msrb.mxu3 %v1483_v28  ;;  %v1540_v59 = vld [vmem:[%s2501_s1 + $0x4] sm:$0xf]  ;;  %v1032_v60 = vld [vmem:[%s2501_s1 + $0x10] sm:$0xf0]  ;;  %v1435_v2 = vor.u32 %v1640_v56, %v1432_v57  ;;  %v1535_v28 = vor.u32 %v1667_v16, %v1534_v15  ;;  %v1663_v33 = vld [vmem:[%s2501_s1 + $0x3d4] sm:$0xf0] }
  0x34   :  { %864 = vmatpush.bf16.msrb.mxu0 %v1083_v34  ;;  %v1572_v63 = vld [vmem:[%s2501_s1 + $0x104] sm:$0xf]  ;;  %v1160_v0 = vld [vmem:[%s2501_s1 + $0x110] sm:$0xf0]  ;;  %v1035_v9 = vor.u32 %v1540_v59, %v1032_v60  ;;  %v1135_v34 = vor.u32 %v1567_v26, %v1134_v25  ;;  %v1118_v37 = vld [vmem:[%s2501_s1 + $0xa8] sm:$0xf] }
  0x35   :  { %877 = vmatpush.bf16.msrb.mxu1 %v1211_v35  ;;  %v1604_v1 = vld [vmem:[%s2501_s1 + $0x204] sm:$0xf]  ;;  %v1288_v3 = vld [vmem:[%s2501_s1 + $0x210] sm:$0xf0]  ;;  %v1163_v13 = vor.u32 %v1572_v63, %v1160_v0  ;;  %v1263_v35 = vor.u32 %v1599_v29, %v1262_v27  ;;  %v1563_v38 = vld [vmem:[%s2501_s1 + $0xb4] sm:$0xf0] }
  0x36   :  { %890 = vmatpush.bf16.msrb.mxu2 %v1339_v36  ;;  %v1636_v4 = vld [vmem:[%s2501_s1 + $0x304] sm:$0xf]  ;;  %v1416_v5 = vld [vmem:[%s2501_s1 + $0x310] sm:$0xf0]  ;;  %v1291_v14 = vor.u32 %v1604_v1, %v1288_v3  ;;  %v1391_v36 = vor.u32 %v1631_v31, %v1390_v30  ;;  %v1246_v39 = vld [vmem:[%s2501_s1 + $0x1a8] sm:$0xf] }
  0x37   :  { %903 = vmatpush.bf16.msrb.mxu3 %v1467_v40  ;;  %v1419_v17 = vor.u32 %v1636_v4, %v1416_v5  ;;  %v1519_v40 = vor.u32 %v1663_v33, %v1518_v32  ;;  %v1595_v41 = vld [vmem:[%s2501_s1 + $0x1b4] sm:$0xf0]  ;;  %v1374_v42 = vld [vmem:[%s2501_s1 + $0x2a8] sm:$0xf] }
  0x38   :  { %865 = vmatpush.bf16.msrb.mxu0 %v1067_v46  ;;  %v1627_v43 = vld [vmem:[%s2501_s1 + $0x2b4] sm:$0xf0]  ;;  %v1502_v44 = vld [vmem:[%s2501_s1 + $0x3a8] sm:$0xf]  ;;  %v1119_v46 = vor.u32 %v1563_v38, %v1118_v37 }
  0x39   :  { %878 = vmatpush.bf16.msrb.mxu1 %v1195_v47  ;;  %v1659_v45 = vld [vmem:[%s2501_s1 + $0x3b4] sm:$0xf0]  ;;  %v1247_v47 = vor.u32 %v1595_v41, %v1246_v39  ;;  %v1102_v49 = vld [vmem:[%s2501_s1 + $0x88] sm:$0xf] }
  0x3a   :  { %891 = vmatpush.bf16.msrb.mxu2 %v1323_v48  ;;  %v1375_v48 = vor.u32 %v1627_v43, %v1374_v42  ;;  %v1559_v50 = vld [vmem:[%s2501_s1 + $0x94] sm:$0xf0]  ;;  %v1230_v51 = vld [vmem:[%s2501_s1 + $0x188] sm:$0xf] }
  0x3b   :  { %904 = vmatpush.bf16.msrb.mxu3 %v1451_v52  ;;  %v1503_v52 = vor.u32 %v1659_v45, %v1502_v44  ;;  %v1591_v53 = vld [vmem:[%s2501_s1 + $0x194] sm:$0xf0]  ;;  %v1358_v54 = vld [vmem:[%s2501_s1 + $0x288] sm:$0xf] }
  0x3c   :  { %866 = vmatpush.bf16.msrb.mxu0 %v1051_v58  ;;  %v1623_v55 = vld [vmem:[%s2501_s1 + $0x294] sm:$0xf0]  ;;  %v1486_v56 = vld [vmem:[%s2501_s1 + $0x388] sm:$0xf]  ;;  %v1103_v58 = vor.u32 %v1559_v50, %v1102_v49  ;;  %v1231_v59 = vor.u32 %v1591_v53, %v1230_v51  ;;  %v1280_v50 = vld [vmem:[%s2501_s1 + $0x1f8] sm:$0xf0] }
  0x3d   :  { %879 = vmatpush.bf16.msrb.mxu1 %v1179_v61  ;;  %v1655_v57 = vld [vmem:[%s2501_s1 + $0x394] sm:$0xf0]  ;;  %v1359_v60 = vor.u32 %v1623_v55, %v1358_v54  ;;  %v1086_v61 = vld [vmem:[%s2501_s1 + $0x68] sm:$0xf]  ;;  %v1633_v51 = vld [vmem:[%s2501_s1 + $0x2ec] sm:$0xf] }
  0x3e   :  { %892 = vmatpush.bf16.msrb.mxu2 %v1307_v62  ;;  %v1555_v62 = vld [vmem:[%s2501_s1 + $0x74] sm:$0xf0]  ;;  %v1214_v63 = vld [vmem:[%s2501_s1 + $0x168] sm:$0xf]  ;;  %v1487_v0 = vor.u32 %v1655_v57, %v1486_v56  ;;  %v1665_v55 = vld [vmem:[%s2501_s1 + $0x3ec] sm:$0xf] }
  0x3f   :  { %905 = vmatpush.bf16.msrb.mxu3 %v1435_v2  ;;  %v1587_v1 = vld [vmem:[%s2501_s1 + $0x174] sm:$0xf0]  ;;  %v1342_v2 = vld [vmem:[%s2501_s1 + $0x268] sm:$0xf]  ;;  %v1087_v6 = vor.u32 %v1555_v62, %v1086_v61  ;;  %v1536_v56 = vld [vmem:[%s2501_s1 + $0x3f8] sm:$0xf0] }
  0x40   :  { %867 = vmatpush.bf16.msrb.mxu0 %v1035_v9  ;;  %v1619_v3 = vld [vmem:[%s2501_s1 + $0x274] sm:$0xf0]  ;;  %v1470_v4 = vld [vmem:[%s2501_s1 + $0x368] sm:$0xf]  ;;  %v1215_v7 = vor.u32 %v1587_v1, %v1214_v63  ;;  %v1565_v61 = vld [vmem:[%s2501_s1 + $0xcc] sm:$0xf] }
  0x41   :  { %880 = vmatpush.bf16.msrb.mxu1 %v1163_v13  ;;  %v1651_v5 = vld [vmem:[%s2501_s1 + $0x374] sm:$0xf0]  ;;  %v1343_v8 = vor.u32 %v1619_v3, %v1342_v2  ;;  %v1070_v9 = vld [vmem:[%s2501_s1 + $0x48] sm:$0xf]  ;;  %v1136_v62 = vld [vmem:[%s2501_s1 + $0xd8] sm:$0xf0] }
  0x42   :  { %893 = vmatpush.bf16.msrb.mxu2 %v1291_v14  ;;  %v1551_v10 = vld [vmem:[%s2501_s1 + $0x54] sm:$0xf0]  ;;  %v1198_v11 = vld [vmem:[%s2501_s1 + $0x148] sm:$0xf]  ;;  %v1471_v12 = vor.u32 %v1651_v5, %v1470_v4  ;;  %v1597_v63 = vld [vmem:[%s2501_s1 + $0x1cc] sm:$0xf] }
  0x43   :  { %906 = vmatpush.bf16.msrb.mxu3 %v1419_v17  ;;  %868 = vmatmul.bf16.vlgmr.msrb.gmra.mxu0 %v1986_v20  ;;  %v1583_v13 = vld [vmem:[%s2501_s1 + $0x154] sm:$0xf0]  ;;  %v1326_v14 = vld [vmem:[%s2501_s1 + $0x248] sm:$0xf]  ;;  %v1264_v1 = vld [vmem:[%s2501_s1 + $0x1d8] sm:$0xf0] }
  0x44   :  { %912 = vmatpush.bf16.msra.mxu0 %v1151_v21  ;;  %881 = vmatmul.bf16.vlgmr.msrb.gmra.mxu1 %v1988_v22  ;;  %v1615_v15 = vld [vmem:[%s2501_s1 + $0x254] sm:$0xf0]  ;;  %v1454_v16 = vld [vmem:[%s2501_s1 + $0x348] sm:$0xf]  ;;  %v1071_v21 = vor.u32 %v1551_v10, %v1070_v9  ;;  %v1629_v2 = vld [vmem:[%s2501_s1 + $0x2cc] sm:$0xf] }
  0x45   :  { %925 = vmatpush.bf16.msra.mxu1 %v1279_v23  ;;  %894 = vmatmul.bf16.vlgmr.msrb.gmra.mxu2 %v1982_v18  ;;  %v1647_v17 = vld [vmem:[%s2501_s1 + $0x354] sm:$0xf0]  ;;  %v1199_v23 = vor.u32 %v1583_v13, %v1198_v11  ;;  %v1054_v25 = vld [vmem:[%s2501_s1 + $0x28] sm:$0xf]  ;;  %v1392_v3 = vld [vmem:[%s2501_s1 + $0x2d8] sm:$0xf0] }
  0x46   :  { %938 = vmatpush.bf16.msra.mxu2 %v1407_v24  ;;  %907 = vmatmul.bf16.vlgmr.msrb.gmra.mxu3 %v1984_v19  ;;  %v1327_v24 = vor.u32 %v1615_v15, %v1326_v14  ;;  %v1547_v26 = vld [vmem:[%s2501_s1 + $0x34] sm:$0xf0]  ;;  %v1182_v27 = vld [vmem:[%s2501_s1 + $0x128] sm:$0xf]  ;;  %v1661_v4 = vld [vmem:[%s2501_s1 + $0x3cc] sm:$0xf] }
  0x47   :  { %951 = vmatpush.bf16.msra.mxu3 %v1535_v28  ;;  %v1455_v28 = vor.u32 %v1647_v17, %v1454_v16  ;;  %v1579_v29 = vld [vmem:[%s2501_s1 + $0x134] sm:$0xf0]  ;;  %v1310_v30 = vld [vmem:[%s2501_s1 + $0x228] sm:$0xf]  ;;  %v1520_v5 = vld [vmem:[%s2501_s1 + $0x3d8] sm:$0xf0] }
  0x48   :  { %913 = vmatpush.bf16.msra.mxu0 %v1135_v34  ;;  %v1611_v31 = vld [vmem:[%s2501_s1 + $0x234] sm:$0xf0]  ;;  %v1438_v32 = vld [vmem:[%s2501_s1 + $0x328] sm:$0xf]  ;;  %v1055_v34 = vor.u32 %v1547_v26, %v1054_v25  ;;  %v1183_v37 = vor.u32 %v1579_v29, %v1182_v27  ;;  %v1561_v9 = vld [vmem:[%s2501_s1 + $0xac] sm:$0xf] }
  0x49   :  { %926 = vmatpush.bf16.msra.mxu1 %v1263_v35  ;;  %v1643_v33 = vld [vmem:[%s2501_s1 + $0x334] sm:$0xf0]  ;;  %v1038_v35 = vld [vmem:[%s2501_s1 + $0x8] sm:$0xf]  ;;  %v1311_v38 = vor.u32 %v1611_v31, %v1310_v30  ;;  %v1120_v10 = vld [vmem:[%s2501_s1 + $0xb8] sm:$0xf0] }
  0x4a   :  { %939 = vmatpush.bf16.msra.mxu2 %v1391_v36  ;;  %v1543_v36 = vld [vmem:[%s2501_s1 + $0x14] sm:$0xf0]  ;;  %v1166_v39 = vld [vmem:[%s2501_s1 + $0x108] sm:$0xf]  ;;  %v1439_v42 = vor.u32 %v1643_v33, %v1438_v32  ;;  %v1593_v11 = vld [vmem:[%s2501_s1 + $0x1ac] sm:$0xf] }
  0x4b   :  { %952 = vmatpush.bf16.msra.mxu3 %v1519_v40  ;;  %v1575_v40 = vld [vmem:[%s2501_s1 + $0x114] sm:$0xf0]  ;;  %v1294_v41 = vld [vmem:[%s2501_s1 + $0x208] sm:$0xf]  ;;  %v1039_v49 = vor.u32 %v1543_v36, %v1038_v35  ;;  %v1248_v13 = vld [vmem:[%s2501_s1 + $0x1b8] sm:$0xf0] }
  0x4c   :  { %914 = vmatpush.bf16.msra.mxu0 %v1119_v46  ;;  %v1607_v43 = vld [vmem:[%s2501_s1 + $0x214] sm:$0xf0]  ;;  %v1422_v44 = vld [vmem:[%s2501_s1 + $0x308] sm:$0xf]  ;;  %v1569_v46 = vld [vmem:[%s2501_s1 + $0xec] sm:$0xf]  ;;  %v1167_v53 = vor.u32 %v1575_v40, %v1166_v39 }
  0x4d   :  { %927 = vmatpush.bf16.msra.mxu1 %v1247_v47  ;;  %v1639_v45 = vld [vmem:[%s2501_s1 + $0x314] sm:$0xf0]  ;;  %v1152_v47 = vld [vmem:[%s2501_s1 + $0xf8] sm:$0xf0]  ;;  %v1295_v54 = vor.u32 %v1607_v43, %v1294_v41  ;;  %v1625_v14 = vld [vmem:[%s2501_s1 + $0x2ac] sm:$0xf] }
  0x4e   :  { %940 = vmatpush.bf16.msra.mxu2 %v1375_v48  ;;  %v1601_v48 = vld [vmem:[%s2501_s1 + $0x1ec] sm:$0xf]  ;;  %v1423_v57 = vor.u32 %v1639_v45, %v1422_v44  ;;  %v1376_v15 = vld [vmem:[%s2501_s1 + $0x2b8] sm:$0xf0] }
  0x4f   :  { %953 = vmatpush.bf16.msra.mxu3 %v1503_v52  ;;  %v1408_v52 = vld [vmem:[%s2501_s1 + $0x2f8] sm:$0xf0]  ;;  %v1657_v16 = vld [vmem:[%s2501_s1 + $0x3ac] sm:$0xf] }
  0x50   :  { %915 = vmatpush.bf16.msra.mxu0 %v1103_v58  ;;  %v1155_v58 = vor.u32 %v1569_v46, %v1152_v47  ;;  %v1504_v17 = vld [vmem:[%s2501_s1 + $0x3b8] sm:$0xf0]  ;;  %v1557_v25 = vld [vmem:[%s2501_s1 + $0x8c] sm:$0xf] }
  0x51   :  { %928 = vmatpush.bf16.msra.mxu1 %v1231_v59  ;;  %v1283_v59 = vor.u32 %v1601_v48, %v1280_v50  ;;  %v1104_v26 = vld [vmem:[%s2501_s1 + $0x98] sm:$0xf0]  ;;  %v1589_v27 = vld [vmem:[%s2501_s1 + $0x18c] sm:$0xf] }
  0x52   :  { %941 = vmatpush.bf16.msra.mxu2 %v1359_v60  ;;  %v1411_v60 = vor.u32 %v1633_v51, %v1408_v52  ;;  %v1232_v29 = vld [vmem:[%s2501_s1 + $0x198] sm:$0xf0]  ;;  %v1621_v30 = vld [vmem:[%s2501_s1 + $0x28c] sm:$0xf] }
  0x53   :  { %954 = vmatpush.bf16.msra.mxu3 %v1487_v0  ;;  %v1539_v0 = vor.u32 %v1665_v55, %v1536_v56  ;;  %v1360_v31 = vld [vmem:[%s2501_s1 + $0x298] sm:$0xf0]  ;;  %v1653_v32 = vld [vmem:[%s2501_s1 + $0x38c] sm:$0xf]  ;;  %v1235_v35 = vor.u32 %v1589_v27, %v1232_v29 }
  0x54   :  { %916 = vmatpush.bf16.msra.mxu0 %v1087_v6  ;;  %v1139_v6 = vor.u32 %v1565_v61, %v1136_v62  ;;  %v1488_v33 = vld [vmem:[%s2501_s1 + $0x398] sm:$0xf0]  ;;  %v1363_v36 = vor.u32 %v1621_v30, %v1360_v31  ;;  %v1585_v39 = vld [vmem:[%s2501_s1 + $0x16c] sm:$0xf] }
  0x55   :  { %929 = vmatpush.bf16.msra.mxu1 %v1215_v7  ;;  %v1267_v7 = vor.u32 %v1597_v63, %v1264_v1  ;;  %v1491_v40 = vor.u32 %v1653_v32, %v1488_v33  ;;  %v1216_v41 = vld [vmem:[%s2501_s1 + $0x178] sm:$0xf0]  ;;  %v1649_v44 = vld [vmem:[%s2501_s1 + $0x36c] sm:$0xf] }
  0x56   :  { %942 = vmatpush.bf16.msra.mxu2 %v1343_v8  ;;  %v1395_v8 = vor.u32 %v1629_v2, %v1392_v3  ;;  %v1344_v43 = vld [vmem:[%s2501_s1 + $0x278] sm:$0xf0]  ;;  %v1219_v47 = vor.u32 %v1585_v39, %v1216_v41  ;;  %v1581_v51 = vld [vmem:[%s2501_s1 + $0x14c] sm:$0xf] }
  0x57   :  { %955 = vmatpush.bf16.msra.mxu3 %v1471_v12  ;;  %v1523_v12 = vor.u32 %v1661_v4, %v1520_v5  ;;  %v1472_v45 = vld [vmem:[%s2501_s1 + $0x378] sm:$0xf0]  ;;  %v1645_v56 = vld [vmem:[%s2501_s1 + $0x34c] sm:$0xf] }
  0x58   :  { %917 = vmatpush.bf16.msra.mxu0 %v1071_v21  ;;  %v1123_v21 = vor.u32 %v1561_v9, %v1120_v10  ;;  %v1072_v50 = vld [vmem:[%s2501_s1 + $0x58] sm:$0xf0]  ;;  %v1475_v52 = vor.u32 %v1649_v44, %v1472_v45  ;;  %v1545_v61 = vld [vmem:[%s2501_s1 + $0x2c] sm:$0xf] }
  0x59   :  { %930 = vmatpush.bf16.msra.mxu1 %v1199_v23  ;;  %v1251_v23 = vor.u32 %v1593_v11, %v1248_v13  ;;  %v1328_v55 = vld [vmem:[%s2501_s1 + $0x258] sm:$0xf0]  ;;  %v1577_v63 = vld [vmem:[%s2501_s1 + $0x12c] sm:$0xf] }
  0x5a   :  { %943 = vmatpush.bf16.msra.mxu2 %v1327_v24  ;;  %v1379_v24 = vor.u32 %v1625_v14, %v1376_v15  ;;  %v1056_v62 = vld [vmem:[%s2501_s1 + $0x38] sm:$0xf0]  ;;  %v1609_v2 = vld [vmem:[%s2501_s1 + $0x22c] sm:$0xf] }
  0x5b   :  { %956 = vmatpush.bf16.msra.mxu3 %v1455_v28  ;;  %v1507_v28 = vor.u32 %v1657_v16, %v1504_v17  ;;  %v1184_v1 = vld [vmem:[%s2501_s1 + $0x138] sm:$0xf0]  ;;  %v1641_v4 = vld [vmem:[%s2501_s1 + $0x32c] sm:$0xf] }
  0x5c   :  { %918 = vmatpush.bf16.msra.mxu0 %v1055_v34  ;;  %v1107_v34 = vor.u32 %v1557_v25, %v1104_v26  ;;  %v1312_v3 = vld [vmem:[%s2501_s1 + $0x238] sm:$0xf0]  ;;  %v1541_v9 = vld [vmem:[%s2501_s1 + $0xc] sm:$0xf]  ;;  %v144_v26 = vld [vmem:[%s2503_s2] sm:$0xf] }
  0x5d   :  { %931 = vmatpush.bf16.msra.mxu1 %v1183_v37  ;;  %v1553_v37 = vld [vmem:[%s2501_s1 + $0x6c] sm:$0xf]  ;;  %v1440_v5 = vld [vmem:[%s2501_s1 + $0x338] sm:$0xf0]  ;;  %v146_v27 = vperm.slane %v144_v26, 0 }
  0x5e   :  { %944 = vmatpush.bf16.msra.mxu2 %v1311_v38  ;;  %v1088_v38 = vld [vmem:[%s2501_s1 + $0x78] sm:$0xf0]  ;;  %v1573_v11 = vld [vmem:[%s2501_s1 + $0x10c] sm:$0xf] }
  0x5f   :  { %957 = vmatpush.bf16.msra.mxu3 %v1439_v42  ;;  %v1617_v42 = vld [vmem:[%s2501_s1 + $0x26c] sm:$0xf]  ;;  %v1091_v46 = vor.u32 %v1553_v37, %v1088_v38  ;;  %v1040_v10 = vld [vmem:[%s2501_s1 + $0x18] sm:$0xf0]  ;;  %v147_v37 = vperm.slane %v144_v26, 1 }
  0x60   :  { %919 = vmatpush.bf16.msra.mxu0 %v1039_v49  ;;  %v1347_v48 = vor.u32 %v1617_v42, %v1344_v43  ;;  %v1549_v49 = vld [vmem:[%s2501_s1 + $0x4c] sm:$0xf]  ;;  %v1168_v13 = vld [vmem:[%s2501_s1 + $0x118] sm:$0xf0] }
  0x61   :  { %932 = vmatpush.bf16.msra.mxu1 %v1167_v53  ;;  %v1200_v53 = vld [vmem:[%s2501_s1 + $0x158] sm:$0xf0]  ;;  %v1605_v14 = vld [vmem:[%s2501_s1 + $0x20c] sm:$0xf] }
  0x62   :  { %945 = vmatpush.bf16.msra.mxu2 %v1295_v54  ;;  %v1613_v54 = vld [vmem:[%s2501_s1 + $0x24c] sm:$0xf]  ;;  %v1296_v15 = vld [vmem:[%s2501_s1 + $0x218] sm:$0xf0] }
  0x63   :  { %958 = vmatpush.bf16.msra.mxu3 %v1423_v57  ;;  %920 = vmatmul.bf16.vlgmr.msra.gmra.mxu0 %v1986_v20  ;;  %v1456_v57 = vld [vmem:[%s2501_s1 + $0x358] sm:$0xf0]  ;;  %v1637_v16 = vld [vmem:[%s2501_s1 + $0x30c] sm:$0xf] }
  0x64   :  { %964 = vmatpush.bf16.msrb.mxu0 %v1155_v58  ;;  %933 = vmatmul.bf16.vlgmr.msra.gmra.mxu1 %v1988_v22  ;;  %v1075_v58 = vor.u32 %v1549_v49, %v1072_v50  ;;  %v1424_v17 = vld [vmem:[%s2501_s1 + $0x318] sm:$0xf0] }
  0x65   :  { %977 = vmatpush.bf16.msrb.mxu1 %v1283_v59  ;;  %946 = vmatmul.bf16.vlgmr.msra.gmra.mxu2 %v1982_v18  ;;  %v1203_v59 = vor.u32 %v1581_v51, %v1200_v53  ;;  %v1427_v25 = vor.u32 %v1637_v16, %v1424_v17  ;;  %v148_v51 = vperm.slane %v144_v26, 2 }
  0x66   :  { %990 = vmatpush.bf16.msrb.mxu2 %v1411_v60  ;;  %959 = vmatmul.bf16.vlgmr.msra.gmra.mxu3 %v1984_v19  ;;  %v1331_v60 = vor.u32 %v1613_v54, %v1328_v55 }
  0x67   :  { %1003 = vmatpush.bf16.msrb.mxu3 %v1539_v0  ;;  %v1459_v0 = vor.u32 %v1645_v56, %v1456_v57 }
  0x68   :  { %965 = vmatpush.bf16.msrb.mxu0 %v1139_v6  ;;  %v1059_v6 = vor.u32 %v1545_v61, %v1056_v62 }
  0x69   :  { %978 = vmatpush.bf16.msrb.mxu1 %v1267_v7  ;;  %v1187_v7 = vor.u32 %v1577_v63, %v1184_v1  ;;  %v149_v1 = vperm.slane %v144_v26, 3 }
  0x6a   :  { %991 = vmatpush.bf16.msrb.mxu2 %v1395_v8  ;;  %v1315_v8 = vor.u32 %v1609_v2, %v1312_v3 }
  0x6b   :  { %1004 = vmatpush.bf16.msrb.mxu3 %v1523_v12  ;;  %v1443_v12 = vor.u32 %v1641_v4, %v1440_v5 }
  0x6c   :  { %966 = vmatpush.bf16.msrb.mxu0 %v1123_v21  ;;  %v1043_v21 = vor.u32 %v1541_v9, %v1040_v10 }
  0x6d   :  { %979 = vmatpush.bf16.msrb.mxu1 %v1251_v23  ;;  %v1171_v23 = vor.u32 %v1573_v11, %v1168_v13 }
  0x6e   :  { %992 = vmatpush.bf16.msrb.mxu2 %v1379_v24  ;;  %v1299_v24 = vor.u32 %v1605_v14, %v1296_v15 }
  0x6f   :  { %1005 = vmatpush.bf16.msrb.mxu3 %v1507_v28 }
  0x70   :  { %967 = vmatpush.bf16.msrb.mxu0 %v1107_v34 }
  0x71   :  { %980 = vmatpush.bf16.msrb.mxu1 %v1235_v35 }
  0x72   :  { %993 = vmatpush.bf16.msrb.mxu2 %v1363_v36 }
  0x73   :  { %1006 = vmatpush.bf16.msrb.mxu3 %v1491_v40 }
  0x74   :  { %968 = vmatpush.bf16.msrb.mxu0 %v1091_v46 }
  0x75   :  { %981 = vmatpush.bf16.msrb.mxu1 %v1219_v47 }
  0x76   :  { %994 = vmatpush.bf16.msrb.mxu2 %v1347_v48 }
  0x77   :  { %1007 = vmatpush.bf16.msrb.mxu3 %v1475_v52 }
  0x78   :  { %969 = vmatpush.bf16.msrb.mxu0 %v1075_v58 }
  0x79   :  { %982 = vmatpush.bf16.msrb.mxu1 %v1203_v59 }
  0x7a   :  { %995 = vmatpush.bf16.msrb.mxu2 %v1331_v60 }
  0x7b   :  { %1008 = vmatpush.bf16.msrb.mxu3 %v1459_v0 }
  0x7c   :  { %970 = vmatpush.bf16.msrb.mxu0 %v1059_v6 }
  0x7d   :  { %983 = vmatpush.bf16.msrb.mxu1 %v1187_v7 }
  0x7e   :  { %996 = vmatpush.bf16.msrb.mxu2 %v1315_v8 }
  0x7f   :  { %1009 = vmatpush.bf16.msrb.mxu3 %v1443_v12 }
  0x80   :  { %971 = vmatpush.bf16.msrb.mxu0 %v1043_v21 }
  0x81   :  { %984 = vmatpush.bf16.msrb.mxu1 %v1171_v23 }
  0x82   :  { %997 = vmatpush.bf16.msrb.mxu2 %v1299_v24 }
  0x83   :  { %1010 = vmatpush.bf16.msrb.mxu3 %v1427_v25  ;;  %972 = vmatmul.bf16.vlgmr.msrb.gmra.mxu0 %v1986_v20 }
  0x84   :  { %985 = vmatmul.bf16.vlgmr.msrb.gmra.mxu1 %v1988_v22 }
  0x85   :  { %998 = vmatmul.bf16.vlgmr.msrb.gmra.mxu2 %v1982_v18 }
  0x86   :  { %1011 = vmatmul.bf16.vlgmr.msrb.gmra.mxu3 %v1984_v19 }
  0xa5   :  { %v830_v30 = vpop.f32.mrf.mxu1 }
  0xa6   :  { %v817_v28 = vpop.f32.mrf.mxu0 }
  0xa7   :  { %v818_v29 = vadd.f32 %v817_v28, %v146_v27 }
  0xa9   :  { %v831_v31 = vadd.f32 %v830_v30, %v818_v29  ;;  %v856_v34 = vpop.f32.mrf.mxu3 }
  0xaa   :  { %v843_v32 = vpop.f32.mrf.mxu2 }
  0xab   :  { %v844_v33 = vadd.f32 %v843_v32, %v831_v31 }
  0xad   :  { %v857_v35 = vadd.f32 %v856_v34, %v844_v33  ;;  %v832_v36 = vpop.f32.mrf.mxu1 }
  0xae   :  { %v819_v20 = vpop.f32.mrf.mxu0 }
  0xaf   :  { %v1016_v22 = vmax.f32 %v857_v35, 0.0 }
  0xb1   :  { %1020 = vst [vmem:[%s2504_s3] sm:$0xff] %v1016_v22  ;;  %v858_v19 = vpop.f32.mrf.mxu3 }
  0xb2   :  { %v845_v18 = vpop.f32.mrf.mxu2 }
  0xc0   :  { %v869_v38 = vpop.f32.mrf.mxu0 }
  0xc1   :  { %v870_v39 = vadd.f32 %v869_v38, %v147_v37  ;;  %v882_v40 = vpop.f32.mrf.mxu1 }
  0xc3   :  { %v883_v41 = vadd.f32 %v882_v40, %v870_v39 }
  0xc8   :  { %v895_v42 = vpop.f32.mrf.mxu2  ;;  %v871_v46 = vpop.f32.mrf.mxu0 }
  0xc9   :  { %v896_v43 = vadd.f32 %v895_v42, %v883_v41  ;;  %v908_v44 = vpop.f32.mrf.mxu3  ;;  %v884_v47 = vpop.f32.mrf.mxu1 }
  0xcb   :  { %v909_v45 = vadd.f32 %v908_v44, %v896_v43 }
  0xcd   :  { %v1017_v48 = vmax.f32 %v909_v45, 0.0 }
  0xcf   :  { %1021 = vst [vmem:[%s2504_s3 + $0x8] sm:$0xff] %v1017_v48 }
  0xd0   :  { %v897_v49 = vpop.f32.mrf.mxu2 }
  0xd1   :  { %v910_v50 = vpop.f32.mrf.mxu3 }
  0xe0   :  { %v921_v52 = vpop.f32.mrf.mxu0 }
  0xe1   :  { %v922_v53 = vadd.f32 %v921_v52, %v148_v51  ;;  %v934_v54 = vpop.f32.mrf.mxu1 }
  0xe3   :  { %v935_v55 = vadd.f32 %v934_v54, %v922_v53 }
  0xe8   :  { %v947_v56 = vpop.f32.mrf.mxu2  ;;  %v923_v60 = vpop.f32.mrf.mxu0 }
  0xe9   :  { %v948_v57 = vadd.f32 %v947_v56, %v935_v55  ;;  %v960_v58 = vpop.f32.mrf.mxu3  ;;  %v936_v61 = vpop.f32.mrf.mxu1 }
  0xeb   :  { %v961_v59 = vadd.f32 %v960_v58, %v948_v57 }
  0xed   :  { %v1018_v62 = vmax.f32 %v961_v59, 0.0 }
  0xef   :  { %1022 = vst [vmem:[%s2504_s3 + $0x10] sm:$0xff] %v1018_v62 }
  0xf0   :  { %v949_v63 = vpop.f32.mrf.mxu2 }
  0xf1   :  { %v962_v0 = vpop.f32.mrf.mxu3 }
 0x100   :  { %v973_v2 = vpop.f32.mrf.mxu0 }
 0x101   :  { %v974_v3 = vadd.f32 %v973_v2, %v149_v1  ;;  %v986_v4 = vpop.f32.mrf.mxu1 }
 0x103   :  { %v987_v5 = vadd.f32 %v986_v4, %v974_v3 }
 0x108   :  { %v999_v6 = vpop.f32.mrf.mxu2  ;;  %v975_v9 = vpop.f32.mrf.mxu0 }
 0x109   :  { %v1000_v7 = vadd.f32 %v999_v6, %v987_v5  ;;  %v1012_v8 = vpop.f32.mrf.mxu3  ;;  %v988_v10 = vpop.f32.mrf.mxu1 }
 0x10b   :  { %v1013_v11 = vadd.f32 %v1012_v8, %v1000_v7 }
 0x10d   :  { %v1019_v12 = vmax.f32 %v1013_v11, 0.0 }
 0x10f   :  { %1023 = vst [vmem:[%s2504_s3 + $0x18] sm:$0xff] %v1019_v12 }
 0x110   :  { %v1001_v13 = vpop.f32.mrf.mxu2 }
 0x111   :  { %v1014_v14 = vpop.f32.mrf.mxu3 }

// kernel: marker_forward.8
= control target key start
LH: loop header
LB: loop body
LE: loop exit
PB: predicated region body
PF: predicated region fallthrough
CT: control target
= control target key end

     0   :  { %s3046_s1 = inlined_call_operand.vmem [shape: bf16[512,128], index: 1, kind: input, shape index: {}]   ;;  %s3047_s2 = inlined_call_operand.vmem [shape: f32[1,128], index: 2, kind: input, shape index: {}]   ;;  %s3048_s0 = inlined_call_operand.vmem [shape: bf16[392,512], index: 0, kind: input, shape index: {}]   ;;  %s3049_s3 = inlined_call_operand.vmem [shape: f32[392,128], index: 3, kind: output, shape index: {}]  }
   0x1   :  { %v2115_v0 = vld [vmem:[%s3046_s1 + $0x38] sm:$0xff]  ;;  %v2114_v4 = vld [vmem:[%s3046_s1 + $0x30] sm:$0xff]  ;;  %v2113_v8 = vld [vmem:[%s3046_s1 + $0x28] sm:$0xff] }
   0x2   :  { %v2123_v1 = vld [vmem:[%s3046_s1 + $0x78] sm:$0xff]  ;;  %866 = vmatpush.bf16.msra.mxu0 %v2115_v0  ;;  %v2122_v5 = vld [vmem:[%s3046_s1 + $0x70] sm:$0xff]  ;;  %v2121_v9 = vld [vmem:[%s3046_s1 + $0x68] sm:$0xff] }
   0x3   :  { %v2131_v2 = vld [vmem:[%s3046_s1 + $0xb8] sm:$0xff]  ;;  %999 = vmatpush.bf16.msra.mxu1 %v2123_v1  ;;  %v2130_v6 = vld [vmem:[%s3046_s1 + $0xb0] sm:$0xff]  ;;  %v2129_v10 = vld [vmem:[%s3046_s1 + $0xa8] sm:$0xff] }
   0x4   :  { %v2139_v3 = vld [vmem:[%s3046_s1 + $0xf8] sm:$0xff]  ;;  %1132 = vmatpush.bf16.msra.mxu2 %v2131_v2  ;;  %v2138_v7 = vld [vmem:[%s3046_s1 + $0xf0] sm:$0xff]  ;;  %v2137_v11 = vld [vmem:[%s3046_s1 + $0xe8] sm:$0xff] }
   0x5   :  { %1265 = vmatpush.bf16.msra.mxu3 %v2139_v3  ;;  %v2112_v12 = vld [vmem:[%s3046_s1 + $0x20] sm:$0xff]  ;;  %v2111_v16 = vld [vmem:[%s3046_s1 + $0x18] sm:$0xff]  ;;  %v2110_v20 = vld [vmem:[%s3046_s1 + $0x10] sm:$0xff] }
   0x6   :  { %867 = vmatpush.bf16.msra.mxu0 %v2114_v4  ;;  %v2120_v13 = vld [vmem:[%s3046_s1 + $0x60] sm:$0xff]  ;;  %v2119_v17 = vld [vmem:[%s3046_s1 + $0x58] sm:$0xff]  ;;  %v2118_v21 = vld [vmem:[%s3046_s1 + $0x50] sm:$0xff] }
   0x7   :  { %1000 = vmatpush.bf16.msra.mxu1 %v2122_v5  ;;  %v2128_v14 = vld [vmem:[%s3046_s1 + $0xa0] sm:$0xff]  ;;  %v2127_v18 = vld [vmem:[%s3046_s1 + $0x98] sm:$0xff]  ;;  %v2126_v22 = vld [vmem:[%s3046_s1 + $0x90] sm:$0xff] }
   0x8   :  { %1133 = vmatpush.bf16.msra.mxu2 %v2130_v6  ;;  %v2136_v15 = vld [vmem:[%s3046_s1 + $0xe0] sm:$0xff]  ;;  %v2135_v19 = vld [vmem:[%s3046_s1 + $0xd8] sm:$0xff]  ;;  %v2134_v23 = vld [vmem:[%s3046_s1 + $0xd0] sm:$0xff] }
   0x9   :  { %1266 = vmatpush.bf16.msra.mxu3 %v2138_v7  ;;  %v2109_v24 = vld [vmem:[%s3046_s1 + $0x8] sm:$0xff]  ;;  %v2108_v28 = vld [vmem:[%s3046_s1] sm:$0xff]  ;;  %v2014_v33 = vld [vmem:[%s3048_s0 + $0xc] sm:$0xf0] }
   0xa   :  { %868 = vmatpush.bf16.msra.mxu0 %v2113_v8  ;;  %v2117_v25 = vld [vmem:[%s3046_s1 + $0x48] sm:$0xff]  ;;  %v2116_v29 = vld [vmem:[%s3046_s1 + $0x40] sm:$0xff]  ;;  %v1504_v35 = vld [vmem:[%s3048_s0 + $0x10] sm:$0xf0] }
   0xb   :  { %1001 = vmatpush.bf16.msra.mxu1 %v2121_v9  ;;  %v2125_v26 = vld [vmem:[%s3046_s1 + $0x88] sm:$0xff]  ;;  %v2124_v30 = vld [vmem:[%s3046_s1 + $0x80] sm:$0xff]  ;;  %v2015_v37 = vld [vmem:[%s3048_s0 + $0x14] sm:$0xf0] }
   0xc   :  { %1134 = vmatpush.bf16.msra.mxu2 %v2129_v10  ;;  %v2133_v27 = vld [vmem:[%s3046_s1 + $0xc8] sm:$0xff]  ;;  %v2132_v31 = vld [vmem:[%s3046_s1 + $0xc0] sm:$0xff]  ;;  %v1512_v39 = vld [vmem:[%s3048_s0 + $0x18] sm:$0xf0] }
   0xd   :  { %1267 = vmatpush.bf16.msra.mxu3 %v2137_v11  ;;  %v1502_v32 = vld [vmem:[%s3048_s0] sm:$0xf]  ;;  %v2012_v34 = vld [vmem:[%s3048_s0 + $0x4] sm:$0xf]  ;;  %v1510_v36 = vld [vmem:[%s3048_s0 + $0x8] sm:$0xf] }
   0xe   :  { %869 = vmatpush.bf16.msra.mxu0 %v2112_v12  ;;  %v2013_v38 = vld [vmem:[%s3048_s0 + $0xc] sm:$0xf]  ;;  %v1503_v40 = vor.u32 %v2014_v33, %v1502_v32  ;;  %v1507_v41 = vor.u32 %v2012_v34, %v1504_v35  ;;  %v1511_v42 = vor.u32 %v2015_v37, %v1510_v36  ;;  %v1518_v44 = vld [vmem:[%s3048_s0 + $0x20] sm:$0xf]  ;;  %v2018_v45 = vld [vmem:[%s3048_s0 + $0x2c] sm:$0xf0] }
   0xf   :  { %1002 = vmatpush.bf16.msra.mxu1 %v2120_v13  ;;  %v1515_v43 = vor.u32 %v2013_v38, %v1512_v39  ;;  %v2016_v46 = vld [vmem:[%s3048_s0 + $0x24] sm:$0xf]  ;;  %v1520_v47 = vld [vmem:[%s3048_s0 + $0x30] sm:$0xf0]  ;;  %v1526_v48 = vld [vmem:[%s3048_s0 + $0x28] sm:$0xf]  ;;  %v1519_v52 = vor.u32 %v2018_v45, %v1518_v44 }
  0x10   :  { %1135 = vmatpush.bf16.msra.mxu2 %v2128_v14  ;;  %v2019_v49 = vld [vmem:[%s3048_s0 + $0x34] sm:$0xf0]  ;;  %v2017_v50 = vld [vmem:[%s3048_s0 + $0x2c] sm:$0xf]  ;;  %v1528_v51 = vld [vmem:[%s3048_s0 + $0x38] sm:$0xf0]  ;;  %v1523_v53 = vor.u32 %v2016_v46, %v1520_v47 }
  0x11   :  { %1268 = vmatpush.bf16.msra.mxu3 %v2136_v15  ;;  %v1527_v54 = vor.u32 %v2019_v49, %v1526_v48  ;;  %v1531_v55 = vor.u32 %v2017_v50, %v1528_v51  ;;  %v1534_v56 = vld [vmem:[%s3048_s0 + $0x40] sm:$0xf]  ;;  %v2022_v57 = vld [vmem:[%s3048_s0 + $0x4c] sm:$0xf0]  ;;  %v2020_v58 = vld [vmem:[%s3048_s0 + $0x44] sm:$0xf] }
  0x12   :  { %870 = vmatpush.bf16.msra.mxu0 %v2111_v16  ;;  %v1536_v59 = vld [vmem:[%s3048_s0 + $0x50] sm:$0xf0]  ;;  %v1542_v60 = vld [vmem:[%s3048_s0 + $0x48] sm:$0xf]  ;;  %v2023_v61 = vld [vmem:[%s3048_s0 + $0x54] sm:$0xf0]  ;;  %v1535_v0 = vor.u32 %v2022_v57, %v1534_v56 }
  0x13   :  { %1003 = vmatpush.bf16.msra.mxu1 %v2119_v17  ;;  %v2021_v62 = vld [vmem:[%s3048_s0 + $0x4c] sm:$0xf]  ;;  %v1544_v63 = vld [vmem:[%s3048_s0 + $0x58] sm:$0xf0]  ;;  %v1539_v1 = vor.u32 %v2020_v58, %v1536_v59  ;;  %v1543_v2 = vor.u32 %v2023_v61, %v1542_v60  ;;  %v1550_v4 = vld [vmem:[%s3048_s0 + $0x60] sm:$0xf] }
  0x14   :  { %1136 = vmatpush.bf16.msra.mxu2 %v2127_v18  ;;  %v1547_v3 = vor.u32 %v2021_v62, %v1544_v63  ;;  %v2026_v5 = vld [vmem:[%s3048_s0 + $0x6c] sm:$0xf0]  ;;  %v2024_v6 = vld [vmem:[%s3048_s0 + $0x64] sm:$0xf]  ;;  %v1552_v7 = vld [vmem:[%s3048_s0 + $0x70] sm:$0xf0] }
  0x15   :  { %1269 = vmatpush.bf16.msra.mxu3 %v2135_v19  ;;  %v1558_v8 = vld [vmem:[%s3048_s0 + $0x68] sm:$0xf]  ;;  %v2027_v9 = vld [vmem:[%s3048_s0 + $0x74] sm:$0xf0]  ;;  %v2025_v10 = vld [vmem:[%s3048_s0 + $0x6c] sm:$0xf]  ;;  %v1551_v12 = vor.u32 %v2026_v5, %v1550_v4  ;;  %v1555_v13 = vor.u32 %v2024_v6, %v1552_v7 }
  0x16   :  { %871 = vmatpush.bf16.msra.mxu0 %v2110_v20  ;;  %v1560_v11 = vld [vmem:[%s3048_s0 + $0x78] sm:$0xf0]  ;;  %v1559_v14 = vor.u32 %v2027_v9, %v1558_v8  ;;  %v1566_v16 = vld [vmem:[%s3048_s0 + $0x80] sm:$0xf]  ;;  %v2030_v17 = vld [vmem:[%s3048_s0 + $0x8c] sm:$0xf0] }
  0x17   :  { %1004 = vmatpush.bf16.msra.mxu1 %v2118_v21  ;;  %v1563_v15 = vor.u32 %v2025_v10, %v1560_v11  ;;  %v2028_v18 = vld [vmem:[%s3048_s0 + $0x84] sm:$0xf]  ;;  %v1568_v19 = vld [vmem:[%s3048_s0 + $0x90] sm:$0xf0]  ;;  %v1574_v20 = vld [vmem:[%s3048_s0 + $0x88] sm:$0xf] }
  0x18   :  { %1137 = vmatpush.bf16.msra.mxu2 %v2126_v22  ;;  %v2031_v21 = vld [vmem:[%s3048_s0 + $0x94] sm:$0xf0]  ;;  %v2029_v22 = vld [vmem:[%s3048_s0 + $0x8c] sm:$0xf]  ;;  %v1590_v32 = vld [vmem:[%s3048_s0 + $0xa8] sm:$0xf] }
  0x19   :  { %1270 = vmatpush.bf16.msra.mxu3 %v2134_v23  ;;  %v1576_v23 = vld [vmem:[%s3048_s0 + $0x98] sm:$0xf0]  ;;  %v2035_v33 = vld [vmem:[%s3048_s0 + $0xb4] sm:$0xf0]  ;;  %v2033_v34 = vld [vmem:[%s3048_s0 + $0xac] sm:$0xf] }
  0x1a   :  { %872 = vmatpush.bf16.msra.mxu0 %v2109_v24  ;;  %v1567_v24 = vor.u32 %v2030_v17, %v1566_v16  ;;  %v1592_v35 = vld [vmem:[%s3048_s0 + $0xb8] sm:$0xf0]  ;;  %v1591_v38 = vor.u32 %v2035_v33, %v1590_v32  ;;  %v1606_v44 = vld [vmem:[%s3048_s0 + $0xc8] sm:$0xf]  ;;  %v2039_v45 = vld [vmem:[%s3048_s0 + $0xd4] sm:$0xf0] }
  0x1b   :  { %1005 = vmatpush.bf16.msra.mxu1 %v2117_v25  ;;  %v1571_v25 = vor.u32 %v2028_v18, %v1568_v19  ;;  %v1595_v39 = vor.u32 %v2033_v34, %v1592_v35  ;;  %v2037_v46 = vld [vmem:[%s3048_s0 + $0xcc] sm:$0xf]  ;;  %v1608_v47 = vld [vmem:[%s3048_s0 + $0xd8] sm:$0xf0]  ;;  %v1607_v50 = vor.u32 %v2039_v45, %v1606_v44  ;;  %v1622_v56 = vld [vmem:[%s3048_s0 + $0xe8] sm:$0xf] }
  0x1c   :  { %1138 = vmatpush.bf16.msra.mxu2 %v2125_v26  ;;  %v1575_v26 = vor.u32 %v2031_v21, %v1574_v20  ;;  %v1611_v51 = vor.u32 %v2037_v46, %v1608_v47  ;;  %v2043_v57 = vld [vmem:[%s3048_s0 + $0xf4] sm:$0xf0]  ;;  %v2041_v58 = vld [vmem:[%s3048_s0 + $0xec] sm:$0xf]  ;;  %v1624_v59 = vld [vmem:[%s3048_s0 + $0xf8] sm:$0xf0] }
  0x1d   :  { %1271 = vmatpush.bf16.msra.mxu3 %v2133_v27  ;;  %v1579_v27 = vor.u32 %v2029_v22, %v1576_v23  ;;  %v1623_v62 = vor.u32 %v2043_v57, %v1622_v56  ;;  %v1627_v63 = vor.u32 %v2041_v58, %v1624_v59  ;;  %v1632_v4 = vld [vmem:[%s3048_s0 + $0x110] sm:$0xf0]  ;;  %v1638_v5 = vld [vmem:[%s3048_s0 + $0x108] sm:$0xf]  ;;  %v2047_v6 = vld [vmem:[%s3048_s0 + $0x114] sm:$0xf0] }
  0x1e   :  { %873 = vmatpush.bf16.msra.mxu0 %v2108_v28  ;;  %v1582_v28 = vld [vmem:[%s3048_s0 + $0xa0] sm:$0xf]  ;;  %v2045_v7 = vld [vmem:[%s3048_s0 + $0x10c] sm:$0xf]  ;;  %v1640_v8 = vld [vmem:[%s3048_s0 + $0x118] sm:$0xf0] }
  0x1f   :  { %1006 = vmatpush.bf16.msra.mxu1 %v2116_v29  ;;  %v2034_v29 = vld [vmem:[%s3048_s0 + $0xac] sm:$0xf0]  ;;  %v1656_v32 = vld [vmem:[%s3048_s0 + $0x138] sm:$0xf0]  ;;  %v2052_v56 = vld [vmem:[%s3048_s0 + $0x144] sm:$0xf] }
  0x20   :  { %1139 = vmatpush.bf16.msra.mxu2 %v2124_v30  ;;  %v2032_v30 = vld [vmem:[%s3048_s0 + $0xa4] sm:$0xf]  ;;  %v1583_v36 = vor.u32 %v2034_v29, %v1582_v28  ;;  %v1648_v28 = vld [vmem:[%s3048_s0 + $0x130] sm:$0xf0]  ;;  %v1654_v29 = vld [vmem:[%s3048_s0 + $0x128] sm:$0xf] }
  0x21   :  { %1272 = vmatpush.bf16.msra.mxu3 %v2132_v31  ;;  %874 = vmatmul.bf16.vlgmr.msra.gmra.mxu0 %v1503_v40  ;;  %v1584_v31 = vld [vmem:[%s3048_s0 + $0xb0] sm:$0xf0]  ;;  %v1598_v40 = vld [vmem:[%s3048_s0 + $0xc0] sm:$0xf]  ;;  %v1670_v59 = vld [vmem:[%s3048_s0 + $0x148] sm:$0xf] }
  0x22   :  { %1007 = vmatmul.bf16.vlgmr.msra.gmra.mxu1 %v1507_v41  ;;  %v1587_v37 = vor.u32 %v2032_v30, %v1584_v31  ;;  %v2038_v41 = vld [vmem:[%s3048_s0 + $0xcc] sm:$0xf0]  ;;  %v2051_v30 = vld [vmem:[%s3048_s0 + $0x134] sm:$0xf0]  ;;  %v2049_v31 = vld [vmem:[%s3048_s0 + $0x12c] sm:$0xf] }
  0x23   :  { %1140 = vmatmul.bf16.vlgmr.msra.gmra.mxu2 %v1511_v42  ;;  %v2036_v42 = vld [vmem:[%s3048_s0 + $0xc4] sm:$0xf]  ;;  %v1599_v48 = vor.u32 %v2038_v41, %v1598_v40  ;;  %v1655_v41 = vor.u32 %v2051_v30, %v1654_v29  ;;  %v1664_v58 = vld [vmem:[%s3048_s0 + $0x150] sm:$0xf0]  ;;  %v1688_v29 = vld [vmem:[%s3048_s0 + $0x178] sm:$0xf0] }
  0x24   :  { %1273 = vmatmul.bf16.vlgmr.msra.gmra.mxu3 %v1515_v43  ;;  %v1600_v43 = vld [vmem:[%s3048_s0 + $0xd0] sm:$0xf0] }
  0x25   :  { %v1603_v49 = vor.u32 %v2036_v42, %v1600_v43  ;;  %v1659_v42 = vor.u32 %v2049_v31, %v1656_v32 }
  0x31   :  { %879 = vmatmul.bf16.gmra.mxu0 %v1519_v52  ;;  %v1614_v52 = vld [vmem:[%s3048_s0 + $0xe0] sm:$0xf] }
  0x32   :  { %1012 = vmatmul.bf16.gmra.mxu1 %v1523_v53  ;;  %v2042_v53 = vld [vmem:[%s3048_s0 + $0xec] sm:$0xf0] }
  0x33   :  { %1145 = vmatmul.bf16.gmra.mxu2 %v1527_v54  ;;  %v2040_v54 = vld [vmem:[%s3048_s0 + $0xe4] sm:$0xf]  ;;  %v1615_v60 = vor.u32 %v2042_v53, %v1614_v52 }
  0x34   :  { %1278 = vmatmul.bf16.gmra.mxu3 %v1531_v55  ;;  %v1616_v55 = vld [vmem:[%s3048_s0 + $0xf0] sm:$0xf0] }
  0x35   :  { %v1619_v61 = vor.u32 %v2040_v54, %v1616_v55  ;;  %v1662_v54 = vld [vmem:[%s3048_s0 + $0x140] sm:$0xf]  ;;  %v2054_v55 = vld [vmem:[%s3048_s0 + $0x14c] sm:$0xf0] }
  0x41   :  { %884 = vmatmul.bf16.gmra.mxu0 %v1535_v0  ;;  %v2453_v0 = vld [vmem:[%s3047_s2] ss:$0 sm:$0xff] }
  0x42   :  { %1017 = vmatmul.bf16.gmra.mxu1 %v1539_v1  ;;  %v1630_v1 = vld [vmem:[%s3048_s0 + $0x100] sm:$0xf] }
  0x43   :  { %1150 = vmatmul.bf16.gmra.mxu2 %v1543_v2  ;;  %v2046_v2 = vld [vmem:[%s3048_s0 + $0x10c] sm:$0xf0] }
  0x44   :  { %1283 = vmatmul.bf16.gmra.mxu3 %v1547_v3  ;;  %v2044_v3 = vld [vmem:[%s3048_s0 + $0x104] sm:$0xf]  ;;  %v1631_v9 = vor.u32 %v2046_v2, %v1630_v1 }
  0x45   :  { %v1635_v10 = vor.u32 %v2044_v3, %v1632_v4  ;;  %v1663_v3 = vor.u32 %v2054_v55, %v1662_v54  ;;  %v1667_v4 = vor.u32 %v2052_v56, %v1664_v58  ;;  %v1696_v55 = vld [vmem:[%s3048_s0 + $0x190] sm:$0xf0]  ;;  %v1702_v56 = vld [vmem:[%s3048_s0 + $0x188] sm:$0xf]  ;;  %v2061_v58 = vld [vmem:[%s3048_s0 + $0x18c] sm:$0xf] }
  0x51   :  { %889 = vmatmul.bf16.gmra.mxu0 %v1551_v12 }
  0x52   :  { %1022 = vmatmul.bf16.gmra.mxu1 %v1555_v13  ;;  %v1639_v13 = vor.u32 %v2047_v6, %v1638_v5 }
  0x53   :  { %1155 = vmatmul.bf16.gmra.mxu2 %v1559_v14  ;;  %v1643_v14 = vor.u32 %v2045_v7, %v1640_v8 }
  0x54   :  { %1288 = vmatmul.bf16.gmra.mxu3 %v1563_v15 }
  0x61   :  { %894 = vmatmul.bf16.gmra.mxu0 %v1567_v24  ;;  %v1646_v24 = vld [vmem:[%s3048_s0 + $0x120] sm:$0xf] }
  0x62   :  { %1027 = vmatmul.bf16.gmra.mxu1 %v1571_v25  ;;  %v2050_v25 = vld [vmem:[%s3048_s0 + $0x12c] sm:$0xf0] }
  0x63   :  { %1160 = vmatmul.bf16.gmra.mxu2 %v1575_v26  ;;  %v2048_v26 = vld [vmem:[%s3048_s0 + $0x124] sm:$0xf] }
  0x64   :  { %1293 = vmatmul.bf16.gmra.mxu3 %v1579_v27 }
  0x71   :  { %899 = vmatmul.bf16.gmra.mxu0 %v1583_v36  ;;  %v1647_v36 = vor.u32 %v2050_v25, %v1646_v24  ;;  %v1680_v25 = vld [vmem:[%s3048_s0 + $0x170] sm:$0xf0] }
  0x72   :  { %1032 = vmatmul.bf16.gmra.mxu1 %v1587_v37  ;;  %v1651_v37 = vor.u32 %v2048_v26, %v1648_v28  ;;  %v1686_v26 = vld [vmem:[%s3048_s0 + $0x168] sm:$0xf]  ;;  %v2057_v28 = vld [vmem:[%s3048_s0 + $0x16c] sm:$0xf] }
  0x73   :  { %1165 = vmatmul.bf16.gmra.mxu2 %v1591_v38 }
  0x74   :  { %1298 = vmatmul.bf16.gmra.mxu3 %v1595_v39 }
  0x81   :  { %904 = vmatmul.bf16.gmra.mxu0 %v1599_v48 }
  0x82   :  { %1037 = vmatmul.bf16.gmra.mxu1 %v1603_v49 }
  0x83   :  { %1170 = vmatmul.bf16.gmra.mxu2 %v1607_v50 }
  0x84   :  { %1303 = vmatmul.bf16.gmra.mxu3 %v1611_v51 }
  0x91   :  { %909 = vmatmul.bf16.gmra.mxu0 %v1615_v60  ;;  %v2055_v60 = vld [vmem:[%s3048_s0 + $0x154] sm:$0xf0] }
  0x92   :  { %1042 = vmatmul.bf16.gmra.mxu1 %v1619_v61  ;;  %v2053_v61 = vld [vmem:[%s3048_s0 + $0x14c] sm:$0xf]  ;;  %v1671_v8 = vor.u32 %v2055_v60, %v1670_v59  ;;  %v1704_v59 = vld [vmem:[%s3048_s0 + $0x198] sm:$0xf0] }
  0x93   :  { %1175 = vmatmul.bf16.gmra.mxu2 %v1623_v62  ;;  %v1672_v62 = vld [vmem:[%s3048_s0 + $0x158] sm:$0xf0] }
  0x94   :  { %1308 = vmatmul.bf16.gmra.mxu3 %v1627_v63 }
  0x9e   :  { %v875_v11 = vpop.f32.mrf.mxu0 }
  0x9f   :  { %v1008_v12 = vpop.f32.mrf.mxu1  ;;  %v876_v15 = vadd.f32 %v2453_v0, %v875_v11 }
  0xa1   :  { %914 = vmatmul.bf16.gmra.mxu0 %v1631_v9  ;;  %v1009_v16 = vadd.f32 %v1008_v12, %v876_v15  ;;  %v1675_v9 = vor.u32 %v2053_v61, %v1672_v62 }
  0xa2   :  { %1047 = vmatmul.bf16.gmra.mxu1 %v1635_v10 }
  0xa3   :  { %1180 = vmatmul.bf16.gmra.mxu2 %v1639_v13 }
  0xa4   :  { %1313 = vmatmul.bf16.gmra.mxu3 %v1643_v14 }
  0xa6   :  { %v1141_v17 = vpop.f32.mrf.mxu2  ;;  %v877_v20 = vpop.f32.mrf.mxu0 }
  0xa7   :  { %v1274_v18 = vpop.f32.mrf.mxu3  ;;  %v1142_v19 = vadd.f32 %v1141_v17, %v1009_v16  ;;  %v1010_v21 = vpop.f32.mrf.mxu1  ;;  %v878_v23 = vadd.f32 %v2453_v0, %v877_v20 }
  0xa9   :  { %v1275_v22 = vadd.f32 %v1274_v18, %v1142_v19  ;;  %v1011_v33 = vadd.f32 %v1010_v21, %v878_v23  ;;  %v1678_v21 = vld [vmem:[%s3048_s0 + $0x160] sm:$0xf]  ;;  %v2056_v23 = vld [vmem:[%s3048_s0 + $0x164] sm:$0xf] }
  0xab   :  { %v1398_v27 = vmax.f32 %v1275_v22, 0.0  ;;  %v2058_v22 = vld [vmem:[%s3048_s0 + $0x16c] sm:$0xf0] }
  0xad   :  { %1447 = vst [vmem:[%s3049_s3] sm:$0xff] %v1398_v27  ;;  %v2059_v27 = vld [vmem:[%s3048_s0 + $0x174] sm:$0xf0] }
  0xae   :  { %v1143_v34 = vpop.f32.mrf.mxu2  ;;  %v880_v39 = vpop.f32.mrf.mxu0 }
  0xaf   :  { %v1276_v35 = vpop.f32.mrf.mxu3  ;;  %v1144_v38 = vadd.f32 %v1143_v34, %v1011_v33  ;;  %v1013_v40 = vpop.f32.mrf.mxu1  ;;  %v881_v43 = vadd.f32 %v2453_v0, %v880_v39  ;;  %v1679_v33 = vor.u32 %v2058_v22, %v1678_v21  ;;  %v1683_v34 = vor.u32 %v2056_v23, %v1680_v25  ;;  %v1712_v22 = vld [vmem:[%s3048_s0 + $0x1b0] sm:$0xf0]  ;;  %v1718_v23 = vld [vmem:[%s3048_s0 + $0x1a8] sm:$0xf]  ;;  %v2065_v25 = vld [vmem:[%s3048_s0 + $0x1ac] sm:$0xf] }
  0xb0   :  { %v1691_v39 = vor.u32 %v2057_v28, %v1688_v29 }
  0xb1   :  { %v1277_v44 = vadd.f32 %v1276_v35, %v1144_v38  ;;  %919 = vmatmul.bf16.gmra.mxu0 %v1647_v36  ;;  %v1014_v46 = vadd.f32 %v1013_v40, %v881_v43  ;;  %v1687_v38 = vor.u32 %v2059_v27, %v1686_v26  ;;  %v1720_v26 = vld [vmem:[%s3048_s0 + $0x1b8] sm:$0xf0] }
  0xb2   :  { %1052 = vmatmul.bf16.gmra.mxu1 %v1651_v37 }
  0xb3   :  { %v1399_v45 = vmax.f32 %v1277_v44, 0.0  ;;  %1185 = vmatmul.bf16.gmra.mxu2 %v1655_v41 }
  0xb4   :  { %1318 = vmatmul.bf16.gmra.mxu3 %v1659_v42 }
  0xb5   :  { %1448 = vst [vmem:[%s3049_s3 + $0x8] sm:$0xff] %v1399_v45 }
  0xb6   :  { %v1146_v47 = vpop.f32.mrf.mxu2  ;;  %v882_v50 = vpop.f32.mrf.mxu0 }
  0xb7   :  { %v1279_v48 = vpop.f32.mrf.mxu3  ;;  %v1147_v49 = vadd.f32 %v1146_v47, %v1014_v46  ;;  %v1015_v51 = vpop.f32.mrf.mxu1  ;;  %v883_v53 = vadd.f32 %v2453_v0, %v882_v50 }
  0xb9   :  { %v1280_v52 = vadd.f32 %v1279_v48, %v1147_v49  ;;  %v1016_v63 = vadd.f32 %v1015_v51, %v883_v53  ;;  %v1694_v51 = vld [vmem:[%s3048_s0 + $0x180] sm:$0xf]  ;;  %v2060_v53 = vld [vmem:[%s3048_s0 + $0x184] sm:$0xf] }
  0xbb   :  { %v1400_v57 = vmax.f32 %v1280_v52, 0.0  ;;  %v2062_v52 = vld [vmem:[%s3048_s0 + $0x18c] sm:$0xf0] }
  0xbd   :  { %1449 = vst [vmem:[%s3049_s3 + $0x10] sm:$0xff] %v1400_v57  ;;  %v2063_v57 = vld [vmem:[%s3048_s0 + $0x194] sm:$0xf0] }
  0xbe   :  { %v1148_v1 = vpop.f32.mrf.mxu2  ;;  %v885_v6 = vpop.f32.mrf.mxu0 }
  0xbf   :  { %v1281_v2 = vpop.f32.mrf.mxu3  ;;  %v1149_v5 = vadd.f32 %v1148_v1, %v1016_v63  ;;  %v1018_v7 = vpop.f32.mrf.mxu1  ;;  %v886_v10 = vadd.f32 %v2453_v0, %v885_v6  ;;  %v1695_v63 = vor.u32 %v2062_v52, %v1694_v51  ;;  %v1699_v1 = vor.u32 %v2060_v53, %v1696_v55  ;;  %v1728_v52 = vld [vmem:[%s3048_s0 + $0x1d0] sm:$0xf0]  ;;  %v1734_v53 = vld [vmem:[%s3048_s0 + $0x1c8] sm:$0xf]  ;;  %v2069_v55 = vld [vmem:[%s3048_s0 + $0x1cc] sm:$0xf] }
  0xc0   :  { %v1707_v6 = vor.u32 %v2061_v58, %v1704_v59 }
  0xc1   :  { %v1282_v11 = vadd.f32 %v1281_v2, %v1149_v5  ;;  %924 = vmatmul.bf16.gmra.mxu0 %v1663_v3  ;;  %v1019_v13 = vadd.f32 %v1018_v7, %v886_v10  ;;  %v1703_v5 = vor.u32 %v2063_v57, %v1702_v56  ;;  %v1736_v56 = vld [vmem:[%s3048_s0 + $0x1d8] sm:$0xf0] }
  0xc2   :  { %1057 = vmatmul.bf16.gmra.mxu1 %v1667_v4 }
  0xc3   :  { %v1401_v12 = vmax.f32 %v1282_v11, 0.0  ;;  %1190 = vmatmul.bf16.gmra.mxu2 %v1671_v8 }
  0xc4   :  { %1323 = vmatmul.bf16.gmra.mxu3 %v1675_v9 }
  0xc5   :  { %1450 = vst [vmem:[%s3049_s3 + $0x18] sm:$0xff] %v1401_v12 }
  0xc6   :  { %v1151_v14 = vpop.f32.mrf.mxu2  ;;  %v887_v17 = vpop.f32.mrf.mxu0 }
  0xc7   :  { %v1284_v15 = vpop.f32.mrf.mxu3  ;;  %v1152_v16 = vadd.f32 %v1151_v14, %v1019_v13  ;;  %v1020_v18 = vpop.f32.mrf.mxu1  ;;  %v888_v20 = vadd.f32 %v2453_v0, %v887_v17 }
  0xc9   :  { %v1285_v19 = vadd.f32 %v1284_v15, %v1152_v16  ;;  %v1021_v30 = vadd.f32 %v1020_v18, %v888_v20  ;;  %v1710_v18 = vld [vmem:[%s3048_s0 + $0x1a0] sm:$0xf]  ;;  %v2064_v20 = vld [vmem:[%s3048_s0 + $0x1a4] sm:$0xf] }
  0xcb   :  { %v1402_v24 = vmax.f32 %v1285_v19, 0.0  ;;  %v2066_v19 = vld [vmem:[%s3048_s0 + $0x1ac] sm:$0xf0] }
  0xcd   :  { %1451 = vst [vmem:[%s3049_s3 + $0x20] sm:$0xff] %v1402_v24  ;;  %v2067_v24 = vld [vmem:[%s3048_s0 + $0x1b4] sm:$0xf0] }
  0xce   :  { %v1153_v31 = vpop.f32.mrf.mxu2  ;;  %v890_v36 = vpop.f32.mrf.mxu0 }
  0xcf   :  { %v1286_v32 = vpop.f32.mrf.mxu3  ;;  %v1154_v35 = vadd.f32 %v1153_v31, %v1021_v30  ;;  %v1023_v37 = vpop.f32.mrf.mxu1  ;;  %v891_v40 = vadd.f32 %v2453_v0, %v890_v36  ;;  %v1711_v30 = vor.u32 %v2066_v19, %v1710_v18  ;;  %v1715_v31 = vor.u32 %v2064_v20, %v1712_v22  ;;  %v1744_v19 = vld [vmem:[%s3048_s0 + $0x1f0] sm:$0xf0]  ;;  %v1750_v20 = vld [vmem:[%s3048_s0 + $0x1e8] sm:$0xf]  ;;  %v2073_v22 = vld [vmem:[%s3048_s0 + $0x1ec] sm:$0xf] }
  0xd0   :  { %v1723_v36 = vor.u32 %v2065_v25, %v1720_v26 }
  0xd1   :  { %v1287_v41 = vadd.f32 %v1286_v32, %v1154_v35  ;;  %929 = vmatmul.bf16.gmra.mxu0 %v1679_v33  ;;  %v1024_v43 = vadd.f32 %v1023_v37, %v891_v40  ;;  %v1719_v35 = vor.u32 %v2067_v24, %v1718_v23  ;;  %v1752_v23 = vld [vmem:[%s3048_s0 + $0x1f8] sm:$0xf0] }
  0xd2   :  { %1062 = vmatmul.bf16.gmra.mxu1 %v1683_v34 }
  0xd3   :  { %v1403_v42 = vmax.f32 %v1287_v41, 0.0  ;;  %1195 = vmatmul.bf16.gmra.mxu2 %v1687_v38 }
  0xd4   :  { %1328 = vmatmul.bf16.gmra.mxu3 %v1691_v39 }
  0xd5   :  { %1452 = vst [vmem:[%s3049_s3 + $0x28] sm:$0xff] %v1403_v42 }
  0xd6   :  { %v1156_v44 = vpop.f32.mrf.mxu2  ;;  %v892_v47 = vpop.f32.mrf.mxu0 }
  0xd7   :  { %v1289_v45 = vpop.f32.mrf.mxu3  ;;  %v1157_v46 = vadd.f32 %v1156_v44, %v1024_v43  ;;  %v1025_v48 = vpop.f32.mrf.mxu1  ;;  %v893_v50 = vadd.f32 %v2453_v0, %v892_v47 }
  0xd9   :  { %v1290_v49 = vadd.f32 %v1289_v45, %v1157_v46  ;;  %v1026_v60 = vadd.f32 %v1025_v48, %v893_v50  ;;  %v1726_v48 = vld [vmem:[%s3048_s0 + $0x1c0] sm:$0xf]  ;;  %v2068_v50 = vld [vmem:[%s3048_s0 + $0x1c4] sm:$0xf] }
  0xdb   :  { %v1404_v54 = vmax.f32 %v1290_v49, 0.0  ;;  %v2070_v49 = vld [vmem:[%s3048_s0 + $0x1cc] sm:$0xf0] }
  0xdd   :  { %1453 = vst [vmem:[%s3049_s3 + $0x30] sm:$0xff] %v1404_v54  ;;  %v2071_v54 = vld [vmem:[%s3048_s0 + $0x1d4] sm:$0xf0] }
  0xde   :  { %v1158_v61 = vpop.f32.mrf.mxu2  ;;  %v895_v3 = vpop.f32.mrf.mxu0 }
  0xdf   :  { %v1291_v62 = vpop.f32.mrf.mxu3  ;;  %v1159_v2 = vadd.f32 %v1158_v61, %v1026_v60  ;;  %v1028_v4 = vpop.f32.mrf.mxu1  ;;  %v896_v7 = vadd.f32 %v2453_v0, %v895_v3  ;;  %v1727_v60 = vor.u32 %v2070_v49, %v1726_v48  ;;  %v1731_v61 = vor.u32 %v2068_v50, %v1728_v52  ;;  %v1760_v49 = vld [vmem:[%s3048_s0 + $0x210] sm:$0xf0]  ;;  %v1766_v50 = vld [vmem:[%s3048_s0 + $0x208] sm:$0xf]  ;;  %v2077_v52 = vld [vmem:[%s3048_s0 + $0x20c] sm:$0xf] }
  0xe0   :  { %v1739_v3 = vor.u32 %v2069_v55, %v1736_v56 }
  0xe1   :  { %v1292_v8 = vadd.f32 %v1291_v62, %v1159_v2  ;;  %934 = vmatmul.bf16.gmra.mxu0 %v1695_v63  ;;  %v1029_v10 = vadd.f32 %v1028_v4, %v896_v7  ;;  %v1735_v2 = vor.u32 %v2071_v54, %v1734_v53  ;;  %v1768_v53 = vld [vmem:[%s3048_s0 + $0x218] sm:$0xf0] }
  0xe2   :  { %1067 = vmatmul.bf16.gmra.mxu1 %v1699_v1 }
  0xe3   :  { %v1405_v9 = vmax.f32 %v1292_v8, 0.0  ;;  %1200 = vmatmul.bf16.gmra.mxu2 %v1703_v5 }
  0xe4   :  { %1333 = vmatmul.bf16.gmra.mxu3 %v1707_v6 }
  0xe5   :  { %1454 = vst [vmem:[%s3049_s3 + $0x38] sm:$0xff] %v1405_v9 }
  0xe6   :  { %v1161_v11 = vpop.f32.mrf.mxu2  ;;  %v897_v14 = vpop.f32.mrf.mxu0 }
  0xe7   :  { %v1294_v12 = vpop.f32.mrf.mxu3  ;;  %v1162_v13 = vadd.f32 %v1161_v11, %v1029_v10  ;;  %v1030_v15 = vpop.f32.mrf.mxu1  ;;  %v898_v17 = vadd.f32 %v2453_v0, %v897_v14 }
  0xe9   :  { %v1295_v16 = vadd.f32 %v1294_v12, %v1162_v13  ;;  %v1031_v27 = vadd.f32 %v1030_v15, %v898_v17  ;;  %v1742_v15 = vld [vmem:[%s3048_s0 + $0x1e0] sm:$0xf]  ;;  %v2072_v17 = vld [vmem:[%s3048_s0 + $0x1e4] sm:$0xf] }
  0xeb   :  { %v1406_v21 = vmax.f32 %v1295_v16, 0.0  ;;  %v2074_v16 = vld [vmem:[%s3048_s0 + $0x1ec] sm:$0xf0] }
  0xed   :  { %1455 = vst [vmem:[%s3049_s3 + $0x40] sm:$0xff] %v1406_v21  ;;  %v2075_v21 = vld [vmem:[%s3048_s0 + $0x1f4] sm:$0xf0] }
  0xee   :  { %v1163_v28 = vpop.f32.mrf.mxu2  ;;  %v900_v33 = vpop.f32.mrf.mxu0 }
  0xef   :  { %v1296_v29 = vpop.f32.mrf.mxu3  ;;  %v1164_v32 = vadd.f32 %v1163_v28, %v1031_v27  ;;  %v1033_v34 = vpop.f32.mrf.mxu1  ;;  %v901_v37 = vadd.f32 %v2453_v0, %v900_v33  ;;  %v1743_v27 = vor.u32 %v2074_v16, %v1742_v15  ;;  %v1747_v28 = vor.u32 %v2072_v17, %v1744_v19  ;;  %v1776_v16 = vld [vmem:[%s3048_s0 + $0x230] sm:$0xf0]  ;;  %v1782_v17 = vld [vmem:[%s3048_s0 + $0x228] sm:$0xf]  ;;  %v2081_v19 = vld [vmem:[%s3048_s0 + $0x22c] sm:$0xf] }
  0xf0   :  { %v1755_v33 = vor.u32 %v2073_v22, %v1752_v23 }
  0xf1   :  { %v1297_v38 = vadd.f32 %v1296_v29, %v1164_v32  ;;  %939 = vmatmul.bf16.gmra.mxu0 %v1711_v30  ;;  %v1034_v40 = vadd.f32 %v1033_v34, %v901_v37  ;;  %v1751_v32 = vor.u32 %v2075_v21, %v1750_v20  ;;  %v1784_v20 = vld [vmem:[%s3048_s0 + $0x238] sm:$0xf0] }
  0xf2   :  { %1072 = vmatmul.bf16.gmra.mxu1 %v1715_v31 }
  0xf3   :  { %v1407_v39 = vmax.f32 %v1297_v38, 0.0  ;;  %1205 = vmatmul.bf16.gmra.mxu2 %v1719_v35 }
  0xf4   :  { %1338 = vmatmul.bf16.gmra.mxu3 %v1723_v36 }
  0xf5   :  { %1456 = vst [vmem:[%s3049_s3 + $0x48] sm:$0xff] %v1407_v39 }
  0xf6   :  { %v1166_v41 = vpop.f32.mrf.mxu2  ;;  %v902_v44 = vpop.f32.mrf.mxu0 }
  0xf7   :  { %v1299_v42 = vpop.f32.mrf.mxu3  ;;  %v1167_v43 = vadd.f32 %v1166_v41, %v1034_v40  ;;  %v1035_v45 = vpop.f32.mrf.mxu1  ;;  %v903_v47 = vadd.f32 %v2453_v0, %v902_v44 }
  0xf9   :  { %v1300_v46 = vadd.f32 %v1299_v42, %v1167_v43  ;;  %v1036_v57 = vadd.f32 %v1035_v45, %v903_v47  ;;  %v1758_v45 = vld [vmem:[%s3048_s0 + $0x200] sm:$0xf]  ;;  %v2076_v47 = vld [vmem:[%s3048_s0 + $0x204] sm:$0xf] }
  0xfb   :  { %v1408_v51 = vmax.f32 %v1300_v46, 0.0  ;;  %v2078_v46 = vld [vmem:[%s3048_s0 + $0x20c] sm:$0xf0] }
  0xfd   :  { %1457 = vst [vmem:[%s3049_s3 + $0x50] sm:$0xff] %v1408_v51  ;;  %v2079_v51 = vld [vmem:[%s3048_s0 + $0x214] sm:$0xf0] }
  0xfe   :  { %v1168_v58 = vpop.f32.mrf.mxu2  ;;  %v905_v63 = vpop.f32.mrf.mxu0 }
  0xff   :  { %v1301_v59 = vpop.f32.mrf.mxu3  ;;  %v1169_v62 = vadd.f32 %v1168_v58, %v1036_v57  ;;  %v1038_v1 = vpop.f32.mrf.mxu1  ;;  %v906_v4 = vadd.f32 %v2453_v0, %v905_v63  ;;  %v1759_v57 = vor.u32 %v2078_v46, %v1758_v45  ;;  %v1763_v58 = vor.u32 %v2076_v47, %v1760_v49  ;;  %v1792_v46 = vld [vmem:[%s3048_s0 + $0x250] sm:$0xf0]  ;;  %v1798_v47 = vld [vmem:[%s3048_s0 + $0x248] sm:$0xf]  ;;  %v2085_v49 = vld [vmem:[%s3048_s0 + $0x24c] sm:$0xf] }
 0x100   :  { %v1771_v63 = vor.u32 %v2077_v52, %v1768_v53 }
 0x101   :  { %v1302_v5 = vadd.f32 %v1301_v59, %v1169_v62  ;;  %944 = vmatmul.bf16.gmra.mxu0 %v1727_v60  ;;  %v1039_v7 = vadd.f32 %v1038_v1, %v906_v4  ;;  %v1767_v62 = vor.u32 %v2079_v51, %v1766_v50  ;;  %v1800_v50 = vld [vmem:[%s3048_s0 + $0x258] sm:$0xf0] }
 0x102   :  { %1077 = vmatmul.bf16.gmra.mxu1 %v1731_v61 }
 0x103   :  { %v1409_v6 = vmax.f32 %v1302_v5, 0.0  ;;  %1210 = vmatmul.bf16.gmra.mxu2 %v1735_v2 }
 0x104   :  { %1343 = vmatmul.bf16.gmra.mxu3 %v1739_v3 }
 0x105   :  { %1458 = vst [vmem:[%s3049_s3 + $0x58] sm:$0xff] %v1409_v6 }
 0x106   :  { %v1171_v8 = vpop.f32.mrf.mxu2  ;;  %v907_v11 = vpop.f32.mrf.mxu0 }
 0x107   :  { %v1304_v9 = vpop.f32.mrf.mxu3  ;;  %v1172_v10 = vadd.f32 %v1171_v8, %v1039_v7  ;;  %v1040_v12 = vpop.f32.mrf.mxu1  ;;  %v908_v14 = vadd.f32 %v2453_v0, %v907_v11 }
 0x109   :  { %v1305_v13 = vadd.f32 %v1304_v9, %v1172_v10  ;;  %v1041_v24 = vadd.f32 %v1040_v12, %v908_v14  ;;  %v1774_v12 = vld [vmem:[%s3048_s0 + $0x220] sm:$0xf]  ;;  %v2080_v14 = vld [vmem:[%s3048_s0 + $0x224] sm:$0xf] }
 0x10b   :  { %v1410_v18 = vmax.f32 %v1305_v13, 0.0  ;;  %v2082_v13 = vld [vmem:[%s3048_s0 + $0x22c] sm:$0xf0] }
 0x10d   :  { %1459 = vst [vmem:[%s3049_s3 + $0x60] sm:$0xff] %v1410_v18  ;;  %v2083_v18 = vld [vmem:[%s3048_s0 + $0x234] sm:$0xf0] }
 0x10e   :  { %v1173_v25 = vpop.f32.mrf.mxu2  ;;  %v910_v30 = vpop.f32.mrf.mxu0 }
 0x10f   :  { %v1306_v26 = vpop.f32.mrf.mxu3  ;;  %v1174_v29 = vadd.f32 %v1173_v25, %v1041_v24  ;;  %v1043_v31 = vpop.f32.mrf.mxu1  ;;  %v911_v34 = vadd.f32 %v2453_v0, %v910_v30  ;;  %v1775_v24 = vor.u32 %v2082_v13, %v1774_v12  ;;  %v1779_v25 = vor.u32 %v2080_v14, %v1776_v16  ;;  %v1808_v13 = vld [vmem:[%s3048_s0 + $0x270] sm:$0xf0]  ;;  %v1814_v14 = vld [vmem:[%s3048_s0 + $0x268] sm:$0xf]  ;;  %v2089_v16 = vld [vmem:[%s3048_s0 + $0x26c] sm:$0xf] }
 0x110   :  { %v1787_v30 = vor.u32 %v2081_v19, %v1784_v20 }
 0x111   :  { %v1307_v35 = vadd.f32 %v1306_v26, %v1174_v29  ;;  %949 = vmatmul.bf16.gmra.mxu0 %v1743_v27  ;;  %v1044_v37 = vadd.f32 %v1043_v31, %v911_v34  ;;  %v1783_v29 = vor.u32 %v2083_v18, %v1782_v17  ;;  %v1816_v17 = vld [vmem:[%s3048_s0 + $0x278] sm:$0xf0] }
 0x112   :  { %1082 = vmatmul.bf16.gmra.mxu1 %v1747_v28 }
 0x113   :  { %v1411_v36 = vmax.f32 %v1307_v35, 0.0  ;;  %1215 = vmatmul.bf16.gmra.mxu2 %v1751_v32 }
 0x114   :  { %1348 = vmatmul.bf16.gmra.mxu3 %v1755_v33 }
 0x115   :  { %1460 = vst [vmem:[%s3049_s3 + $0x68] sm:$0xff] %v1411_v36 }
 0x116   :  { %v1176_v38 = vpop.f32.mrf.mxu2  ;;  %v912_v41 = vpop.f32.mrf.mxu0 }
 0x117   :  { %v1309_v39 = vpop.f32.mrf.mxu3  ;;  %v1177_v40 = vadd.f32 %v1176_v38, %v1044_v37  ;;  %v1045_v42 = vpop.f32.mrf.mxu1  ;;  %v913_v44 = vadd.f32 %v2453_v0, %v912_v41 }
 0x119   :  { %v1310_v43 = vadd.f32 %v1309_v39, %v1177_v40  ;;  %v1046_v54 = vadd.f32 %v1045_v42, %v913_v44  ;;  %v1790_v42 = vld [vmem:[%s3048_s0 + $0x240] sm:$0xf]  ;;  %v2084_v44 = vld [vmem:[%s3048_s0 + $0x244] sm:$0xf] }
 0x11b   :  { %v1412_v48 = vmax.f32 %v1310_v43, 0.0  ;;  %v2086_v43 = vld [vmem:[%s3048_s0 + $0x24c] sm:$0xf0] }
 0x11d   :  { %1461 = vst [vmem:[%s3049_s3 + $0x70] sm:$0xff] %v1412_v48  ;;  %v2087_v48 = vld [vmem:[%s3048_s0 + $0x254] sm:$0xf0] }
 0x11e   :  { %v1178_v55 = vpop.f32.mrf.mxu2  ;;  %v915_v60 = vpop.f32.mrf.mxu0 }
 0x11f   :  { %v1311_v56 = vpop.f32.mrf.mxu3  ;;  %v1179_v59 = vadd.f32 %v1178_v55, %v1046_v54  ;;  %v1048_v61 = vpop.f32.mrf.mxu1  ;;  %v916_v1 = vadd.f32 %v2453_v0, %v915_v60  ;;  %v1791_v54 = vor.u32 %v2086_v43, %v1790_v42  ;;  %v1795_v55 = vor.u32 %v2084_v44, %v1792_v46  ;;  %v1824_v43 = vld [vmem:[%s3048_s0 + $0x290] sm:$0xf0]  ;;  %v1830_v44 = vld [vmem:[%s3048_s0 + $0x288] sm:$0xf]  ;;  %v2093_v46 = vld [vmem:[%s3048_s0 + $0x28c] sm:$0xf] }
 0x120   :  { %v1803_v60 = vor.u32 %v2085_v49, %v1800_v50 }
 0x121   :  { %v1312_v2 = vadd.f32 %v1311_v56, %v1179_v59  ;;  %954 = vmatmul.bf16.gmra.mxu0 %v1759_v57  ;;  %v1049_v4 = vadd.f32 %v1048_v61, %v916_v1  ;;  %v1799_v59 = vor.u32 %v2087_v48, %v1798_v47  ;;  %v1832_v47 = vld [vmem:[%s3048_s0 + $0x298] sm:$0xf0] }
 0x122   :  { %1087 = vmatmul.bf16.gmra.mxu1 %v1763_v58 }
 0x123   :  { %v1413_v3 = vmax.f32 %v1312_v2, 0.0  ;;  %1220 = vmatmul.bf16.gmra.mxu2 %v1767_v62 }
 0x124   :  { %1353 = vmatmul.bf16.gmra.mxu3 %v1771_v63 }
 0x125   :  { %1462 = vst [vmem:[%s3049_s3 + $0x78] sm:$0xff] %v1413_v3 }
 0x126   :  { %v1181_v5 = vpop.f32.mrf.mxu2  ;;  %v917_v8 = vpop.f32.mrf.mxu0 }
 0x127   :  { %v1314_v6 = vpop.f32.mrf.mxu3  ;;  %v1182_v7 = vadd.f32 %v1181_v5, %v1049_v4  ;;  %v1050_v9 = vpop.f32.mrf.mxu1  ;;  %v918_v11 = vadd.f32 %v2453_v0, %v917_v8 }
 0x129   :  { %v1315_v10 = vadd.f32 %v1314_v6, %v1182_v7  ;;  %v1051_v21 = vadd.f32 %v1050_v9, %v918_v11  ;;  %v1806_v9 = vld [vmem:[%s3048_s0 + $0x260] sm:$0xf]  ;;  %v2088_v11 = vld [vmem:[%s3048_s0 + $0x264] sm:$0xf] }
 0x12b   :  { %v1414_v15 = vmax.f32 %v1315_v10, 0.0  ;;  %v2090_v10 = vld [vmem:[%s3048_s0 + $0x26c] sm:$0xf0] }
 0x12d   :  { %1463 = vst [vmem:[%s3049_s3 + $0x80] sm:$0xff] %v1414_v15  ;;  %v2091_v15 = vld [vmem:[%s3048_s0 + $0x274] sm:$0xf0] }
 0x12e   :  { %v1183_v22 = vpop.f32.mrf.mxu2  ;;  %v920_v27 = vpop.f32.mrf.mxu0 }
 0x12f   :  { %v1316_v23 = vpop.f32.mrf.mxu3  ;;  %v1184_v26 = vadd.f32 %v1183_v22, %v1051_v21  ;;  %v1053_v28 = vpop.f32.mrf.mxu1  ;;  %v921_v31 = vadd.f32 %v2453_v0, %v920_v27  ;;  %v1807_v21 = vor.u32 %v2090_v10, %v1806_v9  ;;  %v1811_v22 = vor.u32 %v2088_v11, %v1808_v13  ;;  %v1840_v10 = vld [vmem:[%s3048_s0 + $0x2b0] sm:$0xf0]  ;;  %v1846_v11 = vld [vmem:[%s3048_s0 + $0x2a8] sm:$0xf]  ;;  %v2097_v13 = vld [vmem:[%s3048_s0 + $0x2ac] sm:$0xf] }
 0x130   :  { %v1819_v27 = vor.u32 %v2089_v16, %v1816_v17 }
 0x131   :  { %v1317_v32 = vadd.f32 %v1316_v23, %v1184_v26  ;;  %959 = vmatmul.bf16.gmra.mxu0 %v1775_v24  ;;  %v1054_v34 = vadd.f32 %v1053_v28, %v921_v31  ;;  %v1815_v26 = vor.u32 %v2091_v15, %v1814_v14  ;;  %v1848_v14 = vld [vmem:[%s3048_s0 + $0x2b8] sm:$0xf0] }
 0x132   :  { %1092 = vmatmul.bf16.gmra.mxu1 %v1779_v25 }
 0x133   :  { %v1415_v33 = vmax.f32 %v1317_v32, 0.0  ;;  %1225 = vmatmul.bf16.gmra.mxu2 %v1783_v29 }
 0x134   :  { %1358 = vmatmul.bf16.gmra.mxu3 %v1787_v30 }
 0x135   :  { %1464 = vst [vmem:[%s3049_s3 + $0x88] sm:$0xff] %v1415_v33 }
 0x136   :  { %v1186_v35 = vpop.f32.mrf.mxu2  ;;  %v922_v38 = vpop.f32.mrf.mxu0 }
 0x137   :  { %v1319_v36 = vpop.f32.mrf.mxu3  ;;  %v1187_v37 = vadd.f32 %v1186_v35, %v1054_v34  ;;  %v1055_v39 = vpop.f32.mrf.mxu1  ;;  %v923_v41 = vadd.f32 %v2453_v0, %v922_v38 }
 0x139   :  { %v1320_v40 = vadd.f32 %v1319_v36, %v1187_v37  ;;  %v1056_v51 = vadd.f32 %v1055_v39, %v923_v41  ;;  %v1822_v39 = vld [vmem:[%s3048_s0 + $0x280] sm:$0xf]  ;;  %v2092_v41 = vld [vmem:[%s3048_s0 + $0x284] sm:$0xf] }
 0x13b   :  { %v1416_v45 = vmax.f32 %v1320_v40, 0.0  ;;  %v2094_v40 = vld [vmem:[%s3048_s0 + $0x28c] sm:$0xf0] }
 0x13d   :  { %1465 = vst [vmem:[%s3049_s3 + $0x90] sm:$0xff] %v1416_v45  ;;  %v2095_v45 = vld [vmem:[%s3048_s0 + $0x294] sm:$0xf0] }
 0x13e   :  { %v1188_v52 = vpop.f32.mrf.mxu2  ;;  %v925_v57 = vpop.f32.mrf.mxu0 }
 0x13f   :  { %v1321_v53 = vpop.f32.mrf.mxu3  ;;  %v1189_v56 = vadd.f32 %v1188_v52, %v1056_v51  ;;  %v1058_v58 = vpop.f32.mrf.mxu1  ;;  %v926_v61 = vadd.f32 %v2453_v0, %v925_v57  ;;  %v1823_v51 = vor.u32 %v2094_v40, %v1822_v39  ;;  %v1827_v52 = vor.u32 %v2092_v41, %v1824_v43  ;;  %v1856_v40 = vld [vmem:[%s3048_s0 + $0x2d0] sm:$0xf0]  ;;  %v2103_v41 = vld [vmem:[%s3048_s0 + $0x2d4] sm:$0xf0]  ;;  %v1864_v43 = vld [vmem:[%s3048_s0 + $0x2d8] sm:$0xf0] }
 0x140   :  { %v1835_v57 = vor.u32 %v2093_v46, %v1832_v47 }
 0x141   :  { %v1322_v62 = vadd.f32 %v1321_v53, %v1189_v56  ;;  %964 = vmatmul.bf16.gmra.mxu0 %v1791_v54  ;;  %v1059_v1 = vadd.f32 %v1058_v58, %v926_v61  ;;  %v1831_v56 = vor.u32 %v2095_v45, %v1830_v44 }
 0x142   :  { %1097 = vmatmul.bf16.gmra.mxu1 %v1795_v55 }
 0x143   :  { %v1417_v63 = vmax.f32 %v1322_v62, 0.0  ;;  %1230 = vmatmul.bf16.gmra.mxu2 %v1799_v59 }
 0x144   :  { %1363 = vmatmul.bf16.gmra.mxu3 %v1803_v60 }
 0x145   :  { %1466 = vst [vmem:[%s3049_s3 + $0x98] sm:$0xff] %v1417_v63 }
 0x146   :  { %v1191_v2 = vpop.f32.mrf.mxu2  ;;  %v927_v5 = vpop.f32.mrf.mxu0 }
 0x147   :  { %v1324_v3 = vpop.f32.mrf.mxu3  ;;  %v1192_v4 = vadd.f32 %v1191_v2, %v1059_v1  ;;  %v1060_v6 = vpop.f32.mrf.mxu1  ;;  %v928_v8 = vadd.f32 %v2453_v0, %v927_v5 }
 0x149   :  { %v1325_v7 = vadd.f32 %v1324_v3, %v1192_v4  ;;  %v1061_v18 = vadd.f32 %v1060_v6, %v928_v8  ;;  %v1838_v6 = vld [vmem:[%s3048_s0 + $0x2a0] sm:$0xf]  ;;  %v2096_v8 = vld [vmem:[%s3048_s0 + $0x2a4] sm:$0xf] }
 0x14b   :  { %v1418_v12 = vmax.f32 %v1325_v7, 0.0  ;;  %v2098_v7 = vld [vmem:[%s3048_s0 + $0x2ac] sm:$0xf0] }
 0x14d   :  { %1467 = vst [vmem:[%s3049_s3 + $0xa0] sm:$0xff] %v1418_v12  ;;  %v2099_v12 = vld [vmem:[%s3048_s0 + $0x2b4] sm:$0xf0] }
 0x14e   :  { %v1193_v19 = vpop.f32.mrf.mxu2  ;;  %v930_v24 = vpop.f32.mrf.mxu0 }
 0x14f   :  { %v1326_v20 = vpop.f32.mrf.mxu3  ;;  %v1194_v23 = vadd.f32 %v1193_v19, %v1061_v18  ;;  %v1063_v25 = vpop.f32.mrf.mxu1  ;;  %v931_v28 = vadd.f32 %v2453_v0, %v930_v24  ;;  %v1839_v18 = vor.u32 %v2098_v7, %v1838_v6  ;;  %v1843_v19 = vor.u32 %v2096_v8, %v1840_v10  ;;  %v1872_v7 = vld [vmem:[%s3048_s0 + $0x2f0] sm:$0xf0]  ;;  %v1878_v8 = vld [vmem:[%s3048_s0 + $0x2e8] sm:$0xf]  ;;  %v2105_v10 = vld [vmem:[%s3048_s0 + $0x2ec] sm:$0xf] }
 0x150   :  { %v1851_v24 = vor.u32 %v2097_v13, %v1848_v14 }
 0x151   :  { %v1327_v29 = vadd.f32 %v1326_v20, %v1194_v23  ;;  %969 = vmatmul.bf16.gmra.mxu0 %v1807_v21  ;;  %v1064_v31 = vadd.f32 %v1063_v25, %v931_v28  ;;  %v1847_v23 = vor.u32 %v2099_v12, %v1846_v11  ;;  %v1880_v11 = vld [vmem:[%s3048_s0 + $0x2f8] sm:$0xf0] }
 0x152   :  { %1102 = vmatmul.bf16.gmra.mxu1 %v1811_v22 }
 0x153   :  { %v1419_v30 = vmax.f32 %v1327_v29, 0.0  ;;  %1235 = vmatmul.bf16.gmra.mxu2 %v1815_v26 }
 0x154   :  { %1368 = vmatmul.bf16.gmra.mxu3 %v1819_v27 }
 0x155   :  { %1468 = vst [vmem:[%s3049_s3 + $0xa8] sm:$0xff] %v1419_v30 }
 0x156   :  { %v1196_v32 = vpop.f32.mrf.mxu2  ;;  %v932_v35 = vpop.f32.mrf.mxu0 }
 0x157   :  { %v1329_v33 = vpop.f32.mrf.mxu3  ;;  %v1197_v34 = vadd.f32 %v1196_v32, %v1064_v31  ;;  %v1065_v36 = vpop.f32.mrf.mxu1  ;;  %v933_v38 = vadd.f32 %v2453_v0, %v932_v35 }
 0x159   :  { %v1330_v37 = vadd.f32 %v1329_v33, %v1197_v34  ;;  %v1066_v48 = vadd.f32 %v1065_v36, %v933_v38  ;;  %v1854_v36 = vld [vmem:[%s3048_s0 + $0x2c0] sm:$0xf]  ;;  %v2100_v38 = vld [vmem:[%s3048_s0 + $0x2c4] sm:$0xf] }
 0x15b   :  { %v1420_v42 = vmax.f32 %v1330_v37, 0.0  ;;  %v2102_v37 = vld [vmem:[%s3048_s0 + $0x2cc] sm:$0xf0] }
 0x15c   :  { %v1855_v47 = vor.u32 %v2102_v37, %v1854_v36 }
 0x15d   :  { %1469 = vst [vmem:[%s3049_s3 + $0xb0] sm:$0xff] %v1420_v42  ;;  %v2101_v42 = vld [vmem:[%s3048_s0 + $0x2cc] sm:$0xf] }
 0x15e   :  { %v1198_v49 = vpop.f32.mrf.mxu2  ;;  %v935_v54 = vpop.f32.mrf.mxu0 }
 0x15f   :  { %v1331_v50 = vpop.f32.mrf.mxu3  ;;  %v1199_v53 = vadd.f32 %v1198_v49, %v1066_v48  ;;  %v1068_v55 = vpop.f32.mrf.mxu1  ;;  %v936_v58 = vadd.f32 %v2453_v0, %v935_v54  ;;  %v1859_v48 = vor.u32 %v2100_v38, %v1856_v40  ;;  %v2927_v54 = vld [vmem:[%s3047_s2] ss:$0 sm:$0xff] }
 0x161   :  { %v1332_v59 = vadd.f32 %v1331_v50, %v1199_v53  ;;  %974 = vmatmul.bf16.gmra.mxu0 %v1823_v51  ;;  %v1069_v61 = vadd.f32 %v1068_v55, %v936_v58  ;;  %v1867_v53 = vor.u32 %v2101_v42, %v1864_v43 }
 0x162   :  { %1107 = vmatmul.bf16.gmra.mxu1 %v1827_v52 }
 0x163   :  { %v1421_v60 = vmax.f32 %v1332_v59, 0.0  ;;  %1240 = vmatmul.bf16.gmra.mxu2 %v1831_v56 }
 0x164   :  { %1373 = vmatmul.bf16.gmra.mxu3 %v1835_v57 }
 0x165   :  { %1470 = vst [vmem:[%s3049_s3 + $0xb8] sm:$0xff] %v1421_v60 }
 0x166   :  { %v1201_v62 = vpop.f32.mrf.mxu2  ;;  %v937_v2 = vpop.f32.mrf.mxu0 }
 0x167   :  { %v1334_v63 = vpop.f32.mrf.mxu3  ;;  %v1202_v1 = vadd.f32 %v1201_v62, %v1069_v61  ;;  %v1070_v3 = vpop.f32.mrf.mxu1  ;;  %v938_v5 = vadd.f32 %v2453_v0, %v937_v2 }
 0x169   :  { %v1335_v4 = vadd.f32 %v1334_v63, %v1202_v1  ;;  %v1071_v15 = vadd.f32 %v1070_v3, %v938_v5  ;;  %v1870_v3 = vld [vmem:[%s3048_s0 + $0x2e0] sm:$0xf]  ;;  %v2104_v5 = vld [vmem:[%s3048_s0 + $0x2e4] sm:$0xf] }
 0x16b   :  { %v1422_v9 = vmax.f32 %v1335_v4, 0.0  ;;  %v2106_v4 = vld [vmem:[%s3048_s0 + $0x2ec] sm:$0xf0] }
 0x16d   :  { %1471 = vst [vmem:[%s3049_s3 + $0xc0] sm:$0xff] %v1422_v9  ;;  %v2107_v9 = vld [vmem:[%s3048_s0 + $0x2f4] sm:$0xf0] }
 0x16e   :  { %v1203_v16 = vpop.f32.mrf.mxu2  ;;  %v940_v21 = vpop.f32.mrf.mxu0 }
 0x16f   :  { %v1336_v17 = vpop.f32.mrf.mxu3  ;;  %v1204_v20 = vadd.f32 %v1203_v16, %v1071_v15  ;;  %v1073_v22 = vpop.f32.mrf.mxu1  ;;  %v941_v25 = vadd.f32 %v2453_v0, %v940_v21  ;;  %v1871_v15 = vor.u32 %v2106_v4, %v1870_v3  ;;  %v1875_v16 = vor.u32 %v2104_v5, %v1872_v7 }
 0x170   :  { %v1883_v21 = vor.u32 %v2105_v10, %v1880_v11 }
 0x171   :  { %v1337_v26 = vadd.f32 %v1336_v17, %v1204_v20  ;;  %979 = vmatmul.bf16.gmra.mxu0 %v1839_v18  ;;  %v1074_v28 = vadd.f32 %v1073_v22, %v941_v25  ;;  %v1879_v20 = vor.u32 %v2107_v9, %v1878_v8 }
 0x172   :  { %1112 = vmatmul.bf16.gmra.mxu1 %v1843_v19 }
 0x173   :  { %v1423_v27 = vmax.f32 %v1337_v26, 0.0  ;;  %1245 = vmatmul.bf16.gmra.mxu2 %v1847_v23 }
 0x174   :  { %1378 = vmatmul.bf16.gmra.mxu3 %v1851_v24 }
 0x175   :  { %1472 = vst [vmem:[%s3049_s3 + $0xc8] sm:$0xff] %v1423_v27 }
 0x176   :  { %v1206_v29 = vpop.f32.mrf.mxu2  ;;  %v942_v32 = vpop.f32.mrf.mxu0 }
 0x177   :  { %v1339_v30 = vpop.f32.mrf.mxu3  ;;  %v1207_v31 = vadd.f32 %v1206_v29, %v1074_v28  ;;  %v1075_v33 = vpop.f32.mrf.mxu1  ;;  %v943_v35 = vadd.f32 %v2453_v0, %v942_v32  ;;  %v1862_v0 = vld [vmem:[%s3048_s0 + $0x2c8] sm:$0xf] }
 0x178   :  { %v1863_v52 = vor.u32 %v2103_v41, %v1862_v0  ;;  %v111_v32 = vld [vmem:[%s3048_s0 + $0x308] sm:$0xff] }
 0x179   :  { %v1340_v34 = vadd.f32 %v1339_v30, %v1207_v31  ;;  %v1076_v44 = vadd.f32 %v1075_v33, %v943_v35  ;;  %v110_v31 = vld [vmem:[%s3048_s0 + $0x300] sm:$0xff]  ;;  %v472_v38 = vunpack.c.l.b16 %v111_v32 }
 0x17a   :  { %v470_v35 = vunpack.c.l.b16 %v110_v31  ;;  %v471_v36 = vunpack.c.h.b16 %v110_v31 }
 0x17b   :  { %v1424_v39 = vmax.f32 %v1340_v34, 0.0 }
 0x17c   :  { %v570_v42 = vpack.c.b16 %v470_v35, %v470_v35  ;;  %v571_v43 = vpack.c.b16 %v471_v36, %v471_v36 }
 0x17d   :  { %1473 = vst [vmem:[%s3049_s3 + $0xd0] sm:$0xff] %v1424_v39  ;;  %v473_v39 = vunpack.c.h.b16 %v111_v32 }
 0x17e   :  { %v1208_v45 = vpop.f32.mrf.mxu2  ;;  %v945_v50 = vpop.f32.mrf.mxu0 }
 0x17f   :  { %v1341_v46 = vpop.f32.mrf.mxu3  ;;  %v1209_v49 = vadd.f32 %v1208_v45, %v1076_v44  ;;  %v1078_v51 = vpop.f32.mrf.mxu1  ;;  %v946_v55 = vadd.f32 %v2927_v54, %v945_v50 }
 0x181   :  { %v1342_v56 = vadd.f32 %v1341_v46, %v1209_v49  ;;  %984 = vmatmul.bf16.gmra.mxu0 %v1855_v47  ;;  %v1079_v58 = vadd.f32 %v1078_v51, %v946_v55  ;;  %v572_v47 = vpack.c.b16 %v472_v38, %v472_v38 }
 0x182   :  { %1117 = vmatmul.bf16.gmra.mxu1 %v1859_v48  ;;  %v573_v48 = vpack.c.b16 %v473_v39, %v473_v39 }
 0x183   :  { %v1425_v57 = vmax.f32 %v1342_v56, 0.0  ;;  %1250 = vmatmul.bf16.gmra.mxu2 %v1863_v52 }
 0x184   :  { %1383 = vmatmul.bf16.gmra.mxu3 %v1867_v53 }
 0x185   :  { %1474 = vst [vmem:[%s3049_s3 + $0xd8] sm:$0xff] %v1425_v57 }
 0x186   :  { %v1211_v59 = vpop.f32.mrf.mxu2  ;;  %v947_v62 = vpop.f32.mrf.mxu0 }
 0x187   :  { %v1344_v60 = vpop.f32.mrf.mxu3  ;;  %v1212_v61 = vadd.f32 %v1211_v59, %v1079_v58  ;;  %v1080_v63 = vpop.f32.mrf.mxu1  ;;  %v948_v2 = vadd.f32 %v2927_v54, %v947_v62 }
 0x189   :  { %v1345_v1 = vadd.f32 %v1344_v60, %v1212_v61  ;;  %v1081_v12 = vadd.f32 %v1080_v63, %v948_v2 }
 0x18b   :  { %v1426_v6 = vmax.f32 %v1345_v1, 0.0 }
 0x18d   :  { %1475 = vst [vmem:[%s3049_s3 + $0xe0] sm:$0xff] %v1426_v6 }
 0x18e   :  { %v1213_v13 = vpop.f32.mrf.mxu2  ;;  %v950_v18 = vpop.f32.mrf.mxu0 }
 0x18f   :  { %v1346_v14 = vpop.f32.mrf.mxu3  ;;  %v1214_v17 = vadd.f32 %v1213_v13, %v1081_v12  ;;  %v1083_v19 = vpop.f32.mrf.mxu1  ;;  %v951_v22 = vadd.f32 %v2927_v54, %v950_v18 }
 0x191   :  { %v1347_v23 = vadd.f32 %v1346_v14, %v1214_v17  ;;  %989 = vmatmul.bf16.gmra.mxu0 %v1871_v15  ;;  %v1084_v25 = vadd.f32 %v1083_v19, %v951_v22 }
 0x192   :  { %1122 = vmatmul.bf16.gmra.mxu1 %v1875_v16 }
 0x193   :  { %v1427_v24 = vmax.f32 %v1347_v23, 0.0  ;;  %1255 = vmatmul.bf16.gmra.mxu2 %v1879_v20 }
 0x194   :  { %1388 = vmatmul.bf16.gmra.mxu3 %v1883_v21 }
 0x195   :  { %1476 = vst [vmem:[%s3049_s3 + $0xe8] sm:$0xff] %v1427_v24 }
 0x196   :  { %v1216_v26 = vpop.f32.mrf.mxu2  ;;  %v952_v29 = vpop.f32.mrf.mxu0 }
 0x197   :  { %v1349_v27 = vpop.f32.mrf.mxu3  ;;  %v1217_v28 = vadd.f32 %v1216_v26, %v1084_v25  ;;  %v1085_v30 = vpop.f32.mrf.mxu1  ;;  %v953_v34 = vadd.f32 %v2927_v54, %v952_v29 }
 0x199   :  { %v1350_v33 = vadd.f32 %v1349_v27, %v1217_v28  ;;  %v1086_v40 = vadd.f32 %v1085_v30, %v953_v34 }
 0x19b   :  { %v1428_v37 = vmax.f32 %v1350_v33, 0.0 }
 0x19d   :  { %1477 = vst [vmem:[%s3049_s3 + $0xf0] sm:$0xff] %v1428_v37 }
 0x19e   :  { %v1218_v0 = vpop.f32.mrf.mxu2  ;;  %v955_v45 = vpop.f32.mrf.mxu0 }
 0x19f   :  { %v1351_v41 = vpop.f32.mrf.mxu3  ;;  %v1219_v44 = vadd.f32 %v1218_v0, %v1086_v40  ;;  %v1088_v46 = vpop.f32.mrf.mxu1  ;;  %v956_v49 = vadd.f32 %v2927_v54, %v955_v45 }
 0x1a1   :  { %v1352_v50 = vadd.f32 %v1351_v41, %v1219_v44  ;;  %994 = vmatmul.bf16.gmra.mxu0 %v570_v42  ;;  %v1089_v52 = vadd.f32 %v1088_v46, %v956_v49 }
 0x1a2   :  { %1127 = vmatmul.bf16.gmra.mxu1 %v571_v43 }
 0x1a3   :  { %v1429_v51 = vmax.f32 %v1352_v50, 0.0  ;;  %1260 = vmatmul.bf16.gmra.mxu2 %v572_v47 }
 0x1a4   :  { %1393 = vmatmul.bf16.gmra.mxu3 %v573_v48 }
 0x1a5   :  { %1478 = vst [vmem:[%s3049_s3 + $0xf8] sm:$0xff] %v1429_v51 }
 0x1a6   :  { %v1221_v53 = vpop.f32.mrf.mxu2  ;;  %v957_v57 = vpop.f32.mrf.mxu0 }
 0x1a7   :  { %v1354_v55 = vpop.f32.mrf.mxu3  ;;  %v1222_v56 = vadd.f32 %v1221_v53, %v1089_v52  ;;  %v1090_v58 = vpop.f32.mrf.mxu1  ;;  %v958_v60 = vadd.f32 %v2927_v54, %v957_v57 }
 0x1a9   :  { %v1355_v59 = vadd.f32 %v1354_v55, %v1222_v56  ;;  %v1091_v62 = vadd.f32 %v1090_v58, %v958_v60 }
 0x1ab   :  { %v1430_v61 = vmax.f32 %v1355_v59, 0.0 }
 0x1ad   :  { %1479 = vst [vmem:[%s3049_s3 + $0x100] sm:$0xff] %v1430_v61 }
 0x1ae   :  { %v1223_v63 = vpop.f32.mrf.mxu2  ;;  %v960_v3 = vpop.f32.mrf.mxu0 }
 0x1af   :  { %v1356_v1 = vpop.f32.mrf.mxu3  ;;  %v1224_v2 = vadd.f32 %v1223_v63, %v1091_v62  ;;  %v1093_v4 = vpop.f32.mrf.mxu1  ;;  %v961_v5 = vadd.f32 %v2927_v54, %v960_v3 }
 0x1b1   :  { %v1357_v6 = vadd.f32 %v1356_v1, %v1224_v2  ;;  %v1094_v8 = vadd.f32 %v1093_v4, %v961_v5 }
 0x1b3   :  { %v1431_v7 = vmax.f32 %v1357_v6, 0.0 }
 0x1b5   :  { %1480 = vst [vmem:[%s3049_s3 + $0x108] sm:$0xff] %v1431_v7 }
 0x1b6   :  { %v1226_v9 = vpop.f32.mrf.mxu2  ;;  %v962_v12 = vpop.f32.mrf.mxu0 }
 0x1b7   :  { %v1359_v10 = vpop.f32.mrf.mxu3  ;;  %v1227_v11 = vadd.f32 %v1226_v9, %v1094_v8  ;;  %v1095_v13 = vpop.f32.mrf.mxu1  ;;  %v963_v15 = vadd.f32 %v2927_v54, %v962_v12 }
 0x1b9   :  { %v1360_v14 = vadd.f32 %v1359_v10, %v1227_v11  ;;  %v1096_v17 = vadd.f32 %v1095_v13, %v963_v15 }
 0x1bb   :  { %v1432_v16 = vmax.f32 %v1360_v14, 0.0 }
 0x1bd   :  { %1481 = vst [vmem:[%s3049_s3 + $0x110] sm:$0xff] %v1432_v16 }
 0x1be   :  { %v1228_v18 = vpop.f32.mrf.mxu2  ;;  %v965_v21 = vpop.f32.mrf.mxu0 }
 0x1bf   :  { %v1361_v19 = vpop.f32.mrf.mxu3  ;;  %v1229_v20 = vadd.f32 %v1228_v18, %v1096_v17  ;;  %v1098_v22 = vpop.f32.mrf.mxu1  ;;  %v966_v23 = vadd.f32 %v2927_v54, %v965_v21 }
 0x1c1   :  { %v1362_v24 = vadd.f32 %v1361_v19, %v1229_v20  ;;  %v1099_v26 = vadd.f32 %v1098_v22, %v966_v23 }
 0x1c3   :  { %v1433_v25 = vmax.f32 %v1362_v24, 0.0 }
 0x1c5   :  { %1482 = vst [vmem:[%s3049_s3 + $0x118] sm:$0xff] %v1433_v25 }
 0x1c6   :  { %v1231_v27 = vpop.f32.mrf.mxu2  ;;  %v967_v30 = vpop.f32.mrf.mxu0 }
 0x1c7   :  { %v1364_v28 = vpop.f32.mrf.mxu3  ;;  %v1232_v29 = vadd.f32 %v1231_v27, %v1099_v26  ;;  %v1100_v31 = vpop.f32.mrf.mxu1  ;;  %v968_v33 = vadd.f32 %v2927_v54, %v967_v30 }
 0x1c9   :  { %v1365_v32 = vadd.f32 %v1364_v28, %v1232_v29  ;;  %v1101_v35 = vadd.f32 %v1100_v31, %v968_v33 }
 0x1cb   :  { %v1434_v34 = vmax.f32 %v1365_v32, 0.0 }
 0x1cd   :  { %1483 = vst [vmem:[%s3049_s3 + $0x120] sm:$0xff] %v1434_v34 }
 0x1ce   :  { %v1233_v36 = vpop.f32.mrf.mxu2  ;;  %v970_v39 = vpop.f32.mrf.mxu0 }
 0x1cf   :  { %v1366_v37 = vpop.f32.mrf.mxu3  ;;  %v1234_v38 = vadd.f32 %v1233_v36, %v1101_v35  ;;  %v1103_v40 = vpop.f32.mrf.mxu1  ;;  %v971_v0 = vadd.f32 %v2927_v54, %v970_v39 }
 0x1d1   :  { %v1367_v41 = vadd.f32 %v1366_v37, %v1234_v38  ;;  %v1104_v43 = vadd.f32 %v1103_v40, %v971_v0 }
 0x1d3   :  { %v1435_v42 = vmax.f32 %v1367_v41, 0.0 }
 0x1d5   :  { %1484 = vst [vmem:[%s3049_s3 + $0x128] sm:$0xff] %v1435_v42 }
 0x1d6   :  { %v1236_v44 = vpop.f32.mrf.mxu2  ;;  %v972_v47 = vpop.f32.mrf.mxu0 }
 0x1d7   :  { %v1369_v45 = vpop.f32.mrf.mxu3  ;;  %v1237_v46 = vadd.f32 %v1236_v44, %v1104_v43  ;;  %v1105_v48 = vpop.f32.mrf.mxu1  ;;  %v973_v50 = vadd.f32 %v2927_v54, %v972_v47 }
 0x1d9   :  { %v1370_v49 = vadd.f32 %v1369_v45, %v1237_v46  ;;  %v1106_v52 = vadd.f32 %v1105_v48, %v973_v50 }
 0x1db   :  { %v1436_v51 = vmax.f32 %v1370_v49, 0.0 }
 0x1dd   :  { %1485 = vst [vmem:[%s3049_s3 + $0x130] sm:$0xff] %v1436_v51 }
 0x1de   :  { %v1238_v53 = vpop.f32.mrf.mxu2  ;;  %v975_v57 = vpop.f32.mrf.mxu0 }
 0x1df   :  { %v1371_v55 = vpop.f32.mrf.mxu3  ;;  %v1239_v56 = vadd.f32 %v1238_v53, %v1106_v52  ;;  %v1108_v58 = vpop.f32.mrf.mxu1  ;;  %v976_v59 = vadd.f32 %v2927_v54, %v975_v57 }
 0x1e1   :  { %v1372_v60 = vadd.f32 %v1371_v55, %v1239_v56  ;;  %v1109_v62 = vadd.f32 %v1108_v58, %v976_v59 }
 0x1e3   :  { %v1437_v61 = vmax.f32 %v1372_v60, 0.0 }
 0x1e5   :  { %1486 = vst [vmem:[%s3049_s3 + $0x138] sm:$0xff] %v1437_v61 }
 0x1e6   :  { %v1241_v63 = vpop.f32.mrf.mxu2  ;;  %v977_v3 = vpop.f32.mrf.mxu0 }
 0x1e7   :  { %v1374_v1 = vpop.f32.mrf.mxu3  ;;  %v1242_v2 = vadd.f32 %v1241_v63, %v1109_v62  ;;  %v1110_v4 = vpop.f32.mrf.mxu1  ;;  %v978_v6 = vadd.f32 %v2927_v54, %v977_v3 }
 0x1e9   :  { %v1375_v5 = vadd.f32 %v1374_v1, %v1242_v2  ;;  %v1111_v8 = vadd.f32 %v1110_v4, %v978_v6 }
 0x1eb   :  { %v1438_v7 = vmax.f32 %v1375_v5, 0.0 }
 0x1ed   :  { %1487 = vst [vmem:[%s3049_s3 + $0x140] sm:$0xff] %v1438_v7 }
 0x1ee   :  { %v1243_v9 = vpop.f32.mrf.mxu2  ;;  %v980_v12 = vpop.f32.mrf.mxu0 }
 0x1ef   :  { %v1376_v10 = vpop.f32.mrf.mxu3  ;;  %v1244_v11 = vadd.f32 %v1243_v9, %v1111_v8  ;;  %v1113_v13 = vpop.f32.mrf.mxu1  ;;  %v981_v14 = vadd.f32 %v2927_v54, %v980_v12 }
 0x1f1   :  { %v1377_v15 = vadd.f32 %v1376_v10, %v1244_v11  ;;  %v1114_v17 = vadd.f32 %v1113_v13, %v981_v14 }
 0x1f3   :  { %v1439_v16 = vmax.f32 %v1377_v15, 0.0 }
 0x1f5   :  { %1488 = vst [vmem:[%s3049_s3 + $0x148] sm:$0xff] %v1439_v16 }
 0x1f6   :  { %v1246_v18 = vpop.f32.mrf.mxu2  ;;  %v982_v21 = vpop.f32.mrf.mxu0 }
 0x1f7   :  { %v1379_v19 = vpop.f32.mrf.mxu3  ;;  %v1247_v20 = vadd.f32 %v1246_v18, %v1114_v17  ;;  %v1115_v22 = vpop.f32.mrf.mxu1  ;;  %v983_v24 = vadd.f32 %v2927_v54, %v982_v21 }
 0x1f9   :  { %v1380_v23 = vadd.f32 %v1379_v19, %v1247_v20  ;;  %v1116_v26 = vadd.f32 %v1115_v22, %v983_v24 }
 0x1fb   :  { %v1440_v25 = vmax.f32 %v1380_v23, 0.0 }
 0x1fd   :  { %1489 = vst [vmem:[%s3049_s3 + $0x150] sm:$0xff] %v1440_v25 }
 0x1fe   :  { %v1248_v27 = vpop.f32.mrf.mxu2  ;;  %v985_v30 = vpop.f32.mrf.mxu0 }
 0x1ff   :  { %v1381_v28 = vpop.f32.mrf.mxu3  ;;  %v1249_v29 = vadd.f32 %v1248_v27, %v1116_v26  ;;  %v1118_v31 = vpop.f32.mrf.mxu1  ;;  %v986_v32 = vadd.f32 %v2927_v54, %v985_v30 }
 0x201   :  { %v1382_v33 = vadd.f32 %v1381_v28, %v1249_v29  ;;  %v1119_v35 = vadd.f32 %v1118_v31, %v986_v32 }
 0x203   :  { %v1441_v34 = vmax.f32 %v1382_v33, 0.0 }
 0x205   :  { %1490 = vst [vmem:[%s3049_s3 + $0x158] sm:$0xff] %v1441_v34 }
 0x206   :  { %v1251_v36 = vpop.f32.mrf.mxu2  ;;  %v987_v39 = vpop.f32.mrf.mxu0 }
 0x207   :  { %v1384_v37 = vpop.f32.mrf.mxu3  ;;  %v1252_v38 = vadd.f32 %v1251_v36, %v1119_v35  ;;  %v1120_v40 = vpop.f32.mrf.mxu1  ;;  %v988_v41 = vadd.f32 %v2927_v54, %v987_v39 }
 0x209   :  { %v1385_v0 = vadd.f32 %v1384_v37, %v1252_v38  ;;  %v1121_v43 = vadd.f32 %v1120_v40, %v988_v41 }
 0x20b   :  { %v1442_v42 = vmax.f32 %v1385_v0, 0.0 }
 0x20d   :  { %1491 = vst [vmem:[%s3049_s3 + $0x160] sm:$0xff] %v1442_v42 }
 0x20e   :  { %v1253_v44 = vpop.f32.mrf.mxu2  ;;  %v990_v47 = vpop.f32.mrf.mxu0 }
 0x20f   :  { %v1386_v45 = vpop.f32.mrf.mxu3  ;;  %v1254_v46 = vadd.f32 %v1253_v44, %v1121_v43  ;;  %v1123_v48 = vpop.f32.mrf.mxu1  ;;  %v991_v49 = vadd.f32 %v2927_v54, %v990_v47 }
 0x211   :  { %v1387_v50 = vadd.f32 %v1386_v45, %v1254_v46  ;;  %v1124_v52 = vadd.f32 %v1123_v48, %v991_v49 }
 0x213   :  { %v1443_v51 = vmax.f32 %v1387_v50, 0.0 }
 0x215   :  { %1492 = vst [vmem:[%s3049_s3 + $0x168] sm:$0xff] %v1443_v51 }
 0x216   :  { %v1256_v53 = vpop.f32.mrf.mxu2  ;;  %v992_v57 = vpop.f32.mrf.mxu0 }
 0x217   :  { %v1389_v55 = vpop.f32.mrf.mxu3  ;;  %v1257_v56 = vadd.f32 %v1256_v53, %v1124_v52  ;;  %v1125_v58 = vpop.f32.mrf.mxu1  ;;  %v993_v60 = vadd.f32 %v2927_v54, %v992_v57 }
 0x219   :  { %v1390_v59 = vadd.f32 %v1389_v55, %v1257_v56  ;;  %v1126_v62 = vadd.f32 %v1125_v58, %v993_v60 }
 0x21b   :  { %v1444_v61 = vmax.f32 %v1390_v59, 0.0 }
 0x21d   :  { %1493 = vst [vmem:[%s3049_s3 + $0x170] sm:$0xff] %v1444_v61 }
 0x21e   :  { %v1258_v63 = vpop.f32.mrf.mxu2  ;;  %v995_v3 = vpop.f32.mrf.mxu0 }
 0x21f   :  { %v1391_v1 = vpop.f32.mrf.mxu3  ;;  %v1259_v2 = vadd.f32 %v1258_v63, %v1126_v62  ;;  %v1128_v4 = vpop.f32.mrf.mxu1  ;;  %v996_v5 = vadd.f32 %v2927_v54, %v995_v3 }
 0x221   :  { %v1392_v6 = vadd.f32 %v1391_v1, %v1259_v2  ;;  %v1129_v8 = vadd.f32 %v1128_v4, %v996_v5 }
 0x223   :  { %v1445_v7 = vmax.f32 %v1392_v6, 0.0 }
 0x225   :  { %1494 = vst [vmem:[%s3049_s3 + $0x178] sm:$0xff] %v1445_v7 }
 0x226   :  { %v1261_v9 = vpop.f32.mrf.mxu2  ;;  %v997_v12 = vpop.f32.mrf.mxu0 }
 0x227   :  { %v1394_v10 = vpop.f32.mrf.mxu3  ;;  %v1262_v11 = vadd.f32 %v1261_v9, %v1129_v8  ;;  %v1130_v13 = vpop.f32.mrf.mxu1 }
 0x229   :  { %v1395_v14 = vadd.f32 %v1394_v10, %v1262_v11 }
 0x22b   :  { %v1446_v15 = vmax.f32 %v1395_v14, 0.0 }
 0x22d   :  { %1495 = vst [vmem:[%s3049_s3 + $0x180] sm:$0xff] %v1446_v15 }
 0x22e   :  { %v1263_v16 = vpop.f32.mrf.mxu2 }
 0x22f   :  { %v1396_v54 = vpop.f32.mrf.mxu3 }

// kernel: marker_forward.9
= control target key start
LH: loop header
LB: loop body
LE: loop exit
PB: predicated region body
PF: predicated region fallthrough
CT: control target
= control target key end

     0   :  { %s3348_s12 = smov 0   ;;  %s5186_s0 = inlined_call_operand.vmem [shape: bf16[2048,256], index: 0, kind: input, shape index: {}]   ;;  %s5187_s1 = inlined_call_operand.vmem [shape: bf16[256,128], index: 1, kind: input, shape index: {}]   ;;  %s5188_s2 = inlined_call_operand.vmem [shape: f32[1,128], index: 2, kind: input, shape index: {}]   ;;  %s5189_s3 = inlined_call_operand.vmem [shape: f32[2048,128], index: 3, kind: output, shape index: {}]  }
   0x1 LB: > { %s2623_s13 = sadd.s32 4294967295, %s3326_s12   ;;  %p2627_p0 = scmp.ge.s32.totalorder %s3326_s12, 1  ;;  %s3326_s12 = sphi %s3348_s12, %s13_s12  }
   0x2   : > { %p139_p1 = scmp.lt.s32.totalorder %s3326_s12, 5 }
   0x4   : > { %p140_p2 = pnand %p2627_p0, %p139_p1 }
   0x5   : > { %s2628_s26 = sshll.u32 (!%p140_p2), %s2623_s13, 6 }
   0x6   : > { %143 = sbr.rel (%p140_p2) target bundleno = 571 (0x23b), region = 32  ;;  %p165_p3 = scmp.lt.s32.totalorder (!%p140_p2), %s2628_s26, 255 }
   0xb   : > { %v3027_v0 = vld [vmem:[%s5187_s1 + $0x38] sm:$0xff]  ;;  %v3026_v2 = vld [vmem:[%s5187_s1 + $0x30] sm:$0xff]  ;;  %v3025_v4 = vld [vmem:[%s5187_s1 + $0x28] sm:$0xff]  ;;  %s5287_s26 = smov (!%p165_p3, %s2628_s26), 255 }
   0xc   : > { %v3035_v1 = vld [vmem:[%s5187_s1 + $0x78] sm:$0xff]  ;;  %693 = vmatpush.bf16.msra.mxu0 %v3027_v0  ;;  %3036 = vmatpush.bf16.msra.mxu2 %v3027_v0  ;;  %v3034_v3 = vld [vmem:[%s5187_s1 + $0x70] sm:$0xff]  ;;  %v3033_v5 = vld [vmem:[%s5187_s1 + $0x68] sm:$0xff]  ;;  %s2955_s13 = sshll.u32 %s5287_s26, 3 }
   0xd   : > { %862 = vmatpush.bf16.msra.mxu1 %v3035_v1  ;;  %3044 = vmatpush.bf16.msra.mxu3 %v3035_v1  ;;  %v3024_v6 = vld [vmem:[%s5187_s1 + $0x20] sm:$0xff]  ;;  %v3023_v8 = vld [vmem:[%s5187_s1 + $0x18] sm:$0xff]  ;;  %v3022_v10 = vld [vmem:[%s5187_s1 + $0x10] sm:$0xff]  ;;  %s3403_s18 = scalar_lea.vmem %s5186_s0, %s2955_s13  ;;  %s3595_s30 = scalar_lea.vmem %s5189_s3, %s2955_s13 }
   0xe   : > { %v3032_v7 = vld [vmem:[%s5187_s1 + $0x60] sm:$0xff]  ;;  %v3031_v9 = vld [vmem:[%s5187_s1 + $0x58] sm:$0xff]  ;;  %v3030_v11 = vld [vmem:[%s5187_s1 + $0x50] sm:$0xff] }
   0xf   : > { %v3021_v12 = vld [vmem:[%s5187_s1 + $0x8] sm:$0xff]  ;;  %v3020_v14 = vld [vmem:[%s5187_s1] sm:$0xff]  ;;  %v2643_v28 = vld [vmem:[%s3403_s18 + $0x10] sm:$0xf] }
  0x10   : > { %694 = vmatpush.bf16.msra.mxu0 %v3026_v2  ;;  %3037 = vmatpush.bf16.msra.mxu2 %v3026_v2  ;;  %v3029_v13 = vld [vmem:[%s5187_s1 + $0x48] sm:$0xff]  ;;  %v3028_v15 = vld [vmem:[%s5187_s1 + $0x40] sm:$0xff]  ;;  %v2959_v29 = vld [vmem:[%s3403_s18 + $0x14] sm:$0xf0] }
  0x11   : > { %863 = vmatpush.bf16.msra.mxu1 %v3034_v3  ;;  %3045 = vmatpush.bf16.msra.mxu3 %v3034_v3  ;;  %v2635_v16 = vld [vmem:[%s3403_s18] sm:$0xf]  ;;  %v2957_v17 = vld [vmem:[%s3403_s18 + $0x4] sm:$0xf0]  ;;  %v2956_v20 = vld [vmem:[%s3403_s18 + $0x4] sm:$0xf]  ;;  %v2644_v36 = vor.u32 %v2959_v29, %v2643_v28 }
  0x12   : > { %v2763_v18 = vld [vmem:[%s3403_s18 + $0x100] sm:$0xf]  ;;  %v2989_v19 = vld [vmem:[%s3403_s18 + $0x104] sm:$0xf0]  ;;  %v2637_v21 = vld [vmem:[%s3403_s18 + $0x8] sm:$0xf0]  ;;  %v2636_v24 = vor.u32 %v2957_v17, %v2635_v16 }
  0x13   : > { %v2988_v22 = vld [vmem:[%s3403_s18 + $0x104] sm:$0xf]  ;;  %v2765_v23 = vld [vmem:[%s3403_s18 + $0x108] sm:$0xf0]  ;;  %v2764_v25 = vor.u32 %v2989_v19, %v2763_v18  ;;  %v2640_v26 = vor.u32 %v2956_v20, %v2637_v21  ;;  %v2771_v30 = vld [vmem:[%s3403_s18 + $0x110] sm:$0xf] }
  0x14   : > { %695 = vmatpush.bf16.msra.mxu0 %v3025_v4  ;;  %3038 = vmatpush.bf16.msra.mxu2 %v3025_v4  ;;  %v2768_v27 = vor.u32 %v2988_v22, %v2765_v23  ;;  %v2991_v31 = vld [vmem:[%s3403_s18 + $0x114] sm:$0xf0]  ;;  %v2958_v32 = vld [vmem:[%s3403_s18 + $0x14] sm:$0xf]  ;;  %v2645_v33 = vld [vmem:[%s3403_s18 + $0x18] sm:$0xf0] }
  0x15   : > { %864 = vmatpush.bf16.msra.mxu1 %v3033_v5  ;;  %3046 = vmatpush.bf16.msra.mxu3 %v3033_v5  ;;  %v2990_v34 = vld [vmem:[%s3403_s18 + $0x114] sm:$0xf]  ;;  %v2773_v35 = vld [vmem:[%s3403_s18 + $0x118] sm:$0xf0]  ;;  %v2772_v37 = vor.u32 %v2991_v31, %v2771_v30  ;;  %v2648_v38 = vor.u32 %v2958_v32, %v2645_v33  ;;  %v2651_v40 = vld [vmem:[%s3403_s18 + $0x20] sm:$0xf] }
  0x16   : > { %v2776_v39 = vor.u32 %v2990_v34, %v2773_v35  ;;  %v2961_v41 = vld [vmem:[%s3403_s18 + $0x24] sm:$0xf0]  ;;  %v2779_v42 = vld [vmem:[%s3403_s18 + $0x120] sm:$0xf]  ;;  %v2960_v44 = vld [vmem:[%s3403_s18 + $0x24] sm:$0xf] }
  0x17   : > { %v2993_v43 = vld [vmem:[%s3403_s18 + $0x124] sm:$0xf0]  ;;  %v2653_v45 = vld [vmem:[%s3403_s18 + $0x28] sm:$0xf0]  ;;  %v2992_v46 = vld [vmem:[%s3403_s18 + $0x124] sm:$0xf]  ;;  %v2652_v48 = vor.u32 %v2961_v41, %v2651_v40 }
  0x18   : > { %696 = vmatpush.bf16.msra.mxu0 %v3024_v6  ;;  %3039 = vmatpush.bf16.msra.mxu2 %v3024_v6  ;;  %v2781_v47 = vld [vmem:[%s3403_s18 + $0x128] sm:$0xf0]  ;;  %v2780_v49 = vor.u32 %v2993_v43, %v2779_v42  ;;  %v2656_v50 = vor.u32 %v2960_v44, %v2653_v45  ;;  %v2659_v52 = vld [vmem:[%s3403_s18 + $0x30] sm:$0xf]  ;;  %v2963_v53 = vld [vmem:[%s3403_s18 + $0x34] sm:$0xf0] }
  0x19   : > { %865 = vmatpush.bf16.msra.mxu1 %v3032_v7  ;;  %3047 = vmatpush.bf16.msra.mxu3 %v3032_v7  ;;  %v2784_v51 = vor.u32 %v2992_v46, %v2781_v47  ;;  %v2787_v54 = vld [vmem:[%s3403_s18 + $0x130] sm:$0xf]  ;;  %v2995_v55 = vld [vmem:[%s3403_s18 + $0x134] sm:$0xf0]  ;;  %v2962_v56 = vld [vmem:[%s3403_s18 + $0x34] sm:$0xf]  ;;  %v2660_v60 = vor.u32 %v2963_v53, %v2659_v52 }
  0x1a   : > { %v2661_v57 = vld [vmem:[%s3403_s18 + $0x38] sm:$0xf0]  ;;  %v2994_v58 = vld [vmem:[%s3403_s18 + $0x134] sm:$0xf]  ;;  %v2788_v61 = vor.u32 %v2995_v55, %v2787_v54  ;;  %v2667_v0 = vld [vmem:[%s3403_s18 + $0x40] sm:$0xf] }
  0x1b   : > { %v2789_v59 = vld [vmem:[%s3403_s18 + $0x138] sm:$0xf0]  ;;  %v2664_v62 = vor.u32 %v2962_v56, %v2661_v57  ;;  %v2965_v1 = vld [vmem:[%s3403_s18 + $0x44] sm:$0xf0]  ;;  %v2795_v2 = vld [vmem:[%s3403_s18 + $0x140] sm:$0xf] }
  0x1c   : > { %697 = vmatpush.bf16.msra.mxu0 %v3023_v8  ;;  %3040 = vmatpush.bf16.msra.mxu2 %v3023_v8  ;;  %v2792_v63 = vor.u32 %v2994_v58, %v2789_v59  ;;  %v2997_v3 = vld [vmem:[%s3403_s18 + $0x144] sm:$0xf0]  ;;  %v2964_v4 = vld [vmem:[%s3403_s18 + $0x44] sm:$0xf]  ;;  %v2669_v5 = vld [vmem:[%s3403_s18 + $0x48] sm:$0xf0]  ;;  %v2668_v8 = vor.u32 %v2965_v1, %v2667_v0 }
  0x1d   : > { %866 = vmatpush.bf16.msra.mxu1 %v3031_v9  ;;  %3048 = vmatpush.bf16.msra.mxu3 %v3031_v9  ;;  %v2996_v6 = vld [vmem:[%s3403_s18 + $0x144] sm:$0xf]  ;;  %v2797_v7 = vld [vmem:[%s3403_s18 + $0x148] sm:$0xf0]  ;;  %v2796_v9 = vor.u32 %v2997_v3, %v2795_v2  ;;  %v2966_v16 = vld [vmem:[%s3403_s18 + $0x54] sm:$0xf] }
  0x1e   : > { %v2677_v17 = vld [vmem:[%s3403_s18 + $0x58] sm:$0xf0]  ;;  %v2998_v18 = vld [vmem:[%s3403_s18 + $0x154] sm:$0xf]  ;;  %v2968_v28 = vld [vmem:[%s3403_s18 + $0x64] sm:$0xf] }
  0x1f   : > { %v2805_v19 = vld [vmem:[%s3403_s18 + $0x158] sm:$0xf0]  ;;  %v2680_v22 = vor.u32 %v2966_v16, %v2677_v17  ;;  %v2685_v29 = vld [vmem:[%s3403_s18 + $0x68] sm:$0xf0]  ;;  %v3000_v30 = vld [vmem:[%s3403_s18 + $0x164] sm:$0xf] }
  0x20   : > { %698 = vmatpush.bf16.msra.mxu0 %v3022_v10  ;;  %3041 = vmatpush.bf16.msra.mxu2 %v3022_v10  ;;  %v2672_v10 = vor.u32 %v2964_v4, %v2669_v5  ;;  %v2808_v23 = vor.u32 %v2998_v18, %v2805_v19  ;;  %v2813_v31 = vld [vmem:[%s3403_s18 + $0x168] sm:$0xf0]  ;;  %v2688_v34 = vor.u32 %v2968_v28, %v2685_v29  ;;  %v2970_v40 = vld [vmem:[%s3403_s18 + $0x74] sm:$0xf]  ;;  %v2693_v41 = vld [vmem:[%s3403_s18 + $0x78] sm:$0xf0] }
  0x21   : > { %867 = vmatpush.bf16.msra.mxu1 %v3030_v11  ;;  %3049 = vmatpush.bf16.msra.mxu3 %v3030_v11  ;;  %v2800_v11 = vor.u32 %v2996_v6, %v2797_v7  ;;  %v2816_v35 = vor.u32 %v3000_v30, %v2813_v31  ;;  %v3002_v42 = vld [vmem:[%s3403_s18 + $0x174] sm:$0xf]  ;;  %v2821_v43 = vld [vmem:[%s3403_s18 + $0x178] sm:$0xf0]  ;;  %v2696_v46 = vor.u32 %v2970_v40, %v2693_v41  ;;  %v3005_v52 = vld [vmem:[%s3403_s18 + $0x184] sm:$0xf0] }
  0x22   : > { %v2824_v47 = vor.u32 %v3002_v42, %v2821_v43  ;;  %v2972_v53 = vld [vmem:[%s3403_s18 + $0x84] sm:$0xf]  ;;  %v2701_v54 = vld [vmem:[%s3403_s18 + $0x88] sm:$0xf0]  ;;  %v3007_v16 = vld [vmem:[%s3403_s18 + $0x194] sm:$0xf0] }
  0x23   : > { %v3004_v55 = vld [vmem:[%s3403_s18 + $0x184] sm:$0xf]  ;;  %v2829_v56 = vld [vmem:[%s3403_s18 + $0x188] sm:$0xf0]  ;;  %v2974_v17 = vld [vmem:[%s3403_s18 + $0x94] sm:$0xf] }
  0x24   : > { %699 = vmatpush.bf16.msra.mxu0 %v3021_v12  ;;  %3042 = vmatpush.bf16.msra.mxu2 %v3021_v12  ;;  %v2675_v12 = vld [vmem:[%s3403_s18 + $0x50] sm:$0xf]  ;;  %v2709_v18 = vld [vmem:[%s3403_s18 + $0x98] sm:$0xf0]  ;;  %v3006_v19 = vld [vmem:[%s3403_s18 + $0x194] sm:$0xf] }
  0x25   : > { %868 = vmatpush.bf16.msra.mxu1 %v3029_v13  ;;  %3050 = vmatpush.bf16.msra.mxu3 %v3029_v13  ;;  %v2967_v13 = vld [vmem:[%s3403_s18 + $0x54] sm:$0xf0]  ;;  %v2712_v31 = vor.u32 %v2974_v17, %v2709_v18 }
  0x26   : > { %v2676_v20 = vor.u32 %v2967_v13, %v2675_v12  ;;  %v2975_v12 = vld [vmem:[%s3403_s18 + $0x94] sm:$0xf0] }
  0x28   : > { %700 = vmatpush.bf16.msra.mxu0 %v3020_v14  ;;  %3043 = vmatpush.bf16.msra.mxu2 %v3020_v14  ;;  %v2803_v14 = vld [vmem:[%s3403_s18 + $0x150] sm:$0xf] }
  0x29   : > { %869 = vmatpush.bf16.msra.mxu1 %v3028_v15  ;;  %3051 = vmatpush.bf16.msra.mxu3 %v3028_v15  ;;  %v2999_v15 = vld [vmem:[%s3403_s18 + $0x154] sm:$0xf0] }
  0x2a   : > { %v2804_v21 = vor.u32 %v2999_v15, %v2803_v14  ;;  %v2835_v15 = vld [vmem:[%s3403_s18 + $0x190] sm:$0xf] }
  0x2b   : > { %701 = vmatmul.bf16.vlgmr.msra.gmra.mxu0 %v2636_v24  ;;  %781 = vmatmul.bf16.vlgmr.msra.gmra.mxu2 %v2764_v25  ;;  %v2683_v24 = vld [vmem:[%s3403_s18 + $0x60] sm:$0xf]  ;;  %v2969_v25 = vld [vmem:[%s3403_s18 + $0x64] sm:$0xf0]  ;;  %v2836_v29 = vor.u32 %v3007_v16, %v2835_v15 }
  0x2c   : > { %870 = vmatmul.bf16.vlgmr.msra.gmra.mxu1 %v2640_v26  ;;  %950 = vmatmul.bf16.vlgmr.msra.gmra.mxu3 %v2768_v27  ;;  %v2811_v26 = vld [vmem:[%s3403_s18 + $0x160] sm:$0xf]  ;;  %v3001_v27 = vld [vmem:[%s3403_s18 + $0x164] sm:$0xf0]  ;;  %v2684_v32 = vor.u32 %v2969_v25, %v2683_v24 }
  0x2d   : > { %v2812_v33 = vor.u32 %v3001_v27, %v2811_v26 }
  0x3b   : > { %706 = vmatmul.bf16.gmra.mxu0 %v2644_v36  ;;  %786 = vmatmul.bf16.gmra.mxu2 %v2772_v37  ;;  %v2691_v36 = vld [vmem:[%s3403_s18 + $0x70] sm:$0xf]  ;;  %v2971_v37 = vld [vmem:[%s3403_s18 + $0x74] sm:$0xf0] }
  0x3c   : > { %875 = vmatmul.bf16.gmra.mxu1 %v2648_v38  ;;  %955 = vmatmul.bf16.gmra.mxu3 %v2776_v39  ;;  %v2819_v38 = vld [vmem:[%s3403_s18 + $0x170] sm:$0xf]  ;;  %v3003_v39 = vld [vmem:[%s3403_s18 + $0x174] sm:$0xf0]  ;;  %v2692_v44 = vor.u32 %v2971_v37, %v2691_v36 }
  0x3d   : > { %v2820_v45 = vor.u32 %v3003_v39, %v2819_v38 }
  0x4b   : > { %711 = vmatmul.bf16.gmra.mxu0 %v2652_v48  ;;  %791 = vmatmul.bf16.gmra.mxu2 %v2780_v49  ;;  %v3481_v48 = vld [vmem:[%s5188_s2] ss:$0 sm:$0xff] }
  0x4c   : > { %880 = vmatmul.bf16.gmra.mxu1 %v2656_v50  ;;  %960 = vmatmul.bf16.gmra.mxu3 %v2784_v51  ;;  %v2699_v49 = vld [vmem:[%s3403_s18 + $0x80] sm:$0xf]  ;;  %v2973_v50 = vld [vmem:[%s3403_s18 + $0x84] sm:$0xf0] }
  0x4d   : > { %v2827_v51 = vld [vmem:[%s3403_s18 + $0x180] sm:$0xf]  ;;  %v2700_v57 = vor.u32 %v2973_v50, %v2699_v49 }
  0x4e   : > { %v2828_v58 = vor.u32 %v3005_v52, %v2827_v51  ;;  %v2715_v52 = vld [vmem:[%s3403_s18 + $0xa0] sm:$0xf] }
  0x5b   : > { %716 = vmatmul.bf16.gmra.mxu0 %v2660_v60  ;;  %796 = vmatmul.bf16.gmra.mxu2 %v2788_v61  ;;  %v2704_v60 = vor.u32 %v2972_v53, %v2701_v54  ;;  %v2832_v61 = vor.u32 %v3004_v55, %v2829_v56  ;;  %v2977_v53 = vld [vmem:[%s3403_s18 + $0xa4] sm:$0xf0] }
  0x5c   : > { %885 = vmatmul.bf16.gmra.mxu1 %v2664_v62  ;;  %965 = vmatmul.bf16.gmra.mxu3 %v2792_v63 }
  0x6b   : > { %721 = vmatmul.bf16.gmra.mxu0 %v2668_v8  ;;  %801 = vmatmul.bf16.gmra.mxu2 %v2796_v9 }
  0x6c   : > { %890 = vmatmul.bf16.gmra.mxu1 %v2672_v10  ;;  %970 = vmatmul.bf16.gmra.mxu3 %v2800_v11  ;;  %v2707_v11 = vld [vmem:[%s3403_s18 + $0x90] sm:$0xf] }
  0x6d   : > { %v2708_v24 = vor.u32 %v2975_v12, %v2707_v11 }
  0x7b   : > { %726 = vmatmul.bf16.gmra.mxu0 %v2676_v20  ;;  %806 = vmatmul.bf16.gmra.mxu2 %v2804_v21 }
  0x7c   : > { %895 = vmatmul.bf16.gmra.mxu1 %v2680_v22  ;;  %975 = vmatmul.bf16.gmra.mxu3 %v2808_v23  ;;  %v2837_v22 = vld [vmem:[%s3403_s18 + $0x198] sm:$0xf0] }
  0x8b   : > { %731 = vmatmul.bf16.gmra.mxu0 %v2684_v32  ;;  %811 = vmatmul.bf16.gmra.mxu2 %v2812_v33  ;;  %v2840_v32 = vor.u32 %v3006_v19, %v2837_v22 }
  0x8c   : > { %900 = vmatmul.bf16.gmra.mxu1 %v2688_v34  ;;  %980 = vmatmul.bf16.gmra.mxu3 %v2816_v35 }
  0x9b   : > { %736 = vmatmul.bf16.gmra.mxu0 %v2692_v44  ;;  %816 = vmatmul.bf16.gmra.mxu2 %v2820_v45 }
  0x9c   : > { %905 = vmatmul.bf16.gmra.mxu1 %v2696_v46  ;;  %985 = vmatmul.bf16.gmra.mxu3 %v2824_v47 }
  0xa8   : > { %v702_v59 = vpop.f32.mrf.mxu0 }
  0xa9   : > { %v703_v62 = vadd.f32 %v3481_v48, %v702_v59  ;;  %v871_v63 = vpop.f32.mrf.mxu1 }
  0xab   : > { %v3492_v0 = vadd.f32 %v871_v63, %v703_v62  ;;  %741 = vmatmul.bf16.gmra.mxu0 %v2700_v57  ;;  %821 = vmatmul.bf16.gmra.mxu2 %v2828_v58  ;;  %v2843_v57 = vld [vmem:[%s3403_s18 + $0x1a0] sm:$0xf]  ;;  %v3009_v58 = vld [vmem:[%s3403_s18 + $0x1a4] sm:$0xf0]  ;;  %v2976_v62 = vld [vmem:[%s3403_s18 + $0xa4] sm:$0xf] }
  0xac   : > { %910 = vmatmul.bf16.gmra.mxu1 %v2704_v60  ;;  %990 = vmatmul.bf16.gmra.mxu3 %v2832_v61  ;;  %v2717_v63 = vld [vmem:[%s3403_s18 + $0xa8] sm:$0xf0]  ;;  %v2844_v11 = vor.u32 %v3009_v58, %v2843_v57 }
  0xad   : > { %v1031_v1 = vand.u32 2147483647, %v3492_v0  ;;  %v2720_v12 = vor.u32 %v2976_v62, %v2717_v63  ;;  %vm1287_vm0 = vcmp.ge.f32.partialorder %v3492_v0, 0.0 }
  0xae   : > { %v782_v2 = vpop.f32.mrf.mxu2 }
  0xaf   : > { %v1095_v3 = vsub.f32 0.0, %v1031_v1  ;;  %v783_v4 = vadd.f32 %v3481_v48, %v782_v2  ;;  %v951_v5 = vpop.f32.mrf.mxu3 }
  0xb0   : > { %v704_v6 = vpop.f32.mrf.mxu0 }
  0xb1   : > { %v1159_v7 = vmul.f32 1.442695, %v1095_v3  ;;  %v3496_v8 = vadd.f32 %v951_v5, %v783_v4  ;;  %v705_v9 = vadd.f32 %v3481_v48, %v704_v6  ;;  %v873_v10 = vpop.f32.mrf.mxu1  ;;  %v3008_v4 = vld [vmem:[%s3403_s18 + $0x1a4] sm:$0xf]  ;;  %v2845_v5 = vld [vmem:[%s3403_s18 + $0x1a8] sm:$0xf0] }
  0xb2   : > { %v2848_v16 = vor.u32 %v3008_v4, %v2845_v5 }
  0xb3   : > { %3061 = vpow2.f32 %v1159_v7  ;;  %v1063_v13 = vand.u32 2147483647, %v3496_v8  ;;  %v3502_v14 = vadd.f32 %v873_v10, %v705_v9  ;;  %v2716_v7 = vor.u32 %v2977_v53, %v2715_v52 }
  0xb4   : > { %vm1319_vm6 = vcmp.ge.f32.partialorder %v3496_v8, 0.0 }
  0xb5   : > { %v1127_v20 = vsub.f32 0.0, %v1063_v13  ;;  %v1032_v21 = vand.u32 2147483647, %v3502_v14  ;;  %vm1288_vm11 = vcmp.ge.f32.partialorder %v3502_v14, 0.0 }
  0xb6   : > { %v784_v23 = vpop.f32.mrf.mxu2 }
  0xb7   : > { %v1223_v25 = vmul.f32 1.442695, %v1127_v20  ;;  %v1096_v26 = vsub.f32 0.0, %v1032_v21  ;;  %v785_v27 = vadd.f32 %v3481_v48, %v784_v23  ;;  %v953_v28 = vpop.f32.mrf.mxu3 }
  0xb8   : > { %v707_v30 = vpop.f32.mrf.mxu0 }
  0xb9   : > { %v3512_v33 = vpop.eup %3061  ;;  %3063 = vpow2.f32 %v1223_v25  ;;  %v1161_v34 = vmul.f32 1.442695, %v1096_v26  ;;  %v3514_v35 = vadd.f32 %v953_v28, %v785_v27  ;;  %v708_v36 = vadd.f32 %v3481_v48, %v707_v30  ;;  %v876_v38 = vpop.f32.mrf.mxu1 }
  0xba   : > { %v3518_v37 = vadd.f32 1.0, %v3512_v33 }
  0xbb   : > { %3065 = vpow2.f32 %v1161_v34  ;;  %v1064_v39 = vand.u32 2147483647, %v3514_v35  ;;  %v3521_v40 = vadd.f32 %v876_v38, %v708_v36  ;;  %746 = vmatmul.bf16.gmra.mxu0 %v2708_v24  ;;  %826 = vmatmul.bf16.gmra.mxu2 %v2836_v29 }
  0xbc   : > { %3067 = vrcp.f32 %v3518_v37  ;;  %915 = vmatmul.bf16.gmra.mxu1 %v2712_v31  ;;  %995 = vmatmul.bf16.gmra.mxu3 %v2840_v32  ;;  %v1424_v60 = vand.u32 2147483647, %v3518_v37  ;;  %v1426_v2 = vand.u32 2147483648, %v3518_v37  ;;  %vm1420_vm1 = vweird.f32 %v3518_v37 }
  0xbd   : > { %v1128_v41 = vsub.f32 0.0, %v1064_v39  ;;  %v1033_v42 = vand.u32 2147483647, %v3521_v40 }
  0xbe   : > { %v787_v43 = vpop.f32.mrf.mxu2  ;;  %vm3559_vm3 = vcmp.eq.f32.partialorder %v1424_v60, 8.507059e+37  ;;  %v1427_v20 = vor.u32 1.1754944e-38, %v1426_v2 }
  0xbf   : > { %v3525_v44 = vpop.eup %3063  ;;  %v1225_v45 = vmul.f32 1.442695, %v1128_v41  ;;  %v1097_v46 = vsub.f32 0.0, %v1033_v42  ;;  %v788_v47 = vadd.f32 %v3481_v48, %v787_v43  ;;  %v956_v50 = vpop.f32.mrf.mxu3 }
  0xc0   : > { %v3529_v49 = vadd.f32 1.0, %v3525_v44  ;;  %v709_v51 = vpop.f32.mrf.mxu0 }
  0xc1   : > { %v3533_v54 = vpop.eup %3065  ;;  %3069 = vpow2.f32 %v1225_v45  ;;  %v1163_v55 = vmul.f32 1.442695, %v1097_v46  ;;  %v3535_v56 = vadd.f32 %v956_v50, %v788_v47  ;;  %v710_v61 = vadd.f32 %v3481_v48, %v709_v51  ;;  %v878_v10 = vpop.f32.mrf.mxu1 }
  0xc2   : > { %v3068_v59 = vpop.eup %3067  ;;  %3071 = vrcp.f32 %v3529_v49  ;;  %v3547_v3 = vadd.f32 1.0, %v3533_v54  ;;  %v1904_v23 = vand.u32 2147483647, %v3529_v49  ;;  %v1906_v24 = vand.u32 2147483648, %v3529_v49 }
  0xc3   : > { %v1416_v1 = vmul.f32 %v3068_v59, %v3518_v37  ;;  %3073 = vpow2.f32 %v1163_v55  ;;  %v1065_v6 = vand.u32 2147483647, %v3535_v56  ;;  %v3555_v15 = vadd.f32 %v878_v10, %v710_v61 }
  0xc4   : > { %3075 = vrcp.f32 %v3547_v3  ;;  %vm1421_vm2 = vweird.f32 %v3068_v59  ;;  %vm1900_vm4 = vweird.f32 %v3529_v49  ;;  %v1439_v30 = vand.u32 2147483647, %v3547_v3 }
  0xc5   : > { %v1417_v9 = vsub.f32 1.0, %v1416_v1  ;;  %v1129_v13 = vsub.f32 0.0, %v1065_v6  ;;  %vm1422_vm5 = vmor %vm1420_vm1, %vm1421_vm2  ;;  %v1441_v31 = vand.u32 2147483648, %v3547_v3  ;;  %v1034_v32 = vand.u32 2147483647, %v3555_v15 }
  0xc6   : > { %v789_v21 = vpop.f32.mrf.mxu2  ;;  %vm3585_vm7 = vcmp.eq.f32.partialorder %v1904_v23, 8.507059e+37  ;;  %v1907_v43 = vor.u32 1.1754944e-38, %v1906_v24  ;;  %vm1435_vm9 = vweird.f32 %v3547_v3  ;;  %vm3600_vm10 = vcmp.eq.f32.partialorder %v1439_v30, 8.507059e+37 }
  0xc7   : > { %v3557_v17 = vpop.eup %3069  ;;  %v1418_v18 = vmul.f32 %v3068_v59, %v1417_v9  ;;  %v1227_v26 = vmul.f32 1.442695, %v1129_v13  ;;  %v790_v34 = vadd.f32 %v3481_v48, %v789_v21  ;;  %v958_v50 = vpop.f32.mrf.mxu3  ;;  %v1442_v55 = vor.u32 1.1754944e-38, %v1441_v31 }
  0xc8   : > { %v3072_v22 = vpop.eup %3071  ;;  %v3566_v25 = vadd.f32 1.0, %v3557_v17  ;;  %v712_v51 = vpop.f32.mrf.mxu0 }
  0xc9   : > { %v3568_v27 = vpop.eup %3073  ;;  %v1419_v28 = vadd.f32 %v3068_v59, %v1418_v18  ;;  %v1896_v29 = vmul.f32 %v3072_v22, %v3529_v49  ;;  %vm1901_vm8 = vweird.f32 %v3072_v22  ;;  %v881_v13 = vpop.f32.mrf.mxu1 }
  0xca   : > { %3077 = vrcp.f32 %v3566_v25  ;;  %v3076_v36 = vpop.eup %3075  ;;  %v3580_v41 = vadd.f32 1.0, %v3568_v27  ;;  %vm1902_vm12 = vmor %vm1900_vm4, %vm1901_vm8  ;;  %vm1915_vm14 = vweird.f32 %v3566_v25  ;;  %v1921_v62 = vand.u32 2147483648, %v3566_v25 }
  0xcb   : > { %v1423_v38 = vsel %vm1422_vm5, %v3068_v59, %v1419_v28  ;;  %v1897_v39 = vsub.f32 1.0, %v1896_v29  ;;  %3079 = vpow2.f32 %v1227_v26  ;;  %751 = vmatmul.bf16.gmra.mxu0 %v2716_v7  ;;  %831 = vmatmul.bf16.gmra.mxu2 %v2844_v11  ;;  %v1431_v45 = vmul.f32 %v3076_v36, %v3547_v3 }
  0xcc   : > { %v1428_v37 = vsel %vm3559_vm3, %v1427_v20, %v1423_v38  ;;  %920 = vmatmul.bf16.gmra.mxu1 %v2720_v12  ;;  %1000 = vmatmul.bf16.gmra.mxu3 %v2848_v16  ;;  %3081 = vrcp.f32 %v3580_v41  ;;  %v3607_v59 = vadd.f32 %v958_v50, %v790_v34  ;;  %vm1436_vm13 = vweird.f32 %v3076_v36 }
  0xcd   : > { %v2375_v46 = vmul.f32 %v3512_v33, %v1428_v37  ;;  %v1898_v47 = vmul.f32 %v3072_v22, %v1897_v39  ;;  %v1432_v52 = vsub.f32 1.0, %v1431_v45  ;;  %v1098_v33 = vsub.f32 0.0, %v1034_v32  ;;  %vm1437_vm15 = vmor %vm1435_vm9, %vm1436_vm13 }
  0xce   : > { %v1919_v2 = vand.u32 2147483647, %v3566_v25  ;;  %v713_v7 = vadd.f32 %v3481_v48, %v712_v51  ;;  %v1066_v12 = vand.u32 2147483647, %v3607_v59  ;;  %v792_v16 = vpop.f32.mrf.mxu2  ;;  %v1922_v19 = vor.u32 1.1754944e-38, %v1921_v62 }
  0xcf   : > { %v2439_v57 = vsel %vm1287_vm0, %v1428_v37, %v2375_v46  ;;  %v1899_v58 = vadd.f32 %v3072_v22, %v1898_v47  ;;  %v1433_v61 = vmul.f32 %v3076_v36, %v1432_v52  ;;  %v1165_v4 = vmul.f32 1.442695, %v1098_v33  ;;  %v961_v30 = vpop.f32.mrf.mxu3  ;;  %v2979_v62 = vld [vmem:[%s3403_s18 + $0xb4] sm:$0xf0] }
  0xd0   : > { %v3078_v60 = vpop.eup %3077  ;;  %2503 = vst [vmem:[%s3595_s30] sm:$0xff] %v2439_v57  ;;  %vm1320_vm0 = vcmp.ge.f32.partialorder %v3514_v35, 0.0  ;;  %vm1450_vm2 = vweird.f32 %v3580_v41  ;;  %v1456_v24 = vand.u32 2147483648, %v3580_v41  ;;  %v1130_v28 = vsub.f32 0.0, %v1066_v12  ;;  %v714_v31 = vpop.f32.mrf.mxu0 }
  0xd1   : > { %v3615_v0 = vpop.eup %3079  ;;  %v1903_v63 = vsel %vm1902_vm12, %v3072_v22, %v1899_v58  ;;  %v1911_v1 = vmul.f32 %v3078_v60, %v3566_v25  ;;  %v1434_v6 = vadd.f32 %v3076_v36, %v1433_v61  ;;  %3083 = vpow2.f32 %v1165_v4  ;;  %v2723_v58 = vld [vmem:[%s3403_s18 + $0xb0] sm:$0xf] }
  0xd2   : > { %v1908_v5 = vsel %vm3585_vm7, %v1907_v43, %v1903_v63  ;;  %v3622_v49 = vadd.f32 1.0, %v3615_v0  ;;  %v3082_v9 = vpop.eup %3081  ;;  %vm1916_vm1 = vweird.f32 %v3078_v60  ;;  %v3640_v29 = vadd.f32 %v881_v13, %v713_v7 }
  0xd3   : > { %v2407_v10 = vmul.f32 %v3525_v44, %v1908_v5  ;;  %v1912_v11 = vsub.f32 1.0, %v1911_v1  ;;  %v1438_v18 = vsel %vm1437_vm15, %v3076_v36, %v1434_v6  ;;  %v1446_v20 = vmul.f32 %v3082_v9, %v3580_v41  ;;  %vm1917_vm3 = vmor %vm1915_vm14, %vm1916_vm1 }
  0xd4   : > { %3085 = vrcp.f32 %v3622_v49  ;;  %v1443_v3 = vsel %vm3600_vm10, %v1442_v55, %v1438_v18  ;;  %v793_v8 = vadd.f32 %v3481_v48, %v792_v16  ;;  %vm1451_vm4 = vweird.f32 %v3082_v9  ;;  %v883_v55 = vpop.f32.mrf.mxu1 }
  0xd5   : > { %v2471_v44 = vsel %vm1319_vm6, %v1908_v5, %v2407_v10  ;;  %v1913_v21 = vmul.f32 %v3078_v60, %v1912_v11  ;;  %v2376_v22 = vmul.f32 %v3533_v54, %v1443_v3  ;;  %v1447_v23 = vsub.f32 1.0, %v1446_v20  ;;  %vm1452_vm6 = vmor %vm1450_vm2, %vm1451_vm4 }
  0xd6   : > { %2535 = vst [vmem:[%s3595_s30 + $0x100] sm:$0xff] %v2471_v44  ;;  %v1454_v34 = vand.u32 2147483647, %v3580_v41  ;;  %vm1920_vm5 = vcmp.eq.f32.partialorder %v1919_v2, 8.507059e+37  ;;  %v1229_v39 = vmul.f32 1.442695, %v1130_v28  ;;  %v3655_v25 = vadd.f32 %v961_v30, %v793_v8  ;;  %v794_v57 = vpop.f32.mrf.mxu2 }
  0xd7   : > { %v1914_v26 = vadd.f32 %v3078_v60, %v1913_v21  ;;  %v2440_v32 = vsel %vm1288_vm11, %v1443_v3, %v2376_v22  ;;  %v1448_v54 = vmul.f32 %v3082_v9, %v1447_v23  ;;  %v3648_v36 = vpop.eup %3083  ;;  %v1035_v37 = vand.u32 2147483647, %v3640_v29  ;;  %v963_v11 = vpop.f32.mrf.mxu3  ;;  %v2851_v22 = vld [vmem:[%s3403_s18 + $0x1b0] sm:$0xf]  ;;  %v3011_v23 = vld [vmem:[%s3403_s18 + $0x1b4] sm:$0xf0] }
  0xd8   : > { %2504 = vst [vmem:[%s3595_s30 + $0x8] sm:$0xff] %v2440_v32  ;;  %v3653_v14 = vadd.f32 1.0, %v3648_v36  ;;  %v1457_v47 = vor.u32 1.1754944e-38, %v1456_v24  ;;  %3087 = vpow2.f32 %v1229_v39  ;;  %vm1289_vm7 = vcmp.ge.f32.partialorder %v3521_v40, 0.0  ;;  %v717_v12 = vpop.f32.mrf.mxu0  ;;  %v2978_v24 = vld [vmem:[%s3403_s18 + $0xb4] sm:$0xf] }
  0xd9   : > { %v1918_v38 = vsel %vm1917_vm3, %v3078_v60, %v1914_v26  ;;  %v1449_v45 = vadd.f32 %v3082_v9, %v1448_v54  ;;  %vm1455_vm8 = vcmp.eq.f32.partialorder %v1454_v34, 8.507059e+37  ;;  %v1936_v41 = vand.u32 2147483648, %v3622_v49  ;;  %v2725_v8 = vld [vmem:[%s3403_s18 + $0xb8] sm:$0xf0]  ;;  %v3010_v30 = vld [vmem:[%s3403_s18 + $0x1b4] sm:$0xf] }
  0xda   : > { %v3086_v42 = vpop.eup %3085  ;;  %v1923_v43 = vsel %vm1920_vm5, %v1922_v19, %v1918_v38  ;;  %3089 = vrcp.f32 %v3653_v14  ;;  %vm1930_vm9 = vweird.f32 %v3622_v49  ;;  %v1099_v60 = vsub.f32 0.0, %v1035_v37  ;;  %v2853_v34 = vld [vmem:[%s3403_s18 + $0x1b8] sm:$0xf0] }
  0xdb   : > { %v2408_v46 = vmul.f32 %v3557_v17, %v1923_v43  ;;  %v1926_v50 = vmul.f32 %v3086_v42, %v3622_v49  ;;  %v1453_v51 = vsel %vm1452_vm6, %v3082_v9, %v1449_v45  ;;  %v1067_v61 = vand.u32 2147483647, %v3655_v25 }
  0xdc   : > { %v1458_v53 = vsel %vm1455_vm8, %v1457_v47, %v1453_v51  ;;  %vm1931_vm10 = vweird.f32 %v3086_v42  ;;  %v1934_v35 = vand.u32 2147483647, %v3622_v49  ;;  %v715_v1 = vadd.f32 %v3481_v48, %v714_v31  ;;  %v886_v37 = vpop.f32.mrf.mxu1 }
  0xdd   : > { %v2472_v52 = vsel %vm1320_vm0, %v1923_v43, %v2408_v46  ;;  %v1927_v17 = vsub.f32 1.0, %v1926_v50  ;;  %v2377_v33 = vmul.f32 %v3568_v27, %v1458_v53  ;;  %v1167_v4 = vmul.f32 1.442695, %v1099_v60  ;;  %vm1932_vm11 = vmor %vm1930_vm9, %vm1931_vm10 }
  0xde   : > { %2536 = vst [vmem:[%s3595_s30 + $0x108] sm:$0xff] %v2472_v52  ;;  %v1131_v5 = vsub.f32 0.0, %v1067_v61  ;;  %v795_v6 = vadd.f32 %v3481_v48, %v794_v57  ;;  %v3677_v27 = vpop.eup %3087  ;;  %v1937_v9 = vor.u32 1.1754944e-38, %v1936_v41  ;;  %v3680_v10 = vadd.f32 %v883_v55, %v715_v1  ;;  %v797_v47 = vpop.f32.mrf.mxu2 }
  0xdf   : > { %v1928_v63 = vmul.f32 %v3086_v42, %v1927_v17  ;;  %v2441_v2 = vsel %vm1289_vm7, %v1458_v53, %v2377_v33  ;;  %v2724_v13 = vor.u32 %v2979_v62, %v2723_v58  ;;  %v3686_v40 = vadd.f32 1.0, %v3677_v27 }
  0xe0   : > { %2505 = vst [vmem:[%s3595_s30 + $0x10] sm:$0xff] %v2441_v2  ;;  %v3090_v16 = vpop.eup %3089  ;;  %3091 = vpow2.f32 %v1167_v4  ;;  %v1231_v18 = vmul.f32 1.442695, %v1131_v5  ;;  %v3688_v19 = vadd.f32 %v963_v11, %v795_v6  ;;  %vm1935_vm12 = vcmp.eq.f32.partialorder %v1934_v35, 8.507059e+37  ;;  %v966_v6 = vpop.f32.mrf.mxu3 }
  0xe1   : > { %v1929_v7 = vadd.f32 %v3086_v42, %v1928_v63  ;;  %v1461_v44 = vmul.f32 %v3090_v16, %v3653_v14  ;;  %v1036_v3 = vand.u32 2147483647, %v3680_v10  ;;  %756 = vmatmul.bf16.gmra.mxu0 %v2724_v13  ;;  %3093 = vrcp.f32 %v3686_v40 }
  0xe2   : > { %v718_v49 = vadd.f32 %v3481_v48, %v717_v12  ;;  %vm1321_vm13 = vcmp.ge.f32.partialorder %v3535_v56, 0.0  ;;  %3095 = vpow2.f32 %v1231_v18  ;;  %vm1465_vm14 = vweird.f32 %v3653_v14 }
  0xe3   : > { %v1933_v20 = vsel %vm1932_vm11, %v3086_v42, %v1929_v7  ;;  %v1462_v28 = vsub.f32 1.0, %v1461_v44  ;;  %v1471_v31 = vand.u32 2147483648, %v3653_v14  ;;  %v1100_v32 = vsub.f32 0.0, %v1036_v3  ;;  %v719_v44 = vpop.f32.mrf.mxu0 }
  0xe4   : > { %v1938_v21 = vsel %vm1935_vm12, %v1937_v9, %v1933_v20  ;;  %v1068_v54 = vand.u32 2147483647, %v3688_v19  ;;  %vm1466_vm15 = vweird.f32 %v3090_v16  ;;  %v1469_v56 = vand.u32 2147483647, %v3653_v14 }
  0xe5   : > { %v2409_v26 = vmul.f32 %v3615_v0, %v1938_v21  ;;  %v1463_v39 = vmul.f32 %v3090_v16, %v1462_v28  ;;  %v1169_v42 = vmul.f32 1.442695, %v1100_v32  ;;  %v3709_v45 = vadd.f32 %v886_v37, %v718_v49  ;;  %vm1467_vm0 = vmor %vm1465_vm14, %vm1466_vm15 }
  0xe6   : > { %v3706_v0 = vpop.eup %3091  ;;  %v1132_v43 = vsub.f32 0.0, %v1068_v54  ;;  %v2852_v46 = vor.u32 %v3011_v23, %v2851_v22  ;;  %v2728_v52 = vor.u32 %v2978_v24, %v2725_v8  ;;  %v2856_v53 = vor.u32 %v3010_v30, %v2853_v34  ;;  %v799_v49 = vpop.f32.mrf.mxu2 }
  0xe7   : > { %v2473_v38 = vsel %vm1321_vm13, %v1938_v21, %v2409_v26  ;;  %v1464_v50 = vadd.f32 %v3090_v16, %v1463_v39  ;;  %v3712_v51 = vadd.f32 1.0, %v3706_v0  ;;  %v3094_v17 = vpop.eup %3093  ;;  %v1472_v41 = vor.u32 1.1754944e-38, %v1471_v31 }
  0xe8   : > { %2537 = vst [vmem:[%s3595_s30 + $0x110] sm:$0xff] %v2473_v38  ;;  %3097 = vpow2.f32 %v1169_v42  ;;  %v1233_v55 = vmul.f32 1.442695, %v1132_v43  ;;  %v1037_v57 = vand.u32 2147483647, %v3709_v45  ;;  %836 = vmatmul.bf16.gmra.mxu2 %v2852_v46  ;;  %v3718_v58 = vpop.eup %3095  ;;  %vm1470_vm1 = vcmp.eq.f32.partialorder %v1469_v56, 8.507059e+37  ;;  %925 = vmatmul.bf16.gmra.mxu1 %v2728_v52  ;;  %v888_v52 = vpop.f32.mrf.mxu1 }
  0xe9   : > { %v1468_v33 = vsel %vm1467_vm0, %v3090_v16, %v1464_v50  ;;  %v1941_v60 = vmul.f32 %v3094_v17, %v3686_v40  ;;  %3099 = vrcp.f32 %v3712_v51  ;;  %1005 = vmatmul.bf16.gmra.mxu3 %v2856_v53  ;;  %v1949_v14 = vand.u32 2147483647, %v3686_v40  ;;  %v968_v53 = vpop.f32.mrf.mxu3 }
  0xea   : > { %v1473_v61 = vsel %vm1470_vm1, %v1472_v41, %v1468_v33  ;;  %v1951_v62 = vand.u32 2147483648, %v3686_v40  ;;  %v3726_v1 = vadd.f32 1.0, %v3718_v58  ;;  %3101 = vpow2.f32 %v1233_v55 }
  0xeb   : > { %v2378_v63 = vmul.f32 %v3648_v36, %v1473_v61  ;;  %v1942_v35 = vsub.f32 1.0, %v1941_v60  ;;  %vm1290_vm2 = vcmp.ge.f32.partialorder %v3555_v15, 0.0  ;;  %v1484_v2 = vand.u32 2147483647, %v3712_v51 }
  0xec   : > { %v1101_v4 = vsub.f32 0.0, %v1037_v57  ;;  %v798_v5 = vadd.f32 %v3481_v48, %v797_v47  ;;  %vm1946_vm3 = vweird.f32 %v3094_v17  ;;  %3103 = vrcp.f32 %v3726_v1 }
  0xed   : > { %v2442_v7 = vsel %vm1290_vm2, %v1473_v61, %v2378_v63  ;;  %v1943_v9 = vmul.f32 %v3094_v17, %v1942_v35  ;;  %vm1322_vm4 = vcmp.ge.f32.partialorder %v3607_v59, 0.0  ;;  %vm1945_vm5 = vweird.f32 %v3686_v40 }
  0xee   : > { %v3732_v11 = vpop.eup %3097  ;;  %2506 = vst [vmem:[%s3595_s30 + $0x18] sm:$0xff] %v2442_v7  ;;  %vm3737_vm6 = vcmp.eq.f32.partialorder %v1949_v14, 8.507059e+37  ;;  %v1952_v36 = vor.u32 1.1754944e-38, %v1951_v62  ;;  %v1171_v18 = vmul.f32 1.442695, %v1101_v4  ;;  %v3744_v20 = vadd.f32 %v966_v6, %v798_v5  ;;  %vm1947_vm7 = vmor %vm1945_vm5, %vm1946_vm3  ;;  %v722_v6 = vpop.f32.mrf.mxu0 }
  0xef   : > { %v3100_v12 = vpop.eup %3099  ;;  %v1944_v13 = vadd.f32 %v3094_v17, %v1943_v9  ;;  %v3742_v16 = vadd.f32 1.0, %v3732_v11  ;;  %vm1480_vm8 = vweird.f32 %v3712_v51  ;;  %vm3748_vm9 = vcmp.eq.f32.partialorder %v1484_v2, 8.507059e+37 }
  0xf0   : > { %v1476_v3 = vmul.f32 %v3100_v12, %v3712_v51  ;;  %v1486_v21 = vand.u32 2147483648, %v3712_v51  ;;  %v3753_v22 = vpop.eup %3101  ;;  %v1964_v24 = vand.u32 2147483647, %v3726_v1  ;;  %v1966_v26 = vand.u32 2147483648, %v3726_v1 }
  0xf1   : > { %v1948_v23 = vsel %vm1947_vm7, %v3094_v17, %v1944_v13  ;;  %3105 = vrcp.f32 %v3742_v16  ;;  %v3761_v30 = vadd.f32 1.0, %v3753_v22  ;;  %v720_v31 = vadd.f32 %v3481_v48, %v719_v44 }
  0xf2   : > { %v1953_v28 = vsel %vm3737_vm6, %v1952_v36, %v1948_v23  ;;  %v1477_v8 = vsub.f32 1.0, %v1476_v3  ;;  %v3104_v32 = vpop.eup %3103  ;;  %vm1291_vm10 = vcmp.ge.f32.partialorder %v3640_v29, 0.0  ;;  %3107 = vpow2.f32 %v1171_v18  ;;  %v2981_v23 = vld [vmem:[%s3403_s18 + $0xc4] sm:$0xf0] }
  0xf3   : > { %v2410_v54 = vmul.f32 %v3677_v27, %v1953_v28  ;;  %v1069_v34 = vand.u32 2147483647, %v3744_v20  ;;  %v800_v38 = vadd.f32 %v3481_v48, %v799_v49  ;;  %vm1481_vm11 = vweird.f32 %v3100_v12  ;;  %v2731_v49 = vld [vmem:[%s3403_s18 + $0xc0] sm:$0xf] }
  0xf4   : > { %v1478_v39 = vmul.f32 %v3100_v12, %v1477_v8  ;;  %v1487_v56 = vor.u32 1.1754944e-38, %v1486_v21  ;;  %v1956_v37 = vmul.f32 %v3104_v32, %v3726_v1  ;;  %vm1960_vm12 = vweird.f32 %v3726_v1  ;;  %vm1482_vm14 = vmor %vm1480_vm8, %vm1481_vm11 }
  0xf5   : > { %v2474_v42 = vsel %vm1322_vm4, %v1953_v28, %v2410_v54  ;;  %vm3772_vm13 = vcmp.eq.f32.partialorder %v1964_v24, 8.507059e+37  ;;  %3109 = vrcp.f32 %v3761_v30  ;;  %v1967_v47 = vor.u32 1.1754944e-38, %v1966_v26  ;;  %v2859_v24 = vld [vmem:[%s3403_s18 + $0x1c0] sm:$0xf] }
  0xf6   : > { %2538 = vst [vmem:[%s3595_s30 + $0x118] sm:$0xff] %v2474_v42  ;;  %v1479_v27 = vadd.f32 %v3100_v12, %v1478_v39  ;;  %v1957_v46 = vsub.f32 1.0, %v1956_v37  ;;  %v1133_v50 = vsub.f32 0.0, %v1069_v34  ;;  %vm1323_vm15 = vcmp.ge.f32.partialorder %v3655_v25, 0.0  ;;  %v3013_v34 = vld [vmem:[%s3403_s18 + $0x1c4] sm:$0xf0] }
  0xf7   : > { %v3106_v17 = vpop.eup %3105  ;;  %vm1495_vm0 = vweird.f32 %v3742_v16  ;;  %v1499_v59 = vand.u32 2147483647, %v3742_v16  ;;  %v3784_v41 = vadd.f32 %v888_v52, %v720_v31  ;;  %v3786_v55 = vadd.f32 %v968_v53, %v800_v38  ;;  %v2980_v38 = vld [vmem:[%s3403_s18 + $0xc4] sm:$0xf]  ;;  %v2733_v39 = vld [vmem:[%s3403_s18 + $0xc8] sm:$0xf0] }
  0xf8   : > { %v1483_v57 = vsel %vm1482_vm14, %v3100_v12, %v1479_v27  ;;  %v1958_v33 = vmul.f32 %v3104_v32, %v1957_v46  ;;  %vm1961_vm1 = vweird.f32 %v3104_v32  ;;  %v1491_v60 = vmul.f32 %v3106_v17, %v3742_v16  ;;  %v3789_v61 = vpop.eup %3107 }
  0xf9   : > { %v1488_v51 = vsel %vm3748_vm9, %v1487_v56, %v1483_v57  ;;  %v1501_v14 = vand.u32 2147483648, %v3742_v16  ;;  %v1235_v62 = vmul.f32 1.442695, %v1133_v50  ;;  %v1038_v63 = vand.u32 2147483647, %v3784_v41  ;;  %vm1962_vm2 = vmor %vm1960_vm12, %vm1961_vm1  ;;  %v891_v16 = vpop.f32.mrf.mxu1 }
  0xfa   : > { %v2379_v35 = vmul.f32 %v3706_v0, %v1488_v51  ;;  %v1959_v2 = vadd.f32 %v3104_v32, %v1958_v33  ;;  %v1492_v4 = vsub.f32 1.0, %v1491_v60  ;;  %v3797_v5 = vadd.f32 1.0, %v3789_v61  ;;  %v3012_v60 = vld [vmem:[%s3403_s18 + $0x1c4] sm:$0xf] }
  0xfb   : > { %v3799_v7 = vpop.eup %3109  ;;  %vm1292_vm3 = vcmp.ge.f32.partialorder %v3680_v10, 0.0  ;;  %vm1496_vm4 = vweird.f32 %v3106_v17  ;;  %3111 = vpow2.f32 %v1235_v62  ;;  %v1102_v9 = vsub.f32 0.0, %v1038_v63 }
  0xfc   : > { %v1070_v0 = vand.u32 2147483647, %v3786_v55  ;;  %v2443_v15 = vsel %vm1291_vm10, %v1488_v51, %v2379_v35  ;;  %v1963_v36 = vsel %vm1962_vm2, %v3104_v32, %v1959_v2  ;;  %v1493_v12 = vmul.f32 %v3106_v17, %v1492_v4  ;;  %vm3825_vm6 = vmor %vm1495_vm0, %vm1496_vm4  ;;  %v802_v51 = vpop.f32.mrf.mxu2 }
  0xfd   : > { %v1971_v13 = vmul.f32 %v3799_v7, %v3761_v30  ;;  %2507 = vst [vmem:[%s3595_s30 + $0x20] sm:$0xff] %v2443_v15  ;;  %v1968_v1 = vsel %vm3772_vm13, %v1967_v47, %v1963_v36  ;;  %vm3812_vm5 = vcmp.eq.f32.partialorder %v1499_v59, 8.507059e+37  ;;  %v1981_v44 = vand.u32 2147483648, %v3761_v30 }
  0xfe   : > { %3113 = vrcp.f32 %v3797_v5  ;;  %v2411_v29 = vmul.f32 %v3718_v58, %v1968_v1  ;;  %v1494_v3 = vadd.f32 %v3106_v17, %v1493_v12  ;;  %v1502_v40 = vor.u32 1.1754944e-38, %v1501_v14  ;;  %v724_v14 = vpop.f32.mrf.mxu0  ;;  %v971_v12 = vpop.f32.mrf.mxu3 }
  0xff   : > { %v1972_v21 = vsub.f32 1.0, %v1971_v13  ;;  %vm1975_vm7 = vweird.f32 %v3761_v30  ;;  %v1979_v58 = vand.u32 2147483647, %v3761_v30  ;;  %v1173_v28 = vmul.f32 1.442695, %v1102_v9 }
 0x100   : > { %v1134_v8 = vsub.f32 0.0, %v1070_v0  ;;  %v2475_v31 = vsel %vm1323_vm15, %v1968_v1, %v2411_v29  ;;  %v1498_v32 = vsel %vm3825_vm6, %v3106_v17, %v1494_v3  ;;  %vm1976_vm8 = vweird.f32 %v3799_v7  ;;  %v2861_v30 = vld [vmem:[%s3403_s18 + $0x1c8] sm:$0xf0] }
 0x101   : > { %v1973_v54 = vmul.f32 %v3799_v7, %v1972_v21  ;;  %v3840_v56 = vpop.eup %3111  ;;  %2539 = vst [vmem:[%s3595_s30 + $0x120] sm:$0xff] %v2475_v31  ;;  %v1503_v37 = vsel %vm3812_vm5, %v1502_v40, %v1498_v32  ;;  %v1982_v42 = vor.u32 1.1754944e-38, %v1981_v44  ;;  %3115 = vpow2.f32 %v1173_v28  ;;  %vm3855_vm9 = vmor %vm1975_vm7, %vm1976_vm8  ;;  %v893_v3 = vpop.f32.mrf.mxu1 }
 0x102   : > { %v1237_v25 = vmul.f32 1.442695, %v1134_v8  ;;  %v2380_v43 = vmul.f32 %v3732_v11, %v1503_v37  ;;  %v3848_v46 = vadd.f32 1.0, %v3840_v56  ;;  %v723_v47 = vadd.f32 %v3481_v48, %v722_v6 }
 0x103   : > { %v1974_v27 = vadd.f32 %v3799_v7, %v1973_v54  ;;  %v2732_v53 = vor.u32 %v2981_v23, %v2731_v49  ;;  %v2860_v11 = vor.u32 %v3013_v34, %v2859_v24  ;;  %v2736_v17 = vor.u32 %v2980_v38, %v2733_v39 }
 0x104   : > { %v3114_v50 = vpop.eup %3113  ;;  %3117 = vpow2.f32 %v1237_v25  ;;  %v2444_v59 = vsel %vm1292_vm3, %v1503_v37, %v2380_v43  ;;  %vm1980_vm10 = vcmp.eq.f32.partialorder %v1979_v58, 8.507059e+37  ;;  %vm1324_vm11 = vcmp.ge.f32.partialorder %v3688_v19, 0.0 }
 0x105   : > { %v1978_v57 = vsel %vm3855_vm9, %v3799_v7, %v1974_v27  ;;  %v1506_v33 = vmul.f32 %v3114_v50, %v3797_v5  ;;  %2508 = vst [vmem:[%s3595_s30 + $0x28] sm:$0xff] %v2444_v59  ;;  %v1516_v63 = vand.u32 2147483648, %v3797_v5  ;;  %3119 = vrcp.f32 %v3848_v46  ;;  %761 = vmatmul.bf16.gmra.mxu0 %v2732_v53  ;;  %841 = vmatmul.bf16.gmra.mxu2 %v2860_v11  ;;  %v2739_v27 = vld [vmem:[%s3403_s18 + $0xd0] sm:$0xf] }
 0x106   : > { %v1983_v62 = vsel %vm1980_vm10, %v1982_v42, %v1978_v57  ;;  %vm1510_vm12 = vweird.f32 %v3797_v5  ;;  %v3873_v2 = vadd.f32 %v891_v16, %v723_v47  ;;  %930 = vmatmul.bf16.gmra.mxu1 %v2736_v17  ;;  %v1514_v6 = vand.u32 2147483647, %v3797_v5  ;;  %v804_v16 = vpop.f32.mrf.mxu2  ;;  %v727_v43 = vpop.f32.mrf.mxu0  ;;  %v2983_v47 = vld [vmem:[%s3403_s18 + $0xd4] sm:$0xf0]  ;;  %v3934_v57 = vld [vmem:[%s5188_s2] ss:$0 sm:$0xff] }
 0x107   : > { %v2412_v10 = vmul.f32 %v3753_v22, %v1983_v62  ;;  %v1507_v35 = vsub.f32 1.0, %v1506_v33  ;;  %v3875_v4 = vpop.eup %3115  ;;  %v2864_v7 = vor.u32 %v3012_v60, %v2861_v30  ;;  %v803_v9 = vadd.f32 %v3481_v48, %v802_v51 }
 0x108   : > { %v725_v0 = vadd.f32 %v3481_v48, %v724_v14  ;;  %vm1511_vm13 = vweird.f32 %v3114_v50  ;;  %v3883_v36 = vadd.f32 1.0, %v3875_v4  ;;  %v1517_v1 = vor.u32 1.1754944e-38, %v1516_v63  ;;  %v3015_v63 = vld [vmem:[%s3403_s18 + $0x1d4] sm:$0xf0] }
 0x109   : > { %v2476_v15 = vsel %vm1324_vm11, %v1983_v62, %v2412_v10  ;;  %v1508_v22 = vmul.f32 %v3114_v50, %v1507_v35  ;;  %v1039_v18 = vand.u32 2147483647, %v3873_v2  ;;  %1010 = vmatmul.bf16.gmra.mxu3 %v2864_v7  ;;  %v3889_v44 = vadd.f32 %v971_v12, %v803_v9  ;;  %vm1512_vm14 = vmor %vm1510_vm12, %vm1511_vm13  ;;  %v2867_v62 = vld [vmem:[%s3403_s18 + $0x1d0] sm:$0xf]  ;;  %v896_v7 = vpop.f32.mrf.mxu1 }
 0x10a   : > { %v3885_v13 = vpop.eup %3117  ;;  %2540 = vst [vmem:[%s3595_s30 + $0x128] sm:$0xff] %v2476_v15  ;;  %v1994_v48 = vand.u32 2147483647, %v3848_v46  ;;  %v1996_v19 = vand.u32 2147483648, %v3848_v46  ;;  %3121 = vrcp.f32 %v3883_v36  ;;  %v3901_v24 = vadd.f32 %v893_v3, %v725_v0 }
 0x10b   : > { %v1509_v29 = vadd.f32 %v3114_v50, %v1508_v22  ;;  %v3120_v40 = vpop.eup %3119  ;;  %v3898_v21 = vadd.f32 1.0, %v3885_v13  ;;  %v1103_v49 = vsub.f32 0.0, %v1039_v18  ;;  %v1071_v23 = vand.u32 2147483647, %v3889_v44 }
 0x10c   : > { %vm1293_vm15 = vcmp.ge.f32.partialorder %v3709_v45, 0.0  ;;  %vm1515_vm0 = vcmp.eq.f32.partialorder %v1514_v6, 8.507059e+37  ;;  %v1986_v58 = vmul.f32 %v3120_v40, %v3848_v46  ;;  %v1529_v8 = vand.u32 2147483647, %v3883_v36 }
 0x10d   : > { %v1513_v26 = vsel %vm1512_vm14, %v3114_v50, %v1509_v29  ;;  %v1531_v5 = vand.u32 2147483648, %v3883_v36  ;;  %3123 = vrcp.f32 %v3898_v21  ;;  %vm1990_vm1 = vweird.f32 %v3848_v46  ;;  %v973_v46 = vpop.f32.mrf.mxu3  ;;  %v2982_v29 = vld [vmem:[%s3403_s18 + $0xd4] sm:$0xf] }
 0x10e   : > { %v1518_v28 = vsel %vm1515_vm0, %v1517_v1, %v1513_v26  ;;  %v1987_v32 = vsub.f32 1.0, %v1986_v58  ;;  %vm3910_vm2 = vcmp.eq.f32.partialorder %v1994_v48, 8.507059e+37  ;;  %vm1325_vm3 = vcmp.ge.f32.partialorder %v3744_v20, 0.0  ;;  %v2741_v48 = vld [vmem:[%s3403_s18 + $0xd8] sm:$0xf0] }
 0x10f   : > { %v2381_v31 = vmul.f32 %v3789_v61, %v1518_v28  ;;  %v1997_v34 = vor.u32 1.1754944e-38, %v1996_v19  ;;  %v1175_v38 = vmul.f32 1.442695, %v1103_v49  ;;  %v1135_v39 = vsub.f32 0.0, %v1071_v23 }
 0x110   : > { %v1040_v37 = vand.u32 2147483647, %v3901_v24  ;;  %v3916_v42 = vpop.eup %3121  ;;  %v1988_v25 = vmul.f32 %v3120_v40, %v1987_v32  ;;  %vm1991_vm4 = vweird.f32 %v3120_v40  ;;  %vm1525_vm5 = vweird.f32 %v3883_v36 }
 0x111   : > { %v2445_v61 = vsel %vm1293_vm15, %v1518_v28, %v2381_v31  ;;  %v1521_v50 = vmul.f32 %v3916_v42, %v3883_v36  ;;  %vm3926_vm6 = vcmp.eq.f32.partialorder %v1529_v8, 8.507059e+37  ;;  %v1532_v53 = vor.u32 1.1754944e-38, %v1531_v5  ;;  %vm1992_vm7 = vmor %vm1990_vm1, %vm1991_vm4  ;;  %v3014_v28 = vld [vmem:[%s3403_s18 + $0x1d4] sm:$0xf]  ;;  %v807_v8 = vpop.f32.mrf.mxu2  ;;  %v2869_v36 = vld [vmem:[%s3403_s18 + $0x1d8] sm:$0xf0] }
 0x112   : > { %2509 = vst [vmem:[%s3595_s30 + $0x30] sm:$0xff] %v2445_v61  ;;  %3125 = vpow2.f32 %v1175_v38  ;;  %v1239_v45 = vmul.f32 1.442695, %v1135_v39  ;;  %v1989_v11 = vadd.f32 %v3120_v40, %v1988_v25  ;;  %v2009_v17 = vand.u32 2147483647, %v3898_v21 }
 0x113   : > { %v1104_v59 = vsub.f32 0.0, %v1040_v37  ;;  %v805_v33 = vadd.f32 %v3934_v57, %v804_v16  ;;  %v3937_v60 = vpop.eup %3123  ;;  %v1522_v30 = vsub.f32 1.0, %v1521_v50  ;;  %v728_v51 = vadd.f32 %v3934_v57, %v727_v43 }
 0x114   : > { %3127 = vpow2.f32 %v1239_v45  ;;  %v2740_v14 = vor.u32 %v2983_v47, %v2739_v27  ;;  %v1993_v10 = vsel %vm1992_vm7, %v3120_v40, %v1989_v11  ;;  %vm1294_vm8 = vcmp.ge.f32.partialorder %v3784_v41, 0.0  ;;  %v729_v47 = vpop.f32.mrf.mxu0 }
 0x115   : > { %vm1526_vm9 = vweird.f32 %v3916_v42  ;;  %v2001_v35 = vmul.f32 %v3937_v60, %v3898_v21  ;;  %v1177_v6 = vmul.f32 1.442695, %v1104_v59  ;;  %v1998_v9 = vsel %vm3910_vm2, %v1997_v34, %v1993_v10  ;;  %v976_v52 = vpop.f32.mrf.mxu3 }
 0x116   : > { %v1523_v0 = vmul.f32 %v3916_v42, %v1522_v30  ;;  %v3952_v15 = vadd.f32 %v973_v46, %v805_v33  ;;  %v3954_v22 = vadd.f32 %v896_v7, %v728_v51  ;;  %766 = vmatmul.bf16.gmra.mxu0 %v2740_v14  ;;  %v2413_v12 = vmul.f32 %v3840_v56, %v1998_v9  ;;  %vm1527_vm10 = vmor %vm1525_vm5, %vm1526_vm9  ;;  %v898_v51 = vpop.f32.mrf.mxu1 }
 0x117   : > { %v2002_v1 = vsub.f32 1.0, %v2001_v35  ;;  %3129 = vpow2.f32 %v1177_v6  ;;  %v2868_v18 = vor.u32 %v3015_v63, %v2867_v62  ;;  %v2011_v40 = vand.u32 2147483648, %v3898_v21 }
 0x118   : > { %v3959_v19 = vpop.eup %3125  ;;  %v1524_v3 = vadd.f32 %v3916_v42, %v1523_v0  ;;  %v1072_v49 = vand.u32 2147483647, %v3952_v15  ;;  %v1041_v23 = vand.u32 2147483647, %v3954_v22  ;;  %v2477_v56 = vsel %vm1325_vm3, %v1998_v9, %v2413_v12 }
 0x119   : > { %v2003_v26 = vmul.f32 %v3937_v60, %v2002_v1  ;;  %vm2006_vm11 = vweird.f32 %v3937_v60  ;;  %v3974_v58 = vadd.f32 1.0, %v3959_v19  ;;  %846 = vmatmul.bf16.gmra.mxu2 %v2868_v18  ;;  %2541 = vst [vmem:[%s3595_s30 + $0x130] sm:$0xff] %v2477_v56  ;;  %v2744_v54 = vor.u32 %v2982_v29, %v2741_v48  ;;  %v809_v14 = vpop.f32.mrf.mxu2 }
 0x11a   : > { %v3977_v5 = vpop.eup %3127  ;;  %v1528_v20 = vsel %vm1527_vm10, %v3916_v42, %v1524_v3  ;;  %v1136_v31 = vsub.f32 0.0, %v1072_v49  ;;  %v1105_v32 = vsub.f32 0.0, %v1041_v23  ;;  %vm2005_vm12 = vweird.f32 %v3898_v21 }
 0x11b   : > { %v1533_v16 = vsel %vm3926_vm6, %v1532_v53, %v1528_v20  ;;  %v2004_v34 = vadd.f32 %v3937_v60, %v2003_v26  ;;  %3131 = vrcp.f32 %v3974_v58  ;;  %vm2007_vm13 = vmor %vm2005_vm12, %vm2006_vm11  ;;  %vm2010_vm14 = vcmp.eq.f32.partialorder %v2009_v17, 8.507059e+37  ;;  %935 = vmatmul.bf16.gmra.mxu1 %v2744_v54 }
 0x11c   : > { %v2382_v38 = vmul.f32 %v3875_v4, %v1533_v16  ;;  %v2012_v39 = vor.u32 1.1754944e-38, %v2011_v40  ;;  %v3991_v37 = vadd.f32 1.0, %v3977_v5  ;;  %v1241_v25 = vmul.f32 1.442695, %v1136_v31 }
 0x11d   : > { %v3993_v42 = vpop.eup %3129  ;;  %v2008_v61 = vsel %vm2007_vm13, %v3937_v60, %v2004_v34  ;;  %v1179_v21 = vmul.f32 1.442695, %v1105_v32  ;;  %v2872_v43 = vor.u32 %v3014_v28, %v2869_v36  ;;  %vm1326_vm15 = vcmp.ge.f32.partialorder %v3786_v55, 0.0  ;;  %v978_v32 = vpop.f32.mrf.mxu3 }
 0x11e   : > { %v2446_v27 = vsel %vm1294_vm8, %v1533_v16, %v2382_v38  ;;  %v2013_v4 = vsel %vm2010_vm14, %v2012_v39, %v2008_v61  ;;  %3133 = vrcp.f32 %v3991_v37  ;;  %v1544_v53 = vand.u32 2147483647, %v3974_v58 }
 0x11f   : > { %2510 = vst [vmem:[%s3595_s30 + $0x38] sm:$0xff] %v2446_v27  ;;  %v2414_v50 = vmul.f32 %v3885_v13, %v2013_v4  ;;  %1015 = vmatmul.bf16.gmra.mxu3 %v2872_v43  ;;  %v4004_v45 = vadd.f32 1.0, %v3993_v42  ;;  %3135 = vpow2.f32 %v1241_v25  ;;  %v808_v41 = vadd.f32 %v3934_v57, %v807_v8  ;;  %v732_v8 = vpop.f32.mrf.mxu0 }
 0x120   : > { %v1546_v59 = vand.u32 2147483648, %v3974_v58  ;;  %3137 = vpow2.f32 %v1179_v21  ;;  %v730_v55 = vadd.f32 %v3934_v57, %v729_v47  ;;  %v2024_v33 = vand.u32 2147483647, %v3991_v37 }
 0x121   : > { %v3132_v11 = vpop.eup %3131  ;;  %v2478_v17 = vsel %vm1326_vm15, %v2013_v4, %v2414_v50  ;;  %3139 = vrcp.f32 %v4004_v45  ;;  %v2026_v60 = vand.u32 2147483648, %v3991_v37  ;;  %v4014_v30 = vadd.f32 %v976_v52, %v808_v41 }
 0x122   : > { %2542 = vst [vmem:[%s3595_s30 + $0x138] sm:$0xff] %v2478_v17  ;;  %v1536_v13 = vmul.f32 %v3132_v11, %v3974_v58  ;;  %vm1540_vm0 = vweird.f32 %v3974_v58  ;;  %vm4017_vm1 = vcmp.eq.f32.partialorder %v1544_v53, 8.507059e+37  ;;  %v4021_v10 = vadd.f32 %v898_v51, %v730_v55  ;;  %v2985_v51 = vld [vmem:[%s3403_s18 + $0xe4] sm:$0xf0] }
 0x123   : > { %vm1295_vm2 = vcmp.ge.f32.partialorder %v3873_v2, 0.0  ;;  %vm1541_vm3 = vweird.f32 %v3132_v11  ;;  %v1547_v6 = vor.u32 1.1754944e-38, %v1546_v59  ;;  %vm2020_vm4 = vweird.f32 %v3991_v37 }
 0x124   : > { %v1537_v62 = vsub.f32 1.0, %v1536_v13  ;;  %v3134_v35 = vpop.eup %3133  ;;  %v1073_v46 = vand.u32 2147483647, %v4014_v30  ;;  %vm4029_vm5 = vcmp.eq.f32.partialorder %v2024_v33, 8.507059e+37  ;;  %v1042_v1 = vand.u32 2147483647, %v4021_v10  ;;  %vm1542_vm7 = vmor %vm1540_vm0, %vm1541_vm3 }
 0x125   : > { %v4026_v7 = vpop.eup %3135  ;;  %v2016_v0 = vmul.f32 %v3134_v35, %v3991_v37  ;;  %v810_v18 = vadd.f32 %v3934_v57, %v809_v14  ;;  %v2027_v48 = vor.u32 1.1754944e-38, %v2026_v60  ;;  %vm1555_vm6 = vweird.f32 %v4004_v45  ;;  %v901_v60 = vpop.f32.mrf.mxu1 }
 0x126   : > { %v1538_v9 = vmul.f32 %v3132_v11, %v1537_v62  ;;  %v4035_v29 = vpop.eup %3137  ;;  %v1559_v3 = vand.u32 2147483647, %v4004_v45  ;;  %v4040_v40 = vadd.f32 1.0, %v4026_v7  ;;  %v1561_v26 = vand.u32 2147483648, %v4004_v45 }
 0x127   : > { %v3140_v49 = vpop.eup %3139  ;;  %v2017_v56 = vsub.f32 1.0, %v2016_v0  ;;  %v4044_v28 = vadd.f32 1.0, %v4035_v29  ;;  %vm1327_vm8 = vcmp.ge.f32.partialorder %v3889_v44, 0.0  ;;  %vm2021_vm9 = vweird.f32 %v3134_v35 }
 0x128   : > { %v1539_v23 = vadd.f32 %v3132_v11, %v1538_v9  ;;  %v1551_v20 = vmul.f32 %v3140_v49, %v4004_v45  ;;  %3141 = vrcp.f32 %v4040_v40  ;;  %v1137_v31 = vsub.f32 0.0, %v1073_v46  ;;  %vm2022_vm12 = vmor %vm2020_vm4, %vm2021_vm9 }
 0x129   : > { %v2018_v36 = vmul.f32 %v3134_v35, %v2017_v56  ;;  %v1106_v16 = vsub.f32 0.0, %v1042_v1  ;;  %v4052_v34 = vadd.f32 %v978_v32, %v810_v18  ;;  %3143 = vrcp.f32 %v4044_v28  ;;  %v2984_v1 = vld [vmem:[%s3403_s18 + $0xe4] sm:$0xf]  ;;  %v812_v18 = vpop.f32.mrf.mxu2 }
 0x12a   : > { %v1543_v54 = vsel %vm1542_vm7, %v3132_v11, %v1539_v23  ;;  %v1552_v39 = vsub.f32 1.0, %v1551_v20  ;;  %v733_v58 = vadd.f32 %v3934_v57, %v732_v8  ;;  %vm1296_vm10 = vcmp.ge.f32.partialorder %v3901_v24, 0.0  ;;  %v3016_v20 = vld [vmem:[%s3403_s18 + $0x1e4] sm:$0xf] }
 0x12b   : > { %v1548_v38 = vsel %vm4017_vm1, %v1547_v6, %v1543_v54  ;;  %v2019_v25 = vadd.f32 %v3134_v35, %v2018_v36  ;;  %vm4060_vm11 = vcmp.eq.f32.partialorder %v1559_v3, 8.507059e+37  ;;  %v2039_v43 = vand.u32 2147483647, %v4040_v40  ;;  %v3017_v6 = vld [vmem:[%s3403_s18 + $0x1e4] sm:$0xf0] }
 0x12c   : > { %v2383_v61 = vmul.f32 %v3959_v19, %v1548_v38  ;;  %v1553_v27 = vmul.f32 %v3140_v49, %v1552_v39  ;;  %vm1556_vm13 = vweird.f32 %v3140_v49  ;;  %v1562_v4 = vor.u32 1.1754944e-38, %v1561_v26  ;;  %v734_v39 = vpop.f32.mrf.mxu0 }
 0x12d   : > { %v1243_v47 = vmul.f32 1.442695, %v1137_v31  ;;  %v2023_v50 = vsel %vm2022_vm12, %v3134_v35, %v2019_v25  ;;  %vm2035_vm14 = vweird.f32 %v4040_v40  ;;  %v1181_v52 = vmul.f32 1.442695, %v1106_v16  ;;  %vm4083_vm0 = vmor %vm1555_vm6, %vm1556_vm13  ;;  %v2875_v35 = vld [vmem:[%s3403_s18 + $0x1e0] sm:$0xf] }
 0x12e   : > { %v2447_v19 = vsel %vm1295_vm2, %v1548_v38, %v2383_v61  ;;  %v1074_v53 = vand.u32 2147483647, %v4052_v34  ;;  %v4072_v41 = vpop.eup %3141  ;;  %v2028_v37 = vsel %vm4029_vm5, %v2027_v48, %v2023_v50  ;;  %v1554_v11 = vadd.f32 %v3140_v49, %v1553_v27  ;;  %v2877_v31 = vld [vmem:[%s3403_s18 + $0x1e8] sm:$0xf0] }
 0x12f   : > { %2511 = vst [vmem:[%s3595_s30 + $0x40] sm:$0xff] %v2447_v19  ;;  %v2041_v17 = vand.u32 2147483648, %v4040_v40  ;;  %vm1570_vm15 = vweird.f32 %v4044_v28  ;;  %v2415_v2 = vmul.f32 %v3977_v5, %v2028_v37  ;;  %v2031_v55 = vmul.f32 %v4072_v41, %v4040_v40  ;;  %v2747_v5 = vld [vmem:[%s3403_s18 + $0xe0] sm:$0xf]  ;;  %v4096_v45 = vpop.eup %3143  ;;  %v981_v40 = vpop.f32.mrf.mxu3 }
 0x130   : > { %vm4089_vm1 = vcmp.eq.f32.partialorder %v2039_v43, 8.507059e+37  ;;  %v1574_v33 = vand.u32 2147483647, %v4044_v28  ;;  %3145 = vpow2.f32 %v1243_v47  ;;  %v1558_v14 = vsel %vm4083_vm0, %v3140_v49, %v1554_v11  ;;  %v2749_v49 = vld [vmem:[%s3403_s18 + $0xe8] sm:$0xf0]  ;;  %v903_v11 = vpop.f32.mrf.mxu1 }
 0x131   : > { %v1576_v62 = vand.u32 2147483648, %v4044_v28  ;;  %3147 = vpow2.f32 %v1181_v52  ;;  %v1138_v63 = vsub.f32 0.0, %v1074_v53  ;;  %v2479_v46 = vsel %vm1327_vm8, %v2028_v37, %v2415_v2 }
 0x132   : > { %v1563_v9 = vsel %vm4060_vm11, %v1562_v4, %v1558_v14  ;;  %v2032_v0 = vsub.f32 1.0, %v2031_v55  ;;  %v1566_v12 = vmul.f32 %v4096_v45, %v4044_v28  ;;  %2543 = vst [vmem:[%s3595_s30 + $0x140] sm:$0xff] %v2479_v46  ;;  %vm2036_vm2 = vweird.f32 %v4072_v41  ;;  %v814_v55 = vpop.f32.mrf.mxu2 }
 0x133   : > { %v2384_v48 = vmul.f32 %v3993_v42, %v1563_v9  ;;  %v1245_v3 = vmul.f32 1.442695, %v1138_v63  ;;  %v4113_v44 = vadd.f32 %v901_v60, %v733_v58  ;;  %v2748_v26 = vor.u32 %v2985_v51, %v2747_v5  ;;  %vm2037_vm4 = vmor %vm2035_vm14, %vm2036_vm2 }
 0x134   : > { %v2033_v23 = vmul.f32 %v4072_v41, %v2032_v0  ;;  %v1567_v56 = vsub.f32 1.0, %v1566_v12  ;;  %v2876_v8 = vor.u32 %v3017_v6, %v2875_v35  ;;  %vm1571_vm3 = vweird.f32 %v4096_v45  ;;  %v737_v6 = vpop.f32.mrf.mxu0  ;;  %v2755_v12 = vld [vmem:[%s3403_s18 + $0xf0] sm:$0xf] }
 0x135   : > { %v2448_v32 = vsel %vm1296_vm10, %v1563_v9, %v2384_v48  ;;  %3149 = vpow2.f32 %v1245_v3  ;;  %v1043_v42 = vand.u32 2147483647, %v4113_v44  ;;  %771 = vmatmul.bf16.gmra.mxu0 %v2748_v26  ;;  %v2752_v38 = vor.u32 %v2984_v1, %v2749_v49  ;;  %vm1572_vm6 = vmor %vm1570_vm15, %vm1571_vm3  ;;  %v2987_v1 = vld [vmem:[%s3403_s18 + $0xf4] sm:$0xf0] }
 0x136   : > { %v4123_v54 = vpop.eup %3145  ;;  %2512 = vst [vmem:[%s3595_s30 + $0x48] sm:$0xff] %v2448_v32  ;;  %v2034_v36 = vadd.f32 %v4072_v41, %v2033_v23  ;;  %v1568_v16 = vmul.f32 %v4096_v45, %v1567_v56  ;;  %851 = vmatmul.bf16.gmra.mxu2 %v2876_v8  ;;  %v2042_v24 = vor.u32 1.1754944e-38, %v2041_v17  ;;  %vm4134_vm5 = vcmp.eq.f32.partialorder %v1574_v33, 8.507059e+37 }
 0x137   : > { %v4128_v58 = vpop.eup %3147  ;;  %v4139_v25 = vadd.f32 1.0, %v4123_v54  ;;  %v2880_v21 = vor.u32 %v3016_v20, %v2877_v31  ;;  %v1577_v4 = vor.u32 1.1754944e-38, %v1576_v62  ;;  %940 = vmatmul.bf16.gmra.mxu1 %v2752_v38  ;;  %v1107_v50 = vsub.f32 0.0, %v1043_v42  ;;  %v983_v23 = vpop.f32.mrf.mxu3 }
 0x138   : > { %v2038_v43 = vsel %vm2037_vm4, %v4072_v41, %v2034_v36  ;;  %v1569_v27 = vadd.f32 %v4096_v45, %v1568_v16  ;;  %v4144_v47 = vadd.f32 1.0, %v4128_v58  ;;  %v813_v52 = vadd.f32 %v3934_v57, %v812_v18  ;;  %v906_v42 = vpop.f32.mrf.mxu1 }
 0x139   : > { %v2043_v19 = vsel %vm4089_vm1, %v2042_v24, %v2038_v43  ;;  %3151 = vrcp.f32 %v4139_v25  ;;  %1020 = vmatmul.bf16.gmra.mxu3 %v2880_v21  ;;  %v735_v37 = vadd.f32 %v3934_v57, %v734_v39  ;;  %vm1328_vm7 = vcmp.ge.f32.partialorder %v3952_v15, 0.0 }
 0x13a   : > { %v2416_v53 = vmul.f32 %v4026_v7, %v2043_v19  ;;  %v1573_v41 = vsel %vm1572_vm6, %v4096_v45, %v1569_v27  ;;  %3153 = vrcp.f32 %v4144_v47  ;;  %vm1297_vm8 = vcmp.ge.f32.partialorder %v3954_v22, 0.0 }
 0x13b   : > { %v4158_v17 = vpop.eup %3149  ;;  %v1578_v28 = vsel %vm4134_vm5, %v1577_v4, %v1573_v41  ;;  %v2054_v59 = vand.u32 2147483647, %v4139_v25  ;;  %v2056_v13 = vand.u32 2147483648, %v4139_v25  ;;  %v1183_v60 = vmul.f32 1.442695, %v1107_v50 }
 0x13c   : > { %v2480_v2 = vsel %vm1328_vm7, %v2043_v19, %v2416_v53  ;;  %v2385_v7 = vmul.f32 %v4035_v29, %v1578_v28  ;;  %v4169_v33 = vadd.f32 1.0, %v4158_v17  ;;  %v4171_v15 = vadd.f32 %v981_v40, %v813_v52 }
 0x13d   : > { %2544 = vst [vmem:[%s3595_s30 + $0x148] sm:$0xff] %v2480_v2  ;;  %v1589_v51 = vand.u32 2147483647, %v4144_v47  ;;  %v4174_v45 = vadd.f32 %v903_v11, %v735_v37  ;;  %vm2050_vm9 = vweird.f32 %v4139_v25  ;;  %v815_v29 = vadd.f32 %v3934_v57, %v814_v55  ;;  %v3019_v55 = vld [vmem:[%s3403_s18 + $0x1f4] sm:$0xf0] }
 0x13e   : > { %v2449_v5 = vsel %vm1297_vm8, %v1578_v28, %v2385_v7  ;;  %3155 = vrcp.f32 %v4169_v33  ;;  %vm4181_vm10 = vcmp.eq.f32.partialorder %v2054_v59, 8.507059e+37  ;;  %v1075_v35 = vand.u32 2147483647, %v4171_v15  ;;  %v2883_v59 = vld [vmem:[%s3403_s18 + $0x1f0] sm:$0xf] }
 0x13f   : > { %v3152_v22 = vpop.eup %3151  ;;  %2513 = vst [vmem:[%s3595_s30 + $0x50] sm:$0xff] %v2449_v5  ;;  %3157 = vpow2.f32 %v1183_v60  ;;  %v2057_v46 = vor.u32 1.1754944e-38, %v2056_v13  ;;  %vm1585_vm11 = vweird.f32 %v4144_v47  ;;  %v1591_v0 = vand.u32 2147483648, %v4144_v47  ;;  %v817_v13 = vpop.f32.mrf.mxu2 }
 0x140   : > { %v3154_v14 = vpop.eup %3153  ;;  %v2046_v62 = vmul.f32 %v3152_v22, %v4139_v25  ;;  %vm4191_vm12 = vcmp.eq.f32.partialorder %v1589_v51, 8.507059e+37  ;;  %v1139_v3 = vsub.f32 0.0, %v1075_v35  ;;  %v1044_v49 = vand.u32 2147483647, %v4174_v45  ;;  %v2986_v51 = vld [vmem:[%s3403_s18 + $0xf4] sm:$0xf] }
 0x141   : > { %v1581_v9 = vmul.f32 %v3154_v14, %v4144_v47  ;;  %vm1329_vm13 = vcmp.ge.f32.partialorder %v4014_v30, 0.0  ;;  %vm2051_vm14 = vweird.f32 %v3152_v22  ;;  %v4197_v26 = vadd.f32 %v983_v23, %v815_v29  ;;  %v3018_v30 = vld [vmem:[%s3403_s18 + $0x1f4] sm:$0xf] }
 0x142   : > { %v2047_v18 = vsub.f32 1.0, %v2046_v62  ;;  %v738_v8 = vadd.f32 %v3934_v57, %v737_v6  ;;  %vm1298_vm15 = vcmp.ge.f32.partialorder %v4021_v10, 0.0  ;;  %v1247_v31 = vmul.f32 1.442695, %v1139_v3  ;;  %vm2052_vm1 = vmor %vm2050_vm9, %vm2051_vm14 }
 0x143   : > { %v1582_v56 = vsub.f32 1.0, %v1581_v9  ;;  %v1108_v32 = vsub.f32 0.0, %v1044_v49  ;;  %v2756_v36 = vor.u32 %v2987_v1, %v2755_v12  ;;  %vm1586_vm0 = vweird.f32 %v3154_v14  ;;  %v2885_v12 = vld [vmem:[%s3403_s18 + $0x1f8] sm:$0xf0] }
 0x144   : > { %v2048_v20 = vmul.f32 %v3152_v22, %v2047_v18  ;;  %v3156_v16 = vpop.eup %3155  ;;  %v1076_v39 = vand.u32 2147483647, %v4197_v26  ;;  %v4202_v24 = vadd.f32 %v906_v42, %v738_v8  ;;  %v1592_v43 = vor.u32 1.1754944e-38, %v1591_v0  ;;  %vm1587_vm2 = vmor %vm1585_vm11, %vm1586_vm0 }
 0x145   : > { %v1583_v38 = vmul.f32 %v3154_v14, %v1582_v56  ;;  %v4204_v61 = vpop.eup %3157  ;;  %v2061_v27 = vmul.f32 %v3156_v16, %v4169_v33  ;;  %3159 = vpow2.f32 %v1247_v31  ;;  %776 = vmatmul.bf16.gmra.mxu0 %v2756_v36  ;;  %v1185_v19 = vmul.f32 1.442695, %v1108_v32  ;;  %v986_v31 = vpop.f32.mrf.mxu3 }
 0x146   : > { %v2049_v21 = vadd.f32 %v3152_v22, %v2048_v20  ;;  %v4211_v40 = vadd.f32 1.0, %v4204_v61  ;;  %v1140_v50 = vsub.f32 0.0, %v1076_v39  ;;  %v2069_v41 = vand.u32 2147483647, %v4169_v33  ;;  %v739_v32 = vpop.f32.mrf.mxu0 }
 0x147   : > { %v1584_v4 = vadd.f32 %v3154_v14, %v1583_v38  ;;  %v2062_v53 = vsub.f32 1.0, %v2061_v27  ;;  %v1045_v37 = vand.u32 2147483647, %v4202_v24  ;;  %v2071_v28 = vand.u32 2147483648, %v4169_v33  ;;  %v819_v27 = vpop.f32.mrf.mxu2 }
 0x148   : > { %v2053_v52 = vsel %vm2052_vm1, %v3152_v22, %v2049_v21  ;;  %3161 = vrcp.f32 %v4211_v40  ;;  %vm2066_vm3 = vweird.f32 %v3156_v16  ;;  %vm2065_vm4 = vweird.f32 %v4169_v33  ;;  %v2757_v22 = vld [vmem:[%s3403_s18 + $0xf8] sm:$0xf0] }
 0x149   : > { %v2058_v25 = vsel %vm4181_vm10, %v2057_v46, %v2053_v52  ;;  %v1588_v11 = vsel %vm1587_vm2, %v3154_v14, %v1584_v4  ;;  %v2063_v7 = vmul.f32 %v3156_v16, %v2062_v53  ;;  %3163 = vpow2.f32 %v1185_v19  ;;  %vm2067_vm6 = vmor %vm2065_vm4, %vm2066_vm3 }
 0x14a   : > { %v2417_v2 = vmul.f32 %v4123_v54, %v2058_v25  ;;  %v1593_v47 = vsel %vm4191_vm12, %v1592_v43, %v1588_v11  ;;  %v1249_v5 = vmul.f32 1.442695, %v1140_v50  ;;  %vm4235_vm5 = vcmp.eq.f32.partialorder %v2069_v41, 8.507059e+37 }
 0x14b   : > { %v2386_v60 = vmul.f32 %v4128_v58, %v1593_v47  ;;  %v4231_v54 = vpop.eup %3159  ;;  %v2064_v14 = vadd.f32 %v3156_v16, %v2063_v7  ;;  %v1109_v58 = vsub.f32 0.0, %v1045_v37  ;;  %v2072_v63 = vor.u32 1.1754944e-38, %v2071_v28 }
 0x14c   : > { %v2481_v29 = vsel %vm1329_vm13, %v2058_v25, %v2417_v2  ;;  %v4244_v35 = vadd.f32 1.0, %v4231_v54  ;;  %3165 = vpow2.f32 %v1249_v5  ;;  %v2884_v9 = vor.u32 %v3019_v55, %v2883_v59 }
 0x14d   : > { %2545 = vst [vmem:[%s3595_s30 + $0x150] sm:$0xff] %v2481_v29  ;;  %v2450_v33 = vsel %vm1298_vm15, %v1593_v47, %v2386_v60  ;;  %v2068_v6 = vsel %vm2067_vm6, %v3156_v16, %v2064_v14  ;;  %v1187_v46 = vmul.f32 1.442695, %v1109_v58  ;;  %v2760_v0 = vor.u32 %v2986_v51, %v2757_v22  ;;  %v908_v47 = vpop.f32.mrf.mxu1 }
 0x14e   : > { %2514 = vst [vmem:[%s3595_s30 + $0x58] sm:$0xff] %v2450_v33  ;;  %v3162_v1 = vpop.eup %3161  ;;  %v2073_v18 = vsel %vm4235_vm5, %v2072_v63, %v2068_v6  ;;  %v1604_v10 = vand.u32 2147483647, %v4211_v40  ;;  %3167 = vrcp.f32 %v4244_v35  ;;  %vm1330_vm7 = vcmp.ge.f32.partialorder %v4052_v34, 0.0  ;;  %856 = vmatmul.bf16.gmra.mxu2 %v2884_v9  ;;  %v742_v6 = vpop.f32.mrf.mxu0 }
 0x14f   : > { %v2418_v48 = vmul.f32 %v4158_v17, %v2073_v18  ;;  %v1596_v3 = vmul.f32 %v3162_v1, %v4211_v40  ;;  %v1606_v49 = vand.u32 2147483648, %v4211_v40  ;;  %945 = vmatmul.bf16.gmra.mxu1 %v2760_v0  ;;  %v4257_v23 = vpop.eup %3163  ;;  %v2084_v56 = vand.u32 2147483647, %v4244_v35 }
 0x150   : > { %3169 = vpow2.f32 %v1187_v46  ;;  %v2888_v8 = vor.u32 %v3018_v30, %v2885_v12  ;;  %v818_v20 = vadd.f32 %v3934_v57, %v817_v13  ;;  %v2086_v17 = vand.u32 2147483648, %v4244_v35  ;;  %v988_v30 = vpop.f32.mrf.mxu3 }
 0x151   : > { %v2482_v34 = vsel %vm1330_vm7, %v2073_v18, %v2418_v48  ;;  %v1597_v42 = vsub.f32 1.0, %v1596_v3  ;;  %v4263_v36 = vadd.f32 1.0, %v4257_v23  ;;  %vm1299_vm8 = vcmp.ge.f32.partialorder %v4113_v44, 0.0 }
 0x152   : > { %v4265_v16 = vpop.eup %3165  ;;  %2546 = vst [vmem:[%s3595_s30 + $0x158] sm:$0xff] %v2482_v34  ;;  %vm1600_vm9 = vweird.f32 %v4211_v40  ;;  %vm4270_vm10 = vcmp.eq.f32.partialorder %v1604_v10, 8.507059e+37  ;;  %1025 = vmatmul.bf16.gmra.mxu3 %v2888_v8  ;;  %v4274_v39 = vadd.f32 %v986_v31, %v818_v20  ;;  %vm1601_vm11 = vweird.f32 %v3162_v1 }
 0x153   : > { %v1598_v21 = vmul.f32 %v3162_v1, %v1597_v42  ;;  %v1607_v43 = vor.u32 1.1754944e-38, %v1606_v49  ;;  %3171 = vrcp.f32 %v4263_v36  ;;  %vm2080_vm12 = vweird.f32 %v4244_v35  ;;  %vm1602_vm14 = vmor %vm1600_vm9, %vm1601_vm11 }
 0x154   : > { %v3168_v4 = vpop.eup %3167  ;;  %v4279_v19 = vadd.f32 1.0, %v4265_v16  ;;  %v1077_v50 = vand.u32 2147483647, %v4274_v39  ;;  %v740_v52 = vadd.f32 %v3934_v57, %v739_v32  ;;  %vm4284_vm13 = vcmp.eq.f32.partialorder %v2084_v56, 8.507059e+37 }
 0x155   : > { %v1599_v53 = vadd.f32 %v3162_v1, %v1598_v21  ;;  %v2076_v41 = vmul.f32 %v3168_v4, %v4244_v35  ;;  %v2087_v25 = vor.u32 1.1754944e-38, %v2086_v17  ;;  %v1619_v28 = vand.u32 2147483647, %v4263_v36 }
 0x156   : > { %v4288_v11 = vpop.eup %3169  ;;  %v1621_v2 = vand.u32 2147483648, %v4263_v36  ;;  %3173 = vrcp.f32 %v4279_v19  ;;  %v820_v7 = vadd.f32 %v3934_v57, %v819_v27  ;;  %vm2081_vm15 = vweird.f32 %v3168_v4  ;;  %v822_v27 = vpop.f32.mrf.mxu2 }
 0x157   : > { %v1603_v59 = vsel %vm1602_vm14, %v3162_v1, %v1599_v53  ;;  %v2077_v55 = vsub.f32 1.0, %v2076_v41  ;;  %v4297_v13 = vadd.f32 1.0, %v4288_v11  ;;  %vm1331_vm0 = vcmp.ge.f32.partialorder %v4171_v15, 0.0  ;;  %vm2082_vm4 = vmor %vm2080_vm12, %vm2081_vm15 }
 0x158   : > { %v1608_v60 = vsel %vm4270_vm10, %v1607_v43, %v1603_v59  ;;  %v2101_v40 = vand.u32 2147483648, %v4279_v19  ;;  %v1141_v5 = vsub.f32 0.0, %v1077_v50  ;;  %v4303_v51 = vadd.f32 %v908_v47, %v740_v52  ;;  %v911_v43 = vpop.f32.mrf.mxu1  ;;  %v991_v59 = vpop.f32.mrf.mxu3 }
 0x159   : > { %v3172_v22 = vpop.eup %3171  ;;  %v2387_v29 = vmul.f32 %v4204_v61, %v1608_v60  ;;  %v2078_v14 = vmul.f32 %v3168_v4, %v2077_v55  ;;  %v2099_v62 = vand.u32 2147483647, %v4279_v19  ;;  %3175 = vrcp.f32 %v4297_v13  ;;  %v744_v55 = vpop.f32.mrf.mxu0 }
 0x15a   : > { %v1611_v58 = vmul.f32 %v3172_v22, %v4263_v36  ;;  %vm1615_vm1 = vweird.f32 %v4263_v36  ;;  %vm4310_vm2 = vcmp.eq.f32.partialorder %v1619_v28, 8.507059e+37  ;;  %v1622_v63 = vor.u32 1.1754944e-38, %v1621_v2 }
 0x15b   : > { %v2451_v46 = vsel %vm1299_vm8, %v1608_v60, %v2387_v29  ;;  %v2079_v61 = vadd.f32 %v3168_v4, %v2078_v14  ;;  %vm2095_vm3 = vweird.f32 %v4279_v19  ;;  %v1251_v9 = vmul.f32 1.442695, %v1141_v5 }
 0x15c   : > { %v3174_v0 = vpop.eup %3173  ;;  %2515 = vst [vmem:[%s3595_s30 + $0x60] sm:$0xff] %v2451_v46  ;;  %v1612_v12 = vsub.f32 1.0, %v1611_v58  ;;  %vm1616_vm5 = vweird.f32 %v3172_v22  ;;  %v2102_v1 = vor.u32 1.1754944e-38, %v2101_v40  ;;  %v1046_v18 = vand.u32 2147483647, %v4303_v51 }
 0x15d   : > { %v2083_v10 = vsel %vm2082_vm4, %v3168_v4, %v2079_v61  ;;  %vm1300_vm6 = vcmp.ge.f32.partialorder %v4174_v45, 0.0  ;;  %v2091_v44 = vmul.f32 %v3174_v0, %v4279_v19  ;;  %vm4324_vm7 = vcmp.eq.f32.partialorder %v2099_v62, 8.507059e+37  ;;  %vm1617_vm9 = vmor %vm1615_vm1, %vm1616_vm5 }
 0x15e   : > { %vm1630_vm8 = vweird.f32 %v4297_v13  ;;  %v1634_v3 = vand.u32 2147483647, %v4297_v13  ;;  %v2088_v35 = vsel %vm4284_vm13, %v2087_v25, %v2083_v10  ;;  %v1613_v49 = vmul.f32 %v3172_v22, %v1612_v12  ;;  %v824_v61 = vpop.f32.mrf.mxu2 }
 0x15f   : > { %3177 = vpow2.f32 %v1251_v9  ;;  %v1110_v56 = vsub.f32 0.0, %v1046_v18  ;;  %v3176_v8 = vpop.eup %3175  ;;  %v2419_v20 = vmul.f32 %v4231_v54, %v2088_v35  ;;  %v2092_v31 = vsub.f32 1.0, %v2091_v44 }
 0x160   : > { %v4333_v32 = vadd.f32 %v988_v30, %v820_v7  ;;  %v743_v34 = vadd.f32 %v3934_v57, %v742_v6  ;;  %v1614_v42 = vadd.f32 %v3172_v22, %v1613_v49  ;;  %v1626_v17 = vmul.f32 %v3176_v8, %v4297_v13  ;;  %v913_v46 = vpop.f32.mrf.mxu1 }
 0x161   : > { %v1636_v38 = vand.u32 2147483648, %v4297_v13  ;;  %v1189_v21 = vmul.f32 1.442695, %v1110_v56  ;;  %v2483_v4 = vsel %vm1331_vm0, %v2088_v35, %v2419_v20  ;;  %v2093_v54 = vmul.f32 %v3174_v0, %v2092_v31 }
 0x162   : > { %vm2096_vm10 = vweird.f32 %v3174_v0  ;;  %v1078_v50 = vand.u32 2147483647, %v4333_v32  ;;  %2547 = vst [vmem:[%s3595_s30 + $0x160] sm:$0xff] %v2483_v4  ;;  %v1618_v52 = vsel %vm1617_vm9, %v3172_v22, %v1614_v42  ;;  %v1627_v53 = vsub.f32 1.0, %v1626_v17 }
 0x163   : > { %3179 = vpow2.f32 %v1189_v21  ;;  %v4345_v41 = vadd.f32 %v911_v43, %v743_v34  ;;  %v1623_v37 = vsel %vm4310_vm2, %v1622_v63, %v1618_v52  ;;  %v2094_v25 = vadd.f32 %v3174_v0, %v2093_v54  ;;  %vm2097_vm11 = vmor %vm2095_vm3, %vm2096_vm10 }
 0x164   : > { %v1142_v15 = vsub.f32 0.0, %v1078_v50  ;;  %v823_v28 = vadd.f32 %v3934_v57, %v822_v27  ;;  %v2388_v36 = vmul.f32 %v4257_v23, %v1623_v37  ;;  %v1628_v47 = vmul.f32 %v3176_v8, %v1627_v53 }
 0x165   : > { %v4350_v2 = vpop.eup %3177  ;;  %vm1631_vm12 = vweird.f32 %v3176_v8  ;;  %v1047_v7 = vand.u32 2147483647, %v4345_v41  ;;  %v2098_v60 = vsel %vm2097_vm11, %v3174_v0, %v2094_v25  ;;  %vm1332_vm13 = vcmp.ge.f32.partialorder %v4197_v26, 0.0 }
 0x166   : > { %v4357_v40 = vadd.f32 1.0, %v4350_v2  ;;  %v1253_v5 = vmul.f32 1.442695, %v1142_v15  ;;  %v4359_v22 = vadd.f32 %v991_v59, %v823_v28  ;;  %v2452_v29 = vsel %vm1300_vm6, %v1623_v37, %v2388_v36  ;;  %vm1632_vm14 = vmor %vm1630_vm8, %vm1631_vm12  ;;  %v827_v28 = vpop.f32.mrf.mxu2 }
 0x167   : > { %v2103_v23 = vsel %vm4324_vm7, %v2102_v1, %v2098_v60  ;;  %v1629_v19 = vadd.f32 %v3176_v8, %v1628_v47  ;;  %v1111_v14 = vsub.f32 0.0, %v1047_v7  ;;  %2516 = vst [vmem:[%s3595_s30 + $0x68] sm:$0xff] %v2452_v29  ;;  %v1637_v58 = vor.u32 1.1754944e-38, %v1636_v38 }
 0x168   : > { %v2420_v62 = vmul.f32 %v4265_v16, %v2103_v23  ;;  %3181 = vrcp.f32 %v4357_v40  ;;  %vm1635_vm15 = vcmp.eq.f32.partialorder %v1634_v3, 8.507059e+37  ;;  %v1079_v13 = vand.u32 2147483647, %v4359_v22 }
 0x169   : > { %v4372_v45 = vpop.eup %3179  ;;  %v1633_v33 = vsel %vm1632_vm14, %v3176_v8, %v1629_v19  ;;  %3183 = vpow2.f32 %v1253_v5  ;;  %v1191_v63 = vmul.f32 1.442695, %v1111_v14  ;;  %vm1301_vm0 = vcmp.ge.f32.partialorder %v4202_v24, 0.0  ;;  %v747_v24 = vpop.f32.mrf.mxu0  ;;  %v4439_v14 = vld [vmem:[%s5188_s2] ss:$0 sm:$0xff] }
 0x16a   : > { %v2484_v30 = vsel %vm1332_vm13, %v2103_v23, %v2420_v62  ;;  %v1638_v6 = vsel %vm1635_vm15, %v1637_v58, %v1633_v33  ;;  %v4375_v26 = vadd.f32 1.0, %v4372_v45  ;;  %v2114_v9 = vand.u32 2147483647, %v4357_v40  ;;  %v993_v8 = vpop.f32.mrf.mxu3 }
 0x16b   : > { %2548 = vst [vmem:[%s3595_s30 + $0x168] sm:$0xff] %v2484_v30  ;;  %v2389_v16 = vmul.f32 %v4288_v11, %v1638_v6  ;;  %3185 = vpow2.f32 %v1191_v63  ;;  %v1143_v12 = vsub.f32 0.0, %v1079_v13  ;;  %v745_v1 = vadd.f32 %v3934_v57, %v744_v55 }
 0x16c   : > { %3187 = vrcp.f32 %v4375_v26  ;;  %v825_v10 = vadd.f32 %v3934_v57, %v824_v61  ;;  %vm2110_vm1 = vweird.f32 %v4357_v40  ;;  %vm4392_vm2 = vcmp.eq.f32.partialorder %v2114_v9, 8.507059e+37 }
 0x16d   : > { %v2453_v0 = vsel %vm1301_vm0, %v1638_v6, %v2389_v16  ;;  %v1255_v48 = vmul.f32 1.442695, %v1143_v12  ;;  %v4389_v3 = vadd.f32 %v913_v46, %v745_v1  ;;  %v2116_v49 = vand.u32 2147483648, %v4357_v40 }
 0x16e   : > { %v3182_v18 = vpop.eup %3181  ;;  %2517 = vst [vmem:[%s3595_s30 + $0x70] sm:$0xff] %v2453_v0  ;;  %v4403_v42 = vadd.f32 %v993_v8, %v825_v10  ;;  %vm1333_vm3 = vcmp.ge.f32.partialorder %v4274_v39, 0.0  ;;  %v1649_v38 = vand.u32 2147483647, %v4375_v26  ;;  %v1651_v21 = vand.u32 2147483648, %v4375_v26 }
 0x16f   : > { %v4386_v11 = vpop.eup %3183  ;;  %v2106_v44 = vmul.f32 %v3182_v18, %v4357_v40  ;;  %3189 = vpow2.f32 %v1255_v48  ;;  %v1048_v34 = vand.u32 2147483647, %v4389_v3  ;;  %v748_v43 = vadd.f32 %v3934_v57, %v747_v24  ;;  %v916_v57 = vpop.f32.mrf.mxu1 }
 0x170   : > { %v4398_v56 = vadd.f32 1.0, %v4386_v11  ;;  %vm2111_vm4 = vweird.f32 %v3182_v18  ;;  %v2117_v50 = vor.u32 1.1754944e-38, %v2116_v49  ;;  %vm1645_vm5 = vweird.f32 %v4375_v26 }
 0x171   : > { %v4400_v20 = vpop.eup %3185  ;;  %v2107_v31 = vsub.f32 1.0, %v2106_v44  ;;  %v1112_v53 = vsub.f32 0.0, %v1048_v34  ;;  %v1080_v15 = vand.u32 2147483647, %v4403_v42  ;;  %vm2112_vm6 = vmor %vm2110_vm1, %vm2111_vm4  ;;  %vm1302_vm7 = vcmp.ge.f32.partialorder %v4303_v51, 0.0 }
 0x172   : > { %v3188_v17 = vpop.eup %3187  ;;  %3191 = vrcp.f32 %v4398_v56  ;;  %v4412_v54 = vadd.f32 1.0, %v4400_v20  ;;  %v2129_v52 = vand.u32 2147483647, %v4398_v56  ;;  %vm4421_vm8 = vcmp.eq.f32.partialorder %v1649_v38, 8.507059e+37  ;;  %v996_v48 = vpop.f32.mrf.mxu3 }
 0x173   : > { %v2108_v27 = vmul.f32 %v3182_v18, %v2107_v31  ;;  %v1641_v4 = vmul.f32 %v3188_v17, %v4375_v26  ;;  %v1652_v47 = vor.u32 1.1754944e-38, %v1651_v21  ;;  %v2131_v7 = vand.u32 2147483648, %v4398_v56 }
 0x174   : > { %3193 = vrcp.f32 %v4412_v54  ;;  %v4426_v59 = vadd.f32 %v916_v57, %v748_v43  ;;  %vm1646_vm9 = vweird.f32 %v3188_v17  ;;  %v1193_v29 = vmul.f32 1.442695, %v1112_v53 }
 0x175   : > { %v2109_v37 = vadd.f32 %v3182_v18, %v2108_v27  ;;  %v1642_v25 = vsub.f32 1.0, %v1641_v4  ;;  %v4428_v55 = vpop.eup %3189  ;;  %vm2125_vm10 = vweird.f32 %v4398_v56  ;;  %v828_v62 = vadd.f32 %v4439_v14, %v827_v28  ;;  %vm1647_vm12 = vmor %vm1645_vm5, %vm1646_vm9 }
 0x176   : > { %v4434_v19 = vadd.f32 1.0, %v4428_v55  ;;  %vm4444_vm11 = vcmp.eq.f32.partialorder %v2129_v52, 8.507059e+37  ;;  %v1144_v6 = vsub.f32 0.0, %v1080_v15  ;;  %v2132_v16 = vor.u32 1.1754944e-38, %v2131_v7 }
 0x177   : > { %v2113_v60 = vsel %vm2112_vm6, %v3182_v18, %v2109_v37  ;;  %v1643_v5 = vmul.f32 %v3188_v17, %v1642_v25  ;;  %v1664_v13 = vand.u32 2147483647, %v4412_v54  ;;  %v1049_v46 = vand.u32 2147483647, %v4426_v59  ;;  %v749_v18 = vpop.f32.mrf.mxu0  ;;  %v918_v27 = vpop.f32.mrf.mxu1 }
 0x178   : > { %v3192_v23 = vpop.eup %3191  ;;  %v2118_v40 = vsel %vm4392_vm2, %v2117_v50, %v2113_v60  ;;  %3195 = vrcp.f32 %v4434_v19  ;;  %vm1334_vm13 = vcmp.ge.f32.partialorder %v4333_v32, 0.0  ;;  %vm1660_vm14 = vweird.f32 %v4412_v54 }
 0x179   : > { %v2421_v58 = vmul.f32 %v4350_v2, %v2118_v40  ;;  %v1644_v33 = vadd.f32 %v3188_v17, %v1643_v5  ;;  %v2121_v63 = vmul.f32 %v3192_v23, %v4398_v56  ;;  %3197 = vpow2.f32 %v1193_v29 }
 0x17a   : > { %v3194_v61 = vpop.eup %3193  ;;  %v1666_v1 = vand.u32 2147483648, %v4412_v54  ;;  %vm2126_vm15 = vweird.f32 %v3192_v23  ;;  %v1257_v44 = vmul.f32 1.442695, %v1144_v6  ;;  %vm4463_vm0 = vcmp.eq.f32.partialorder %v1664_v13, 8.507059e+37 }
 0x17b   : > { %v2485_v2 = vsel %vm1333_vm3, %v2118_v40, %v2421_v58  ;;  %v1648_v9 = vsel %vm1647_vm12, %v3188_v17, %v1644_v33  ;;  %v2122_v0 = vsub.f32 1.0, %v2121_v63  ;;  %v1656_v26 = vmul.f32 %v3194_v61, %v4412_v54  ;;  %vm2127_vm1 = vmor %vm2125_vm10, %vm2126_vm15 }
 0x17c   : > { %2549 = vst [vmem:[%s3595_s30 + $0x170] sm:$0xff] %v2485_v2  ;;  %v1653_v12 = vsel %vm4421_vm8, %v1652_v47, %v1648_v9  ;;  %v1113_v49 = vsub.f32 0.0, %v1049_v46  ;;  %v4467_v8 = vadd.f32 %v996_v48, %v828_v62  ;;  %3199 = vpow2.f32 %v1257_v44  ;;  %v829_v47 = vpop.f32.mrf.mxu2 }
 0x17d   : > { %v2390_v39 = vmul.f32 %v4372_v45, %v1653_v12  ;;  %v2123_v10 = vmul.f32 %v3192_v23, %v2122_v0  ;;  %v1657_v24 = vsub.f32 1.0, %v1656_v26  ;;  %v750_v17 = vadd.f32 %v4439_v14, %v749_v18 }
 0x17e   : > { %v3196_v45 = vpop.eup %3195  ;;  %vm1661_vm2 = vweird.f32 %v3194_v61  ;;  %v1195_v21 = vmul.f32 1.442695, %v1113_v49  ;;  %v1081_v43 = vand.u32 2147483647, %v4467_v8  ;;  %v1667_v51 = vor.u32 1.1754944e-38, %v1666_v1 }
 0x17f   : > { %v2454_v31 = vsel %vm1302_vm7, %v1653_v12, %v2390_v39  ;;  %v2124_v34 = vadd.f32 %v3192_v23, %v2123_v10  ;;  %v1658_v38 = vmul.f32 %v3194_v61, %v1657_v24  ;;  %v4476_v4 = vpop.eup %3197  ;;  %v2136_v52 = vmul.f32 %v3196_v45, %v4434_v19  ;;  %vm1662_vm3 = vmor %vm1660_vm14, %vm1661_vm2  ;;  %v752_v46 = vpop.f32.mrf.mxu0 }
 0x180   : > { %2518 = vst [vmem:[%s3595_s30 + $0x78] sm:$0xff] %v2454_v31  ;;  %v4479_v53 = vadd.f32 %v918_v27, %v750_v17  ;;  %v4484_v56 = vadd.f32 1.0, %v4476_v4  ;;  %3201 = vpow2.f32 %v1195_v21  ;;  %v1145_v28 = vsub.f32 0.0, %v1081_v43  ;;  %v921_v21 = vpop.f32.mrf.mxu1 }
 0x181   : > { %v2128_v50 = vsel %vm2127_vm1, %v3192_v23, %v2124_v34  ;;  %v1659_v25 = vadd.f32 %v3194_v61, %v1658_v38  ;;  %v2137_v57 = vsub.f32 1.0, %v2136_v52  ;;  %v2144_v60 = vand.u32 2147483647, %v4434_v19 }
 0x182   : > { %v2133_v37 = vsel %vm4444_vm11, %v2132_v16, %v2128_v50  ;;  %v1050_v36 = vand.u32 2147483647, %v4479_v53  ;;  %v2146_v5 = vand.u32 2147483648, %v4434_v19  ;;  %3203 = vrcp.f32 %v4484_v56  ;;  %v4493_v29 = vpop.eup %3199 }
 0x183   : > { %v2422_v15 = vmul.f32 %v4386_v11, %v2133_v37  ;;  %v1663_v7 = vsel %vm1662_vm3, %v3194_v61, %v1659_v25  ;;  %v2138_v23 = vmul.f32 %v3196_v45, %v2137_v57  ;;  %vm2141_vm4 = vweird.f32 %v3196_v45 }
 0x184   : > { %v1668_v54 = vsel %vm4463_vm0, %v1667_v51, %v1663_v7  ;;  %v4502_v62 = vadd.f32 1.0, %v4493_v29  ;;  %v1259_v58 = vmul.f32 1.442695, %v1145_v28  ;;  %vm1303_vm5 = vcmp.ge.f32.partialorder %v4345_v41, 0.0  ;;  %v998_v41 = vpop.f32.mrf.mxu3  ;;  %v832_v48 = vpop.f32.mrf.mxu2 }
 0x185   : > { %v2486_v11 = vsel %vm1334_vm13, %v2133_v37, %v2422_v15  ;;  %v2391_v40 = vmul.f32 %v4400_v20, %v1668_v54  ;;  %v2139_v33 = vadd.f32 %v3196_v45, %v2138_v23  ;;  %vm2140_vm6 = vweird.f32 %v4434_v19 }
 0x186   : > { %2550 = vst [vmem:[%s3595_s30 + $0x178] sm:$0xff] %v2486_v11  ;;  %v1114_v32 = vsub.f32 0.0, %v1050_v36  ;;  %v4506_v63 = vpop.eup %3201  ;;  %vm2142_vm7 = vmor %vm2140_vm6, %vm2141_vm4  ;;  %vm2145_vm8 = vcmp.eq.f32.partialorder %v2144_v60, 8.507059e+37  ;;  %v2147_v6 = vor.u32 1.1754944e-38, %v2146_v5  ;;  %3205 = vrcp.f32 %v4502_v62 }
 0x187   : > { %v2455_v30 = vsel %vm1303_vm5, %v1668_v54, %v2391_v40  ;;  %v2143_v20 = vsel %vm2142_vm7, %v3196_v45, %v2139_v33  ;;  %v1679_v16 = vand.u32 2147483647, %v4484_v56  ;;  %v4512_v13 = vadd.f32 1.0, %v4506_v63 }
 0x188   : > { %2519 = vst [vmem:[%s3595_s30 + $0x80] sm:$0xff] %v2455_v30  ;;  %3207 = vpow2.f32 %v1259_v58  ;;  %v3204_v19 = vpop.eup %3203  ;;  %v2148_v61 = vsel %vm2145_vm8, %v2147_v6, %v2143_v20  ;;  %v1681_v2 = vand.u32 2147483648, %v4484_v56  ;;  %v1197_v9 = vmul.f32 1.442695, %v1114_v32 }
 0x189   : > { %v830_v0 = vadd.f32 %v4439_v14, %v829_v47  ;;  %v2423_v12 = vmul.f32 %v4428_v55, %v2148_v61  ;;  %v1671_v26 = vmul.f32 %v3204_v19, %v4484_v56  ;;  %vm1335_vm9 = vcmp.ge.f32.partialorder %v4359_v22, 0.0 }
 0x18a   : > { %v2159_v1 = vand.u32 2147483647, %v4502_v62  ;;  %v2161_v18 = vand.u32 2147483648, %v4502_v62  ;;  %3209 = vrcp.f32 %v4512_v13  ;;  %vm1304_vm10 = vcmp.ge.f32.partialorder %v4389_v3, 0.0 }
 0x18b   : > { %v2487_v39 = vsel %vm1335_vm9, %v2148_v61, %v2423_v12  ;;  %v1672_v10 = vsub.f32 1.0, %v1671_v26  ;;  %3211 = vpow2.f32 %v1197_v9  ;;  %v4522_v44 = vadd.f32 %v998_v41, %v830_v0 }
 0x18c   : > { %v3206_v24 = vpop.eup %3205  ;;  %2551 = vst [vmem:[%s3595_s30 + $0x180] sm:$0xff] %v2487_v39  ;;  %vm1675_vm11 = vweird.f32 %v4484_v56  ;;  %vm4527_vm12 = vcmp.eq.f32.partialorder %v1679_v16, 8.507059e+37  ;;  %v1682_v55 = vor.u32 1.1754944e-38, %v1681_v2  ;;  %vm2155_vm13 = vweird.f32 %v4502_v62  ;;  %v1001_v7 = vpop.f32.mrf.mxu3 }
 0x18d   : > { %v1673_v49 = vmul.f32 %v3204_v19, %v1672_v10  ;;  %vm1676_vm14 = vweird.f32 %v3204_v19  ;;  %v2151_v31 = vmul.f32 %v3206_v24, %v4502_v62  ;;  %v1082_v34 = vand.u32 2147483647, %v4522_v44  ;;  %v754_v56 = vpop.f32.mrf.mxu0  ;;  %v834_v16 = vpop.f32.mrf.mxu2 }
 0x18e   : > { %v4532_v35 = vpop.eup %3207  ;;  %vm4536_vm15 = vcmp.eq.f32.partialorder %v2159_v1, 8.507059e+37  ;;  %v753_v38 = vadd.f32 %v4439_v14, %v752_v46  ;;  %v833_v43 = vadd.f32 %v4439_v14, %v832_v48  ;;  %v2162_v51 = vor.u32 1.1754944e-38, %v2161_v18  ;;  %vm1677_vm0 = vmor %vm1675_vm11, %vm1676_vm14  ;;  %v923_v18 = vpop.f32.mrf.mxu1 }
 0x18f   : > { %v4541_v45 = vadd.f32 1.0, %v4532_v35  ;;  %v1674_v27 = vadd.f32 %v3204_v19, %v1673_v49  ;;  %v2152_v50 = vsub.f32 1.0, %v2151_v31  ;;  %v1146_v52 = vsub.f32 0.0, %v1082_v34 }
 0x190   : > { %v3210_v37 = vpop.eup %3209  ;;  %vm1336_vm1 = vcmp.ge.f32.partialorder %v4403_v42, 0.0  ;;  %vm1690_vm2 = vweird.f32 %v4512_v13  ;;  %v1694_v25 = vand.u32 2147483647, %v4512_v13  ;;  %v1696_v15 = vand.u32 2147483648, %v4512_v13 }
 0x191   : > { %3213 = vrcp.f32 %v4541_v45  ;;  %v4552_v57 = vpop.eup %3211  ;;  %v1678_v28 = vsel %vm1677_vm0, %v3204_v19, %v1674_v27  ;;  %v2153_v36 = vmul.f32 %v3206_v24, %v2152_v50  ;;  %vm2156_vm3 = vweird.f32 %v3206_v24 }
 0x192   : > { %v1686_v47 = vmul.f32 %v3210_v37, %v4512_v13  ;;  %v1683_v60 = vsel %vm4527_vm12, %v1682_v55, %v1678_v28  ;;  %v4558_v5 = vadd.f32 1.0, %v4552_v57  ;;  %v4560_v11 = vadd.f32 %v921_v21, %v753_v38  ;;  %vm2157_vm4 = vmor %vm2155_vm13, %vm2156_vm3 }
 0x193   : > { %v4562_v54 = vadd.f32 %v1001_v7, %v833_v43  ;;  %v2392_v23 = vmul.f32 %v4476_v4, %v1683_v60  ;;  %v2154_v40 = vadd.f32 %v3206_v24, %v2153_v36  ;;  %v1261_v33 = vmul.f32 1.442695, %v1146_v52 }
 0x194   : > { %v1687_v58 = vsub.f32 1.0, %v1686_v47  ;;  %vm1305_vm5 = vcmp.ge.f32.partialorder %v4426_v59, 0.0  ;;  %vm1691_vm6 = vweird.f32 %v3210_v37  ;;  %v2174_v32 = vand.u32 2147483647, %v4541_v45  ;;  %v1003_v38 = vpop.f32.mrf.mxu3 }
 0x195   : > { %3215 = vrcp.f32 %v4558_v5  ;;  %v755_v30 = vadd.f32 %v4439_v14, %v754_v56  ;;  %v2456_v6 = vsel %vm1304_vm10, %v1683_v60, %v2392_v23  ;;  %v2158_v4 = vsel %vm2157_vm4, %v3206_v24, %v2154_v40  ;;  %vm1692_vm9 = vmor %vm1690_vm2, %vm1691_vm6  ;;  %v837_v47 = vpop.f32.mrf.mxu2 }
 0x196   : > { %v1688_v20 = vmul.f32 %v3210_v37, %v1687_v58  ;;  %3217 = vpow2.f32 %v1261_v33  ;;  %2520 = vst [vmem:[%s3595_s30 + $0x88] sm:$0xff] %v2456_v6  ;;  %v2163_v62 = vsel %vm4536_vm15, %v2162_v51, %v2158_v4  ;;  %vm4576_vm7 = vcmp.eq.f32.partialorder %v1694_v25, 8.507059e+37 }
 0x197   : > { %v3214_v41 = vpop.eup %3213  ;;  %v1697_v19 = vor.u32 1.1754944e-38, %v1696_v15  ;;  %v1051_v61 = vand.u32 2147483647, %v4560_v11  ;;  %v2424_v3 = vmul.f32 %v4493_v29, %v2163_v62  ;;  %vm2170_vm8 = vweird.f32 %v4541_v45 }
 0x198   : > { %v1689_v2 = vadd.f32 %v3210_v37, %v1688_v20  ;;  %v2166_v9 = vmul.f32 %v3214_v41, %v4541_v45  ;;  %vm4587_vm10 = vcmp.eq.f32.partialorder %v2174_v32, 8.507059e+37  ;;  %v2176_v12 = vand.u32 2147483648, %v4541_v45 }
 0x199   : > { %v1115_v26 = vsub.f32 0.0, %v1051_v61  ;;  %v1083_v1 = vand.u32 2147483647, %v4562_v54  ;;  %v2488_v29 = vsel %vm1336_vm1, %v2163_v62, %v2424_v3  ;;  %v4595_v48 = vadd.f32 %v923_v18, %v755_v30 }
 0x19a   : > { %v1693_v39 = vsel %vm1692_vm9, %v3210_v37, %v1689_v2  ;;  %v2167_v10 = vsub.f32 1.0, %v2166_v9  ;;  %2552 = vst [vmem:[%s3595_s30 + $0x188] sm:$0xff] %v2488_v29  ;;  %vm2171_vm11 = vweird.f32 %v3214_v41  ;;  %v835_v17 = vadd.f32 %v4439_v14, %v834_v16 }
 0x19b   : > { %v3216_v24 = vpop.eup %3215  ;;  %v1698_v13 = vsel %vm4576_vm7, %v1697_v19, %v1693_v39  ;;  %v1199_v22 = vmul.f32 1.442695, %v1115_v26  ;;  %v1147_v55 = vsub.f32 0.0, %v1083_v1  ;;  %v1052_v27 = vand.u32 2147483647, %v4595_v48  ;;  %vm2172_vm12 = vmor %vm2170_vm8, %vm2171_vm11 }
 0x19c   : > { %v4600_v49 = vpop.eup %3217  ;;  %v2393_v31 = vmul.f32 %v4506_v63, %v1698_v13  ;;  %v2168_v34 = vmul.f32 %v3214_v41, %v2167_v10  ;;  %v1701_v42 = vmul.f32 %v3216_v24, %v4558_v5  ;;  %v2177_v52 = vor.u32 1.1754944e-38, %v2176_v12  ;;  %v757_v63 = vpop.f32.mrf.mxu0 }
 0x19d   : > { %v4606_v21 = vadd.f32 1.0, %v4600_v49  ;;  %3219 = vpow2.f32 %v1199_v22  ;;  %v1263_v43 = vmul.f32 1.442695, %v1147_v55  ;;  %vm1706_vm13 = vweird.f32 %v3216_v24  ;;  %v1006_v61 = vpop.f32.mrf.mxu3 }
 0x19e   : > { %v2457_v50 = vsel %vm1305_vm5, %v1698_v13, %v2393_v31  ;;  %v2169_v51 = vadd.f32 %v3214_v41, %v2168_v34  ;;  %v1702_v37 = vsub.f32 1.0, %v1701_v42  ;;  %v1709_v25 = vand.u32 2147483647, %v4558_v5 }
 0x19f   : > { %2521 = vst [vmem:[%s3595_s30 + $0x90] sm:$0xff] %v2457_v50  ;;  %v1711_v15 = vand.u32 2147483648, %v4558_v5  ;;  %3221 = vrcp.f32 %v4606_v21  ;;  %v1116_v59 = vsub.f32 0.0, %v1052_v27  ;;  %vm1337_vm14 = vcmp.ge.f32.partialorder %v4467_v8, 0.0 }
 0x1a0   : > { %v2173_v28 = vsel %vm2172_vm12, %v3214_v41, %v2169_v51  ;;  %v1703_v36 = vmul.f32 %v3216_v24, %v1702_v37  ;;  %3223 = vpow2.f32 %v1263_v43  ;;  %vm1705_vm15 = vweird.f32 %v4558_v5 }
 0x1a1   : > { %v2178_v7 = vsel %vm4587_vm10, %v2177_v52, %v2173_v28  ;;  %v4622_v45 = vadd.f32 %v1003_v38, %v835_v17  ;;  %v1201_v23 = vmul.f32 1.442695, %v1116_v59  ;;  %v758_v40 = vadd.f32 %v4439_v14, %v757_v63  ;;  %vm1707_vm0 = vmor %vm1705_vm15, %vm1706_vm13 }
 0x1a2   : > { %v2425_v56 = vmul.f32 %v4532_v35, %v2178_v7  ;;  %v1704_v60 = vadd.f32 %v3216_v24, %v1703_v36  ;;  %vm1710_vm1 = vcmp.eq.f32.partialorder %v1709_v25, 8.507059e+37  ;;  %v1712_v8 = vor.u32 1.1754944e-38, %v1711_v15  ;;  %v926_v35 = vpop.f32.mrf.mxu1 }
 0x1a3   : > { %v4626_v58 = vpop.eup %3219  ;;  %v1084_v33 = vand.u32 2147483647, %v4622_v45  ;;  %v838_v32 = vadd.f32 %v4439_v14, %v837_v47  ;;  %3225 = vpow2.f32 %v1201_v23  ;;  %v4635_v41 = vadd.f32 %v926_v35, %v758_v40 }
 0x1a4   : > { %v2489_v5 = vsel %vm1337_vm14, %v2178_v7, %v2425_v56  ;;  %v1708_v30 = vsel %vm1707_vm0, %v3216_v24, %v1704_v60  ;;  %v4632_v6 = vadd.f32 1.0, %v4626_v58  ;;  %vm1306_vm2 = vcmp.ge.f32.partialorder %v4479_v53, 0.0  ;;  %v839_v7 = vpop.f32.mrf.mxu2 }
 0x1a5   : > { %v3222_v4 = vpop.eup %3221  ;;  %2553 = vst [vmem:[%s3595_s30 + $0x190] sm:$0xff] %v2489_v5  ;;  %v1713_v20 = vsel %vm1710_vm1, %v1712_v8, %v1708_v30  ;;  %v1148_v16 = vsub.f32 0.0, %v1084_v33  ;;  %v2189_v3 = vand.u32 2147483647, %v4606_v21  ;;  %v2191_v2 = vand.u32 2147483648, %v4606_v21 }
 0x1a6   : > { %v4637_v62 = vpop.eup %3223  ;;  %v2394_v46 = vmul.f32 %v4552_v57, %v1713_v20  ;;  %v2181_v19 = vmul.f32 %v3222_v4, %v4606_v21  ;;  %3227 = vrcp.f32 %v4632_v6  ;;  %v4648_v0 = vadd.f32 %v1006_v61, %v838_v32  ;;  %v759_v57 = vpop.f32.mrf.mxu0 }
 0x1a7   : > { %v4646_v9 = vadd.f32 1.0, %v4637_v62  ;;  %v1265_v1 = vmul.f32 1.442695, %v1148_v16  ;;  %v1053_v53 = vand.u32 2147483647, %v4635_v41  ;;  %vm1338_vm3 = vcmp.ge.f32.partialorder %v4522_v44, 0.0 }
 0x1a8   : > { %v2458_v12 = vsel %vm1306_vm2, %v1713_v20, %v2394_v46  ;;  %v2182_v26 = vsub.f32 1.0, %v2181_v19  ;;  %v1724_v18 = vand.u32 2147483647, %v4632_v6  ;;  %vm2186_vm4 = vweird.f32 %v3222_v4 }
 0x1a9   : > { %2522 = vst [vmem:[%s3595_s30 + $0x98] sm:$0xff] %v2458_v12  ;;  %3229 = vrcp.f32 %v4646_v9  ;;  %v4655_v29 = vpop.eup %3225  ;;  %v1726_v10 = vand.u32 2147483648, %v4632_v6  ;;  %v1117_v13 = vsub.f32 0.0, %v1053_v53  ;;  %v1085_v22 = vand.u32 2147483647, %v4648_v0 }
 0x1aa   : > { %v2183_v39 = vmul.f32 %v3222_v4, %v2182_v26  ;;  %3231 = vpow2.f32 %v1265_v1  ;;  %v4659_v24 = vadd.f32 1.0, %v4655_v29  ;;  %v760_v55 = vadd.f32 %v4439_v14, %v759_v57  ;;  %v928_v52 = vpop.f32.mrf.mxu1 }
 0x1ab   : > { %vm2185_vm5 = vweird.f32 %v4606_v21  ;;  %vm2190_vm6 = vcmp.eq.f32.partialorder %v2189_v3, 8.507059e+37  ;;  %v2192_v42 = vor.u32 1.1754944e-38, %v2191_v2  ;;  %vm1720_vm8 = vweird.f32 %v4632_v6 }
 0x1ac   : > { %v3228_v31 = vpop.eup %3227  ;;  %v2184_v34 = vadd.f32 %v3222_v4, %v2183_v39  ;;  %vm2187_vm7 = vmor %vm2185_vm5, %vm2186_vm4  ;;  %vm4666_vm9 = vcmp.eq.f32.partialorder %v1724_v18, 8.507059e+37  ;;  %3233 = vrcp.f32 %v4659_v24  ;;  %v1727_v27 = vor.u32 1.1754944e-38, %v1726_v10 }
 0x1ad   : > { %v1716_v17 = vmul.f32 %v3228_v31, %v4632_v6  ;;  %v2204_v50 = vand.u32 2147483647, %v4646_v9  ;;  %v1203_v51 = vmul.f32 1.442695, %v1117_v13  ;;  %v1149_v25 = vsub.f32 0.0, %v1085_v22  ;;  %v1008_v6 = vpop.f32.mrf.mxu3 }
 0x1ae   : > { %v2188_v43 = vsel %vm2187_vm7, %v3222_v4, %v2184_v34  ;;  %v4672_v15 = vadd.f32 %v928_v52, %v760_v55  ;;  %vm1307_vm10 = vcmp.ge.f32.partialorder %v4560_v11, 0.0  ;;  %vm2200_vm11 = vweird.f32 %v4646_v9  ;;  %v762_v46 = vpop.f32.mrf.mxu0 }
 0x1af   : > { %v3230_v21 = vpop.eup %3229  ;;  %v2193_v37 = vsel %vm2190_vm6, %v2192_v42, %v2188_v43  ;;  %v1717_v63 = vsub.f32 1.0, %v1716_v17  ;;  %v2206_v47 = vand.u32 2147483648, %v4646_v9  ;;  %vm1721_vm12 = vweird.f32 %v3228_v31  ;;  %v842_v17 = vpop.f32.mrf.mxu2 }
 0x1b0   : > { %v4674_v28 = vpop.eup %3231  ;;  %v2426_v36 = vmul.f32 %v4600_v49, %v2193_v37  ;;  %v2196_v59 = vmul.f32 %v3230_v21, %v4646_v9  ;;  %3235 = vpow2.f32 %v1203_v51  ;;  %v1267_v49 = vmul.f32 1.442695, %v1149_v25  ;;  %vm1722_vm15 = vmor %vm1720_vm8, %vm1721_vm12 }
 0x1b1   : > { %v1718_v56 = vmul.f32 %v3228_v31, %v1717_v63  ;;  %v4682_v60 = vadd.f32 1.0, %v4674_v28  ;;  %v1054_v8 = vand.u32 2147483647, %v4672_v15  ;;  %vm1339_vm13 = vcmp.ge.f32.partialorder %v4562_v54, 0.0 }
 0x1b2   : > { %v2490_v23 = vsel %vm1338_vm3, %v2193_v37, %v2426_v36  ;;  %v2197_v40 = vsub.f32 1.0, %v2196_v59  ;;  %v3234_v33 = vpop.eup %3233  ;;  %vm4689_vm14 = vcmp.eq.f32.partialorder %v2204_v50, 8.507059e+37  ;;  %v1739_v30 = vand.u32 2147483647, %v4659_v24 }
 0x1b3   : > { %2554 = vst [vmem:[%s3595_s30 + $0x198] sm:$0xff] %v2490_v23  ;;  %v1719_v32 = vadd.f32 %v3228_v31, %v1718_v56  ;;  %3237 = vrcp.f32 %v4682_v60  ;;  %vm2201_vm0 = vweird.f32 %v3230_v21  ;;  %v2207_v35 = vor.u32 1.1754944e-38, %v2206_v47 }
 0x1b4   : > { %v2198_v44 = vmul.f32 %v3230_v21, %v2197_v40  ;;  %v1731_v4 = vmul.f32 %v3234_v33, %v4659_v24  ;;  %vm1735_vm1 = vweird.f32 %v4659_v24  ;;  %3239 = vpow2.f32 %v1267_v49  ;;  %vm2202_vm2 = vmor %vm2200_vm11, %vm2201_vm0 }
 0x1b5   : > { %v1723_v20 = vsel %vm1722_vm15, %v3228_v31, %v1719_v32  ;;  %v1118_v16 = vsub.f32 0.0, %v1054_v8  ;;  %v1741_v2 = vand.u32 2147483648, %v4659_v24  ;;  %vm1308_vm3 = vcmp.ge.f32.partialorder %v4595_v48, 0.0  ;;  %v1011_v8 = vpop.f32.mrf.mxu3 }
 0x1b6   : > { %v1728_v19 = vsel %vm4666_vm9, %v1727_v27, %v1723_v20  ;;  %v2199_v61 = vadd.f32 %v3230_v21, %v2198_v44  ;;  %v1732_v3 = vsub.f32 1.0, %v1731_v4  ;;  %v4702_v12 = vpop.eup %3235  ;;  %vm4709_vm4 = vcmp.eq.f32.partialorder %v1739_v30, 8.507059e+37  ;;  %v764_v56 = vpop.f32.mrf.mxu0 }
 0x1b7   : > { %v2395_v26 = vmul.f32 %v4626_v58, %v1728_v19  ;;  %v1205_v53 = vmul.f32 1.442695, %v1118_v16  ;;  %v840_v57 = vadd.f32 %v4439_v14, %v839_v7  ;;  %vm1736_vm5 = vweird.f32 %v3234_v33 }
 0x1b8   : > { %v2203_v18 = vsel %vm2202_vm2, %v3230_v21, %v2199_v61  ;;  %v1733_v39 = vmul.f32 %v3234_v33, %v1732_v3  ;;  %v4715_v10 = vadd.f32 1.0, %v4702_v12  ;;  %v1742_v34 = vor.u32 1.1754944e-38, %v1741_v2  ;;  %vm1737_vm6 = vmor %vm1735_vm1, %vm1736_vm5  ;;  %v844_v3 = vpop.f32.mrf.mxu2 }
 0x1b9   : > { %v3238_v58 = vpop.eup %3237  ;;  %v2459_v9 = vsel %vm1307_vm10, %v1728_v19, %v2395_v26  ;;  %v2208_v13 = vsel %vm4689_vm14, %v2207_v35, %v2203_v18  ;;  %3241 = vpow2.f32 %v1205_v53  ;;  %v4721_v22 = vadd.f32 %v1008_v6, %v840_v57 }
 0x1ba   : > { %2523 = vst [vmem:[%s3595_s30 + $0xa0] sm:$0xff] %v2459_v9  ;;  %v2427_v55 = vmul.f32 %v4637_v62, %v2208_v13  ;;  %v1734_v31 = vadd.f32 %v3234_v33, %v1733_v39  ;;  %v2211_v42 = vmul.f32 %v3238_v58, %v4682_v60  ;;  %v4726_v38 = vpop.eup %3239  ;;  %v2219_v11 = vand.u32 2147483647, %v4682_v60  ;;  %v931_v62 = vpop.f32.mrf.mxu1 }
 0x1bb   : > { %v2221_v43 = vand.u32 2147483648, %v4682_v60  ;;  %3243 = vrcp.f32 %v4715_v10  ;;  %v763_v27 = vadd.f32 %v4439_v14, %v762_v46  ;;  %v4737_v21 = vadd.f32 1.0, %v4726_v38 }
 0x1bc   : > { %v2491_v50 = vsel %vm1339_vm13, %v2208_v13, %v2427_v55  ;;  %v1738_v51 = vsel %vm1737_vm6, %v3234_v33, %v1734_v31  ;;  %v2212_v52 = vsub.f32 1.0, %v2211_v42  ;;  %vm1340_vm7 = vcmp.ge.f32.partialorder %v4622_v45, 0.0 }
 0x1bd   : > { %2555 = vst [vmem:[%s3595_s30 + $0x1a0] sm:$0xff] %v2491_v50  ;;  %v1743_v24 = vsel %vm4709_vm4, %v1742_v34, %v1738_v51  ;;  %vm2215_vm8 = vweird.f32 %v4682_v60  ;;  %v1086_v37 = vand.u32 2147483647, %v4721_v22  ;;  %vm2216_vm9 = vweird.f32 %v3238_v58 }
 0x1be   : > { %v2396_v63 = vmul.f32 %v4655_v29, %v1743_v24  ;;  %v2213_v54 = vmul.f32 %v3238_v58, %v2212_v52  ;;  %3245 = vrcp.f32 %v4737_v21  ;;  %vm4749_vm10 = vcmp.eq.f32.partialorder %v2219_v11, 8.507059e+37  ;;  %vm2217_vm11 = vmor %vm2215_vm8, %vm2216_vm9  ;;  %v1013_v52 = vpop.f32.mrf.mxu3 }
 0x1bf   : > { %v4747_v25 = vpop.eup %3241  ;;  %v2222_v59 = vor.u32 1.1754944e-38, %v2221_v43  ;;  %v1754_v47 = vand.u32 2147483647, %v4715_v10  ;;  %v1150_v7 = vsub.f32 0.0, %v1086_v37  ;;  %v4759_v49 = vadd.f32 %v931_v62, %v763_v27  ;;  %v767_v43 = vpop.f32.mrf.mxu0 }
 0x1c0   : > { %v2460_v23 = vsel %vm1308_vm3, %v1743_v24, %v2396_v63  ;;  %v2214_v29 = vadd.f32 %v3238_v58, %v2213_v54  ;;  %v4757_v40 = vadd.f32 1.0, %v4747_v25  ;;  %v1756_v32 = vand.u32 2147483648, %v4715_v10 }
 0x1c1   : > { %v3244_v33 = vpop.eup %3243  ;;  %2524 = vst [vmem:[%s3595_s30 + $0xa8] sm:$0xff] %v2460_v23  ;;  %v2234_v5 = vand.u32 2147483647, %v4737_v21  ;;  %v1269_v30 = vmul.f32 1.442695, %v1150_v7  ;;  %vm1750_vm12 = vweird.f32 %v4715_v10  ;;  %vm4772_vm13 = vcmp.eq.f32.partialorder %v1754_v47, 8.507059e+37 }
 0x1c2   : > { %v2218_v48 = vsel %vm2217_vm11, %v3238_v58, %v2214_v29  ;;  %v1746_v44 = vmul.f32 %v3244_v33, %v4715_v10  ;;  %3247 = vrcp.f32 %v4757_v40  ;;  %v2236_v60 = vand.u32 2147483648, %v4737_v21  ;;  %v933_v1 = vpop.f32.mrf.mxu1 }
 0x1c3   : > { %v2223_v35 = vsel %vm4749_vm10, %v2222_v59, %v2218_v48  ;;  %v843_v20 = vadd.f32 %v4439_v14, %v842_v17  ;;  %3249 = vpow2.f32 %v1269_v30  ;;  %v1055_v61 = vand.u32 2147483647, %v4759_v49 }
 0x1c4   : > { %v3246_v16 = vpop.eup %3245  ;;  %v2428_v46 = vmul.f32 %v4674_v28, %v2223_v35  ;;  %v1747_v19 = vsub.f32 1.0, %v1746_v44  ;;  %vm1309_vm14 = vcmp.ge.f32.partialorder %v4635_v41, 0.0  ;;  %v1757_v2 = vor.u32 1.1754944e-38, %v1756_v32 }
 0x1c5   : > { %v2226_v6 = vmul.f32 %v3246_v16, %v4737_v21  ;;  %vm2230_vm15 = vweird.f32 %v4737_v21  ;;  %vm4783_vm0 = vcmp.eq.f32.partialorder %v2234_v5, 8.507059e+37  ;;  %vm1751_vm1 = vweird.f32 %v3244_v33  ;;  %v847_v21 = vpop.f32.mrf.mxu2 }
 0x1c6   : > { %v2492_v28 = vsel %vm1340_vm7, %v2223_v35, %v2428_v46  ;;  %v1748_v53 = vmul.f32 %v3244_v33, %v1747_v19  ;;  %v1119_v57 = vsub.f32 0.0, %v1055_v61  ;;  %v2237_v39 = vor.u32 1.1754944e-38, %v2236_v60  ;;  %vm1752_vm2 = vmor %vm1750_vm12, %vm1751_vm1 }
 0x1c7   : > { %2556 = vst [vmem:[%s3595_s30 + $0x1a8] sm:$0xff] %v2492_v28  ;;  %v2227_v18 = vsub.f32 1.0, %v2226_v6  ;;  %v4790_v58 = vadd.f32 %v1011_v8, %v843_v20  ;;  %v765_v9 = vadd.f32 %v4439_v14, %v764_v56  ;;  %v1769_v31 = vand.u32 2147483647, %v4757_v40 }
 0x1c8   : > { %v3248_v13 = vpop.eup %3247  ;;  %v1749_v55 = vadd.f32 %v3244_v33, %v1748_v53  ;;  %v1771_v34 = vand.u32 2147483648, %v4757_v40  ;;  %v1207_v42 = vmul.f32 1.442695, %v1119_v57  ;;  %vm2231_vm3 = vweird.f32 %v3246_v16 }
 0x1c9   : > { %v2228_v45 = vmul.f32 %v3246_v16, %v2227_v18  ;;  %v1761_v17 = vmul.f32 %v3248_v13, %v4757_v40  ;;  %v1087_v11 = vand.u32 2147483647, %v4790_v58  ;;  %v4799_v27 = vpop.eup %3249  ;;  %v4801_v50 = vadd.f32 %v933_v1, %v765_v9  ;;  %vm2232_vm4 = vmor %vm2230_vm15, %vm2231_vm3 }
 0x1ca   : > { %v1753_v62 = vsel %vm1752_vm2, %v3244_v33, %v1749_v55  ;;  %3251 = vpow2.f32 %v1207_v42  ;;  %v845_v51 = vadd.f32 %v4439_v14, %v844_v3  ;;  %v4807_v63 = vadd.f32 1.0, %v4799_v27  ;;  %v936_v5 = vpop.f32.mrf.mxu1  ;;  %v1016_v3 = vpop.f32.mrf.mxu3 }
 0x1cb   : > { %v1758_v10 = vsel %vm4772_vm13, %v1757_v2, %v1753_v62  ;;  %v2229_v24 = vadd.f32 %v3246_v16, %v2228_v45  ;;  %v1762_v37 = vsub.f32 1.0, %v1761_v17  ;;  %v1151_v36 = vsub.f32 0.0, %v1087_v11 }
 0x1cc   : > { %v2397_v54 = vmul.f32 %v4702_v12, %v1758_v10  ;;  %v1056_v59 = vand.u32 2147483647, %v4801_v50  ;;  %v768_v47 = vadd.f32 %v4439_v14, %v767_v43  ;;  %vm1766_vm5 = vweird.f32 %v3248_v13 }
 0x1cd   : > { %v2233_v7 = vsel %vm2232_vm4, %v3246_v16, %v2229_v24  ;;  %v1763_v56 = vmul.f32 %v3248_v13, %v1762_v37  ;;  %3253 = vrcp.f32 %v4807_v63  ;;  %vm1341_vm6 = vcmp.ge.f32.partialorder %v4648_v0, 0.0  ;;  %v849_v55 = vpop.f32.mrf.mxu2 }
 0x1ce   : > { %v2461_v23 = vsel %vm1309_vm14, %v1758_v10, %v2397_v54  ;;  %v2238_v12 = vsel %vm4783_vm0, %v2237_v39, %v2233_v7  ;;  %vm1765_vm7 = vweird.f32 %v4757_v40  ;;  %v1271_v33 = vmul.f32 1.442695, %v1151_v36 }
 0x1cf   : > { %2525 = vst [vmem:[%s3595_s30 + $0xb0] sm:$0xff] %v2461_v23  ;;  %v2429_v29 = vmul.f32 %v4726_v38, %v2238_v12  ;;  %v1764_v8 = vadd.f32 %v3248_v13, %v1763_v56  ;;  %v1120_v32 = vsub.f32 0.0, %v1056_v59  ;;  %vm1767_vm8 = vmor %vm1765_vm7, %vm1766_vm5  ;;  %vm1770_vm9 = vcmp.eq.f32.partialorder %v1769_v31, 8.507059e+37 }
 0x1d0   : > { %v4824_v30 = vpop.eup %3251  ;;  %v1772_v41 = vor.u32 1.1754944e-38, %v1771_v34  ;;  %v4826_v48 = vadd.f32 %v1013_v52, %v845_v51  ;;  %v4828_v44 = vadd.f32 %v936_v5, %v768_v47  ;;  %3255 = vpow2.f32 %v1271_v33 }
 0x1d1   : > { %v2493_v40 = vsel %vm1341_vm6, %v2238_v12, %v2429_v29  ;;  %v1768_v35 = vsel %vm1767_vm8, %v3248_v13, %v1764_v8  ;;  %v4833_v4 = vadd.f32 1.0, %v4824_v30  ;;  %v1209_v60 = vmul.f32 1.442695, %v1120_v32  ;;  %v769_v13 = vpop.f32.mrf.mxu0 }
 0x1d2   : > { %2557 = vst [vmem:[%s3595_s30 + $0x1b0] sm:$0xff] %v2493_v40  ;;  %v1773_v38 = vsel %vm1770_vm9, %v1772_v41, %v1768_v35  ;;  %v1088_v20 = vand.u32 2147483647, %v4826_v48  ;;  %v848_v16 = vadd.f32 %v4439_v14, %v847_v21  ;;  %vm1310_vm10 = vcmp.ge.f32.partialorder %v4672_v15, 0.0  ;;  %v938_v56 = vpop.f32.mrf.mxu1  ;;  %v1018_v23 = vpop.f32.mrf.mxu3 }
 0x1d3   : > { %v3254_v46 = vpop.eup %3253  ;;  %v2398_v19 = vmul.f32 %v4747_v25, %v1773_v38  ;;  %3257 = vrcp.f32 %v4833_v4  ;;  %v2249_v61 = vand.u32 2147483647, %v4807_v63  ;;  %v2251_v6 = vand.u32 2147483648, %v4807_v63 }
 0x1d4   : > { %v2241_v0 = vmul.f32 %v3254_v46, %v4807_v63  ;;  %3259 = vpow2.f32 %v1209_v60  ;;  %v1152_v26 = vsub.f32 0.0, %v1088_v20  ;;  %v1057_v1 = vand.u32 2147483647, %v4828_v44 }
 0x1d5   : > { %v2462_v2 = vsel %vm1310_vm10, %v1773_v38, %v2398_v19  ;;  %v4846_v53 = vadd.f32 %v1016_v3, %v848_v16  ;;  %vm1342_vm11 = vcmp.ge.f32.partialorder %v4721_v22, 0.0  ;;  %vm2245_vm12 = vweird.f32 %v4807_v63 }
 0x1d6   : > { %2526 = vst [vmem:[%s3595_s30 + $0xb8] sm:$0xff] %v2462_v2  ;;  %v2242_v28 = vsub.f32 1.0, %v2241_v0  ;;  %v4848_v25 = vpop.eup %3255  ;;  %v1273_v15 = vmul.f32 1.442695, %v1152_v26  ;;  %v1121_v57 = vsub.f32 0.0, %v1057_v1  ;;  %vm2246_vm13 = vweird.f32 %v3254_v46 }
 0x1d7   : > { %v4853_v39 = vadd.f32 1.0, %v4848_v25  ;;  %v1089_v9 = vand.u32 2147483647, %v4846_v53  ;;  %vm4856_vm14 = vcmp.eq.f32.partialorder %v2249_v61, 8.507059e+37  ;;  %v2252_v42 = vor.u32 1.1754944e-38, %v2251_v6  ;;  %vm2247_vm15 = vmor %vm2245_vm12, %vm2246_vm13 }
 0x1d8   : > { %v2243_v18 = vmul.f32 %v3254_v46, %v2242_v28  ;;  %3261 = vpow2.f32 %v1273_v15  ;;  %v1211_v45 = vmul.f32 1.442695, %v1121_v57  ;;  %v1784_v62 = vand.u32 2147483647, %v4833_v4 }
 0x1d9   : > { %v3258_v31 = vpop.eup %3257  ;;  %3263 = vrcp.f32 %v4853_v39  ;;  %v1786_v51 = vand.u32 2147483648, %v4833_v4  ;;  %v770_v10 = vadd.f32 %v4439_v14, %v769_v13  ;;  %v850_v24 = vadd.f32 %v4439_v14, %v849_v55  ;;  %v772_v26 = vpop.f32.mrf.mxu0 }
 0x1da   : > { %v4860_v17 = vpop.eup %3259  ;;  %v2244_v11 = vadd.f32 %v3254_v46, %v2243_v18  ;;  %v1776_v43 = vmul.f32 %v3258_v31, %v4833_v4  ;;  %3265 = vpow2.f32 %v1211_v45  ;;  %v1153_v36 = vsub.f32 0.0, %v1089_v9 }
 0x1db   : > { %v4870_v52 = vadd.f32 1.0, %v4860_v17  ;;  %vm1311_vm0 = vcmp.ge.f32.partialorder %v4759_v49, 0.0  ;;  %vm1780_vm1 = vweird.f32 %v4833_v4  ;;  %v2264_v63 = vand.u32 2147483647, %v4853_v39  ;;  %v852_v49 = vpop.f32.mrf.mxu2 }
 0x1dc   : > { %v2248_v37 = vsel %vm2247_vm15, %v3254_v46, %v2244_v11  ;;  %v1777_v54 = vsub.f32 1.0, %v1776_v43  ;;  %vm1781_vm2 = vweird.f32 %v3258_v31  ;;  %vm4881_vm3 = vcmp.eq.f32.partialorder %v1784_v62, 8.507059e+37 }
 0x1dd   : > { %v2253_v59 = vsel %vm4856_vm14, %v2252_v42, %v2248_v37  ;;  %3267 = vrcp.f32 %v4870_v52  ;;  %v1787_v21 = vor.u32 1.1754944e-38, %v1786_v51  ;;  %v1275_v29 = vmul.f32 1.442695, %v1153_v36  ;;  %vm1782_vm4 = vmor %vm1780_vm1, %vm1781_vm2 }
 0x1de   : > { %v2430_v47 = vmul.f32 %v4799_v27, %v2253_v59  ;;  %v1778_v7 = vmul.f32 %v3258_v31, %v1777_v54  ;;  %v4885_v12 = vpop.eup %3261  ;;  %v4887_v8 = vadd.f32 %v938_v56, %v770_v10  ;;  %v4889_v33 = vadd.f32 %v1018_v23, %v850_v24 }
 0x1df   : > { %v3264_v32 = vpop.eup %3263  ;;  %v2266_v41 = vand.u32 2147483648, %v4853_v39  ;;  %v4895_v40 = vadd.f32 1.0, %v4885_v12  ;;  %vm2260_vm5 = vweird.f32 %v4853_v39  ;;  %vm4903_vm6 = vcmp.eq.f32.partialorder %v2264_v63, 8.507059e+37 }
 0x1e0   : > { %v2494_v27 = vsel %vm1342_vm11, %v2253_v59, %v2430_v47  ;;  %v1779_v5 = vadd.f32 %v3258_v31, %v1778_v7  ;;  %v2256_v35 = vmul.f32 %v3264_v32, %v4853_v39  ;;  %3269 = vpow2.f32 %v1275_v29  ;;  %v4907_v22 = vpop.eup %3265  ;;  %v941_v7 = vpop.f32.mrf.mxu1 }
 0x1e1   : > { %2558 = vst [vmem:[%s3595_s30 + $0x1b8] sm:$0xff] %v2494_v27  ;;  %v1799_v20 = vand.u32 2147483647, %v4870_v52  ;;  %v1801_v16 = vand.u32 2147483648, %v4870_v52  ;;  %3271 = vrcp.f32 %v4895_v40  ;;  %v4915_v0 = vadd.f32 1.0, %v4907_v22  ;;  %v774_v38 = vpop.f32.mrf.mxu0 }
 0x1e2   : > { %v1783_v60 = vsel %vm1782_vm4, %v3258_v31, %v1779_v5  ;;  %v2257_v19 = vsub.f32 1.0, %v2256_v35  ;;  %v1058_v61 = vand.u32 2147483647, %v4887_v8  ;;  %vm1343_vm7 = vcmp.ge.f32.partialorder %v4790_v58, 0.0  ;;  %v4975_v58 = vld [vmem:[%s5188_s2] ss:$0 sm:$0xff] }
 0x1e3   : > { %v3268_v4 = vpop.eup %3267  ;;  %v1788_v46 = vsel %vm4881_vm3, %v1787_v21, %v1783_v60  ;;  %v2267_v2 = vor.u32 1.1754944e-38, %v2266_v41  ;;  %vm1795_vm8 = vweird.f32 %v4870_v52  ;;  %vm2261_vm9 = vweird.f32 %v3264_v32 }
 0x1e4   : > { %v2399_v3 = vmul.f32 %v4824_v30, %v1788_v46  ;;  %v1791_v6 = vmul.f32 %v3268_v4, %v4870_v52  ;;  %v2258_v1 = vmul.f32 %v3264_v32, %v2257_v19  ;;  %v2279_v28 = vand.u32 2147483647, %v4895_v40  ;;  %vm2262_vm14 = vmor %vm2260_vm5, %vm2261_vm9 }
 0x1e5   : > { %3273 = vrcp.f32 %v4915_v0  ;;  %vm4926_vm10 = vcmp.eq.f32.partialorder %v1799_v20, 8.507059e+37  ;;  %v1802_v18 = vor.u32 1.1754944e-38, %v1801_v16  ;;  %vm1312_vm11 = vcmp.ge.f32.partialorder %v4801_v50, 0.0 }
 0x1e6   : > { %v2463_v15 = vsel %vm1311_vm0, %v1788_v46, %v2399_v3  ;;  %v1792_v57 = vsub.f32 1.0, %v1791_v6  ;;  %v4930_v9 = vpop.eup %3269  ;;  %v2259_v13 = vadd.f32 %v3264_v32, %v2258_v1  ;;  %vm1796_vm12 = vweird.f32 %v3268_v4  ;;  %v854_v1 = vpop.f32.mrf.mxu2 }
 0x1e7   : > { %2527 = vst [vmem:[%s3595_s30 + $0xc0] sm:$0xff] %v2463_v15  ;;  %vm2275_vm13 = vweird.f32 %v4895_v40  ;;  %v2281_v55 = vand.u32 2147483648, %v4895_v40  ;;  %v1122_v31 = vsub.f32 0.0, %v1058_v61  ;;  %v3272_v34 = vpop.eup %3271  ;;  %v1814_v45 = vand.u32 2147483647, %v4915_v0  ;;  %vm1797_vm0 = vmor %vm1795_vm8, %vm1796_vm12 }
 0x1e8   : > { %v1793_v42 = vmul.f32 %v3268_v4, %v1792_v57  ;;  %v1816_v11 = vand.u32 2147483648, %v4915_v0  ;;  %v4942_v43 = vadd.f32 1.0, %v4930_v9  ;;  %v2263_v62 = vsel %vm2262_vm14, %v3264_v32, %v2259_v13  ;;  %v1021_v32 = vpop.f32.mrf.mxu3 }
 0x1e9   : > { %v2271_v51 = vmul.f32 %v3272_v34, %v4895_v40  ;;  %vm4945_vm15 = vcmp.eq.f32.partialorder %v2279_v28, 8.507059e+37  ;;  %v1213_v24 = vmul.f32 1.442695, %v1122_v31  ;;  %v2268_v39 = vsel %vm4903_vm6, %v2267_v2, %v2263_v62 }
 0x1ea   : > { %v1794_v37 = vadd.f32 %v3268_v4, %v1793_v42  ;;  %3275 = vrcp.f32 %v4942_v43  ;;  %v1090_v54 = vand.u32 2147483647, %v4889_v33  ;;  %v2431_v59 = vmul.f32 %v4848_v25, %v2268_v39  ;;  %v943_v42 = vpop.f32.mrf.mxu1 }
 0x1eb   : > { %v3274_v36 = vpop.eup %3273  ;;  %v2272_v63 = vsub.f32 1.0, %v2271_v51  ;;  %v2282_v47 = vor.u32 1.1754944e-38, %v2281_v55  ;;  %vm1810_vm1 = vweird.f32 %v4915_v0  ;;  %vm1344_vm2 = vcmp.ge.f32.partialorder %v4826_v48, 0.0 }
 0x1ec   : > { %v1798_v14 = vsel %vm1797_vm0, %v3268_v4, %v1794_v37  ;;  %v1806_v56 = vmul.f32 %v3274_v36, %v4915_v0  ;;  %vm4960_vm3 = vcmp.eq.f32.partialorder %v1814_v45, 8.507059e+37  ;;  %v1817_v25 = vor.u32 1.1754944e-38, %v1816_v11 }
 0x1ed   : > { %3277 = vpow2.f32 %v1213_v24  ;;  %v2495_v52 = vsel %vm1343_vm7, %v2268_v39, %v2431_v59  ;;  %v1803_v21 = vsel %vm4926_vm10, %v1802_v18, %v1798_v14  ;;  %v2273_v29 = vmul.f32 %v3272_v34, %v2272_v63 }
 0x1ee   : > { %vm2276_vm4 = vweird.f32 %v3272_v34  ;;  %2559 = vst [vmem:[%s3595_s30 + $0x1c0] sm:$0xff] %v2495_v52  ;;  %v2400_v27 = vmul.f32 %v4860_v17, %v1803_v21  ;;  %v1807_v5 = vsub.f32 1.0, %v1806_v56  ;;  %v2294_v41 = vand.u32 2147483647, %v4942_v43  ;;  %v857_v52 = vpop.f32.mrf.mxu2 }
 0x1ef   : > { %v1154_v35 = vsub.f32 0.0, %v1090_v54  ;;  %v2274_v60 = vadd.f32 %v3272_v34, %v2273_v29  ;;  %v2296_v20 = vand.u32 2147483648, %v4942_v43  ;;  %v773_v16 = vadd.f32 %v4975_v58, %v772_v26  ;;  %vm2277_vm5 = vmor %vm2275_vm13, %vm2276_vm4 }
 0x1f0   : > { %v853_v4 = vadd.f32 %v4975_v58, %v852_v49  ;;  %v3276_v46 = vpop.eup %3275  ;;  %v2464_v17 = vsel %vm1312_vm11, %v1803_v21, %v2400_v27  ;;  %v1808_v19 = vmul.f32 %v3274_v36, %v1807_v5  ;;  %vm1811_vm6 = vweird.f32 %v3274_v36  ;;  %v1023_v10 = vpop.f32.mrf.mxu3 }
 0x1f1   : > { %v1277_v61 = vmul.f32 1.442695, %v1154_v35  ;;  %2528 = vst [vmem:[%s3595_s30 + $0xc8] sm:$0xff] %v2464_v17  ;;  %v2278_v3 = vsel %vm2277_vm5, %v3272_v34, %v2274_v60  ;;  %v2286_v2 = vmul.f32 %v3276_v46, %v4942_v43  ;;  %v4986_v6 = vadd.f32 %v941_v7, %v773_v16  ;;  %vm1812_vm7 = vmor %vm1810_vm1, %vm1811_vm6 }
 0x1f2   : > { %v775_v26 = vadd.f32 %v4975_v58, %v774_v38  ;;  %v2283_v50 = vsel %vm4945_vm15, %v2282_v47, %v2278_v3  ;;  %v1809_v15 = vadd.f32 %v3274_v36, %v1808_v19  ;;  %v4993_v40 = vadd.f32 %v1021_v32, %v853_v4  ;;  %v946_v35 = vpop.f32.mrf.mxu1 }
 0x1f3   : > { %v4989_v28 = vpop.eup %3277  ;;  %3279 = vpow2.f32 %v1277_v61  ;;  %v2432_v57 = vmul.f32 %v4885_v12, %v2283_v50  ;;  %v2287_v30 = vsub.f32 1.0, %v2286_v2  ;;  %v1059_v13 = vand.u32 2147483647, %v4986_v6 }
 0x1f4   : > { %v4999_v18 = vadd.f32 1.0, %v4989_v28  ;;  %v1813_v55 = vsel %vm1812_vm7, %v3274_v36, %v1809_v15  ;;  %vm2291_vm8 = vweird.f32 %v3276_v46  ;;  %v1091_v31 = vand.u32 2147483647, %v4993_v40 }
 0x1f5   : > { %v855_v49 = vadd.f32 %v4975_v58, %v854_v1  ;;  %v2496_v34 = vsel %vm1344_vm2, %v2283_v50, %v2432_v57  ;;  %v1818_v12 = vsel %vm4960_vm3, %v1817_v25, %v1813_v55  ;;  %v2288_v0 = vmul.f32 %v3276_v46, %v2287_v30 }
 0x1f6   : > { %3281 = vrcp.f32 %v4999_v18  ;;  %2560 = vst [vmem:[%s3595_s30 + $0x1c8] sm:$0xff] %v2496_v34  ;;  %vm1313_vm9 = vcmp.ge.f32.partialorder %v4828_v44, 0.0  ;;  %v2401_v45 = vmul.f32 %v4907_v22, %v1818_v12  ;;  %vm2290_vm10 = vweird.f32 %v4942_v43  ;;  %v777_v44 = vpop.f32.mrf.mxu0 }
 0x1f7   : > { %v2289_v11 = vadd.f32 %v3276_v46, %v2288_v0  ;;  %v1123_v62 = vsub.f32 0.0, %v1059_v13  ;;  %v1155_v51 = vsub.f32 0.0, %v1091_v31  ;;  %v5013_v48 = vadd.f32 %v943_v42, %v775_v26  ;;  %vm2292_vm11 = vmor %vm2290_vm10, %vm2291_vm8 }
 0x1f8   : > { %v2465_v39 = vsel %vm1313_vm9, %v1818_v12, %v2401_v45  ;;  %vm2295_vm12 = vcmp.eq.f32.partialorder %v2294_v41, 8.507059e+37  ;;  %v2297_v37 = vor.u32 1.1754944e-38, %v2296_v20  ;;  %v5018_v54 = vadd.f32 %v1023_v10, %v855_v49  ;;  %v1026_v34 = vpop.f32.mrf.mxu3  ;;  %v859_v12 = vpop.f32.mrf.mxu2 }
 0x1f9   : > { %v5015_v24 = vpop.eup %3279  ;;  %2529 = vst [vmem:[%s3595_s30 + $0xd0] sm:$0xff] %v2465_v39  ;;  %v2293_v22 = vsel %vm2292_vm11, %v3276_v46, %v2289_v11  ;;  %v1215_v36 = vmul.f32 1.442695, %v1123_v62  ;;  %v1279_v59 = vmul.f32 1.442695, %v1155_v51  ;;  %vm1345_vm13 = vcmp.ge.f32.partialorder %v4846_v53, 0.0 }
 0x1fa   : > { %v5022_v43 = vadd.f32 1.0, %v5015_v24  ;;  %v2298_v63 = vsel %vm2295_vm12, %v2297_v37, %v2293_v22  ;;  %v1060_v47 = vand.u32 2147483647, %v5013_v48  ;;  %v1092_v7 = vand.u32 2147483647, %v5018_v54 }
 0x1fb   : > { %v2433_v56 = vmul.f32 %v4930_v9, %v2298_v63  ;;  %v1829_v25 = vand.u32 2147483647, %v4999_v18  ;;  %v1831_v29 = vand.u32 2147483648, %v4999_v18  ;;  %v778_v9 = vadd.f32 %v4975_v58, %v777_v44 }
 0x1fc   : > { %v3282_v14 = vpop.eup %3281  ;;  %3283 = vrcp.f32 %v5022_v43  ;;  %v1124_v32 = vsub.f32 0.0, %v1060_v47  ;;  %v1156_v5 = vsub.f32 0.0, %v1092_v7  ;;  %vm1314_vm14 = vcmp.ge.f32.partialorder %v4887_v8, 0.0  ;;  %v948_v8 = vpop.f32.mrf.mxu1 }
 0x1fd   : > { %v1821_v23 = vmul.f32 %v3282_v14, %v4999_v18  ;;  %3285 = vpow2.f32 %v1215_v36  ;;  %v2497_v21 = vsel %vm1345_vm13, %v2298_v63, %v2433_v56  ;;  %vm1826_vm15 = vweird.f32 %v3282_v14 }
 0x1fe   : > { %3287 = vpow2.f32 %v1279_v59  ;;  %2561 = vst [vmem:[%s3595_s30 + $0x1d0] sm:$0xff] %v2497_v21  ;;  %v1217_v41 = vmul.f32 1.442695, %v1124_v32  ;;  %v1281_v38 = vmul.f32 1.442695, %v1156_v5  ;;  %vm1825_vm0 = vweird.f32 %v4999_v18  ;;  %v779_v61 = vpop.f32.mrf.mxu0 }
 0x1ff   : > { %v1822_v27 = vsub.f32 1.0, %v1821_v23  ;;  %vm5036_vm1 = vcmp.eq.f32.partialorder %v1829_v25, 8.507059e+37  ;;  %v1832_v16 = vor.u32 1.1754944e-38, %v1831_v29  ;;  %v5043_v19 = vadd.f32 %v946_v35, %v778_v9  ;;  %vm1827_vm2 = vmor %vm1825_vm0, %vm1826_vm15 }
 0x200   : > { %3289 = vpow2.f32 %v1217_v41  ;;  %v2309_v2 = vand.u32 2147483647, %v5022_v43  ;;  %v2311_v26 = vand.u32 2147483648, %v5022_v43  ;;  %v858_v50 = vadd.f32 %v4975_v58, %v857_v52 }
 0x201   : > { %v1823_v53 = vmul.f32 %v3282_v14, %v1822_v27  ;;  %3291 = vpow2.f32 %v1281_v38  ;;  %vm2305_vm3 = vweird.f32 %v5022_v43  ;;  %vm1346_vm4 = vcmp.ge.f32.partialorder %v4889_v33, 0.0 }
 0x202   : > { %v3284_v60 = vpop.eup %3283  ;;  %v780_v13 = vadd.f32 %v4975_v58, %v779_v61  ;;  %v1061_v49 = vand.u32 2147483647, %v5043_v19  ;;  %vm5067_vm6 = vcmp.eq.f32.partialorder %v2309_v2, 8.507059e+37  ;;  %v2312_v45 = vor.u32 1.1754944e-38, %v2311_v26 }
 0x203   : > { %v5040_v4 = vpop.eup %3285  ;;  %v1824_v46 = vadd.f32 %v3282_v14, %v1823_v53  ;;  %v2301_v17 = vmul.f32 %v3284_v60, %v5022_v43  ;;  %vm2306_vm5 = vweird.f32 %v3284_v60  ;;  %v5072_v62 = vadd.f32 %v1026_v34, %v858_v50 }
 0x204   : > { %v5045_v3 = vpop.eup %3287  ;;  %v5050_v1 = vadd.f32 1.0, %v5040_v4  ;;  %vm2307_vm7 = vmor %vm2305_vm3, %vm2306_vm5  ;;  %v860_v59 = vadd.f32 %v4975_v58, %v859_v12  ;;  %v1125_v47 = vsub.f32 0.0, %v1061_v49  ;;  %v5093_v7 = vadd.f32 %v948_v8, %v780_v13 }
 0x205   : > { %v1828_v15 = vsel %vm1827_vm2, %v3282_v14, %v1824_v46  ;;  %v2302_v57 = vsub.f32 1.0, %v2301_v17  ;;  %v5055_v30 = vadd.f32 1.0, %v5045_v3  ;;  %v1093_v56 = vand.u32 2147483647, %v5072_v62 }
 0x206   : > { %v1833_v18 = vsel %vm5036_vm1, %v1832_v16, %v1828_v15  ;;  %3293 = vrcp.f32 %v5050_v1  ;;  %v5065_v0 = vpop.eup %3289  ;;  %v1844_v11 = vand.u32 2147483647, %v5050_v1  ;;  %v1846_v39 = vand.u32 2147483648, %v5050_v1 }
 0x207   : > { %v2402_v55 = vmul.f32 %v4989_v28, %v1833_v18  ;;  %v2303_v31 = vmul.f32 %v3284_v60, %v2302_v57  ;;  %3295 = vrcp.f32 %v5055_v30  ;;  %v5074_v28 = vpop.eup %3291  ;;  %v5080_v37 = vadd.f32 1.0, %v5065_v0 }
 0x208   : > { %v2324_v44 = vand.u32 2147483647, %v5055_v30  ;;  %v2326_v22 = vand.u32 2147483648, %v5055_v30  ;;  %v5089_v36 = vadd.f32 1.0, %v5074_v28  ;;  %vm1840_vm8 = vweird.f32 %v5050_v1 }
 0x209   : > { %v2466_v51 = vsel %vm1314_vm14, %v1833_v18, %v2402_v55  ;;  %v2304_v10 = vadd.f32 %v3284_v60, %v2303_v31  ;;  %3297 = vrcp.f32 %v5080_v37  ;;  %vm5102_vm9 = vcmp.eq.f32.partialorder %v1844_v11, 8.507059e+37  ;;  %v1028_v18 = vpop.f32.mrf.mxu3 }
 0x20a   : > { %2530 = vst [vmem:[%s3595_s30 + $0xd8] sm:$0xff] %v2466_v51  ;;  %3299 = vrcp.f32 %v5089_v36  ;;  %v1847_v21 = vor.u32 1.1754944e-38, %v1846_v39  ;;  %vm2320_vm10 = vweird.f32 %v5055_v30  ;;  %vm5108_vm11 = vcmp.eq.f32.partialorder %v2324_v44, 8.507059e+37 }
 0x20b   : > { %v2308_v63 = vsel %vm2307_vm7, %v3284_v60, %v2304_v10  ;;  %v2327_v27 = vor.u32 1.1754944e-38, %v2326_v22  ;;  %v1859_v5 = vand.u32 2147483647, %v5080_v37  ;;  %v1861_v9 = vand.u32 2147483648, %v5080_v37 }
 0x20c   : > { %v3294_v14 = vpop.eup %3293  ;;  %v2313_v43 = vsel %vm5067_vm6, %v2312_v45, %v2308_v63  ;;  %v1219_v35 = vmul.f32 1.442695, %v1125_v47  ;;  %vm1315_vm12 = vcmp.ge.f32.partialorder %v4986_v6, 0.0  ;;  %vm1855_vm14 = vweird.f32 %v5080_v37 }
 0x20d   : > { %v3296_v23 = vpop.eup %3295  ;;  %v2434_v58 = vmul.f32 %v5015_v24, %v2313_v43  ;;  %v1836_v25 = vmul.f32 %v3294_v14, %v5050_v1  ;;  %vm1841_vm13 = vweird.f32 %v3294_v14  ;;  %v1157_v38 = vsub.f32 0.0, %v1093_v56 }
 0x20e   : > { %v2316_v29 = vmul.f32 %v3296_v23, %v5055_v30  ;;  %v1062_v60 = vand.u32 2147483647, %v5093_v7  ;;  %vm1347_vm15 = vcmp.ge.f32.partialorder %v4993_v40, 0.0  ;;  %vm2321_vm0 = vweird.f32 %v3296_v23  ;;  %vm1842_vm3 = vmor %vm1840_vm8, %vm1841_vm13 }
 0x20f   : > { %v2498_v24 = vsel %vm1346_vm4, %v2313_v43, %v2434_v58  ;;  %v1837_v41 = vsub.f32 1.0, %v1836_v25  ;;  %v3298_v20 = vpop.eup %3297  ;;  %vm2335_vm1 = vweird.f32 %v5089_v36  ;;  %v2339_v33 = vand.u32 2147483647, %v5089_v36  ;;  %vm2322_vm4 = vmor %vm2320_vm10, %vm2321_vm0 }
 0x210   : > { %2562 = vst [vmem:[%s3595_s30 + $0x1d8] sm:$0xff] %v2498_v24  ;;  %v2317_v53 = vsub.f32 1.0, %v2316_v29  ;;  %3301 = vpow2.f32 %v1219_v35  ;;  %v3300_v46 = vpop.eup %3299  ;;  %v1851_v61 = vmul.f32 %v3298_v20, %v5080_v37  ;;  %v2341_v2 = vand.u32 2147483648, %v5089_v36 }
 0x211   : > { %v1838_v16 = vmul.f32 %v3294_v14, %v1837_v41  ;;  %v1283_v26 = vmul.f32 1.442695, %v1157_v38  ;;  %vm1856_vm2 = vweird.f32 %v3298_v20  ;;  %v2331_v15 = vmul.f32 %v3300_v46, %v5089_v36 }
 0x212   : > { %v2318_v17 = vmul.f32 %v3296_v23, %v2317_v53  ;;  %v1126_v57 = vsub.f32 0.0, %v1062_v60  ;;  %v1852_v55 = vsub.f32 1.0, %v1851_v61  ;;  %v5129_v31 = vadd.f32 %v1028_v18, %v860_v59  ;;  %vm1857_vm6 = vmor %vm1855_vm14, %vm1856_vm2 }
 0x213   : > { %v1839_v50 = vadd.f32 %v3294_v14, %v1838_v16  ;;  %3303 = vpow2.f32 %v1283_v26  ;;  %v2332_v34 = vsub.f32 1.0, %v2331_v15  ;;  %vm2336_vm5 = vweird.f32 %v3300_v46 }
 0x214   : > { %v2319_v13 = vadd.f32 %v3296_v23, %v2318_v17  ;;  %v1221_v12 = vmul.f32 1.442695, %v1126_v57  ;;  %v1853_v11 = vmul.f32 %v3298_v20, %v1852_v55  ;;  %v1094_v1 = vand.u32 2147483647, %v5129_v31  ;;  %vm2337_vm8 = vmor %vm2335_vm1, %vm2336_vm5 }
 0x215   : > { %v1843_v49 = vsel %vm1842_vm3, %v3294_v14, %v1839_v50  ;;  %v2333_v30 = vmul.f32 %v3300_v46, %v2332_v34  ;;  %vm1860_vm7 = vcmp.eq.f32.partialorder %v1859_v5, 8.507059e+37  ;;  %v2342_v6 = vor.u32 1.1754944e-38, %v2341_v2 }
 0x216   : > { %v1848_v42 = vsel %vm5102_vm9, %v1847_v21, %v1843_v49  ;;  %v2323_v45 = vsel %vm2322_vm4, %v3296_v23, %v2319_v13  ;;  %v5137_v51 = vpop.eup %3301  ;;  %3305 = vpow2.f32 %v1221_v12  ;;  %v1854_v22 = vadd.f32 %v3298_v20, %v1853_v11 }
 0x217   : > { %v2403_v10 = vmul.f32 %v5040_v4, %v1848_v42  ;;  %v2328_v39 = vsel %vm5108_vm11, %v2327_v27, %v2323_v45  ;;  %v1381_v8 = vadd.f32 1.0, %v5137_v51  ;;  %v1158_v59 = vsub.f32 0.0, %v1094_v1 }
 0x218   : > { %v2435_v44 = vmul.f32 %v5045_v3, %v2328_v39  ;;  %v1862_v4 = vor.u32 1.1754944e-38, %v1861_v9  ;;  %v2334_v47 = vadd.f32 %v3300_v46, %v2333_v30  ;;  %v1858_v43 = vsel %vm1857_vm6, %v3298_v20, %v1854_v22 }
 0x219   : > { %v2467_v63 = vsel %vm1315_vm12, %v1848_v42, %v2403_v10  ;;  %v5149_v14 = vpop.eup %3303  ;;  %3307 = vrcp.f32 %v1381_v8  ;;  %vm2340_vm9 = vcmp.eq.f32.partialorder %v2339_v33, 8.507059e+37  ;;  %v1285_v40 = vmul.f32 1.442695, %v1158_v59 }
 0x21a   : > { %2531 = vst [vmem:[%s3595_s30 + $0xe0] sm:$0xff] %v2467_v63  ;;  %v2499_v3 = vsel %vm1347_vm15, %v2328_v39, %v2435_v44  ;;  %v1863_v37 = vsel %vm1860_vm7, %v1862_v4, %v1858_v43  ;;  %v2338_v56 = vsel %vm2337_vm8, %v3300_v46, %v2334_v47  ;;  %v1413_v25 = vadd.f32 1.0, %v5149_v14 }
 0x21b   : > { %2563 = vst [vmem:[%s3595_s30 + $0x1e0] sm:$0xff] %v2499_v3  ;;  %v2404_v23 = vmul.f32 %v5065_v0, %v1863_v37  ;;  %v2343_v58 = vsel %vm2340_vm9, %v2342_v6, %v2338_v56  ;;  %vm1316_vm10 = vcmp.ge.f32.partialorder %v5013_v48, 0.0  ;;  %vm1348_vm11 = vcmp.ge.f32.partialorder %v5018_v54, 0.0 }
 0x21c   : > { %v5160_v52 = vpop.eup %3305  ;;  %v2436_v36 = vmul.f32 %v5074_v28, %v2343_v58  ;;  %3309 = vrcp.f32 %v1413_v25  ;;  %v1874_v24 = vand.u32 2147483647, %v1381_v8  ;;  %v1876_v9 = vand.u32 2147483648, %v1381_v8 }
 0x21d   : > { %v2468_v21 = vsel %vm1316_vm10, %v1863_v37, %v2404_v23  ;;  %v1382_v32 = vadd.f32 1.0, %v5160_v52  ;;  %3311 = vpow2.f32 %v1285_v40  ;;  %vm1870_vm12 = vweird.f32 %v1381_v8 }
 0x21e   : > { %2532 = vst [vmem:[%s3595_s30 + $0xe8] sm:$0xff] %v2468_v21  ;;  %v2500_v29 = vsel %vm1348_vm11, %v2343_v58, %v2436_v36  ;;  %vm1875_vm14 = vcmp.eq.f32.partialorder %v1874_v24, 8.507059e+37  ;;  %v1877_v20 = vor.u32 1.1754944e-38, %v1876_v9  ;;  %v2356_v16 = vand.u32 2147483648, %v1413_v25 }
 0x21f   : > { %v3308_v0 = vpop.eup %3307  ;;  %2564 = vst [vmem:[%s3595_s30 + $0x1e8] sm:$0xff] %v2500_v29  ;;  %3313 = vrcp.f32 %v1382_v32  ;;  %v2354_v61 = vand.u32 2147483647, %v1413_v25  ;;  %vm1317_vm1 = vcmp.ge.f32.partialorder %v5043_v19, 0.0  ;;  %vm2350_vm2 = vweird.f32 %v1413_v25 }
 0x220   : > { %v1866_v27 = vmul.f32 %v3308_v0, %v1381_v8  ;;  %vm1871_vm13 = vweird.f32 %v3308_v0  ;;  %v1891_v57 = vand.u32 2147483648, %v1382_v32  ;;  %v2357_v18 = vor.u32 1.1754944e-38, %v2356_v16 }
 0x221   : > { %vm1872_vm15 = vmor %vm1870_vm12, %vm1871_vm13  ;;  %v1889_v55 = vand.u32 2147483647, %v1382_v32  ;;  %vm2355_vm5 = vcmp.eq.f32.partialorder %v2354_v61, 8.507059e+37  ;;  %vm1885_vm6 = vweird.f32 %v1382_v32  ;;  %vm1349_vm8 = vcmp.ge.f32.partialorder %v5072_v62, 0.0 }
 0x222   : > { %v1867_v5 = vsub.f32 1.0, %v1866_v27  ;;  %v3310_v41 = vpop.eup %3309  ;;  %v1892_v11 = vor.u32 1.1754944e-38, %v1891_v57  ;;  %vm1318_vm10 = vcmp.ge.f32.partialorder %v5093_v7, 0.0 }
 0x223   : > { %v5168_v48 = vpop.eup %3311  ;;  %v2346_v54 = vmul.f32 %v3310_v41, %v1413_v25  ;;  %vm2351_vm0 = vweird.f32 %v3310_v41  ;;  %vm1890_vm9 = vcmp.eq.f32.partialorder %v1889_v55, 8.507059e+37 }
 0x224   : > { %v1868_v28 = vmul.f32 %v3308_v0, %v1867_v5  ;;  %v1414_v35 = vadd.f32 1.0, %v5168_v48  ;;  %vm2352_vm3 = vmor %vm2350_vm2, %vm2351_vm0 }
 0x225   : > { %v3314_v53 = vpop.eup %3313  ;;  %v2347_v60 = vsub.f32 1.0, %v2346_v54 }
 0x226   : > { %v1869_v38 = vadd.f32 %v3308_v0, %v1868_v28  ;;  %v1881_v33 = vmul.f32 %v3314_v53, %v1382_v32  ;;  %3315 = vrcp.f32 %v1414_v35  ;;  %vm1886_vm4 = vweird.f32 %v3314_v53 }
 0x227   : > { %v2348_v17 = vmul.f32 %v3310_v41, %v2347_v60  ;;  %vm1887_vm7 = vmor %vm1885_vm6, %vm1886_vm4  ;;  %v2371_v22 = vand.u32 2147483648, %v1414_v35  ;;  %v2369_v59 = vand.u32 2147483647, %v1414_v35  ;;  %vm2365_vm12 = vweird.f32 %v1414_v35 }
 0x228   : > { %v1873_v46 = vsel %vm1872_vm15, %v3308_v0, %v1869_v38  ;;  %v1882_v26 = vsub.f32 1.0, %v1881_v33  ;;  %vm1350_vm15 = vcmp.ge.f32.partialorder %v5129_v31, 0.0 }
 0x229   : > { %v1878_v2 = vsel %vm1875_vm14, %v1877_v20, %v1873_v46  ;;  %v2349_v15 = vadd.f32 %v3310_v41, %v2348_v17  ;;  %v2372_v62 = vor.u32 1.1754944e-38, %v2371_v22  ;;  %vm2370_vm14 = vcmp.eq.f32.partialorder %v2369_v59, 8.507059e+37 }
 0x22a   : > { %v2405_v50 = vmul.f32 %v5137_v51, %v1878_v2  ;;  %v1883_v13 = vmul.f32 %v3314_v53, %v1882_v26 }
 0x22b   : > { %v2353_v34 = vsel %vm2352_vm3, %v3310_v41, %v2349_v15 }
 0x22c   : > { %v2469_v49 = vsel %vm1317_vm1, %v1878_v2, %v2405_v50  ;;  %v3316_v12 = vpop.eup %3315  ;;  %v2358_v19 = vsel %vm2355_vm5, %v2357_v18, %v2353_v34  ;;  %v1884_v42 = vadd.f32 %v3314_v53, %v1883_v13 }
 0x22d   : > { %2533 = vst [vmem:[%s3595_s30 + $0xf0] sm:$0xff] %v2469_v49  ;;  %v2437_v45 = vmul.f32 %v5149_v14, %v2358_v19  ;;  %v2361_v1 = vmul.f32 %v3316_v12, %v1414_v35  ;;  %vm2366_vm11 = vweird.f32 %v3316_v12 }
 0x22e   : > { %v1888_v51 = vsel %vm1887_vm7, %v3314_v53, %v1884_v42  ;;  %vm2367_vm13 = vmor %vm2365_vm12, %vm2366_vm11 }
 0x22f   : > { %v2501_v10 = vsel %vm1349_vm8, %v2358_v19, %v2437_v45  ;;  %v1893_v39 = vsel %vm1890_vm9, %v1892_v11, %v1888_v51  ;;  %v2362_v30 = vsub.f32 1.0, %v2361_v1 }
 0x230   : > { %2565 = vst [vmem:[%s3595_s30 + $0x1f0] sm:$0xff] %v2501_v10  ;;  %v2406_v44 = vmul.f32 %v5160_v52, %v1893_v39 }
 0x231   : > { %v2363_v8 = vmul.f32 %v3316_v12, %v2362_v30 }
 0x232   : > { %v2470_v63 = vsel %vm1318_vm10, %v1893_v39, %v2406_v44 }
 0x233   : > { %2534 = vst [vmem:[%s3595_s30 + $0xf8] sm:$0xff] %v2470_v63  ;;  %v2364_v4 = vadd.f32 %v3316_v12, %v2363_v8 }
 0x235   : > { %v2368_v47 = vsel %vm2367_vm13, %v3316_v12, %v2364_v4 }
 0x236   : > { %v2373_v14 = vsel %vm2370_vm14, %v2372_v62, %v2368_v47 }
 0x237   : > { %v2438_v3 = vmul.f32 %v5168_v48, %v2373_v14 }
 0x239   : > { %v2502_v43 = vsel %vm1350_vm15, %v2373_v14, %v2438_v3 }
 0x23a   : > { %2566 = vst [vmem:[%s3595_s30 + $0x1f8] sm:$0xff] %v2502_v43 }
 0x23b PF: > { %s13_s12 = sadd.s32 1, %s3326_s12  }
 0x23c   : > { %p10_p4 = scmp.ge.s32.totalorder %s13_s12, 6  }
 0x23e   :  { %12 = sbr.rel (!%p10_p4) target bundleno = 1 (0x1), region = 62 }

</bundles_post_ra>
